<compile_context>
chip_gen: v7x
topology: tpu7x:2x2x1
jax: 0.10.0
libtpu: 0.0.40
codegen_flags: <defaults>
</compile_context>

<pallas_src>
import jax
import jax.numpy as jnp
import numpy as np
from jax.experimental import pallas as pl
from jax.experimental.pallas import tpu as pltpu

EPS = 1e-5


def _bn_train(t, gamma, beta):
    # One-pass training-mode BatchNorm over the rows of a (rows, C) matrix:
    # biased variance via E[x^2] - mean^2, per-channel affine.
    inv_n = 1.0 / t.shape[0]
    s = jnp.sum(t, axis=0, keepdims=True)
    sq = jnp.sum(t * t, axis=0, keepdims=True)
    mean = s * inv_n
    var = jnp.maximum(sq * inv_n - mean * mean, 0.0)
    return gamma * (t - mean) * jax.lax.rsqrt(var + EPS) + beta


def bottleneck_kernel(x_ref, w1cat_ref, gcat_ref, becat_ref,
                      w2_ref, g2_ref, be2_ref,
                      w3_ref, g3_ref, be3_ref,
                      out_ref, pad_ref):
    N, H, W, Cin = x_ref.shape
    Cmid = g2_ref.shape[1]
    Cout = g3_ref.shape[1]
    NHW = N * H * W

    xm = x_ref[...].reshape(NHW, Cin)

    # ---- conv1 (1x1) + shortcut conv1_1 (1x1): ONE fused MXU matmul --------
    # (no bias adds: they cancel under training-mode BN)
    t0 = jnp.dot(xm, w1cat_ref[...], preferred_element_type=jnp.float32)
    # BN1 (columns [:Cmid]) and shortcut-BN3 (columns [Cmid:]) in one
    # statistics pass: per-column stats are independent per column.
    t0 = _bn_train(t0, gcat_ref[...], becat_ref[...])
    t1 = jnp.maximum(t0[:, :Cmid], 0.0)     # main path after ReLU
    t11 = t0[:, Cmid:]                      # shortcut path (no ReLU)

    # ---- conv2 (3x3, stride 1, pad 1) as a single im2col matmul ------------
    # Stage the ReLU output in a (H+2, W+2) scratch with a 1-wide zero halo;
    # only the halo is zeroed (not the whole buffer).
    z_row = jnp.zeros((N, 1, W + 2, Cmid), jnp.float32)
    z_col = jnp.zeros((N, H, 1, Cmid), jnp.float32)
    pad_ref[:, 0:1, :, :] = z_row
    pad_ref[:, H + 1:H + 2, :, :] = z_row
    pad_ref[:, 1:H + 1, 0:1, :] = z_col
    pad_ref[:, 1:H + 1, W + 1:W + 2, :] = z_col
    pad_ref[:, 1:H + 1, 1:W + 1, :] = t1.reshape(N, H, W, Cmid)

    # (NHW, 9*Cmid) im2col: tap order (ky, kx, ci) matches w2 reshaped rows.
    patches = [pad_ref[:, ky:ky + H, kx:kx + W, :].reshape(NHW, Cmid)
               for ky in range(3) for kx in range(3)]
    im2col = jnp.concatenate(patches, axis=1)
    t2 = jnp.dot(im2col, w2_ref[...], preferred_element_type=jnp.float32)
    t2 = jnp.maximum(_bn_train(t2, g2_ref[...], be2_ref[...]), 0.0)

    # ---- conv3 (1x1) + BN3 (its own batch stats), add shortcut -------------
    t3 = jnp.dot(t2, w3_ref[...], preferred_element_type=jnp.float32)
    t3 = _bn_train(t3, g3_ref[...], be3_ref[...])

    out_ref[...] = t3 + t11


def bottleneck_n(x, p):
    N, H, W, Cin = x.shape
    Cmid = p["w1"].shape[1]
    Cout = p["w3"].shape[1]

    # Parameter preprocessing (done once, outside the kernel):
    #  * conv1 / conv1_1 weights fused column-wise -> one matmul in-kernel,
    #  * matching BN affine params concatenated,
    #  * 3x3 weight reshaped to (9*Cmid, Cmid) for the im2col matmul,
    #  * conv biases dropped (cancelled by training-mode BN mean subtraction).
    w1cat = jnp.concatenate([p["w1"], p["w11"]], axis=1)      # (Cin, Cmid+Cout)
    gcat = jnp.concatenate([p["g1"], p["g3"]], axis=1)        # (1, Cmid+Cout)
    becat = jnp.concatenate([p["be1"], p["be3"]], axis=1)     # (1, Cmid+Cout)
    w2m = p["w2"].reshape(9 * Cmid, Cmid)                     # rows = (ky,kx,ci)

    args = (x, w1cat, gcat, becat, w2m,
            p["g2"], p["be2"], p["w3"], p["g3"], p["be3"])

    vmem = pl.BlockSpec(memory_space=pltpu.MemorySpace.VMEM)
    out2d = pl.pallas_call(
        bottleneck_kernel,
        out_shape=jax.ShapeDtypeStruct((N * H * W, Cout), jnp.float32),
        in_specs=[vmem] * len(args),
        out_specs=vmem,
        scratch_shapes=[pltpu.VMEM((N, H + 2, W + 2, Cmid), jnp.float32)],
        compiler_params=pltpu.CompilerParams(vmem_limit_bytes=32 * 1024 * 1024),
    )(*args)
    # Free layout plumbing in the wrapper (channels-last data, contiguous).
    return out2d.reshape(N, H, W, Cout)


def reference(x, p):
    """Pure-JAX reference of the PyTorch forward (training-mode BN)."""
    hi = jax.lax.Precision.HIGHEST

    def conv1x1(t, w, b):
        return jnp.einsum("nhwc,cd->nhwd", t, w, precision=hi) + b[0]

    def bn(t, g, be):
        mean = jnp.mean(t, axis=(0, 1, 2), keepdims=True)
        var = jnp.mean((t - mean) ** 2, axis=(0, 1, 2), keepdims=True)
        return g[0] * (t - mean) / jnp.sqrt(var + EPS) + be[0]

    t = conv1x1(x, p["w1"], p["b1"])
    t = jax.nn.relu(bn(t, p["g1"], p["be1"]))
    t = jax.lax.conv_general_dilated(
        t, p["w2"], (1, 1), "SAME",
        dimension_numbers=("NHWC", "HWIO", "NHWC"), precision=hi) + p["b2"][0]
    t = jax.nn.relu(bn(t, p["g2"], p["be2"]))
    t = conv1x1(t, p["w3"], p["b3"])
    t = bn(t, p["g3"], p["be3"])
    s = conv1x1(x, p["w11"], p["b11"])
    s = bn(s, p["g3"], p["be3"])
    return t + s


if __name__ == "__main__":
    # Small shapes consistent with the module: batch=2, in_ch=4, mid_ch=4,
    # out_ch=8, spatial 16x16 (equivalent to NCHW input [2, 4, 16, 16]).
    N, H, W = 2, 16, 16
    Cin, Cmid, Cout = 4, 4, 8

    key = jax.random.PRNGKey(0)
    ks = jax.random.split(key, 16)

    def nrm(k, shape, scale=0.1):
        return scale * jax.random.normal(k, shape, jnp.float32)

    params = dict(
        w1=nrm(ks[0], (Cin, Cmid)),        b1=nrm(ks[1], (1, Cmid)),
        g1=1.0 + nrm(ks[2], (1, Cmid)),    be1=nrm(ks[3], (1, Cmid)),
        w2=nrm(ks[4], (3, 3, Cmid, Cmid)), b2=nrm(ks[5], (1, Cmid)),
        g2=1.0 + nrm(ks[6], (1, Cmid)),    be2=nrm(ks[7], (1, Cmid)),
        w3=nrm(ks[8], (Cmid, Cout)),       b3=nrm(ks[9], (1, Cout)),
        g3=1.0 + nrm(ks[10], (1, Cout)),   be3=nrm(ks[11], (1, Cout)),
        w11=nrm(ks[12], (Cin, Cout)),      b11=nrm(ks[13], (1, Cout)),
    )
    x = jax.random.normal(ks[14], (N, H, W, Cin), jnp.float32)

    out = jax.block_until_ready(bottleneck_n(x, params))
    ref = jax.block_until_ready(reference(x, params))

    np.testing.assert_allclose(np.asarray(out), np.asarray(ref),
                               rtol=5e-3, atol=5e-3)
    print("KERNEL_OK")
</pallas_src>

<mosaic_0001>
module attributes {stable_mosaic.version = 11 : i64} {
  func.func @bottleneck_kernel(%arg0: memref<2x16x16x4xf32, #tpu.memory_space<vmem>>, %arg1: memref<4x12xf32, #tpu.memory_space<vmem>>, %arg2: memref<1x12xf32, #tpu.memory_space<vmem>>, %arg3: memref<1x12xf32, #tpu.memory_space<vmem>>, %arg4: memref<36x4xf32, #tpu.memory_space<vmem>>, %arg5: memref<1x4xf32, #tpu.memory_space<vmem>>, %arg6: memref<1x4xf32, #tpu.memory_space<vmem>>, %arg7: memref<4x8xf32, #tpu.memory_space<vmem>>, %arg8: memref<1x8xf32, #tpu.memory_space<vmem>>, %arg9: memref<1x8xf32, #tpu.memory_space<vmem>>, %arg10: memref<512x8xf32, #tpu.memory_space<vmem>>, %arg11: memref<2x18x18x4xf32, #tpu.memory_space<vmem>>) attributes {dimension_semantics = [], scalar_prefetch = 0 : i64, scratch_operands = 1 : i64, tpu.core_type = #tpu.core_type<tc>} {
    %c0 = arith.constant 0 : index
    %c0_0 = arith.constant 0 : index
    %c0_1 = arith.constant 0 : index
    %c0_2 = arith.constant 0 : index
    %0 = vector.load %arg0[%c0, %c0_0, %c0_1, %c0_2] : memref<2x16x16x4xf32, #tpu.memory_space<vmem>>, vector<2x16x16x4xf32>
    %1 = vector.shape_cast %0 : vector<2x16x16x4xf32> to vector<512x4xf32>
    %c0_3 = arith.constant 0 : index
    %c0_4 = arith.constant 0 : index
    %2 = vector.load %arg1[%c0_3, %c0_4] : memref<4x12xf32, #tpu.memory_space<vmem>>, vector<4x12xf32>
    %cst = arith.constant dense<0.000000e+00> : vector<512x12xf32>
    %3 = tpu.matmul %1, %2, %cst {dimension_numbers = #tpu.dot_dimension_numbers<[1], [0], [0], [1], [0, 0, 1, 1], [], []>} : vector<512x4xf32>, vector<4x12xf32>, vector<512x12xf32> -> vector<512x12xf32>
    %c0_5 = arith.constant 0 : index
    %c0_6 = arith.constant 0 : index
    %4 = vector.load %arg2[%c0_5, %c0_6] : memref<1x12xf32, #tpu.memory_space<vmem>>, vector<1x12xf32>
    %c0_7 = arith.constant 0 : index
    %c0_8 = arith.constant 0 : index
    %5 = vector.load %arg3[%c0_7, %c0_8] : memref<1x12xf32, #tpu.memory_space<vmem>>, vector<1x12xf32>
    %cst_9 = arith.constant dense<0.000000e+00> : vector<12xf32>
    %6 = vector.multi_reduction <add>, %3, %cst_9 [0] : vector<512x12xf32> to vector<12xf32>
    %7 = vector.shape_cast %6 : vector<12xf32> to vector<1x12xf32>
    %8 = arith.mulf %3, %3 : vector<512x12xf32>
    %cst_10 = arith.constant dense<0.000000e+00> : vector<12xf32>
    %9 = vector.multi_reduction <add>, %8, %cst_10 [0] : vector<512x12xf32> to vector<12xf32>
    %10 = vector.shape_cast %9 : vector<12xf32> to vector<1x12xf32>
    %cst_11 = arith.constant 0.001953125 : f32
    %11 = vector.broadcast %cst_11 : f32 to vector<1x12xf32>
    %12 = arith.mulf %7, %11 : vector<1x12xf32>
    %cst_12 = arith.constant 0.001953125 : f32
    %13 = vector.broadcast %cst_12 : f32 to vector<1x12xf32>
    %14 = arith.mulf %10, %13 : vector<1x12xf32>
    %15 = arith.mulf %12, %12 : vector<1x12xf32>
    %16 = arith.subf %14, %15 : vector<1x12xf32>
    %cst_13 = arith.constant 0.000000e+00 : f32
    %17 = vector.broadcast %cst_13 : f32 to vector<1x12xf32>
    %18 = arith.maximumf %16, %17 : vector<1x12xf32>
    %19 = vector.broadcast %12 : vector<1x12xf32> to vector<512x12xf32>
    %20 = arith.subf %3, %19 : vector<512x12xf32>
    %21 = vector.broadcast %4 : vector<1x12xf32> to vector<512x12xf32>
    %22 = arith.mulf %21, %20 : vector<512x12xf32>
    %cst_14 = arith.constant 9.99999974E-6 : f32
    %23 = vector.broadcast %cst_14 : f32 to vector<1x12xf32>
    %24 = arith.addf %18, %23 : vector<1x12xf32>
    %25 = math.rsqrt %24 : vector<1x12xf32>
    %26 = vector.broadcast %25 : vector<1x12xf32> to vector<512x12xf32>
    %27 = arith.mulf %22, %26 : vector<512x12xf32>
    %28 = vector.broadcast %5 : vector<1x12xf32> to vector<512x12xf32>
    %29 = arith.addf %27, %28 : vector<512x12xf32>
    %30 = vector.extract_strided_slice %29 {offsets = [0, 0], sizes = [512, 4], strides = [1, 1]} : vector<512x12xf32> to vector<512x4xf32>
    %cst_15 = arith.constant 0.000000e+00 : f32
    %31 = vector.broadcast %cst_15 : f32 to vector<512x4xf32>
    %32 = arith.maximumf %30, %31 : vector<512x4xf32>
    %33 = vector.extract_strided_slice %29 {offsets = [0, 4], sizes = [512, 8], strides = [1, 1]} : vector<512x12xf32> to vector<512x8xf32>
    %cst_16 = arith.constant 0.000000e+00 : f32
    %34 = vector.broadcast %cst_16 : f32 to vector<2x1x18x4xf32>
    %cst_17 = arith.constant 0.000000e+00 : f32
    %35 = vector.broadcast %cst_17 : f32 to vector<2x16x1x4xf32>
    %c0_18 = arith.constant 0 : index
    %c0_19 = arith.constant 0 : index
    %c0_20 = arith.constant 0 : index
    %c0_21 = arith.constant 0 : index
    %36 = vector.load %arg11[%c0_18, %c0_19, %c0_20, %c0_21] : memref<2x18x18x4xf32, #tpu.memory_space<vmem>>, vector<2x1x18x4xf32>
    tpu.vector_store %arg11[%c0_18, %c0_19, %c0_20, %c0_21], %34 {strides = array<i32>} : memref<2x18x18x4xf32, #tpu.memory_space<vmem>>, vector<2x1x18x4xf32>,
    %c0_22 = arith.constant 0 : index
    %c17 = arith.constant 17 : index
    %c0_23 = arith.constant 0 : index
    %c0_24 = arith.constant 0 : index
    %37 = vector.load %arg11[%c0_22, %c17, %c0_23, %c0_24] : memref<2x18x18x4xf32, #tpu.memory_space<vmem>>, vector<2x1x18x4xf32>
    tpu.vector_store %arg11[%c0_22, %c17, %c0_23, %c0_24], %34 {strides = array<i32>} : memref<2x18x18x4xf32, #tpu.memory_space<vmem>>, vector<2x1x18x4xf32>,
    %c0_25 = arith.constant 0 : index
    %c1 = arith.constant 1 : index
    %c0_26 = arith.constant 0 : index
    %c0_27 = arith.constant 0 : index
    %38 = vector.load %arg11[%c0_25, %c1, %c0_26, %c0_27] : memref<2x18x18x4xf32, #tpu.memory_space<vmem>>, vector<2x16x1x4xf32>
    tpu.vector_store %arg11[%c0_25, %c1, %c0_26, %c0_27], %35 {strides = array<i32>} : memref<2x18x18x4xf32, #tpu.memory_space<vmem>>, vector<2x16x1x4xf32>,
    %c0_28 = arith.constant 0 : index
    %c1_29 = arith.constant 1 : index
    %c17_30 = arith.constant 17 : index
    %c0_31 = arith.constant 0 : index
    %39 = vector.load %arg11[%c0_28, %c1_29, %c17_30, %c0_31] : memref<2x18x18x4xf32, #tpu.memory_space<vmem>>, vector<2x16x1x4xf32>
    tpu.vector_store %arg11[%c0_28, %c1_29, %c17_30, %c0_31], %35 {strides = array<i32>} : memref<2x18x18x4xf32, #tpu.memory_space<vmem>>, vector<2x16x1x4xf32>,
    %40 = vector.shape_cast %32 : vector<512x4xf32> to vector<2x16x16x4xf32>
    %c0_32 = arith.constant 0 : index
    %c1_33 = arith.constant 1 : index
    %c1_34 = arith.constant 1 : index
    %c0_35 = arith.constant 0 : index
    %41 = vector.load %arg11[%c0_32, %c1_33, %c1_34, %c0_35] : memref<2x18x18x4xf32, #tpu.memory_space<vmem>>, vector<2x16x16x4xf32>
    tpu.vector_store %arg11[%c0_32, %c1_33, %c1_34, %c0_35], %40 {strides = array<i32>} : memref<2x18x18x4xf32, #tpu.memory_space<vmem>>, vector<2x16x16x4xf32>,
    %c0_36 = arith.constant 0 : index
    %c0_37 = arith.constant 0 : index
    %c0_38 = arith.constant 0 : index
    %c0_39 = arith.constant 0 : index
    %42 = vector.load %arg11[%c0_36, %c0_37, %c0_38, %c0_39] : memref<2x18x18x4xf32, #tpu.memory_space<vmem>>, vector<2x16x16x4xf32>
    %43 = vector.shape_cast %42 : vector<2x16x16x4xf32> to vector<512x4xf32>
    %c0_40 = arith.constant 0 : index
    %c0_41 = arith.constant 0 : index
    %c1_42 = arith.constant 1 : index
    %c0_43 = arith.constant 0 : index
    %44 = vector.load %arg11[%c0_40, %c0_41, %c1_42, %c0_43] : memref<2x18x18x4xf32, #tpu.memory_space<vmem>>, vector<2x16x16x4xf32>
    %45 = vector.shape_cast %44 : vector<2x16x16x4xf32> to vector<512x4xf32>
    %c0_44 = arith.constant 0 : index
    %c0_45 = arith.constant 0 : index
    %c2 = arith.constant 2 : index
    %c0_46 = arith.constant 0 : index
    %46 = vector.load %arg11[%c0_44, %c0_45, %c2, %c0_46] : memref<2x18x18x4xf32, #tpu.memory_space<vmem>>, vector<2x16x16x4xf32>
    %47 = vector.shape_cast %46 : vector<2x16x16x4xf32> to vector<512x4xf32>
    %c0_47 = arith.constant 0 : index
    %c1_48 = arith.constant 1 : index
    %c0_49 = arith.constant 0 : index
    %c0_50 = arith.constant 0 : index
    %48 = vector.load %arg11[%c0_47, %c1_48, %c0_49, %c0_50] : memref<2x18x18x4xf32, #tpu.memory_space<vmem>>, vector<2x16x16x4xf32>
    %49 = vector.shape_cast %48 : vector<2x16x16x4xf32> to vector<512x4xf32>
    %c0_51 = arith.constant 0 : index
    %c1_52 = arith.constant 1 : index
    %c1_53 = arith.constant 1 : index
    %c0_54 = arith.constant 0 : index
    %50 = vector.load %arg11[%c0_51, %c1_52, %c1_53, %c0_54] : memref<2x18x18x4xf32, #tpu.memory_space<vmem>>, vector<2x16x16x4xf32>
    %51 = vector.shape_cast %50 : vector<2x16x16x4xf32> to vector<512x4xf32>
    %c0_55 = arith.constant 0 : index
    %c1_56 = arith.constant 1 : index
    %c2_57 = arith.constant 2 : index
    %c0_58 = arith.constant 0 : index
    %52 = vector.load %arg11[%c0_55, %c1_56, %c2_57, %c0_58] : memref<2x18x18x4xf32, #tpu.memory_space<vmem>>, vector<2x16x16x4xf32>
    %53 = vector.shape_cast %52 : vector<2x16x16x4xf32> to vector<512x4xf32>
    %c0_59 = arith.constant 0 : index
    %c2_60 = arith.constant 2 : index
    %c0_61 = arith.constant 0 : index
    %c0_62 = arith.constant 0 : index
    %54 = vector.load %arg11[%c0_59, %c2_60, %c0_61, %c0_62] : memref<2x18x18x4xf32, #tpu.memory_space<vmem>>, vector<2x16x16x4xf32>
    %55 = vector.shape_cast %54 : vector<2x16x16x4xf32> to vector<512x4xf32>
    %c0_63 = arith.constant 0 : index
    %c2_64 = arith.constant 2 : index
    %c1_65 = arith.constant 1 : index
    %c0_66 = arith.constant 0 : index
    %56 = vector.load %arg11[%c0_63, %c2_64, %c1_65, %c0_66] : memref<2x18x18x4xf32, #tpu.memory_space<vmem>>, vector<2x16x16x4xf32>
    %57 = vector.shape_cast %56 : vector<2x16x16x4xf32> to vector<512x4xf32>
    %c0_67 = arith.constant 0 : index
    %c2_68 = arith.constant 2 : index
    %c2_69 = arith.constant 2 : index
    %c0_70 = arith.constant 0 : index
    %58 = vector.load %arg11[%c0_67, %c2_68, %c2_69, %c0_70] : memref<2x18x18x4xf32, #tpu.memory_space<vmem>>, vector<2x16x16x4xf32>
    %59 = vector.shape_cast %58 : vector<2x16x16x4xf32> to vector<512x4xf32>
    %60 = tpu.concatenate %43, %45, %47, %49, %51, %53, %55, %57, %59 in 1 : vector<512x4xf32>, vector<512x4xf32>, vector<512x4xf32>, vector<512x4xf32>, vector<512x4xf32>, vector<512x4xf32>, vector<512x4xf32>, vector<512x4xf32>, vector<512x4xf32> -> vector<512x36xf32>
    %c0_71 = arith.constant 0 : index
    %c0_72 = arith.constant 0 : index
    %61 = vector.load %arg4[%c0_71, %c0_72] : memref<36x4xf32, #tpu.memory_space<vmem>>, vector<36x4xf32>
    %cst_73 = arith.constant dense<0.000000e+00> : vector<512x4xf32>
    %62 = tpu.matmul %60, %61, %cst_73 {dimension_numbers = #tpu.dot_dimension_numbers<[1], [0], [0], [1], [0, 0, 1, 1], [], []>} : vector<512x36xf32>, vector<36x4xf32>, vector<512x4xf32> -> vector<512x4xf32>
    %c0_74 = arith.constant 0 : index
    %c0_75 = arith.constant 0 : index
    %63 = vector.load %arg5[%c0_74, %c0_75] : memref<1x4xf32, #tpu.memory_space<vmem>>, vector<1x4xf32>
    %c0_76 = arith.constant 0 : index
    %c0_77 = arith.constant 0 : index
    %64 = vector.load %arg6[%c0_76, %c0_77] : memref<1x4xf32, #tpu.memory_space<vmem>>, vector<1x4xf32>
    %cst_78 = arith.constant dense<0.000000e+00> : vector<4xf32>
    %65 = vector.multi_reduction <add>, %62, %cst_78 [0] : vector<512x4xf32> to vector<4xf32>
    %66 = vector.shape_cast %65 : vector<4xf32> to vector<1x4xf32>
    %67 = arith.mulf %62, %62 : vector<512x4xf32>
    %cst_79 = arith.constant dense<0.000000e+00> : vector<4xf32>
    %68 = vector.multi_reduction <add>, %67, %cst_79 [0] : vector<512x4xf32> to vector<4xf32>
    %69 = vector.shape_cast %68 : vector<4xf32> to vector<1x4xf32>
    %cst_80 = arith.constant 0.001953125 : f32
    %70 = vector.broadcast %cst_80 : f32 to vector<1x4xf32>
    %71 = arith.mulf %66, %70 : vector<1x4xf32>
    %cst_81 = arith.constant 0.001953125 : f32
    %72 = vector.broadcast %cst_81 : f32 to vector<1x4xf32>
    %73 = arith.mulf %69, %72 : vector<1x4xf32>
    %74 = arith.mulf %71, %71 : vector<1x4xf32>
    %75 = arith.subf %73, %74 : vector<1x4xf32>
    %cst_82 = arith.constant 0.000000e+00 : f32
    %76 = vector.broadcast %cst_82 : f32 to vector<1x4xf32>
    %77 = arith.maximumf %75, %76 : vector<1x4xf32>
    %78 = vector.broadcast %71 : vector<1x4xf32> to vector<512x4xf32>
    %79 = arith.subf %62, %78 : vector<512x4xf32>
    %80 = vector.broadcast %63 : vector<1x4xf32> to vector<512x4xf32>
    %81 = arith.mulf %80, %79 : vector<512x4xf32>
    %cst_83 = arith.constant 9.99999974E-6 : f32
    %82 = vector.broadcast %cst_83 : f32 to vector<1x4xf32>
    %83 = arith.addf %77, %82 : vector<1x4xf32>
    %84 = math.rsqrt %83 : vector<1x4xf32>
    %85 = vector.broadcast %84 : vector<1x4xf32> to vector<512x4xf32>
    %86 = arith.mulf %81, %85 : vector<512x4xf32>
    %87 = vector.broadcast %64 : vector<1x4xf32> to vector<512x4xf32>
    %88 = arith.addf %86, %87 : vector<512x4xf32>
    %cst_84 = arith.constant 0.000000e+00 : f32
    %89 = vector.broadcast %cst_84 : f32 to vector<512x4xf32>
    %90 = arith.maximumf %88, %89 : vector<512x4xf32>
    %c0_85 = arith.constant 0 : index
    %c0_86 = arith.constant 0 : index
    %91 = vector.load %arg7[%c0_85, %c0_86] : memref<4x8xf32, #tpu.memory_space<vmem>>, vector<4x8xf32>
    %cst_87 = arith.constant dense<0.000000e+00> : vector<512x8xf32>
    %92 = tpu.matmul %90, %91, %cst_87 {dimension_numbers = #tpu.dot_dimension_numbers<[1], [0], [0], [1], [0, 0, 1, 1], [], []>} : vector<512x4xf32>, vector<4x8xf32>, vector<512x8xf32> -> vector<512x8xf32>
    %c0_88 = arith.constant 0 : index
    %c0_89 = arith.constant 0 : index
    %93 = vector.load %arg8[%c0_88, %c0_89] : memref<1x8xf32, #tpu.memory_space<vmem>>, vector<1x8xf32>
    %c0_90 = arith.constant 0 : index
    %c0_91 = arith.constant 0 : index
    %94 = vector.load %arg9[%c0_90, %c0_91] : memref<1x8xf32, #tpu.memory_space<vmem>>, vector<1x8xf32>
    %cst_92 = arith.constant dense<0.000000e+00> : vector<8xf32>
    %95 = vector.multi_reduction <add>, %92, %cst_92 [0] : vector<512x8xf32> to vector<8xf32>
    %96 = vector.shape_cast %95 : vector<8xf32> to vector<1x8xf32>
    %97 = arith.mulf %92, %92 : vector<512x8xf32>
    %cst_93 = arith.constant dense<0.000000e+00> : vector<8xf32>
    %98 = vector.multi_reduction <add>, %97, %cst_93 [0] : vector<512x8xf32> to vector<8xf32>
    %99 = vector.shape_cast %98 : vector<8xf32> to vector<1x8xf32>
    %cst_94 = arith.constant 0.001953125 : f32
    %100 = vector.broadcast %cst_94 : f32 to vector<1x8xf32>
    %101 = arith.mulf %96, %100 : vector<1x8xf32>
    %cst_95 = arith.constant 0.001953125 : f32
    %102 = vector.broadcast %cst_95 : f32 to vector<1x8xf32>
    %103 = arith.mulf %99, %102 : vector<1x8xf32>
    %104 = arith.mulf %101, %101 : vector<1x8xf32>
    %105 = arith.subf %103, %104 : vector<1x8xf32>
    %cst_96 = arith.constant 0.000000e+00 : f32
    %106 = vector.broadcast %cst_96 : f32 to vector<1x8xf32>
    %107 = arith.maximumf %105, %106 : vector<1x8xf32>
    %108 = vector.broadcast %101 : vector<1x8xf32> to vector<512x8xf32>
    %109 = arith.subf %92, %108 : vector<512x8xf32>
    %110 = vector.broadcast %93 : vector<1x8xf32> to vector<512x8xf32>
    %111 = arith.mulf %110, %109 : vector<512x8xf32>
    %cst_97 = arith.constant 9.99999974E-6 : f32
    %112 = vector.broadcast %cst_97 : f32 to vector<1x8xf32>
    %113 = arith.addf %107, %112 : vector<1x8xf32>
    %114 = math.rsqrt %113 : vector<1x8xf32>
    %115 = vector.broadcast %114 : vector<1x8xf32> to vector<512x8xf32>
    %116 = arith.mulf %111, %115 : vector<512x8xf32>
    %117 = vector.broadcast %94 : vector<1x8xf32> to vector<512x8xf32>
    %118 = arith.addf %116, %117 : vector<512x8xf32>
    %119 = arith.addf %118, %33 : vector<512x8xf32>
    %c0_98 = arith.constant 0 : index
    %c0_99 = arith.constant 0 : index
    %120 = vector.load %arg10[%c0_98, %c0_99] : memref<512x8xf32, #tpu.memory_space<vmem>>, vector<512x8xf32>
    tpu.vector_store %arg10[%c0_98, %c0_99], %119 {strides = array<i32>} : memref<512x8xf32, #tpu.memory_space<vmem>>, vector<512x8xf32>,
    return
  }
}

</mosaic_0001>

<bundles_post_ra>
// kernel: tpu_custom_call.1
= control target key start
LH: loop header
LB: loop body
LE: loop exit
PB: predicated region body
PF: predicated region fallthrough
CT: control target
= control target key end

     0   :  { %vm293_vm0 = vcmask 1043456   ;;  %vm100_vm1 = vcmask 31744   ;;  %vm684_vm2 = vcmask 97280   ;;  %vm1356_vm3 = vcmask 25600   ;;  %s8227_s17 = smov 8   ;;  %s8230_s21 = smov 20   ;;  %s15712_s1 = inlined_call_operand.vmem [shape: f32[4,12], index: 1, kind: input, shape index: {}]   ;;  %s15713_s0 = inlined_call_operand.vmem [shape: f32[2,16,16,4], index: 0, kind: input, shape index: {}]   ;;  %s15714_s2 = inlined_call_operand.vmem [shape: f32[1,12], index: 2, kind: input, shape index: {}]   ;;  %s15715_s3 = inlined_call_operand.vmem [shape: f32[1,12], index: 3, kind: input, shape index: {}]   ;;  %s15716_s4 = inlined_call_operand.vmem [shape: f32[36,4], index: 4, kind: input, shape index: {}]   ;;  %s15717_s7 = inlined_call_operand.vmem [shape: f32[4,8], index: 7, kind: input, shape index: {}]   ;;  %s15718_s5 = inlined_call_operand.vmem [shape: f32[1,4], index: 5, kind: input, shape index: {}]   ;;  %s15719_s6 = inlined_call_operand.vmem [shape: f32[1,4], index: 6, kind: input, shape index: {}]   ;;  %s15720_s8 = inlined_call_operand.vmem [shape: f32[1,8], index: 8, kind: input, shape index: {}]   ;;  %s15721_s9 = inlined_call_operand.vmem [shape: f32[1,8], index: 9, kind: input, shape index: {}]   ;;  %s15722_s10 = inlined_call_operand.vmem [shape: f32[512,8], index: 10, kind: output, shape index: {}]  }
   0x1   :  { %v99_v0 = vld [vmem:[%s15712_s1] sm:$0xf]  ;;  %v36_v2 = vld [vmem:[%s15713_s0 + $0x8] sm:$0xff]  ;;  %v37_v3 = vld [vmem:[%s15713_s0 + $0x10] sm:$0xff]  ;;  %vm1369_vm4 = vcmask 24576   ;;  %s8229_s1 = smov 16  }
   0x2   :  { %v35_v1 = vld [vmem:[%s15713_s0] sm:$0xff]  ;;  %7874 = vmatprep.subr.msk.mxu0 %vm293_vm0, %v99_v0  ;;  %8184 = vmatprep.subr.msk.mxu1 %vm293_vm0, %v99_v0  ;;  %v38_v4 = vld [vmem:[%s15713_s0 + $0x18] sm:$0xff]  ;;  %v40_v6 = vld [vmem:[%s15713_s0 + $0x28] sm:$0xff]  ;;  %s8231_s26 = smov 24   ;;  %s8232_s13 = smov 28   ;;  %vm4187_vm5 = vcmask 64512  }
   0x3   :  { %7876 = vmatprep.mubr.msk.f32.mxu0 %vm100_vm1, %v35_v1  ;;  %7875 = vmatpush3.msk.msra.mxu0 %vm293_vm0, %v99_v0  ;;  %v39_v5 = vld [vmem:[%s15713_s0 + $0x20] sm:$0xff]  ;;  %v41_v7 = vld [vmem:[%s15713_s0 + $0x30] sm:$0xff]  ;;  %v68_v9 = vld [vmem:[%s15713_s0 + $0x108] sm:$0xff]  ;;  %s8233_s14 = smov 32   ;;  %vm4316_vm6 = vcmask 130048   ;;  %vm4381_vm7 = vcmask 162816  }
   0x4   :  { %7877 = vmatmul.mubr.msk.f32.vlgmr.msra.gmra.mrb[0].mxu0 %vm100_vm1, %v36_v2  ;;  %8185 = vmatpush3.msk.msra.mxu1 %vm293_vm0, %v99_v0  ;;  %v67_v8 = vld [vmem:[%s15713_s0 + $0x100] sm:$0xff]  ;;  %v69_v10 = vld [vmem:[%s15713_s0 + $0x110] sm:$0xff]  ;;  %v42_v11 = vld [vmem:[%s15713_s0 + $0x38] sm:$0xff]  ;;  %vm4511_vm8 = vcmask 228352   ;;  %vm4446_vm9 = vcmask 195584   ;;  %vm4576_vm10 = vcmask 261120  }
   0x5   :  { %7879 = vmatprep.mubr.msk.f32.mxu0 %vm100_vm1, %v37_v3  ;;  %7924 = vmatprep.mubr.msk.f32.mxu1 %vm100_vm1, %v67_v8  ;;  %v43_v12 = vld [vmem:[%s15713_s0 + $0x40] sm:$0xff]  ;;  %v70_v13 = vld [vmem:[%s15713_s0 + $0x118] sm:$0xff]  ;;  %v44_v15 = vld [vmem:[%s15713_s0 + $0x48] sm:$0xff]  ;;  %vm4646_vm11 = vcmask 293888  }
   0x6   :  { %7925 = vmatmul.mubr.msk.f32.vlgmr.msra.gmra.mrb[0].mxu1 %vm100_vm1, %v68_v9  ;;  %v71_v14 = vld [vmem:[%s15713_s0 + $0x120] sm:$0xff]  ;;  %v45_v16 = vld [vmem:[%s15713_s0 + $0x50] sm:$0xff]  ;;  %v72_v17 = vld [vmem:[%s15713_s0 + $0x128] sm:$0xff] }
   0x7   :  { %7927 = vmatprep.mubr.msk.f32.mxu1 %vm100_vm1, %v69_v10  ;;  %v73_v18 = vld [vmem:[%s15713_s0 + $0x130] sm:$0xff]  ;;  %v46_v19 = vld [vmem:[%s15713_s0 + $0x58] sm:$0xff]  ;;  %v47_v20 = vld [vmem:[%s15713_s0 + $0x60] sm:$0xff] }
   0x8   :  { %7880 = vmatmul.mubr.msk.f32.gmra.mrb[2].mxu0 %vm100_vm1, %v38_v4  ;;  %v74_v21 = vld [vmem:[%s15713_s0 + $0x138] sm:$0xff]  ;;  %v75_v22 = vld [vmem:[%s15713_s0 + $0x140] sm:$0xff]  ;;  %v48_v23 = vld [vmem:[%s15713_s0 + $0x68] sm:$0xff] }
   0x9   :  { %7882 = vmatprep.mubr.msk.f32.mxu0 %vm100_vm1, %v39_v5  ;;  %v49_v24 = vld [vmem:[%s15713_s0 + $0x70] sm:$0xff]  ;;  %v76_v25 = vld [vmem:[%s15713_s0 + $0x148] sm:$0xff]  ;;  %v50_v27 = vld [vmem:[%s15713_s0 + $0x78] sm:$0xff] }
   0xa   :  { %7928 = vmatmul.mubr.msk.f32.gmra.mrb[2].mxu1 %vm100_vm1, %v70_v13  ;;  %v77_v26 = vld [vmem:[%s15713_s0 + $0x150] sm:$0xff]  ;;  %v51_v28 = vld [vmem:[%s15713_s0 + $0x80] sm:$0xff]  ;;  %v78_v29 = vld [vmem:[%s15713_s0 + $0x158] sm:$0xff] }
   0xb   :  { %7930 = vmatprep.mubr.msk.f32.mxu1 %vm100_vm1, %v71_v14  ;;  %v79_v30 = vld [vmem:[%s15713_s0 + $0x160] sm:$0xff]  ;;  %v52_v31 = vld [vmem:[%s15713_s0 + $0x88] sm:$0xff]  ;;  %v53_v32 = vld [vmem:[%s15713_s0 + $0x90] sm:$0xff] }
   0xc   :  { %7883 = vmatmul.mubr.msk.f32.gmra.mrb[4].mxu0 %vm100_vm1, %v40_v6  ;;  %v80_v33 = vld [vmem:[%s15713_s0 + $0x168] sm:$0xff]  ;;  %v81_v34 = vld [vmem:[%s15713_s0 + $0x170] sm:$0xff]  ;;  %v54_v35 = vld [vmem:[%s15713_s0 + $0x98] sm:$0xff] }
   0xd   :  { %7885 = vmatprep.mubr.msk.f32.mxu0 %vm100_vm1, %v41_v7  ;;  %v55_v36 = vld [vmem:[%s15713_s0 + $0xa0] sm:$0xff]  ;;  %v82_v37 = vld [vmem:[%s15713_s0 + $0x178] sm:$0xff]  ;;  %v56_v39 = vld [vmem:[%s15713_s0 + $0xa8] sm:$0xff] }
   0xe   :  { %7931 = vmatmul.mubr.msk.f32.gmra.mrb[4].mxu1 %vm100_vm1, %v72_v17  ;;  %v83_v38 = vld [vmem:[%s15713_s0 + $0x180] sm:$0xff]  ;;  %v57_v40 = vld [vmem:[%s15713_s0 + $0xb0] sm:$0xff]  ;;  %v84_v41 = vld [vmem:[%s15713_s0 + $0x188] sm:$0xff] }
   0xf   :  { %7933 = vmatprep.mubr.msk.f32.mxu1 %vm100_vm1, %v73_v18  ;;  %v85_v42 = vld [vmem:[%s15713_s0 + $0x190] sm:$0xff]  ;;  %v58_v43 = vld [vmem:[%s15713_s0 + $0xb8] sm:$0xff]  ;;  %v59_v44 = vld [vmem:[%s15713_s0 + $0xc0] sm:$0xff] }
  0x10   :  { %7886 = vmatmul.mubr.msk.f32.gmra.mrb[6].mxu0 %vm100_vm1, %v42_v11  ;;  %v86_v45 = vld [vmem:[%s15713_s0 + $0x198] sm:$0xff]  ;;  %v87_v46 = vld [vmem:[%s15713_s0 + $0x1a0] sm:$0xff]  ;;  %v60_v47 = vld [vmem:[%s15713_s0 + $0xc8] sm:$0xff] }
  0x11   :  { %7888 = vmatprep.mubr.msk.f32.mxu0 %vm100_vm1, %v43_v12  ;;  %v61_v48 = vld [vmem:[%s15713_s0 + $0xd0] sm:$0xff]  ;;  %v88_v49 = vld [vmem:[%s15713_s0 + $0x1a8] sm:$0xff]  ;;  %v62_v51 = vld [vmem:[%s15713_s0 + $0xd8] sm:$0xff] }
  0x12   :  { %7934 = vmatmul.mubr.msk.f32.gmra.mrb[6].mxu1 %vm100_vm1, %v74_v21  ;;  %v89_v50 = vld [vmem:[%s15713_s0 + $0x1b0] sm:$0xff]  ;;  %v63_v52 = vld [vmem:[%s15713_s0 + $0xe0] sm:$0xff]  ;;  %v90_v53 = vld [vmem:[%s15713_s0 + $0x1b8] sm:$0xff] }
  0x13   :  { %7936 = vmatprep.mubr.msk.f32.mxu1 %vm100_vm1, %v75_v22  ;;  %v91_v54 = vld [vmem:[%s15713_s0 + $0x1c0] sm:$0xff]  ;;  %v64_v55 = vld [vmem:[%s15713_s0 + $0xe8] sm:$0xff]  ;;  %v65_v56 = vld [vmem:[%s15713_s0 + $0xf0] sm:$0xff] }
  0x14   :  { %7889 = vmatmul.mubr.msk.f32.gmra.mrb[8].mxu0 %vm100_vm1, %v44_v15  ;;  %v92_v57 = vld [vmem:[%s15713_s0 + $0x1c8] sm:$0xff]  ;;  %v93_v58 = vld [vmem:[%s15713_s0 + $0x1d0] sm:$0xff]  ;;  %v66_v59 = vld [vmem:[%s15713_s0 + $0xf8] sm:$0xff] }
  0x15   :  { %7891 = vmatprep.mubr.msk.f32.mxu0 %vm100_vm1, %v45_v16  ;;  %v94_v60 = vld [vmem:[%s15713_s0 + $0x1d8] sm:$0xff]  ;;  %v95_v61 = vld [vmem:[%s15713_s0 + $0x1e0] sm:$0xff]  ;;  %v96_v62 = vld [vmem:[%s15713_s0 + $0x1e8] sm:$0xff] }
  0x16   :  { %7937 = vmatmul.mubr.msk.f32.gmra.mrb[8].mxu1 %vm100_vm1, %v76_v25  ;;  %v97_v63 = vld [vmem:[%s15713_s0 + $0x1f0] sm:$0xff]  ;;  %v98_v0 = vld [vmem:[%s15713_s0 + $0x1f8] sm:$0xff]  ;;  %s8226_s0 = smov 4  }
  0x17   :  { %7939 = vmatprep.mubr.msk.f32.mxu1 %vm100_vm1, %v77_v26 }
  0x18   :  { %7892 = vmatmul.mubr.msk.f32.gmra.mrb[10].mxu0 %vm100_vm1, %v46_v19 }
  0x19   :  { %7894 = vmatprep.mubr.msk.f32.mxu0 %vm100_vm1, %v47_v20 }
  0x1a   :  { %7940 = vmatmul.mubr.msk.f32.gmra.mrb[10].mxu1 %vm100_vm1, %v78_v29 }
  0x1b   :  { %7942 = vmatprep.mubr.msk.f32.mxu1 %vm100_vm1, %v79_v30 }
  0x1c   :  { %7895 = vmatmul.mubr.msk.f32.gmra.mrb[12].mxu0 %vm100_vm1, %v48_v23 }
  0x1d   :  { %7897 = vmatprep.mubr.msk.f32.mxu0 %vm100_vm1, %v49_v24 }
  0x1e   :  { %7943 = vmatmul.mubr.msk.f32.gmra.mrb[12].mxu1 %vm100_vm1, %v80_v33 }
  0x1f   :  { %7945 = vmatprep.mubr.msk.f32.mxu1 %vm100_vm1, %v81_v34 }
  0x20   :  { %7898 = vmatmul.mubr.msk.f32.gmra.mrb[14].mxu0 %vm100_vm1, %v50_v27 }
  0x21   :  { %7900 = vmatprep.mubr.msk.f32.mxu0 %vm100_vm1, %v51_v28 }
  0x22   :  { %7946 = vmatmul.mubr.msk.f32.gmra.mrb[14].mxu1 %vm100_vm1, %v82_v37 }
  0x23   :  { %7948 = vmatprep.mubr.msk.f32.mxu1 %vm100_vm1, %v83_v38 }
  0x24   :  { %7901 = vmatmul.mubr.msk.f32.gmra.mrb[16].mxu0 %vm100_vm1, %v52_v31 }
  0x25   :  { %7903 = vmatprep.mubr.msk.f32.mxu0 %vm100_vm1, %v53_v32 }
  0x26   :  { %7949 = vmatmul.mubr.msk.f32.gmra.mrb[16].mxu1 %vm100_vm1, %v84_v41 }
  0x27   :  { %7951 = vmatprep.mubr.msk.f32.mxu1 %vm100_vm1, %v85_v42 }
  0x28   :  { %7904 = vmatmul.mubr.msk.f32.gmra.mrb[18].mxu0 %vm100_vm1, %v54_v35 }
  0x29   :  { %7906 = vmatprep.mubr.msk.f32.mxu0 %vm100_vm1, %v55_v36 }
  0x2a   :  { %7952 = vmatmul.mubr.msk.f32.gmra.mrb[18].mxu1 %vm100_vm1, %v86_v45 }
  0x2b   :  { %7954 = vmatprep.mubr.msk.f32.mxu1 %vm100_vm1, %v87_v46 }
  0x2c   :  { %7907 = vmatmul.mubr.msk.f32.gmra.mrb[20].mxu0 %vm100_vm1, %v56_v39 }
  0x2d   :  { %7909 = vmatprep.mubr.msk.f32.mxu0 %vm100_vm1, %v57_v40 }
  0x2e   :  { %7955 = vmatmul.mubr.msk.f32.gmra.mrb[20].mxu1 %vm100_vm1, %v88_v49 }
  0x2f   :  { %7957 = vmatprep.mubr.msk.f32.mxu1 %vm100_vm1, %v89_v50 }
  0x30   :  { %7910 = vmatmul.mubr.msk.f32.gmra.mrb[22].mxu0 %vm100_vm1, %v58_v43 }
  0x31   :  { %7912 = vmatprep.mubr.msk.f32.mxu0 %vm100_vm1, %v59_v44 }
  0x32   :  { %7958 = vmatmul.mubr.msk.f32.gmra.mrb[22].mxu1 %vm100_vm1, %v90_v53 }
  0x33   :  { %7960 = vmatprep.mubr.msk.f32.mxu1 %vm100_vm1, %v91_v54 }
  0x34   :  { %7913 = vmatmul.mubr.msk.f32.gmra.mrb[24].mxu0 %vm100_vm1, %v60_v47 }
  0x35   :  { %7915 = vmatprep.mubr.msk.f32.mxu0 %vm100_vm1, %v61_v48 }
  0x36   :  { %7961 = vmatmul.mubr.msk.f32.gmra.mrb[24].mxu1 %vm100_vm1, %v92_v57 }
  0x37   :  { %7963 = vmatprep.mubr.msk.f32.mxu1 %vm100_vm1, %v93_v58 }
  0x38   :  { %7916 = vmatmul.mubr.msk.f32.gmra.mrb[26].mxu0 %vm100_vm1, %v62_v51 }
  0x39   :  { %7918 = vmatprep.mubr.msk.f32.mxu0 %vm100_vm1, %v63_v52 }
  0x3a   :  { %7964 = vmatmul.mubr.msk.f32.gmra.mrb[26].mxu1 %vm100_vm1, %v94_v60 }
  0x3b   :  { %7966 = vmatprep.mubr.msk.f32.mxu1 %vm100_vm1, %v95_v61 }
  0x3c   :  { %7919 = vmatmul.mubr.msk.f32.gmra.mrb[28].mxu0 %vm100_vm1, %v64_v55 }
  0x3d   :  { %7921 = vmatprep.mubr.msk.f32.mxu0 %vm100_vm1, %v65_v56 }
  0x3e   :  { %7967 = vmatmul.mubr.msk.f32.gmra.mrb[28].mxu1 %vm100_vm1, %v96_v62 }
  0x3f   :  { %7969 = vmatprep.mubr.msk.f32.mxu1 %vm100_vm1, %v97_v63 }
  0x40   :  { %7922 = vmatmul.mubr.msk.f32.gmra.mrb[30].mxu0 %vm100_vm1, %v66_v59 }
  0x42   :  { %7970 = vmatmul.mubr.msk.f32.gmra.mrb[30].mxu1 %vm100_vm1, %v98_v0 }
  0xd7   :  { %v8553_v1 = vpop.f32.mrb[0].mxu0 }
  0xd8   :  { %v686_v2 = vsel %vm684_vm2, %v8553_v1, 0.0  ;;  %v819_v3 = vmul.f32 %v8553_v1, %v8553_v1  ;;  %v8559_v4 = vpop.f32.mrb[1].mxu0 }
  0xd9   :  { %v685_v5 = vsel %vm684_vm2, %v8559_v4, 0.0  ;;  %v818_v6 = vmul.f32 %v8559_v4, %v8559_v4  ;;  %v8591_v27 = vpop.f32.mrb[0].mxu1 }
  0xda   :  { %v883_v7 = vsel %vm684_vm2, %v819_v3, 0.0  ;;  %v687_v8 = vadd.f32 %v686_v2, %v685_v5  ;;  %15934 = vst [vmem:[#allocation3_spill] sm:$0xff] %v8591_v27  ;;  %v8593_v30 = vpop.f32.mrb[1].mxu1 }
  0xdb   :  { %v882_v9 = vsel %vm684_vm2, %v818_v6, 0.0  ;;  %v8567_v10 = vpop.f32.mrb[2].mxu0  ;;  %15935 = vst [vmem:[#allocation4_spill] sm:$0xff] %v8593_v30 }
  0xdc   :  { %v884_v11 = vadd.f32 %v883_v7, %v882_v9  ;;  %v8569_v12 = vpop.f32.mrb[3].mxu0  ;;  %v821_v13 = vmul.f32 %v8567_v10, %v8567_v10  ;;  %v690_v17 = vsel %vm684_vm2, %v8567_v10, 0.0 }
  0xdd   :  { %v688_v14 = vsel %vm684_vm2, %v8569_v12, 0.0  ;;  %v820_v15 = vmul.f32 %v8569_v12, %v8569_v12  ;;  %v8609_v41 = vpop.f32.mrb[2].mxu1 }
  0xde   :  { %v689_v16 = vadd.f32 %v688_v14, %v687_v8  ;;  %v887_v23 = vsel %vm684_vm2, %v821_v13, 0.0  ;;  %v8611_v44 = vpop.f32.mrb[3].mxu1 }
  0xdf   :  { %v885_v18 = vsel %vm684_vm2, %v820_v15, 0.0  ;;  %v8580_v19 = vpop.f32.mrb[4].mxu0  ;;  %15936 = vst [vmem:[#allocation5_spill] sm:$0xff] %v8611_v44 }
  0xe0   :  { %v691_v20 = vadd.f32 %v690_v17, %v689_v16  ;;  %v886_v21 = vadd.f32 %v885_v18, %v884_v11  ;;  %v8582_v22 = vpop.f32.mrb[5].mxu0  ;;  %v823_v24 = vmul.f32 %v8580_v19, %v8580_v19  ;;  %v694_v31 = vsel %vm684_vm2, %v8580_v19, 0.0 }
  0xe1   :  { %v692_v25 = vsel %vm684_vm2, %v8582_v22, 0.0  ;;  %v822_v26 = vmul.f32 %v8582_v22, %v8582_v22  ;;  %v8627_v55 = vpop.f32.mrb[4].mxu1 }
  0xe2   :  { %v888_v28 = vadd.f32 %v887_v23, %v886_v21  ;;  %v693_v29 = vadd.f32 %v692_v25, %v691_v20  ;;  %v891_v37 = vsel %vm684_vm2, %v823_v24, 0.0  ;;  %v8629_v58 = vpop.f32.mrb[5].mxu1 }
  0xe3   :  { %v889_v32 = vsel %vm684_vm2, %v822_v26, 0.0  ;;  %v8598_v33 = vpop.f32.mrb[6].mxu0  ;;  %15937 = vst [vmem:[#allocation6_spill] sm:$0xff] %v8629_v58 }
  0xe4   :  { %v890_v34 = vadd.f32 %v889_v32, %v888_v28  ;;  %v8600_v35 = vpop.f32.mrb[7].mxu0  ;;  %v695_v36 = vadd.f32 %v694_v31, %v693_v29  ;;  %v825_v38 = vmul.f32 %v8598_v33, %v8598_v33  ;;  %v698_v45 = vsel %vm684_vm2, %v8598_v33, 0.0 }
  0xe5   :  { %v696_v39 = vsel %vm684_vm2, %v8600_v35, 0.0  ;;  %v824_v40 = vmul.f32 %v8600_v35, %v8600_v35  ;;  %v8645_v7 = vpop.f32.mrb[6].mxu1 }
  0xe6   :  { %v697_v42 = vadd.f32 %v696_v39, %v695_v36  ;;  %v892_v43 = vadd.f32 %v891_v37, %v890_v34  ;;  %v895_v51 = vsel %vm684_vm2, %v825_v38, 0.0  ;;  %v8647_v11 = vpop.f32.mrb[7].mxu1 }
  0xe7   :  { %v893_v46 = vsel %vm684_vm2, %v824_v40, 0.0  ;;  %v8616_v47 = vpop.f32.mrb[8].mxu0 }
  0xe8   :  { %v894_v48 = vadd.f32 %v893_v46, %v892_v43  ;;  %v8618_v49 = vpop.f32.mrb[9].mxu0  ;;  %v699_v50 = vadd.f32 %v698_v45, %v697_v42  ;;  %v827_v52 = vmul.f32 %v8616_v47, %v8616_v47  ;;  %v702_v59 = vsel %vm684_vm2, %v8616_v47, 0.0 }
  0xe9   :  { %v700_v53 = vsel %vm684_vm2, %v8618_v49, 0.0  ;;  %v826_v54 = vmul.f32 %v8618_v49, %v8618_v49  ;;  %v8663_v25 = vpop.f32.mrb[8].mxu1 }
  0xea   :  { %v701_v56 = vadd.f32 %v700_v53, %v699_v50  ;;  %v896_v57 = vadd.f32 %v895_v51, %v894_v48  ;;  %v899_v2 = vsel %vm684_vm2, %v827_v52, 0.0  ;;  %v8665_v29 = vpop.f32.mrb[9].mxu1 }
  0xeb   :  { %v897_v60 = vsel %vm684_vm2, %v826_v54, 0.0  ;;  %v8634_v61 = vpop.f32.mrb[10].mxu0 }
  0xec   :  { %v898_v62 = vadd.f32 %v897_v60, %v896_v57  ;;  %v8636_v63 = vpop.f32.mrb[11].mxu0  ;;  %v703_v0 = vadd.f32 %v702_v59, %v701_v56  ;;  %v829_v3 = vmul.f32 %v8634_v61, %v8634_v61  ;;  %v706_v13 = vsel %vm684_vm2, %v8634_v61, 0.0 }
  0xed   :  { %v704_v5 = vsel %vm684_vm2, %v8636_v63, 0.0  ;;  %v828_v6 = vmul.f32 %v8636_v63, %v8636_v63  ;;  %v8681_v45 = vpop.f32.mrb[10].mxu1 }
  0xee   :  { %v705_v8 = vadd.f32 %v704_v5, %v703_v0  ;;  %v900_v9 = vadd.f32 %v899_v2, %v898_v62  ;;  %v903_v20 = vsel %vm684_vm2, %v829_v3, 0.0  ;;  %v8683_v50 = vpop.f32.mrb[11].mxu1 }
  0xef   :  { %v901_v14 = vsel %vm684_vm2, %v828_v6, 0.0  ;;  %v8652_v15 = vpop.f32.mrb[12].mxu0 }
  0xf0   :  { %v902_v16 = vadd.f32 %v901_v14, %v900_v9  ;;  %v8654_v17 = vpop.f32.mrb[13].mxu0  ;;  %v707_v18 = vadd.f32 %v706_v13, %v705_v8  ;;  %v831_v21 = vmul.f32 %v8652_v15, %v8652_v15  ;;  %v710_v31 = vsel %vm684_vm2, %v8652_v15, 0.0 }
  0xf1   :  { %v708_v23 = vsel %vm684_vm2, %v8654_v17, 0.0  ;;  %v830_v24 = vmul.f32 %v8654_v17, %v8654_v17  ;;  %v8699_v2 = vpop.f32.mrb[12].mxu1 }
  0xf2   :  { %v709_v26 = vadd.f32 %v708_v23, %v707_v18  ;;  %v904_v28 = vadd.f32 %v903_v20, %v902_v16  ;;  %v907_v39 = vsel %vm684_vm2, %v831_v21, 0.0  ;;  %v8701_v6 = vpop.f32.mrb[13].mxu1 }
  0xf3   :  { %v905_v32 = vsel %vm684_vm2, %v830_v24, 0.0  ;;  %v8670_v34 = vpop.f32.mrb[14].mxu0 }
  0xf4   :  { %v906_v36 = vadd.f32 %v905_v32, %v904_v28  ;;  %v8672_v37 = vpop.f32.mrb[15].mxu0  ;;  %v711_v38 = vadd.f32 %v710_v31, %v709_v26  ;;  %v833_v40 = vmul.f32 %v8670_v34, %v8670_v34  ;;  %v714_v51 = vsel %vm684_vm2, %v8670_v34, 0.0 }
  0xf5   :  { %v712_v42 = vsel %vm684_vm2, %v8672_v37, 0.0  ;;  %v832_v43 = vmul.f32 %v8672_v37, %v8672_v37  ;;  %v8717_v26 = vpop.f32.mrb[14].mxu1 }
  0xf6   :  { %v713_v46 = vadd.f32 %v712_v42, %v711_v38  ;;  %v908_v48 = vadd.f32 %v907_v39, %v906_v36  ;;  %v911_v59 = vsel %vm684_vm2, %v833_v40, 0.0  ;;  %v8719_v32 = vpop.f32.mrb[15].mxu1 }
  0xf7   :  { %v909_v52 = vsel %vm684_vm2, %v832_v43, 0.0  ;;  %v8688_v53 = vpop.f32.mrb[16].mxu0 }
  0xf8   :  { %v910_v54 = vadd.f32 %v909_v52, %v908_v48  ;;  %v8690_v56 = vpop.f32.mrb[17].mxu0  ;;  %v715_v57 = vadd.f32 %v714_v51, %v713_v46  ;;  %v835_v60 = vmul.f32 %v8688_v53, %v8688_v53  ;;  %v718_v8 = vsel %vm684_vm2, %v8688_v53, 0.0 }
  0xf9   :  { %v716_v62 = vsel %vm684_vm2, %v8690_v56, 0.0  ;;  %v834_v0 = vmul.f32 %v8690_v56, %v8690_v56 }
  0xfa   :  { %v717_v3 = vadd.f32 %v716_v62, %v715_v57  ;;  %v912_v5 = vadd.f32 %v911_v59, %v910_v54  ;;  %v915_v20 = vsel %vm684_vm2, %v835_v60, 0.0  ;;  %v8735_v54 = vpop.f32.mrb[16].mxu1 }
  0xfb   :  { %v913_v9 = vsel %vm684_vm2, %v834_v0, 0.0  ;;  %v8706_v13 = vpop.f32.mrb[18].mxu0  ;;  %v8737_v60 = vpop.f32.mrb[17].mxu1 }
  0xfc   :  { %15938 = vst [vmem:[#allocation7_spill] sm:$0xff] %v8706_v13  ;;  %v914_v14 = vadd.f32 %v913_v9, %v912_v5  ;;  %v8708_v16 = vpop.f32.mrb[19].mxu0  ;;  %v719_v18 = vadd.f32 %v718_v8, %v717_v3  ;;  %v837_v21 = vmul.f32 %v8706_v13, %v8706_v13  ;;  %v722_v36 = vsel %vm684_vm2, %v8706_v13, 0.0 }
  0xfd   :  { %15939 = vst [vmem:[#allocation8_spill] sm:$0xff] %v8708_v16  ;;  %v720_v23 = vsel %vm684_vm2, %v8708_v16, 0.0  ;;  %v836_v24 = vmul.f32 %v8708_v16, %v8708_v16 }
  0xfe   :  { %v721_v28 = vadd.f32 %v720_v23, %v719_v18  ;;  %v916_v31 = vadd.f32 %v915_v20, %v914_v14  ;;  %v919_v46 = vsel %vm684_vm2, %v837_v21, 0.0  ;;  %v8753_v23 = vpop.f32.mrb[18].mxu1 }
  0xff   :  { %v917_v38 = vsel %vm684_vm2, %v836_v24, 0.0  ;;  %v8724_v39 = vpop.f32.mrb[20].mxu0  ;;  %15944 = vst [vmem:[#allocation13_spill] sm:$0xff] %v8753_v23 }
 0x100   :  { %15940 = vst [vmem:[#allocation9_spill] sm:$0xff] %v8724_v39  ;;  %v918_v40 = vadd.f32 %v917_v38, %v916_v31  ;;  %v8726_v42 = vpop.f32.mrb[21].mxu0  ;;  %v723_v43 = vadd.f32 %v722_v36, %v721_v28  ;;  %v839_v48 = vmul.f32 %v8724_v39, %v8724_v39  ;;  %v726_v62 = vsel %vm684_vm2, %v8724_v39, 0.0  ;;  %v8755_v31 = vpop.f32.mrb[19].mxu1 }
 0x101   :  { %15941 = vst [vmem:[#allocation10_spill] sm:$0xff] %v8726_v42  ;;  %v724_v51 = vsel %vm684_vm2, %v8726_v42, 0.0  ;;  %v838_v52 = vmul.f32 %v8726_v42, %v8726_v42  ;;  %15945 = vst [vmem:[#allocation14_spill] sm:$0xff] %v8755_v31 }
 0x102   :  { %v725_v57 = vadd.f32 %v724_v51, %v723_v43  ;;  %v920_v59 = vadd.f32 %v919_v46, %v918_v40  ;;  %v923_v14 = vsel %vm684_vm2, %v839_v48, 0.0 }
 0x103   :  { %v921_v0 = vsel %vm684_vm2, %v838_v52, 0.0  ;;  %v8742_v3 = vpop.f32.mrb[22].mxu0 }
 0x104   :  { %15942 = vst [vmem:[#allocation11_spill] sm:$0xff] %v8742_v3  ;;  %v922_v5 = vadd.f32 %v921_v0, %v920_v59  ;;  %v8744_v8 = vpop.f32.mrb[23].mxu0  ;;  %v727_v9 = vadd.f32 %v726_v62, %v725_v57  ;;  %v841_v18 = vmul.f32 %v8742_v3, %v8742_v3  ;;  %v730_v36 = vsel %vm684_vm2, %v8742_v3, 0.0  ;;  %v8771_v62 = vpop.f32.mrb[20].mxu1 }
 0x105   :  { %15943 = vst [vmem:[#allocation12_spill] sm:$0xff] %v8744_v8  ;;  %v728_v20 = vsel %vm684_vm2, %v8744_v8, 0.0  ;;  %v840_v21 = vmul.f32 %v8744_v8, %v8744_v8  ;;  %15948 = vst [vmem:[#allocation17_spill] sm:$0xff] %v8771_v62 }
 0x106   :  { %v729_v24 = vadd.f32 %v728_v20, %v727_v9  ;;  %v924_v28 = vadd.f32 %v923_v14, %v922_v5  ;;  %v927_v51 = vsel %vm684_vm2, %v841_v18, 0.0  ;;  %v8773_v9 = vpop.f32.mrb[21].mxu1 }
 0x107   :  { %v925_v38 = vsel %vm684_vm2, %v840_v21, 0.0  ;;  %v8760_v40 = vpop.f32.mrb[24].mxu0  ;;  %15949 = vst [vmem:[#allocation18_spill] sm:$0xff] %v8773_v9 }
 0x108   :  { %15946 = vst [vmem:[#allocation15_spill] sm:$0xff] %v8760_v40  ;;  %v926_v43 = vadd.f32 %v925_v38, %v924_v28  ;;  %v8762_v46 = vpop.f32.mrb[25].mxu0  ;;  %v731_v48 = vadd.f32 %v730_v36, %v729_v24  ;;  %v843_v52 = vmul.f32 %v8760_v40, %v8760_v40  ;;  %v734_v14 = vsel %vm684_vm2, %v8760_v40, 0.0 }
 0x109   :  { %15947 = vst [vmem:[#allocation16_spill] sm:$0xff] %v8762_v46  ;;  %v732_v57 = vsel %vm684_vm2, %v8762_v46, 0.0  ;;  %v842_v59 = vmul.f32 %v8762_v46, %v8762_v46 }
 0x10a   :  { %v733_v0 = vadd.f32 %v732_v57, %v731_v48  ;;  %v928_v5 = vadd.f32 %v927_v51, %v926_v43  ;;  %v931_v36 = vsel %vm684_vm2, %v843_v52, 0.0  ;;  %v8789_v51 = vpop.f32.mrb[22].mxu1 }
 0x10b   :  { %v929_v18 = vsel %vm684_vm2, %v842_v59, 0.0  ;;  %v8778_v20 = vpop.f32.mrb[26].mxu0  ;;  %v8791_v40 = vpop.f32.mrb[23].mxu1 }
 0x10c   :  { %15950 = vst [vmem:[#allocation19_spill] sm:$0xff] %v8778_v20  ;;  %v930_v21 = vadd.f32 %v929_v18, %v928_v5  ;;  %v8780_v24 = vpop.f32.mrb[27].mxu0  ;;  %v735_v28 = vadd.f32 %v734_v14, %v733_v0  ;;  %v845_v38 = vmul.f32 %v8778_v20, %v8778_v20  ;;  %15952 = vst [vmem:[#allocation21_spill] sm:$0xff] %v8791_v40  ;;  %v738_v0 = vsel %vm684_vm2, %v8778_v20, 0.0 }
 0x10d   :  { %15951 = vst [vmem:[#allocation20_spill] sm:$0xff] %v8780_v24  ;;  %v736_v43 = vsel %vm684_vm2, %v8780_v24, 0.0  ;;  %v844_v48 = vmul.f32 %v8780_v24, %v8780_v24 }
 0x10e   :  { %v737_v57 = vadd.f32 %v736_v43, %v735_v28  ;;  %v932_v59 = vadd.f32 %v931_v36, %v930_v21  ;;  %v935_v3 = vsel %vm684_vm2, %v845_v38, 0.0  ;;  %v8807_v36 = vpop.f32.mrb[24].mxu1 }
 0x10f   :  { %v933_v52 = vsel %vm684_vm2, %v844_v48, 0.0  ;;  %v8796_v5 = vpop.f32.mrb[28].mxu0  ;;  %15955 = vst [vmem:[#allocation24_spill] sm:$0xff] %v8807_v36  ;;  %v8809_v20 = vpop.f32.mrb[25].mxu1 }
 0x110   :  { %15953 = vst [vmem:[#allocation22_spill] sm:$0xff] %v8796_v5  ;;  %v934_v14 = vadd.f32 %v933_v52, %v932_v59  ;;  %v8798_v18 = vpop.f32.mrb[29].mxu0  ;;  %v739_v46 = vadd.f32 %v738_v0, %v737_v57  ;;  %v847_v24 = vmul.f32 %v8796_v5, %v8796_v5  ;;  %v742_v57 = vsel %vm684_vm2, %v8796_v5, 0.0 }
 0x111   :  { %15954 = vst [vmem:[#allocation23_spill] sm:$0xff] %v8798_v18  ;;  %v740_v21 = vsel %vm684_vm2, %v8798_v18, 0.0  ;;  %v846_v28 = vmul.f32 %v8798_v18, %v8798_v18  ;;  %v850_v18 = vmul.f32 %v8593_v30, %v8593_v30 }
 0x112   :  { %v741_v43 = vadd.f32 %v740_v21, %v739_v46  ;;  %v936_v48 = vadd.f32 %v935_v3, %v934_v14  ;;  %v939_v39 = vsel %vm684_vm2, %v847_v24, 0.0  ;;  %v8827_v21 = vpop.f32.mrb[26].mxu1 }
 0x113   :  { %v937_v38 = vsel %vm684_vm2, %v846_v28, 0.0  ;;  %v8814_v59 = vpop.f32.mrb[30].mxu0  ;;  %15958 = vst [vmem:[#allocation27_spill] sm:$0xff] %v8827_v21 }
 0x114   :  { %15956 = vst [vmem:[#allocation25_spill] sm:$0xff] %v8814_v59  ;;  %v938_v0 = vadd.f32 %v937_v38, %v936_v48  ;;  %v8816_v52 = vpop.f32.mrb[31].mxu0  ;;  %v743_v8 = vadd.f32 %v742_v57, %v741_v43  ;;  %v849_v3 = vmul.f32 %v8814_v59, %v8814_v59  ;;  %v8829_v38 = vpop.f32.mrb[27].mxu1  ;;  %v746_v43 = vsel %vm684_vm2, %v8814_v59, 0.0 }
 0x115   :  { %15957 = vst [vmem:[#allocation26_spill] sm:$0xff] %v8816_v52  ;;  %v744_v46 = vsel %vm684_vm2, %v8816_v52, 0.0  ;;  %v848_v14 = vmul.f32 %v8816_v52, %v8816_v52  ;;  %15959 = vst [vmem:[#allocation28_spill] sm:$0xff] %v8829_v38  ;;  %v748_v57 = vsel %vm684_vm2, %v8593_v30, 0.0  ;;  %v851_v52 = vmul.f32 %v8591_v27, %v8591_v27 }
 0x116   :  { %v745_v28 = vadd.f32 %v744_v46, %v743_v8  ;;  %v940_v48 = vadd.f32 %v939_v39, %v938_v0  ;;  %v943_v13 = vsel %vm684_vm2, %v849_v3, 0.0  ;;  %v945_v39 = vsel %vm684_vm2, %v850_v18, 0.0  ;;  %v8842_v0 = vpop.f32.mrb[28].mxu1 }
 0x117   :  { %v941_v24 = vsel %vm684_vm2, %v848_v14, 0.0  ;;  %v852_v8 = vmul.f32 %v8611_v44, %v8611_v44  ;;  %15960 = vst [vmem:[#allocation29_spill] sm:$0xff] %v8842_v0  ;;  %v15753_v46 = vmov 0.0   ;;  %v8868_v14 = vpop.f32.mrb[29].mxu1  ;;  %v947_v30 = vsel %vm684_vm2, %v851_v52, 0.0 }
 0x118   :  { %v942_v5 = vadd.f32 %v941_v24, %v940_v48  ;;  %v747_v42 = vadd.f32 %v746_v43, %v745_v28  ;;  %1354 = vst.msk [vmem:[#allocation2] sm:$0xff] %vm100_vm1, %v15753_v46  ;;  %1355 = vst.msk [vmem:[#allocation2 + $0x8] sm:$0xff] %vm100_vm1, %v15753_v46  ;;  %v750_v28 = vsel %vm684_vm2, %v8591_v27, 0.0  ;;  %v752_v48 = vsel %vm684_vm2, %v8611_v44, 0.0 }
 0x119   :  { %1358 = vst.msk [vmem:[#allocation2 + $0x1b0] sm:$0xff] %vm100_vm1, %v15753_v46  ;;  %1359 = vst.msk [vmem:[#allocation2 + $0x1b8] sm:$0xff] %vm100_vm1, %v15753_v46  ;;  %v853_v59 = vmul.f32 %v8609_v41, %v8609_v41  ;;  %v949_v16 = vsel %vm684_vm2, %v852_v8, 0.0  ;;  %v756_v52 = vsel %vm684_vm2, %v8629_v58, 0.0  ;;  %v855_v27 = vmul.f32 %v8627_v55, %v8627_v55 }
 0x11a   :  { %1362 = vst.msk [vmem:[#allocation2 + $0x198] sm:$0xff] %vm100_vm1, %v15753_v46  ;;  %1363 = vst.msk [vmem:[#allocation2 + $0x1a0] sm:$0xff] %vm100_vm1, %v15753_v46  ;;  %v749_v18 = vadd.f32 %v748_v57, %v747_v42  ;;  %v944_v3 = vadd.f32 %v943_v13, %v942_v5  ;;  %v854_v13 = vmul.f32 %v8629_v58, %v8629_v58  ;;  %v8880_v42 = vpop.f32.mrb[30].mxu1 }
 0x11b   :  { %1365 = vst.msk [vmem:[#allocation2 + $0x348] sm:$0xff] %vm100_vm1, %v15753_v46  ;;  %1366 = vst.msk [vmem:[#allocation2 + $0x350] sm:$0xff] %vm100_vm1, %v15753_v46  ;;  %v951_v8 = vsel %vm684_vm2, %v853_v59, 0.0  ;;  %v760_v59 = vsel %vm684_vm2, %v8647_v11, 0.0  ;;  %v857_v58 = vmul.f32 %v8645_v7, %v8645_v7 }
 0x11c   :  { %1357 = vst.msk [vmem:[#allocation2 + $0x10] sm:$0x3] %vm1356_vm3, %v15753_v46  ;;  %1360 = vst.msk [vmem:[#allocation2 + $0x1c0] sm:$0x3] %vm1356_vm3, %v15753_v46  ;;  %v946_v43 = vadd.f32 %v945_v39, %v944_v3  ;;  %v751_v24 = vadd.f32 %v750_v28, %v749_v18  ;;  %v754_v39 = vsel %vm684_vm2, %v8609_v41, 0.0 }
 0x11d   :  { %1364 = vst.msk [vmem:[#allocation2 + $0x1a8] sm:$0x3] %vm1356_vm3, %v15753_v46  ;;  %1367 = vst.msk [vmem:[#allocation2 + $0x358] sm:$0x3] %vm1356_vm3, %v15753_v46  ;;  %v8882_v46 = vpop.f32.mrb[31].mxu1 }
 0x11e   :  { %15961 = vst [vmem:[#allocation30_spill] sm:$0xff] %v8868_v14  ;;  %v753_v5 = vadd.f32 %v752_v48, %v751_v24  ;;  %v948_v57 = vadd.f32 %v947_v30, %v946_v43  ;;  %v953_v48 = vsel %vm684_vm2, %v854_v13, 0.0  ;;  %v856_v30 = vmul.f32 %v8647_v11, %v8647_v11 }
 0x11f   :  { %v1562_v28 = vld [vmem:[#allocation2 + $0x1] sm:$0xff]  ;;  %v955_v13 = vsel %vm684_vm2, %v855_v27, 0.0 }
 0x120   :  { %v950_v18 = vadd.f32 %v949_v16, %v948_v57  ;;  %v755_v3 = vadd.f32 %v754_v39, %v753_v5  ;;  %2139 = vrot.lane.b32.xlu0 %v1562_v28, %s8226_s0  ;;  %v758_v5 = vsel %vm684_vm2, %v8627_v55, 0.0  ;;  %v957_v28 = vsel %vm684_vm2, %v856_v30, 0.0 }
 0x121   :  { %v859_v30 = vmul.f32 %v8663_v25, %v8663_v25 }
 0x122   :  { %v757_v43 = vadd.f32 %v756_v52, %v755_v3  ;;  %v952_v16 = vadd.f32 %v951_v8, %v950_v18  ;;  %v1594_v3 = vld [vmem:[#allocation2 + $0x1b1] sm:$0xff]  ;;  %v762_v8 = vsel %vm684_vm2, %v8645_v7, 0.0 }
 0x123   :  { %v1595_v44 = vld [vmem:[#allocation2 + $0x1b9] sm:$0xff]  ;;  %v1563_v24 = vld [vmem:[#allocation2 + $0x9] sm:$0xff] }
 0x124   :  { %2205 = vrot.lane.b32.xlu1 %v1595_v44, %s8226_s0  ;;  %v954_v57 = vadd.f32 %v953_v48, %v952_v16  ;;  %v759_v39 = vadd.f32 %v758_v5, %v757_v43  ;;  %v858_v44 = vmul.f32 %v8665_v29, %v8665_v29  ;;  %2141 = vrot.lane.b32.xlu0 %v1563_v24, %s8226_s0  ;;  %v764_v48 = vsel %vm684_vm2, %v8665_v29, 0.0 }
 0x125   :  { %v959_v16 = vsel %vm684_vm2, %v857_v58, 0.0  ;;  %v860_v24 = vmul.f32 %v8683_v50, %v8683_v50 }
 0x126   :  { %v761_v52 = vadd.f32 %v760_v59, %v759_v39  ;;  %v956_v18 = vadd.f32 %v955_v13, %v954_v57  ;;  %v961_v5 = vsel %vm684_vm2, %v858_v44, 0.0  ;;  %v766_v39 = vsel %vm684_vm2, %v8663_v25, 0.0 }
 0x127   :  { %v768_v13 = vsel %vm684_vm2, %v8683_v50, 0.0  ;;  %v861_v44 = vmul.f32 %v8681_v45, %v8681_v45 }
 0x128   :  { %v958_v27 = vadd.f32 %v957_v28, %v956_v18  ;;  %v763_v43 = vadd.f32 %v762_v8, %v761_v52  ;;  %2203 = vrot.lane.b32.xlu0 %v1594_v3, %s8226_s0  ;;  %v963_v52 = vsel %vm684_vm2, %v859_v30, 0.0  ;;  %v965_v18 = vsel %vm684_vm2, %v860_v24, 0.0 }
 0x129   :  { %v862_v3 = vmul.f32 %v8701_v6, %v8701_v6  ;;  %v967_v30 = vsel %vm684_vm2, %v861_v44, 0.0 }
 0x12a   :  { %v765_v59 = vadd.f32 %v764_v48, %v763_v43  ;;  %v960_v57 = vadd.f32 %v959_v16, %v958_v27  ;;  %v770_v27 = vsel %vm684_vm2, %v8681_v45, 0.0  ;;  %v772_v43 = vsel %vm684_vm2, %v8701_v6, 0.0 }
 0x12b   :  { %v969_v24 = vsel %vm684_vm2, %v862_v3, 0.0  ;;  %v865_v3 = vmul.f32 %v8717_v26, %v8717_v26 }
 0x12c   :  { %v962_v28 = vadd.f32 %v961_v5, %v960_v57  ;;  %v767_v58 = vadd.f32 %v766_v39, %v765_v59  ;;  %v863_v59 = vmul.f32 %v8699_v2, %v8699_v2  ;;  %v864_v57 = vmul.f32 %v8719_v32, %v8719_v32 }
 0x12e   :  { %v769_v8 = vadd.f32 %v768_v13, %v767_v58  ;;  %v964_v48 = vadd.f32 %v963_v52, %v962_v28  ;;  %v774_v28 = vsel %vm684_vm2, %v8699_v2, 0.0  ;;  %v776_v58 = vsel %vm684_vm2, %v8719_v32, 0.0  ;;  %v1627_v52 = vld [vmem:[#allocation2 + $0xa] sm:$0xff] }
 0x12f   :  { %2397 = vrot.lane.b32.xlu1 %v1627_v52, %s8227_s17  ;;  %v971_v44 = vsel %vm684_vm2, %v863_v59, 0.0  ;;  %v1659_v59 = vld [vmem:[#allocation2 + $0x1ba] sm:$0xff]  ;;  %v868_v52 = vmul.f32 %v8755_v31, %v8755_v31 }
 0x130   :  { %v966_v16 = vadd.f32 %v965_v18, %v964_v48  ;;  %v771_v5 = vadd.f32 %v770_v27, %v769_v8  ;;  %v973_v48 = vsel %vm684_vm2, %v864_v57, 0.0  ;;  %v866_v27 = vmul.f32 %v8737_v60, %v8737_v60 }
 0x131   :  { %v975_v57 = vsel %vm684_vm2, %v865_v3, 0.0 }
 0x132   :  { %v773_v39 = vadd.f32 %v772_v43, %v771_v5  ;;  %v968_v13 = vadd.f32 %v967_v30, %v966_v16  ;;  %v1626_v5 = vld [vmem:[#allocation2 + $0x2] sm:$0xff]  ;;  %v778_v30 = vsel %vm684_vm2, %v8717_v26, 0.0 }
 0x133   :  { %2395 = vrot.lane.b32.xlu0 %v1626_v5, %s8227_s17  ;;  %2461 = vrot.lane.b32.xlu1 %v1659_v59, %s8227_s17 }
 0x134   :  { %v970_v18 = vadd.f32 %v969_v24, %v968_v13  ;;  %v775_v8 = vadd.f32 %v774_v28, %v773_v39  ;;  %v780_v24 = vsel %vm684_vm2, %v8737_v60, 0.0  ;;  %v867_v28 = vmul.f32 %v8735_v54, %v8735_v54 }
 0x136   :  { %v777_v43 = vadd.f32 %v776_v58, %v775_v8  ;;  %v972_v16 = vadd.f32 %v971_v44, %v970_v18  ;;  %v977_v58 = vsel %vm684_vm2, %v866_v27, 0.0  ;;  %v782_v44 = vsel %vm684_vm2, %v8735_v54, 0.0 }
 0x137   :  { %v979_v3 = vsel %vm684_vm2, %v867_v28, 0.0  ;;  %v8969_v27 = vmul.f32 %v8753_v23, %v8753_v23 }
 0x138   :  { %v974_v39 = vadd.f32 %v973_v48, %v972_v16  ;;  %v779_v13 = vadd.f32 %v778_v30, %v777_v43  ;;  %v784_v48 = vsel %vm684_vm2, %v8755_v31, 0.0  ;;  %v1658_v43 = vld [vmem:[#allocation2 + $0x1b2] sm:$0xff]  ;;  %v981_v30 = vsel %vm684_vm2, %v868_v52, 0.0 }
 0x139   :  { %2459 = vrot.lane.b32.xlu0 %v1658_v43, %s8227_s17  ;;  %v983_v52 = vsel %vm684_vm2, %v8969_v27, 0.0 }
 0x13a   :  { %v781_v18 = vadd.f32 %v780_v24, %v779_v13  ;;  %v976_v8 = vadd.f32 %v975_v57, %v974_v39  ;;  %v8974_v24 = vmul.f32 %v8773_v9, %v8773_v9  ;;  %v786_v13 = vsel %vm684_vm2, %v8753_v23, 0.0 }
 0x13b   :  { %v8980_v57 = vsel %vm684_vm2, %v8773_v9, 0.0  ;;  %v9327_v9 = vld [vmem:[%s15715_s3] ss:$0 sm:$0xff]  ;;  %s8228_s3 = smov 12  }
 0x13c   :  { %v978_v16 = vadd.f32 %v977_v58, %v976_v8  ;;  %v783_v5 = vadd.f32 %v782_v44, %v781_v18  ;;  %v15962_v18 = vmov 0.0   ;;  %v871_v8 = vmul.f32 %v8771_v62, %v8771_v62 }
 0x13d   :  { %1371 = vst.msk [vmem:[#allocation2 + $0x30] sm:$0x1] %vm1369_vm4, %v15962_v18  ;;  %1370 = vst.msk [vmem:[#allocation2 + $0x18] sm:$0x1] %vm1369_vm4, %v15962_v18  ;;  %v985_v44 = vsel %vm684_vm2, %v8974_v24, 0.0  ;;  %v873_v24 = vmul.f32 %v8789_v51, %v8789_v51 }
 0x13e   :  { %v785_v59 = vadd.f32 %v784_v48, %v783_v5  ;;  %v980_v39 = vadd.f32 %v979_v3, %v978_v16  ;;  %1372 = vst.msk [vmem:[#allocation2 + $0x48] sm:$0x1] %vm1369_vm4, %v15962_v18  ;;  %1373 = vst.msk [vmem:[#allocation2 + $0x60] sm:$0x1] %vm1369_vm4, %v15962_v18  ;;  %v872_v48 = vmul.f32 %v8791_v40, %v8791_v40  ;;  %v790_v5 = vsel %vm684_vm2, %v8771_v62, 0.0 }
 0x13f   :  { %1374 = vst.msk [vmem:[#allocation2 + $0x78] sm:$0x1] %vm1369_vm4, %v15962_v18  ;;  %1375 = vst.msk [vmem:[#allocation2 + $0x90] sm:$0x1] %vm1369_vm4, %v15962_v18  ;;  %v792_v3 = vsel %vm684_vm2, %v8791_v40, 0.0 }
 0x140   :  { %v8982_v28 = vadd.f32 %v981_v30, %v980_v39  ;;  %v8984_v58 = vadd.f32 %v786_v13, %v785_v59  ;;  %1376 = vst.msk [vmem:[#allocation2 + $0xa8] sm:$0x1] %vm1369_vm4, %v15962_v18  ;;  %1377 = vst.msk [vmem:[#allocation2 + $0xc0] sm:$0x1] %vm1369_vm4, %v15962_v18  ;;  %v987_v59 = vsel %vm684_vm2, %v871_v8, 0.0  ;;  %v989_v39 = vsel %vm684_vm2, %v872_v48, 0.0 }
 0x141   :  { %1378 = vst.msk [vmem:[#allocation2 + $0xd8] sm:$0x1] %vm1369_vm4, %v15962_v18  ;;  %1379 = vst.msk [vmem:[#allocation2 + $0xf0] sm:$0x1] %vm1369_vm4, %v15962_v18  ;;  %v874_v13 = vmul.f32 %v8809_v20, %v8809_v20  ;;  %v991_v8 = vsel %vm684_vm2, %v873_v24, 0.0 }
 0x142   :  { %1380 = vst.msk [vmem:[#allocation2 + $0x108] sm:$0x1] %vm1369_vm4, %v15962_v18  ;;  %1381 = vst.msk [vmem:[#allocation2 + $0x120] sm:$0x1] %vm1369_vm4, %v15962_v18  ;;  %v789_v43 = vadd.f32 %v8980_v57, %v8984_v58  ;;  %v984_v16 = vadd.f32 %v983_v52, %v8982_v28  ;;  %v794_v58 = vsel %vm684_vm2, %v8789_v51, 0.0 }
 0x143   :  { %1382 = vst.msk [vmem:[#allocation2 + $0x138] sm:$0x1] %vm1369_vm4, %v15962_v18  ;;  %1383 = vst.msk [vmem:[#allocation2 + $0x150] sm:$0x1] %vm1369_vm4, %v15962_v18  ;;  %v993_v48 = vsel %vm684_vm2, %v874_v13, 0.0 }
 0x144   :  { %1384 = vst.msk [vmem:[#allocation2 + $0x168] sm:$0x1] %vm1369_vm4, %v15962_v18  ;;  %1385 = vst.msk [vmem:[#allocation2 + $0x180] sm:$0x1] %vm1369_vm4, %v15962_v18  ;;  %v986_v27 = vadd.f32 %v985_v44, %v984_v16  ;;  %v791_v30 = vadd.f32 %v790_v5, %v789_v43  ;;  %v875_v43 = vmul.f32 %v8807_v36, %v8807_v36 }
 0x145   :  { %1386 = vst.msk [vmem:[#allocation2 + $0x1c8] sm:$0x1] %vm1369_vm4, %v15962_v18  ;;  %1387 = vst.msk [vmem:[#allocation2 + $0x1e0] sm:$0x1] %vm1369_vm4, %v15962_v18  ;;  %v876_v16 = vmul.f32 %v8829_v38, %v8829_v38 }
 0x146   :  { %1388 = vst.msk [vmem:[#allocation2 + $0x1f8] sm:$0x1] %vm1369_vm4, %v15962_v18  ;;  %1389 = vst.msk [vmem:[#allocation2 + $0x210] sm:$0x1] %vm1369_vm4, %v15962_v18  ;;  %v793_v57 = vadd.f32 %v792_v3, %v791_v30  ;;  %v988_v28 = vadd.f32 %v987_v59, %v986_v27  ;;  %v798_v27 = vsel %vm684_vm2, %v8807_v36, 0.0  ;;  %v800_v30 = vsel %vm684_vm2, %v8829_v38, 0.0 }
 0x147   :  { %1390 = vst.msk [vmem:[#allocation2 + $0x228] sm:$0x1] %vm1369_vm4, %v15962_v18  ;;  %1391 = vst.msk [vmem:[#allocation2 + $0x240] sm:$0x1] %vm1369_vm4, %v15962_v18  ;;  %v995_v24 = vsel %vm684_vm2, %v875_v43, 0.0  ;;  %v997_v13 = vsel %vm684_vm2, %v876_v16, 0.0 }
 0x148   :  { %1392 = vst.msk [vmem:[#allocation2 + $0x258] sm:$0x1] %vm1369_vm4, %v15962_v18  ;;  %1393 = vst.msk [vmem:[#allocation2 + $0x270] sm:$0x1] %vm1369_vm4, %v15962_v18  ;;  %v990_v52 = vadd.f32 %v989_v39, %v988_v28  ;;  %v795_v44 = vadd.f32 %v794_v58, %v793_v57  ;;  %v877_v57 = vmul.f32 %v8827_v21, %v8827_v21 }
 0x149   :  { %1394 = vst.msk [vmem:[#allocation2 + $0x288] sm:$0x1] %vm1369_vm4, %v15962_v18  ;;  %1395 = vst.msk [vmem:[#allocation2 + $0x2a0] sm:$0x1] %vm1369_vm4, %v15962_v18  ;;  %v878_v28 = vmul.f32 %v8868_v14, %v8868_v14 }
 0x14a   :  { %1396 = vst.msk [vmem:[#allocation2 + $0x2b8] sm:$0x1] %vm1369_vm4, %v15962_v18  ;;  %1397 = vst.msk [vmem:[#allocation2 + $0x2d0] sm:$0x1] %vm1369_vm4, %v15962_v18  ;;  %v992_v3 = vadd.f32 %v991_v8, %v990_v52  ;;  %v802_v52 = vsel %vm684_vm2, %v8827_v21, 0.0  ;;  %v999_v43 = vsel %vm684_vm2, %v877_v57, 0.0 }
 0x14b   :  { %1398 = vst.msk [vmem:[#allocation2 + $0x2e8] sm:$0x1] %vm1369_vm4, %v15962_v18  ;;  %1399 = vst.msk [vmem:[#allocation2 + $0x300] sm:$0x1] %vm1369_vm4, %v15962_v18  ;;  %v1001_v16 = vsel %vm684_vm2, %v878_v28, 0.0 }
 0x14c   :  { %1400 = vst.msk [vmem:[#allocation2 + $0x318] sm:$0x1] %vm1369_vm4, %v15962_v18  ;;  %1401 = vst.msk [vmem:[#allocation2 + $0x330] sm:$0x1] %vm1369_vm4, %v15962_v18  ;;  %v994_v59 = vadd.f32 %v993_v48, %v992_v3  ;;  %v880_v3 = vmul.f32 %v8882_v46, %v8882_v46 }
 0x14d   :  { %1402 = vst.msk [vmem:[#allocation2 + $0x29] sm:$0x1] %vm1369_vm4, %v15962_v18  ;;  %1403 = vst.msk [vmem:[#allocation2 + $0x41] sm:$0x1] %vm1369_vm4, %v15962_v18 }
 0x14e   :  { %1404 = vst.msk [vmem:[#allocation2 + $0x59] sm:$0x1] %vm1369_vm4, %v15962_v18  ;;  %1405 = vst.msk [vmem:[#allocation2 + $0x71] sm:$0x1] %vm1369_vm4, %v15962_v18  ;;  %v1005_v28 = vsel %vm684_vm2, %v880_v3, 0.0 }
 0x14f   :  { %1406 = vst.msk [vmem:[#allocation2 + $0x89] sm:$0x1] %vm1369_vm4, %v15962_v18  ;;  %1407 = vst.msk [vmem:[#allocation2 + $0xa1] sm:$0x1] %vm1369_vm4, %v15962_v18 }
 0x150   :  { %1408 = vst.msk [vmem:[#allocation2 + $0xb9] sm:$0x1] %vm1369_vm4, %v15962_v18  ;;  %1409 = vst.msk [vmem:[#allocation2 + $0xd1] sm:$0x1] %vm1369_vm4, %v15962_v18 }
 0x151   :  { %1410 = vst.msk [vmem:[#allocation2 + $0xe9] sm:$0x1] %vm1369_vm4, %v15962_v18  ;;  %1411 = vst.msk [vmem:[#allocation2 + $0x101] sm:$0x1] %vm1369_vm4, %v15962_v18 }
 0x152   :  { %1412 = vst.msk [vmem:[#allocation2 + $0x119] sm:$0x1] %vm1369_vm4, %v15962_v18  ;;  %1413 = vst.msk [vmem:[#allocation2 + $0x131] sm:$0x1] %vm1369_vm4, %v15962_v18 }
 0x153   :  { %1414 = vst.msk [vmem:[#allocation2 + $0x149] sm:$0x1] %vm1369_vm4, %v15962_v18  ;;  %1415 = vst.msk [vmem:[#allocation2 + $0x161] sm:$0x1] %vm1369_vm4, %v15962_v18 }
 0x154   :  { %1416 = vst.msk [vmem:[#allocation2 + $0x179] sm:$0x1] %vm1369_vm4, %v15962_v18  ;;  %1417 = vst.msk [vmem:[#allocation2 + $0x191] sm:$0x1] %vm1369_vm4, %v15962_v18 }
 0x155   :  { %1418 = vst.msk [vmem:[#allocation2 + $0x1d9] sm:$0x1] %vm1369_vm4, %v15962_v18  ;;  %1419 = vst.msk [vmem:[#allocation2 + $0x1f1] sm:$0x1] %vm1369_vm4, %v15962_v18 }
 0x156   :  { %1420 = vst.msk [vmem:[#allocation2 + $0x209] sm:$0x1] %vm1369_vm4, %v15962_v18  ;;  %1421 = vst.msk [vmem:[#allocation2 + $0x221] sm:$0x1] %vm1369_vm4, %v15962_v18 }
 0x157   :  { %1422 = vst.msk [vmem:[#allocation2 + $0x239] sm:$0x1] %vm1369_vm4, %v15962_v18  ;;  %1423 = vst.msk [vmem:[#allocation2 + $0x251] sm:$0x1] %vm1369_vm4, %v15962_v18 }
 0x158   :  { %1424 = vst.msk [vmem:[#allocation2 + $0x269] sm:$0x1] %vm1369_vm4, %v15962_v18  ;;  %1425 = vst.msk [vmem:[#allocation2 + $0x281] sm:$0x1] %vm1369_vm4, %v15962_v18 }
 0x159   :  { %1426 = vst.msk [vmem:[#allocation2 + $0x299] sm:$0x1] %vm1369_vm4, %v15962_v18  ;;  %1427 = vst.msk [vmem:[#allocation2 + $0x2b1] sm:$0x1] %vm1369_vm4, %v15962_v18 }
 0x15a   :  { %1428 = vst.msk [vmem:[#allocation2 + $0x2c9] sm:$0x1] %vm1369_vm4, %v15962_v18  ;;  %1429 = vst.msk [vmem:[#allocation2 + $0x2e1] sm:$0x1] %vm1369_vm4, %v15962_v18 }
 0x15b   :  { %1430 = vst.msk [vmem:[#allocation2 + $0x2f9] sm:$0x1] %vm1369_vm4, %v15962_v18  ;;  %1431 = vst.msk [vmem:[#allocation2 + $0x311] sm:$0x1] %vm1369_vm4, %v15962_v18 }
 0x15c   :  { %1432 = vst.msk [vmem:[#allocation2 + $0x329] sm:$0x1] %vm1369_vm4, %v15962_v18  ;;  %1433 = vst.msk [vmem:[#allocation2 + $0x341] sm:$0x1] %vm1369_vm4, %v15962_v18  ;;  %v796_v18 = vsel %vm684_vm2, %v8809_v20, 0.0 }
 0x15d   :  { %v797_v5 = vadd.f32 %v796_v18, %v795_v44  ;;  %v996_v18 = vadd.f32 %v995_v24, %v994_v59  ;;  %v804_v44 = vsel %vm684_vm2, %v8868_v14, 0.0  ;;  %v806_v59 = vsel %vm684_vm2, %v8842_v0, 0.0 }
 0x15f   :  { %v799_v39 = vadd.f32 %v798_v27, %v797_v5  ;;  %v998_v8 = vadd.f32 %v997_v13, %v996_v18  ;;  %v879_v5 = vmul.f32 %v8842_v0, %v8842_v0 }
 0x161   :  { %v801_v58 = vadd.f32 %v800_v30, %v799_v39  ;;  %v1000_v30 = vadd.f32 %v999_v43, %v998_v8  ;;  %v808_v39 = vsel %vm684_vm2, %v8882_v46, 0.0  ;;  %v1003_v57 = vsel %vm684_vm2, %v879_v5, 0.0 }
 0x163   :  { %v803_v48 = vadd.f32 %v802_v52, %v801_v58  ;;  %v1002_v24 = vadd.f32 %v1001_v16, %v1000_v30  ;;  %v881_v58 = vmul.f32 %v8880_v42, %v8880_v42 }
 0x165   :  { %v805_v27 = vadd.f32 %v804_v44, %v803_v48  ;;  %v1004_v52 = vadd.f32 %v1003_v57, %v1002_v24  ;;  %v810_v44 = vsel %vm684_vm2, %v8880_v42, 0.0  ;;  %v1007_v43 = vsel %vm684_vm2, %v881_v58, 0.0  ;;  %v9181_v57 = vld [vmem:[%s15714_s2] ss:$0 sm:$0xff] }
 0x167   :  { %v807_v13 = vadd.f32 %v806_v59, %v805_v27  ;;  %v1006_v48 = vadd.f32 %v1005_v28, %v1004_v52  ;;  %v15979_v28 = vld [vmem:[#allocation5_spill] sm:$0xff] }
 0x169   :  { %v809_v18 = vadd.f32 %v808_v39, %v807_v13  ;;  %v1008_v14 = vadd.f32 %v1007_v43, %v1006_v48  ;;  %v15973_v43 = vld [vmem:[#allocation23_spill] sm:$0xff] }
 0x16b   :  { %v811_v8 = vadd.f32 %v810_v44, %v809_v18  ;;  %v1009_v27 = vrot.slane %v1008_v14, 4  ;;  %v15978_v18 = vld [vmem:[#allocation3_spill] sm:$0xff] }
 0x16d   :  { %v812_v0 = vrot.slane %v811_v8, 4  ;;  %v1010_v5 = vadd.f32 %v1009_v27, %v1008_v14  ;;  %v15985_v27 = vld [vmem:[#allocation29_spill] sm:$0xff] }
 0x16f   :  { %v813_v16 = vadd.f32 %v812_v0, %v811_v8  ;;  %v1011_v21 = vrot.slane %v1010_v5, 2  ;;  %v15975_v8 = vld [vmem:[#allocation26_spill] sm:$0xff] }
 0x171   :  { %v814_v30 = vrot.slane %v813_v16, 2  ;;  %v1012_v36 = vadd.f32 %v1011_v21, %v1010_v5  ;;  %v15982_v21 = vld [vmem:[#allocation28_spill] sm:$0xff]  ;;  %v15984_v5 = vld [vmem:[#allocation30_spill] sm:$0xff] }
 0x173   :  { %v815_v59 = vadd.f32 %v814_v30, %v813_v16  ;;  %v1013_v39 = vrot.slane %v1012_v36, 1 }
 0x175   :  { %v816_v38 = vrot.slane %v815_v59, 1  ;;  %v1014_v24 = vadd.f32 %v1013_v39, %v1012_v36  ;;  %v15966_v39 = vld [vmem:[#allocation9_spill] sm:$0xff]  ;;  %v15980_v36 = vld [vmem:[#allocation6_spill] sm:$0xff] }
 0x177   :  { %v817_v3 = vadd.f32 %v816_v38, %v815_v59  ;;  %v1016_v58 = vmul.f32 0.001953125, %v1014_v24  ;;  %v15964_v59 = vld [vmem:[#allocation7_spill] sm:$0xff]  ;;  %v15967_v24 = vld [vmem:[#allocation12_spill] sm:$0xff] }
 0x178   :  { %15988 = vst [vmem:[#allocation7_spill] sm:$0xff] %v9327_v9 }
 0x179   :  { %v9176_v13 = vmul.f32 0.001953125, %v817_v3  ;;  %v15965_v3 = vld [vmem:[#allocation10_spill] sm:$0xff] }
 0x17b   :  { %v1017_v0 = vmul.f32 %v9176_v13, %v9176_v13  ;;  %v1082_v14 = vsub.f32 %v8882_v46, %v9176_v13  ;;  %v15977_v46 = vld [vmem:[#allocation4_spill] sm:$0xff]  ;;  %v15986_v38 = vsub.f32 %v8559_v4, %v9176_v13  ;;  %v15989_v62 = vsub.f32 %v8553_v1, %v9176_v13 }
 0x17c   :  { %v15990_v16 = vsub.f32 %v8569_v12, %v9176_v13  ;;  %v15993_v12 = vsub.f32 %v8580_v19, %v9176_v13 }
 0x17d   :  { %v1018_v52 = vsub.f32 %v1016_v58, %v1017_v0  ;;  %v9198_v44 = vmul.f32 %v9181_v57, %v1082_v14  ;;  %v15968_v58 = vld [vmem:[#allocation11_spill] sm:$0xff]  ;;  %v9320_v31 = vmul.f32 %v9181_v57, %v15986_v38  ;;  %v9333_v40 = vmul.f32 %v9181_v57, %v15989_v62 }
 0x17e   :  { %v15983_v0 = vld [vmem:[#allocation27_spill] sm:$0xff]  ;;  %v9339_v4 = vmul.f32 %v9181_v57, %v15990_v16  ;;  %v15991_v38 = vsub.f32 %v8567_v10, %v9176_v13  ;;  %v9359_v16 = vmul.f32 %v9181_v57, %v15993_v12  ;;  %v15994_v10 = vsub.f32 %v8600_v35, %v9176_v13 }
 0x17f   :  { %v1019_v30 = vmax.f32 %v1018_v52, 0.0  ;;  %v15963_v52 = vld [vmem:[#allocation8_spill] sm:$0xff]  ;;  %v15997_v12 = vsub.f32 %v8616_v47, %v9176_v13  ;;  %v16001_v47 = vsub.f32 %v8654_v17, %v9176_v13 }
 0x180   :  { %15987 = vst [vmem:[#allocation8_spill] sm:$0xff] %v9320_v31  ;;  %v9345_v23 = vmul.f32 %v9181_v57, %v15991_v38  ;;  %v15992_v31 = vsub.f32 %v8582_v22, %v9176_v13  ;;  %v9365_v38 = vmul.f32 %v9181_v57, %v15994_v10  ;;  %v15995_v22 = vsub.f32 %v8598_v33, %v9176_v13 }
 0x181   :  { %v1154_v14 = vadd.f32 1e-05, %v1019_v30  ;;  %v15969_v30 = vld [vmem:[#allocation16_spill] sm:$0xff]  ;;  %v9383_v35 = vmul.f32 %v9181_v57, %v15997_v12  ;;  %v15998_v10 = vsub.f32 %v8636_v63, %v9176_v13  ;;  %v9404_v12 = vmul.f32 %v9181_v57, %v16001_v47 }
 0x182   :  { %v9351_v1 = vmul.f32 %v9181_v57, %v15992_v31  ;;  %v9371_v31 = vmul.f32 %v9181_v57, %v15995_v22  ;;  %v15999_v22 = vsub.f32 %v8634_v61, %v9176_v13  ;;  %v16002_v63 = vsub.f32 %v8652_v15, %v9176_v13 }
 0x183   :  { %8196 = vrsqrt.f32 %v1154_v14  ;;  %v15976_v14 = vld [vmem:[#allocation25_spill] sm:$0xff]  ;;  %v9389_v33 = vmul.f32 %v9181_v57, %v15998_v10  ;;  %v16003_v61 = vsub.f32 %v8672_v37, %v9176_v13  ;;  %v16005_v47 = vsub.f32 %v8690_v56, %v9176_v13 }
 0x184   :  { %v9410_v10 = vmul.f32 %v9181_v57, %v16002_v63  ;;  %v16006_v63 = vsub.f32 %v8688_v53, %v9176_v13  ;;  %v16008_v56 = vsub.f32 %v15964_v59, %v9176_v13  ;;  %v16009_v53 = vsub.f32 %v15965_v3, %v9176_v13 }
 0x185   :  { %v9428_v15 = vmul.f32 %v9181_v57, %v16005_v47 }
 0x186   :  { %v9434_v37 = vmul.f32 %v9181_v57, %v16006_v63  ;;  %v9447_v47 = vmul.f32 %v9181_v57, %v16008_v56  ;;  %v9453_v63 = vmul.f32 %v9181_v57, %v16009_v53  ;;  %v16012_v56 = vsub.f32 %v15968_v58, %v9176_v13 }
 0x187   :  { %v16014_v53 = vsub.f32 %v15969_v30, %v9176_v13 }
 0x188   :  { %v9471_v3 = vmul.f32 %v9181_v57, %v16012_v56 }
 0x18a   :  { %16013 = vst [vmem:[#allocation9_spill] sm:$0xff] %v9471_v3  ;;  %v16020_v3 = vld [vmem:[#allocation19_spill] sm:$0xff] }
 0x18b   :  { %v16021_v30 = vsub.f32 %v16020_v3, %v9176_v13 }
 0x18d   :  { %v9322_v48 = vpop.eup %8196 }
 0x18e   :  { %v1218_v62 = vmul.f32 %v9322_v48, %v9198_v44  ;;  %v15996_v44 = vsub.f32 %v8618_v49, %v9176_v13  ;;  %v9395_v49 = vmul.f32 %v9181_v57, %v15999_v22  ;;  %v9416_v22 = vmul.f32 %v9181_v57, %v16003_v61 }
 0x18f   :  { %v16007_v61 = vsub.f32 %v15963_v52, %v9176_v13  ;;  %v16010_v52 = vsub.f32 %v15966_v39, %v9176_v13  ;;  %v9477_v39 = vmul.f32 %v9181_v57, %v16014_v53  ;;  %v9496_v53 = vmul.f32 %v9181_v57, %v16021_v30 }
 0x190   :  { %v9377_v19 = vmul.f32 %v9181_v57, %v15996_v44  ;;  %v9398_v44 = vadd.f32 %v9327_v9, %v1218_v62  ;;  %v16004_v62 = vsub.f32 %v8670_v34, %v9176_v13  ;;  %v16026_v30 = vsub.f32 %v15976_v14, %v9176_v13 }
 0x191   :  { %v9440_v34 = vmul.f32 %v9181_v57, %v16007_v61  ;;  %v9459_v61 = vmul.f32 %v9181_v57, %v16010_v52  ;;  %v16015_v52 = vld [vmem:[#allocation15_spill] sm:$0xff] }
 0x192   :  { %16000 = vst [vmem:[#allocation10_spill] sm:$0xff] %v9398_v44  ;;  %v9422_v17 = vmul.f32 %v9181_v57, %v16004_v62  ;;  %v1352_v62 = vmax.f32 %v9398_v44, 0.0  ;;  %v16011_v44 = vsub.f32 %v15967_v24, %v9176_v13  ;;  %v16016_v9 = vsub.f32 %v16015_v52, %v9176_v13 }
 0x193   :  { %v16022_v52 = vsub.f32 %v15973_v43, %v9176_v13  ;;  %v9520_v43 = vmul.f32 %v9181_v57, %v16026_v30  ;;  %v16030_v30 = vsub.f32 %v8609_v41, %v9176_v13 }
 0x194   :  { %v9465_v59 = vmul.f32 %v9181_v57, %v16011_v44  ;;  %v9483_v24 = vmul.f32 %v9181_v57, %v16016_v9  ;;  %1496 = vst.msk [vmem:[#allocation2 + $0x331] sm:$0xff] %vm100_vm1, %v1352_v62  ;;  %v16018_v44 = vld [vmem:[#allocation20_spill] sm:$0xff] }
 0x195   :  { %v16019_v58 = vsub.f32 %v16018_v44, %v9176_v13  ;;  %v9502_v9 = vmul.f32 %v9181_v57, %v16022_v52  ;;  %v16027_v52 = vsub.f32 %v15977_v46, %v9176_v13  ;;  %v9544_v46 = vmul.f32 %v9181_v57, %v16030_v30 }
 0x196   :  { %16017 = vst [vmem:[#allocation12_spill] sm:$0xff] %v9483_v24  ;;  %v16023_v24 = vld [vmem:[#allocation22_spill] sm:$0xff]  ;;  %v16034_v30 = vsub.f32 %v8645_v7, %v9176_v13 }
 0x197   :  { %v9490_v56 = vmul.f32 %v9181_v57, %v16019_v58  ;;  %v16024_v62 = vsub.f32 %v16023_v24, %v9176_v13  ;;  %v16025_v58 = vsub.f32 %v15975_v8, %v9176_v13  ;;  %v9526_v24 = vmul.f32 %v9181_v57, %v16027_v52 }
 0x198   :  { %v16031_v52 = vsub.f32 %v15980_v36, %v9176_v13  ;;  %v9568_v36 = vmul.f32 %v9181_v57, %v16034_v30  ;;  %v16038_v30 = vsub.f32 %v8681_v45, %v9176_v13 }
 0x199   :  { %v9508_v44 = vmul.f32 %v9181_v57, %v16024_v62  ;;  %v9514_v3 = vmul.f32 %v9181_v57, %v16025_v58  ;;  %v16028_v62 = vsub.f32 %v15978_v18, %v9176_v13  ;;  %v16029_v58 = vsub.f32 %v15979_v28, %v9176_v13 }
 0x19a   :  { %v9550_v18 = vmul.f32 %v9181_v57, %v16031_v52  ;;  %v16035_v52 = vsub.f32 %v8665_v29, %v9176_v13  ;;  %v9592_v29 = vmul.f32 %v9181_v57, %v16038_v30  ;;  %v16043_v30 = vsub.f32 %v8717_v26, %v9176_v13 }
 0x19b   :  { %v9532_v8 = vmul.f32 %v9181_v57, %v16028_v62  ;;  %v9538_v14 = vmul.f32 %v9181_v57, %v16029_v58  ;;  %v16032_v62 = vsub.f32 %v8627_v55, %v9176_v13  ;;  %v16033_v58 = vsub.f32 %v8647_v11, %v9176_v13 }
 0x19c   :  { %v9574_v55 = vmul.f32 %v9181_v57, %v16035_v52  ;;  %v16039_v52 = vsub.f32 %v8701_v6, %v9176_v13  ;;  %v9616_v6 = vmul.f32 %v9181_v57, %v16043_v30  ;;  %v16052_v30 = vld [vmem:[#allocation13_spill] sm:$0xff] }
 0x19d   :  { %v9556_v28 = vmul.f32 %v9181_v57, %v16032_v62  ;;  %v9562_v41 = vmul.f32 %v9181_v57, %v16033_v58  ;;  %v16036_v62 = vsub.f32 %v8663_v25, %v9176_v13  ;;  %v16037_v58 = vsub.f32 %v8683_v50, %v9176_v13 }
 0x19e   :  { %v9598_v25 = vmul.f32 %v9181_v57, %v16039_v52  ;;  %16044 = vst [vmem:[#allocation16_spill] sm:$0xff] %v9616_v6  ;;  %v16045_v52 = vsub.f32 %v8737_v60, %v9176_v13  ;;  %v16053_v6 = vsub.f32 %v16052_v30, %v9176_v13 }
 0x19f   :  { %v9580_v11 = vmul.f32 %v9181_v57, %v16036_v62  ;;  %v9586_v7 = vmul.f32 %v9181_v57, %v16037_v58  ;;  %v16040_v62 = vsub.f32 %v8699_v2, %v9176_v13  ;;  %v16041_v58 = vsub.f32 %v8719_v32, %v9176_v13 }
 0x1a0   :  { %v9622_v2 = vmul.f32 %v9181_v57, %v16045_v52  ;;  %v9640_v60 = vmul.f32 %v9181_v57, %v16053_v6  ;;  %v16054_v52 = vld [vmem:[#allocation18_spill] sm:$0xff]  ;;  %v16061_v6 = vsub.f32 %v8789_v51, %v9176_v13 }
 0x1a1   :  { %v9604_v50 = vmul.f32 %v9181_v57, %v16040_v62  ;;  %v9610_v45 = vmul.f32 %v9181_v57, %v16041_v58  ;;  %v16047_v62 = vsub.f32 %v8735_v54, %v9176_v13  ;;  %v16049_v58 = vld [vmem:[#allocation14_spill] sm:$0xff] }
 0x1a2   :  { %16046 = vst [vmem:[#allocation23_spill] sm:$0xff] %v9622_v2  ;;  %v16055_v2 = vsub.f32 %v16054_v52, %v9176_v13  ;;  %v9664_v52 = vmul.f32 %v9181_v57, %v16061_v6  ;;  %v16066_v6 = vsub.f32 %v15983_v0, %v9176_v13 }
 0x1a3   :  { %16042 = vst [vmem:[#allocation11_spill] sm:$0xff] %v9610_v45  ;;  %v9628_v32 = vmul.f32 %v9181_v57, %v16047_v62  ;;  %v16050_v45 = vsub.f32 %v16049_v58, %v9176_v13  ;;  %v16056_v62 = vld [vmem:[#allocation17_spill] sm:$0xff] }
 0x1a4   :  { %v9646_v54 = vmul.f32 %v9181_v57, %v16055_v2  ;;  %v16062_v2 = vsub.f32 %v8809_v20, %v9176_v13  ;;  %v9688_v20 = vmul.f32 %v9181_v57, %v16066_v6  ;;  %v16071_v6 = vld [vmem:[#allocation8_spill] sm:$0xff] }
 0x1a5   :  { %16048 = vst [vmem:[#allocation26_spill] sm:$0xff] %v9628_v32  ;;  %v9634_v26 = vmul.f32 %v9181_v57, %v16050_v45  ;;  %v16057_v32 = vsub.f32 %v16056_v62, %v9176_v13  ;;  %v16059_v45 = vld [vmem:[#allocation21_spill] sm:$0xff] }
 0x1a6   :  { %v9670_v62 = vmul.f32 %v9181_v57, %v16062_v2  ;;  %16067 = vst [vmem:[#allocation3_spill] sm:$0xff] %v9688_v20  ;;  %v16068_v2 = vsub.f32 %v15984_v5, %v9176_v13  ;;  %v9710_v20 = vmul.f32 %v9322_v48, %v16071_v6  ;;  %v9714_v5 = vmul.f32 %v9322_v48, %v9333_v40 }
 0x1a7   :  { %16051 = vst [vmem:[#allocation25_spill] sm:$0xff] %v9634_v26  ;;  %v9652_v58 = vmul.f32 %v9181_v57, %v16057_v32  ;;  %v16060_v26 = vsub.f32 %v16059_v45, %v9176_v13  ;;  %v16063_v32 = vld [vmem:[#allocation24_spill] sm:$0xff]  ;;  %v9734_v40 = vmul.f32 %v9322_v48, %v9365_v38  ;;  %v9758_v38 = vmul.f32 %v9322_v48, %v9404_v12 }
 0x1a8   :  { %v9782_v12 = vmul.f32 %v9322_v48, %v9440_v34  ;;  %v9830_v6 = vmul.f32 %v9322_v48, %v9514_v3  ;;  %v9850_v3 = vmul.f32 %v9322_v48, %v9544_v46  ;;  %v9870_v46 = vmul.f32 %v9322_v48, %v9574_v55 }
 0x1a9   :  { %16058 = vst [vmem:[#allocation4_spill] sm:$0xff] %v9652_v58  ;;  %v9658_v30 = vmul.f32 %v9181_v57, %v16060_v26  ;;  %v16064_v58 = vsub.f32 %v16063_v32, %v9176_v13  ;;  %v16065_v26 = vsub.f32 %v15982_v21, %v9176_v13  ;;  %v9694_v32 = vmul.f32 %v9181_v57, %v16068_v2 }
 0x1aa   :  { %v9722_v2 = vmul.f32 %v9322_v48, %v9345_v23  ;;  %v9742_v23 = vmul.f32 %v9322_v48, %v9377_v19  ;;  %v9766_v19 = vmul.f32 %v9322_v48, %v9416_v22  ;;  %v9790_v22 = vmul.f32 %v9322_v48, %v9453_v63 }
 0x1ab   :  { %v9676_v45 = vmul.f32 %v9181_v57, %v16064_v58  ;;  %v9682_v51 = vmul.f32 %v9181_v57, %v16065_v26  ;;  %v16069_v58 = vsub.f32 %v15985_v27, %v9176_v13  ;;  %v16070_v26 = vsub.f32 %v8880_v42, %v9176_v13 }
 0x1ac   :  { %v9718_v27 = vmul.f32 %v9322_v48, %v9339_v4  ;;  %v9726_v42 = vmul.f32 %v9322_v48, %v9351_v1  ;;  %v9730_v13 = vmul.f32 %v9322_v48, %v9359_v16  ;;  %v9746_v4 = vmul.f32 %v9322_v48, %v9383_v35 }
 0x1ad   :  { %v9700_v21 = vmul.f32 %v9181_v57, %v16069_v58  ;;  %v9706_v0 = vmul.f32 %v9181_v57, %v16070_v26  ;;  %v9738_v57 = vmul.f32 %v9322_v48, %v9371_v31  ;;  %v9750_v1 = vmul.f32 %v9322_v48, %v9389_v33  ;;  %v16073_v58 = vld [vmem:[#allocation12_spill] sm:$0xff] }
 0x1ae   :  { %v9754_v16 = vmul.f32 %v9322_v48, %v9395_v49  ;;  %v9762_v31 = vmul.f32 %v9322_v48, %v9410_v10  ;;  %v9770_v35 = vmul.f32 %v9322_v48, %v9422_v17  ;;  %v9774_v33 = vmul.f32 %v9322_v48, %v9428_v15 }
 0x1af   :  { %v9778_v49 = vmul.f32 %v9322_v48, %v9434_v37  ;;  %v9786_v10 = vmul.f32 %v9322_v48, %v9447_v47  ;;  %v9794_v17 = vmul.f32 %v9322_v48, %v9459_v61  ;;  %v9798_v15 = vmul.f32 %v9322_v48, %v9465_v59  ;;  %v16072_v37 = vld [vmem:[#allocation9_spill] sm:$0xff] }
 0x1b0   :  { %v9802_v34 = vmul.f32 %v9322_v48, %v16072_v37  ;;  %v9806_v47 = vmul.f32 %v9322_v48, %v9477_v39  ;;  %v9810_v63 = vmul.f32 %v9322_v48, %v16073_v58  ;;  %v9814_v61 = vmul.f32 %v9322_v48, %v9490_v56  ;;  %v16077_v37 = vld [vmem:[#allocation11_spill] sm:$0xff]  ;;  %v16078_v58 = vld [vmem:[#allocation16_spill] sm:$0xff] }
 0x1b1   :  { %v9818_v59 = vmul.f32 %v9322_v48, %v9496_v53  ;;  %v9822_v26 = vmul.f32 %v9322_v48, %v9502_v9  ;;  %v9826_v39 = vmul.f32 %v9322_v48, %v9508_v44  ;;  %v9834_v56 = vmul.f32 %v9322_v48, %v9520_v43 }
 0x1b2   :  { %v9838_v53 = vmul.f32 %v9322_v48, %v9526_v24  ;;  %v9842_v9 = vmul.f32 %v9322_v48, %v9532_v8  ;;  %v9846_v44 = vmul.f32 %v9322_v48, %v9538_v14  ;;  %v9854_v43 = vmul.f32 %v9322_v48, %v9550_v18 }
 0x1b3   :  { %v9858_v24 = vmul.f32 %v9322_v48, %v9556_v28  ;;  %v9862_v8 = vmul.f32 %v9322_v48, %v9562_v41  ;;  %v9866_v14 = vmul.f32 %v9322_v48, %v9568_v36  ;;  %v9874_v18 = vmul.f32 %v9322_v48, %v9580_v11 }
 0x1b4   :  { %v9878_v28 = vmul.f32 %v9322_v48, %v9586_v7  ;;  %v9882_v41 = vmul.f32 %v9322_v48, %v9592_v29  ;;  %v9886_v36 = vmul.f32 %v9322_v48, %v9598_v25  ;;  %v9890_v55 = vmul.f32 %v9322_v48, %v9604_v50 }
 0x1b5   :  { %v9894_v11 = vmul.f32 %v9322_v48, %v16077_v37  ;;  %v9898_v7 = vmul.f32 %v9322_v48, %v16078_v58  ;;  %v9914_v37 = vmul.f32 %v9322_v48, %v9640_v60  ;;  %v9918_v58 = vmul.f32 %v9322_v48, %v9646_v54 }
 0x1b6   :  { %16074 = vst [vmem:[#allocation5_spill] sm:$0xff] %v9878_v28  ;;  %16075 = vst [vmem:[#allocation6_spill] sm:$0xff] %v9882_v41  ;;  %v16080_v28 = vld [vmem:[#allocation23_spill] sm:$0xff]  ;;  %v16081_v41 = vld [vmem:[#allocation26_spill] sm:$0xff]  ;;  %v9934_v60 = vmul.f32 %v9322_v48, %v9670_v62  ;;  %v9938_v54 = vmul.f32 %v9322_v48, %v9676_v45  ;;  %v9954_v62 = vmul.f32 %v9322_v48, %v9700_v21 }
 0x1b7   :  { %16076 = vst [vmem:[#allocation28_spill] sm:$0xff] %v9886_v36  ;;  %16079 = vst [vmem:[#allocation27_spill] sm:$0xff] %v9898_v7  ;;  %v9902_v29 = vmul.f32 %v9322_v48, %v16080_v28  ;;  %v9906_v25 = vmul.f32 %v9322_v48, %v16081_v41  ;;  %v16082_v36 = vld [vmem:[#allocation25_spill] sm:$0xff]  ;;  %v16083_v7 = vld [vmem:[#allocation4_spill] sm:$0xff]  ;;  %v9926_v41 = vmul.f32 %v9322_v48, %v9658_v30 }
 0x1b8   :  { %v9910_v50 = vmul.f32 %v9322_v48, %v16082_v36  ;;  %v9922_v28 = vmul.f32 %v9322_v48, %v16083_v7  ;;  %v9930_v36 = vmul.f32 %v9322_v48, %v9664_v52  ;;  %16085 = vst [vmem:[#allocation29_spill] sm:$0xff] %v9938_v54  ;;  %v9942_v7 = vmul.f32 %v9322_v48, %v9682_v51  ;;  %v16087_v54 = vld [vmem:[#allocation7_spill] sm:$0xff] }
 0x1b9   :  { %v9950_v52 = vmul.f32 %v9322_v48, %v9694_v32  ;;  %v9958_v45 = vmul.f32 %v9322_v48, %v9706_v0  ;;  %v9962_v51 = vadd.f32 %v16087_v54, %v9710_v20  ;;  %v9970_v32 = vadd.f32 %v16087_v54, %v9718_v27 }
 0x1ba   :  { %16084 = vst [vmem:[#allocation30_spill] sm:$0xff] %v9922_v28  ;;  %v16086_v28 = vld [vmem:[#allocation3_spill] sm:$0xff]  ;;  %v9974_v21 = vadd.f32 %v16087_v54, %v9722_v2  ;;  %v9982_v20 = vadd.f32 %v16087_v54, %v9730_v13  ;;  %v9986_v0 = vadd.f32 %v16087_v54, %v9734_v40  ;;  %v9994_v27 = vadd.f32 %v16087_v54, %v9742_v23 }
 0x1bb   :  { %v9946_v30 = vmul.f32 %v9322_v48, %v16086_v28  ;;  %16088 = vst [vmem:[#allocation15_spill] sm:$0xff] %v9962_v51  ;;  %v9966_v28 = vadd.f32 %v16087_v54, %v9714_v5  ;;  %16090 = vst [vmem:[#allocation19_spill] sm:$0xff] %v9970_v32  ;;  %v9978_v48 = vadd.f32 %v16087_v54, %v9726_v42 }
 0x1bc   :  { %16091 = vst [vmem:[#allocation22_spill] sm:$0xff] %v9974_v21  ;;  %16093 = vst [vmem:[#allocation13_spill] sm:$0xff] %v9982_v20  ;;  %v9990_v5 = vadd.f32 %v16087_v54, %v9738_v57  ;;  %v9998_v2 = vadd.f32 %v16087_v54, %v9746_v4  ;;  %v10002_v42 = vadd.f32 %v16087_v54, %v9750_v1 }
 0x1bd   :  { %16089 = vst [vmem:[#allocation20_spill] sm:$0xff] %v9966_v28  ;;  %16092 = vst [vmem:[#allocation14_spill] sm:$0xff] %v9978_v48  ;;  %v10006_v13 = vadd.f32 %v16087_v54, %v9754_v16  ;;  %v10010_v40 = vadd.f32 %v16087_v54, %v9758_v38  ;;  %v10014_v57 = vadd.f32 %v16087_v54, %v9762_v31 }
 0x1be   :  { %16094 = vst [vmem:[#allocation18_spill] sm:$0xff] %v9986_v0  ;;  %16095 = vst [vmem:[#allocation17_spill] sm:$0xff] %v9990_v5  ;;  %v10018_v23 = vadd.f32 %v16087_v54, %v9766_v19  ;;  %v10022_v4 = vadd.f32 %v16087_v54, %v9770_v35  ;;  %v10026_v1 = vadd.f32 %v16087_v54, %v9774_v33 }
 0x1bf   :  { %16096 = vst [vmem:[#allocation21_spill] sm:$0xff] %v9994_v27  ;;  %16097 = vst [vmem:[#allocation24_spill] sm:$0xff] %v9998_v2  ;;  %v10030_v16 = vadd.f32 %v16087_v54, %v9778_v49  ;;  %v10034_v38 = vadd.f32 %v16087_v54, %v9782_v12  ;;  %v10038_v31 = vadd.f32 %v16087_v54, %v9786_v10 }
 0x1c0   :  { %16098 = vst [vmem:[#allocation8_spill] sm:$0xff] %v10002_v42  ;;  %16099 = vst [vmem:[#allocation9_spill] sm:$0xff] %v10006_v13  ;;  %v10042_v19 = vadd.f32 %v16087_v54, %v9790_v22  ;;  %v10046_v35 = vadd.f32 %v16087_v54, %v9794_v17  ;;  %v10050_v33 = vadd.f32 %v16087_v54, %v9798_v15 }
 0x1c1   :  { %16100 = vst [vmem:[#allocation12_spill] sm:$0xff] %v10010_v40  ;;  %16101 = vst [vmem:[#allocation11_spill] sm:$0xff] %v10014_v57  ;;  %v10054_v49 = vadd.f32 %v16087_v54, %v9802_v34  ;;  %v10058_v12 = vadd.f32 %v16087_v54, %v9806_v47  ;;  %v10062_v10 = vadd.f32 %v16087_v54, %v9810_v63 }
 0x1c2   :  { %16102 = vst [vmem:[#allocation16_spill] sm:$0xff] %v10018_v23  ;;  %16103 = vst [vmem:[#allocation23_spill] sm:$0xff] %v10022_v4  ;;  %v10066_v22 = vadd.f32 %v16087_v54, %v9814_v61  ;;  %v10070_v17 = vadd.f32 %v16087_v54, %v9818_v59  ;;  %v10074_v15 = vadd.f32 %v16087_v54, %v9822_v26 }
 0x1c3   :  { %16104 = vst [vmem:[#allocation26_spill] sm:$0xff] %v10026_v1  ;;  %16105 = vst [vmem:[#allocation25_spill] sm:$0xff] %v10030_v16  ;;  %v10078_v34 = vadd.f32 %v16087_v54, %v9826_v39  ;;  %v10082_v47 = vadd.f32 %v16087_v54, %v9830_v6  ;;  %v10086_v63 = vadd.f32 %v16087_v54, %v9834_v56 }
 0x1c4   :  { %16106 = vst [vmem:[#allocation4_spill] sm:$0xff] %v10034_v38  ;;  %16107 = vst [vmem:[#allocation3_spill] sm:$0xff] %v10038_v31  ;;  %v10090_v61 = vadd.f32 %v16087_v54, %v9838_v53  ;;  %v10094_v59 = vadd.f32 %v16087_v54, %v9842_v9  ;;  %v10098_v26 = vadd.f32 %v16087_v54, %v9846_v44 }
 0x1c5   :  { %16108 = vst [vmem:[#allocation7_spill] sm:$0xff] %v10042_v19  ;;  %16109 = vst [vmem:[#allocation31_spill] sm:$0xff] %v10046_v35  ;;  %v10102_v39 = vadd.f32 %v16087_v54, %v9850_v3  ;;  %v10106_v6 = vadd.f32 %v16087_v54, %v9854_v43  ;;  %v10110_v56 = vadd.f32 %v16087_v54, %v9858_v24  ;;  %v16130_v43 = vld [vmem:[#allocation5_spill] sm:$0xff] }
 0x1c6   :  { %16110 = vst [vmem:[#allocation32_spill] sm:$0xff] %v10050_v33  ;;  %16111 = vst [vmem:[#allocation33_spill] sm:$0xff] %v10054_v49  ;;  %v10114_v53 = vadd.f32 %v16087_v54, %v9862_v8  ;;  %v10118_v9 = vadd.f32 %v16087_v54, %v9866_v14  ;;  %v10122_v44 = vadd.f32 %v16087_v54, %v9870_v46 }
 0x1c7   :  { %16112 = vst [vmem:[#allocation34_spill] sm:$0xff] %v10058_v12  ;;  %16113 = vst [vmem:[#allocation35_spill] sm:$0xff] %v10062_v10  ;;  %v10126_v3 = vadd.f32 %v16087_v54, %v9874_v18  ;;  %v10130_v24 = vadd.f32 %v16087_v54, %v16130_v43  ;;  %v10142_v46 = vadd.f32 %v16087_v54, %v9890_v55 }
 0x1c8   :  { %16114 = vst [vmem:[#allocation36_spill] sm:$0xff] %v10066_v22  ;;  %16115 = vst [vmem:[#allocation37_spill] sm:$0xff] %v10070_v17  ;;  %v10146_v18 = vadd.f32 %v16087_v54, %v9894_v11  ;;  %v10162_v55 = vadd.f32 %v16087_v54, %v9910_v50  ;;  %v10166_v11 = vadd.f32 %v16087_v54, %v9914_v37 }
 0x1c9   :  { %16116 = vst [vmem:[#allocation38_spill] sm:$0xff] %v10074_v15  ;;  %16117 = vst [vmem:[#allocation39_spill] sm:$0xff] %v10078_v34  ;;  %v10182_v50 = vadd.f32 %v16087_v54, %v9930_v36  ;;  %v10186_v37 = vadd.f32 %v16087_v54, %v9934_v60  ;;  %v10202_v36 = vadd.f32 %v16087_v54, %v9950_v52  ;;  %v1295_v52 = vmax.f32 %v9982_v20, 0.0 }
 0x1ca   :  { %16118 = vst [vmem:[#allocation40_spill] sm:$0xff] %v10082_v47  ;;  %16119 = vst [vmem:[#allocation41_spill] sm:$0xff] %v10086_v63  ;;  %v10206_v60 = vadd.f32 %v16087_v54, %v9954_v62  ;;  %v1297_v62 = vmax.f32 %v9990_v5, 0.0  ;;  %v1303_v5 = vmax.f32 %v10014_v57, 0.0 }
 0x1cb   :  { %16120 = vst [vmem:[#allocation42_spill] sm:$0xff] %v10090_v61  ;;  %16121 = vst [vmem:[#allocation43_spill] sm:$0xff] %v10094_v59 }
 0x1cc   :  { %16122 = vst [vmem:[#allocation44_spill] sm:$0xff] %v10098_v26  ;;  %16123 = vst [vmem:[#allocation45_spill] sm:$0xff] %v10102_v39 }
 0x1cd   :  { %16124 = vst [vmem:[#allocation46_spill] sm:$0xff] %v10106_v6  ;;  %16125 = vst [vmem:[#allocation47_spill] sm:$0xff] %v10110_v56  ;;  %v16132_v56 = vld [vmem:[#allocation6_spill] sm:$0xff] }
 0x1ce   :  { %16126 = vst [vmem:[#allocation48_spill] sm:$0xff] %v10114_v53  ;;  %16127 = vst [vmem:[#allocation49_spill] sm:$0xff] %v10118_v9  ;;  %v10134_v8 = vadd.f32 %v16087_v54, %v16132_v56  ;;  %v16134_v53 = vld [vmem:[#allocation28_spill] sm:$0xff]  ;;  %v10154_v56 = vadd.f32 %v16087_v54, %v9902_v29 }
 0x1cf   :  { %16128 = vst [vmem:[#allocation50_spill] sm:$0xff] %v10122_v44  ;;  %16129 = vst [vmem:[#allocation51_spill] sm:$0xff] %v10126_v3  ;;  %v10138_v14 = vadd.f32 %v16087_v54, %v16134_v53  ;;  %v16138_v3 = vld [vmem:[#allocation27_spill] sm:$0xff]  ;;  %v10158_v53 = vadd.f32 %v16087_v54, %v9906_v25  ;;  %v10178_v25 = vadd.f32 %v16087_v54, %v9926_v41 }
 0x1d0   :  { %16131 = vst [vmem:[#allocation5_spill] sm:$0xff] %v10130_v24  ;;  %16133 = vst [vmem:[#allocation6_spill] sm:$0xff] %v10134_v8  ;;  %v10150_v43 = vadd.f32 %v16087_v54, %v16138_v3  ;;  %v10170_v3 = vadd.f32 %v16087_v54, %v9918_v58  ;;  %v10198_v41 = vadd.f32 %v16087_v54, %v9946_v30  ;;  %v1293_v30 = vmax.f32 %v9974_v21, 0.0 }
 0x1d1   :  { %16135 = vst [vmem:[#allocation28_spill] sm:$0xff] %v10138_v14  ;;  %16136 = vst [vmem:[#allocation52_spill] sm:$0xff] %v10142_v46  ;;  %v1302_v21 = vmax.f32 %v10010_v40, 0.0 }
 0x1d2   :  { %16137 = vst [vmem:[#allocation53_spill] sm:$0xff] %v10146_v18  ;;  %16139 = vst [vmem:[#allocation27_spill] sm:$0xff] %v10150_v43  ;;  %v16145_v43 = vld [vmem:[#allocation30_spill] sm:$0xff] }
 0x1d3   :  { %16140 = vst [vmem:[#allocation54_spill] sm:$0xff] %v10154_v56  ;;  %16141 = vst [vmem:[#allocation55_spill] sm:$0xff] %v10158_v53  ;;  %v10174_v29 = vadd.f32 %v16087_v54, %v16145_v43  ;;  %v10194_v43 = vadd.f32 %v16087_v54, %v9942_v7  ;;  %v1291_v7 = vmax.f32 %v9966_v28, 0.0  ;;  %v1301_v28 = vmax.f32 %v10006_v13, 0.0 }
 0x1d4   :  { %16142 = vst [vmem:[#allocation56_spill] sm:$0xff] %v10162_v55  ;;  %16143 = vst [vmem:[#allocation57_spill] sm:$0xff] %v10166_v11  ;;  %v16150_v11 = vld [vmem:[#allocation29_spill] sm:$0xff] }
 0x1d5   :  { %16144 = vst [vmem:[#allocation58_spill] sm:$0xff] %v10170_v3  ;;  %16146 = vst [vmem:[#allocation30_spill] sm:$0xff] %v10174_v29  ;;  %v10190_v58 = vadd.f32 %v16087_v54, %v16150_v11  ;;  %v10210_v11 = vadd.f32 %v16087_v54, %v9958_v45  ;;  %v1299_v54 = vmax.f32 %v9998_v2, 0.0  ;;  %v1300_v45 = vmax.f32 %v10002_v42, 0.0 }
 0x1d6   :  { %16147 = vst [vmem:[#allocation59_spill] sm:$0xff] %v10178_v25  ;;  %16148 = vst [vmem:[#allocation60_spill] sm:$0xff] %v10182_v50  ;;  %v1305_v2 = vmax.f32 %v10022_v4, 0.0  ;;  %v1306_v42 = vmax.f32 %v10026_v1, 0.0 }
 0x1d7   :  { %16149 = vst [vmem:[#allocation61_spill] sm:$0xff] %v10186_v37  ;;  %16151 = vst [vmem:[#allocation29_spill] sm:$0xff] %v10190_v58  ;;  %v1290_v58 = vmax.f32 %v9962_v51, 0.0 }
 0x1d8   :  { %16152 = vst [vmem:[#allocation62_spill] sm:$0xff] %v10194_v43  ;;  %16153 = vst [vmem:[#allocation63_spill] sm:$0xff] %v10198_v41  ;;  %v1292_v43 = vmax.f32 %v9970_v32, 0.0  ;;  %v1294_v41 = vmax.f32 %v9978_v48, 0.0 }
 0x1d9   :  { %16154 = vst [vmem:[#allocation64_spill] sm:$0xff] %v10202_v36  ;;  %16155 = vst [vmem:[#allocation65_spill] sm:$0xff] %v10206_v60  ;;  %v1296_v36 = vmax.f32 %v9986_v0, 0.0  ;;  %v1298_v60 = vmax.f32 %v9994_v27, 0.0 }
 0x1da   :  { %16156 = vst [vmem:[#allocation66_spill] sm:$0xff] %v10210_v11  ;;  %1434 = vst.msk [vmem:[#allocation2 + $0x19] sm:$0xff] %vm100_vm1, %v1290_v58  ;;  %v1304_v58 = vmax.f32 %v10018_v23, 0.0 }
 0x1db   :  { %1435 = vst.msk [vmem:[#allocation2 + $0x21] sm:$0xff] %vm100_vm1, %v1291_v7  ;;  %1436 = vst.msk [vmem:[#allocation2 + $0x31] sm:$0xff] %vm100_vm1, %v1292_v43  ;;  %v1307_v43 = vmax.f32 %v10030_v16, 0.0  ;;  %v1309_v7 = vmax.f32 %v10038_v31, 0.0 }
 0x1dc   :  { %1437 = vst.msk [vmem:[#allocation2 + $0x39] sm:$0xff] %vm100_vm1, %v1293_v30  ;;  %1438 = vst.msk [vmem:[#allocation2 + $0x49] sm:$0xff] %vm100_vm1, %v1294_v41  ;;  %v1308_v41 = vmax.f32 %v10034_v38, 0.0  ;;  %v1310_v30 = vmax.f32 %v10042_v19, 0.0 }
 0x1dd   :  { %1439 = vst.msk [vmem:[#allocation2 + $0x51] sm:$0xff] %vm100_vm1, %v1295_v52  ;;  %1440 = vst.msk [vmem:[#allocation2 + $0x61] sm:$0xff] %vm100_vm1, %v1296_v36  ;;  %v1311_v36 = vmax.f32 %v10046_v35, 0.0  ;;  %v1313_v52 = vmax.f32 %v10054_v49, 0.0 }
 0x1de   :  { %1441 = vst.msk [vmem:[#allocation2 + $0x69] sm:$0xff] %vm100_vm1, %v1297_v62  ;;  %1442 = vst.msk [vmem:[#allocation2 + $0x79] sm:$0xff] %vm100_vm1, %v1298_v60  ;;  %v1312_v60 = vmax.f32 %v10050_v33, 0.0  ;;  %v1314_v62 = vmax.f32 %v10058_v12, 0.0 }
 0x1df   :  { %1443 = vst.msk [vmem:[#allocation2 + $0x81] sm:$0xff] %vm100_vm1, %v1299_v54  ;;  %1444 = vst.msk [vmem:[#allocation2 + $0x91] sm:$0xff] %vm100_vm1, %v1300_v45  ;;  %v1317_v54 = vmax.f32 %v10070_v17, 0.0  ;;  %v1318_v45 = vmax.f32 %v10074_v15, 0.0 }
 0x1e0   :  { %1445 = vst.msk [vmem:[#allocation2 + $0x99] sm:$0xff] %vm100_vm1, %v1301_v28  ;;  %1446 = vst.msk [vmem:[#allocation2 + $0xa9] sm:$0xff] %vm100_vm1, %v1302_v21  ;;  %v1315_v28 = vmax.f32 %v10062_v10, 0.0  ;;  %v1316_v21 = vmax.f32 %v10066_v22, 0.0 }
 0x1e1   :  { %1447 = vst.msk [vmem:[#allocation2 + $0xb1] sm:$0xff] %vm100_vm1, %v1303_v5  ;;  %1448 = vst.msk [vmem:[#allocation2 + $0xc1] sm:$0xff] %vm100_vm1, %v1304_v58  ;;  %v1319_v5 = vmax.f32 %v10078_v34, 0.0  ;;  %v1322_v58 = vmax.f32 %v10090_v61, 0.0 }
 0x1e2   :  { %1449 = vst.msk [vmem:[#allocation2 + $0xc9] sm:$0xff] %vm100_vm1, %v1305_v2  ;;  %1450 = vst.msk [vmem:[#allocation2 + $0xd9] sm:$0xff] %vm100_vm1, %v1306_v42  ;;  %v1320_v2 = vmax.f32 %v10082_v47, 0.0  ;;  %v1321_v42 = vmax.f32 %v10086_v63, 0.0 }
 0x1e3   :  { %1451 = vst.msk [vmem:[#allocation2 + $0xe1] sm:$0xff] %vm100_vm1, %v1307_v43  ;;  %1452 = vst.msk [vmem:[#allocation2 + $0xf1] sm:$0xff] %vm100_vm1, %v1308_v41  ;;  %v1323_v43 = vmax.f32 %v10094_v59, 0.0  ;;  %v1324_v41 = vmax.f32 %v10098_v26, 0.0  ;;  %v1329_v59 = vmax.f32 %v10118_v9, 0.0  ;;  %v1330_v26 = vmax.f32 %v10122_v44, 0.0 }
 0x1e4   :  { %1453 = vst.msk [vmem:[#allocation2 + $0xf9] sm:$0xff] %vm100_vm1, %v1309_v7  ;;  %1454 = vst.msk [vmem:[#allocation2 + $0x109] sm:$0xff] %vm100_vm1, %v1310_v30  ;;  %v1325_v7 = vmax.f32 %v10102_v39, 0.0  ;;  %v1326_v30 = vmax.f32 %v10106_v6, 0.0  ;;  %v1334_v9 = vmax.f32 %v10138_v14, 0.0 }
 0x1e5   :  { %1455 = vst.msk [vmem:[#allocation2 + $0x111] sm:$0xff] %vm100_vm1, %v1311_v36  ;;  %1456 = vst.msk [vmem:[#allocation2 + $0x121] sm:$0xff] %vm100_vm1, %v1312_v60  ;;  %v1564_v36 = vld [vmem:[#allocation2 + $0x19] sm:$0xff] }
 0x1e6   :  { %1457 = vst.msk [vmem:[#allocation2 + $0x129] sm:$0xff] %vm100_vm1, %v1313_v52  ;;  %1458 = vst.msk [vmem:[#allocation2 + $0x139] sm:$0xff] %vm100_vm1, %v1314_v62  ;;  %v16157_v60 = vld [vmem:[#allocation47_spill] sm:$0xff]  ;;  %v16158_v62 = vld [vmem:[#allocation48_spill] sm:$0xff]  ;;  %2143 = vrot.lane.b32.xlu1 %v1564_v36, %s8226_s0  ;;  %v1338_v36 = vmax.f32 %v10154_v56, 0.0 }
 0x1e7   :  { %1459 = vst.msk [vmem:[#allocation2 + $0x141] sm:$0xff] %vm100_vm1, %v1315_v28  ;;  %1460 = vst.msk [vmem:[#allocation2 + $0x151] sm:$0xff] %vm100_vm1, %v1316_v21  ;;  %v1327_v52 = vmax.f32 %v16157_v60, 0.0  ;;  %v1328_v63 = vmax.f32 %v16158_v62, 0.0  ;;  %v1566_v28 = vld [vmem:[#allocation2 + $0x31] sm:$0xff]  ;;  %v16159_v21 = vld [vmem:[#allocation51_spill] sm:$0xff] }
 0x1e8   :  { %1461 = vst.msk [vmem:[#allocation2 + $0x159] sm:$0xff] %vm100_vm1, %v1317_v54  ;;  %1462 = vst.msk [vmem:[#allocation2 + $0x169] sm:$0xff] %vm100_vm1, %v1318_v45  ;;  %v1331_v54 = vmax.f32 %v16159_v21, 0.0  ;;  %v1332_v45 = vmax.f32 %v10130_v24, 0.0  ;;  %v1333_v60 = vmax.f32 %v10134_v8, 0.0  ;;  %2147 = vrot.lane.b32.xlu0 %v1566_v28, %s8226_s0  ;;  %v1342_v28 = vmax.f32 %v10170_v3, 0.0 }
 0x1e9   :  { %1463 = vst.msk [vmem:[#allocation2 + $0x171] sm:$0xff] %vm100_vm1, %v1319_v5  ;;  %1464 = vst.msk [vmem:[#allocation2 + $0x181] sm:$0xff] %vm100_vm1, %v1320_v2  ;;  %v1335_v5 = vmax.f32 %v10142_v46, 0.0  ;;  %v1336_v2 = vmax.f32 %v10146_v18, 0.0  ;;  %v1635_v18 = vld [vmem:[#allocation2 + $0x6a] sm:$0xff]  ;;  %v1638_v8 = vld [vmem:[#allocation2 + $0x92] sm:$0xff] }
 0x1ea   :  { %1465 = vst.msk [vmem:[#allocation2 + $0x189] sm:$0xff] %vm100_vm1, %v1321_v42  ;;  %1466 = vst.msk [vmem:[#allocation2 + $0x1c9] sm:$0xff] %vm100_vm1, %v1322_v58  ;;  %v16160_v42 = vld [vmem:[#allocation27_spill] sm:$0xff]  ;;  %v1640_v24 = vld [vmem:[#allocation2 + $0xaa] sm:$0xff] }
 0x1eb   :  { %1467 = vst.msk [vmem:[#allocation2 + $0x1d1] sm:$0xff] %vm100_vm1, %v1323_v43  ;;  %1468 = vst.msk [vmem:[#allocation2 + $0x1e1] sm:$0xff] %vm100_vm1, %v1324_v41  ;;  %v1337_v58 = vmax.f32 %v16160_v42, 0.0  ;;  %v1339_v43 = vmax.f32 %v10158_v53, 0.0  ;;  %v1340_v41 = vmax.f32 %v10162_v55, 0.0  ;;  %v1346_v53 = vmax.f32 %v10186_v37, 0.0 }
 0x1ec   :  { %1469 = vst.msk [vmem:[#allocation2 + $0x1e9] sm:$0xff] %vm100_vm1, %v1325_v7  ;;  %1470 = vst.msk [vmem:[#allocation2 + $0x1f9] sm:$0xff] %vm100_vm1, %v1326_v30  ;;  %v16161_v7 = vld [vmem:[#allocation57_spill] sm:$0xff]  ;;  %v1636_v42 = vld [vmem:[#allocation2 + $0x7a] sm:$0xff] }
 0x1ed   :  { %1471 = vst.msk [vmem:[#allocation2 + $0x201] sm:$0xff] %vm100_vm1, %v1327_v52  ;;  %1472 = vst.msk [vmem:[#allocation2 + $0x211] sm:$0xff] %vm100_vm1, %v1328_v63  ;;  %v1341_v30 = vmax.f32 %v16161_v7, 0.0  ;;  %v1565_v63 = vld [vmem:[#allocation2 + $0x21] sm:$0xff]  ;;  %v1345_v52 = vmax.f32 %v10182_v50, 0.0  ;;  %v10455_v55 = vld [vmem:[#allocation2 + $0x52] sm:$0xff] }
 0x1ee   :  { %1473 = vst.msk [vmem:[#allocation2 + $0x219] sm:$0xff] %vm100_vm1, %v1329_v59  ;;  %1474 = vst.msk [vmem:[#allocation2 + $0x229] sm:$0xff] %vm100_vm1, %v1330_v26  ;;  %v1343_v59 = vmax.f32 %v10174_v29, 0.0  ;;  %v1344_v26 = vmax.f32 %v10178_v25, 0.0  ;;  %2145 = vrot.lane.b32.xlu1 %v1565_v63, %s8226_s0  ;;  %v16164_v25 = vld [vmem:[#allocation63_spill] sm:$0xff]  ;;  %v16165_v50 = vld [vmem:[#allocation64_spill] sm:$0xff] }
 0x1ef   :  { %1475 = vst.msk [vmem:[#allocation2 + $0x231] sm:$0xff] %vm100_vm1, %v1331_v54  ;;  %1476 = vst.msk [vmem:[#allocation2 + $0x241] sm:$0xff] %vm100_vm1, %v1332_v45  ;;  %v16163_v45 = vld [vmem:[#allocation62_spill] sm:$0xff]  ;;  %v1349_v7 = vmax.f32 %v16164_v25, 0.0  ;;  %v1350_v3 = vmax.f32 %v16165_v50, 0.0  ;;  %v1578_v63 = vld [vmem:[#allocation2 + $0xc1] sm:$0xff] }
 0x1f0   :  { %1477 = vst.msk [vmem:[#allocation2 + $0x249] sm:$0xff] %vm100_vm1, %v1333_v60  ;;  %1478 = vst.msk [vmem:[#allocation2 + $0x259] sm:$0xff] %vm100_vm1, %v1334_v9  ;;  %v1568_v60 = vld [vmem:[#allocation2 + $0x49] sm:$0xff]  ;;  %v1348_v29 = vmax.f32 %v16163_v45, 0.0  ;;  %v10446_v50 = vld [vmem:[#allocation2 + $0x3a] sm:$0xff] }
 0x1f1   :  { %1479 = vst.msk [vmem:[#allocation2 + $0x261] sm:$0xff] %vm100_vm1, %v1335_v5  ;;  %1480 = vst.msk [vmem:[#allocation2 + $0x271] sm:$0xff] %vm100_vm1, %v1336_v2  ;;  %v16162_v9 = vld [vmem:[#allocation29_spill] sm:$0xff]  ;;  %2151 = vrot.lane.b32.xlu0 %v1568_v60, %s8226_s0  ;;  %v1637_v21 = vld [vmem:[#allocation2 + $0x82] sm:$0xff] }
 0x1f2   :  { %1481 = vst.msk [vmem:[#allocation2 + $0x279] sm:$0xff] %vm100_vm1, %v1337_v58  ;;  %1482 = vst.msk [vmem:[#allocation2 + $0x289] sm:$0xff] %vm100_vm1, %v1338_v36  ;;  %v1347_v54 = vmax.f32 %v16162_v9, 0.0  ;;  %v16166_v5 = vld [vmem:[#allocation65_spill] sm:$0xff]  ;;  %v1353_v58 = vmax.f32 %v10210_v11, 0.0  ;;  %v1567_v36 = vld [vmem:[#allocation2 + $0x39] sm:$0xff] }
 0x1f3   :  { %1483 = vst.msk [vmem:[#allocation2 + $0x291] sm:$0xff] %vm100_vm1, %v1339_v43  ;;  %1484 = vst.msk [vmem:[#allocation2 + $0x2a1] sm:$0xff] %vm100_vm1, %v1340_v41  ;;  %v1351_v2 = vmax.f32 %v16166_v5, 0.0  ;;  %v1570_v43 = vld [vmem:[#allocation2 + $0x61] sm:$0xff]  ;;  %2149 = vrot.lane.b32.xlu1 %v1567_v36, %s8226_s0  ;;  %v1569_v41 = vld [vmem:[#allocation2 + $0x51] sm:$0xff] }
 0x1f4   :  { %1485 = vst.msk [vmem:[#allocation2 + $0x2a9] sm:$0xff] %vm100_vm1, %v1341_v30  ;;  %1486 = vst.msk [vmem:[#allocation2 + $0x2b9] sm:$0xff] %vm100_vm1, %v1342_v28  ;;  %v1576_v30 = vld [vmem:[#allocation2 + $0xa9] sm:$0xff]  ;;  %v1575_v28 = vld [vmem:[#allocation2 + $0x99] sm:$0xff] }
 0x1f5   :  { %1487 = vst.msk [vmem:[#allocation2 + $0x2c1] sm:$0xff] %vm100_vm1, %v1343_v59  ;;  %1488 = vst.msk [vmem:[#allocation2 + $0x2d1] sm:$0xff] %vm100_vm1, %v1344_v26  ;;  %2155 = vrot.lane.b32.xlu0 %v1570_v43, %s8226_s0  ;;  %v1577_v59 = vld [vmem:[#allocation2 + $0xb1] sm:$0xff]  ;;  %v1580_v26 = vld [vmem:[#allocation2 + $0xd9] sm:$0xff] }
 0x1f6   :  { %1489 = vst.msk [vmem:[#allocation2 + $0x2d9] sm:$0xff] %vm100_vm1, %v1345_v52  ;;  %1490 = vst.msk [vmem:[#allocation2 + $0x2e9] sm:$0xff] %vm100_vm1, %v1346_v53  ;;  %v1572_v53 = vld [vmem:[#allocation2 + $0x79] sm:$0xff]  ;;  %v1579_v52 = vld [vmem:[#allocation2 + $0xc9] sm:$0xff] }
 0x1f7   :  { %1491 = vst.msk [vmem:[#allocation2 + $0x2f1] sm:$0xff] %vm100_vm1, %v1347_v54  ;;  %1492 = vst.msk [vmem:[#allocation2 + $0x301] sm:$0xff] %vm100_vm1, %v1348_v29  ;;  %2153 = vrot.lane.b32.xlu1 %v1569_v41, %s8226_s0  ;;  %v1571_v29 = vld [vmem:[#allocation2 + $0x69] sm:$0xff]  ;;  %v1582_v60 = vld [vmem:[#allocation2 + $0xf1] sm:$0xff] }
 0x1f8   :  { %1493 = vst.msk [vmem:[#allocation2 + $0x309] sm:$0xff] %vm100_vm1, %v1349_v7  ;;  %1494 = vst.msk [vmem:[#allocation2 + $0x319] sm:$0xff] %vm100_vm1, %v1350_v3  ;;  %v1574_v7 = vld [vmem:[#allocation2 + $0x91] sm:$0xff]  ;;  %v1573_v3 = vld [vmem:[#allocation2 + $0x81] sm:$0xff] }
 0x1f9   :  { %1495 = vst.msk [vmem:[#allocation2 + $0x321] sm:$0xff] %vm100_vm1, %v1351_v2  ;;  %1497 = vst.msk [vmem:[#allocation2 + $0x339] sm:$0xff] %vm100_vm1, %v1353_v58  ;;  %2159 = vrot.lane.b32.xlu0 %v1572_v53, %s8226_s0  ;;  %v1581_v54 = vld [vmem:[#allocation2 + $0xe1] sm:$0xff]  ;;  %v1584_v2 = vld [vmem:[#allocation2 + $0x109] sm:$0xff] }
 0x1fa   :  { %v1583_v58 = vld [vmem:[#allocation2 + $0xf9] sm:$0xff]  ;;  %v1586_v36 = vld [vmem:[#allocation2 + $0x121] sm:$0xff]  ;;  %v1585_v43 = vld [vmem:[#allocation2 + $0x111] sm:$0xff] }
 0x1fb   :  { %2157 = vrot.lane.b32.xlu1 %v1571_v29, %s8226_s0  ;;  %v1588_v41 = vld [vmem:[#allocation2 + $0x139] sm:$0xff]  ;;  %v1587_v53 = vld [vmem:[#allocation2 + $0x129] sm:$0xff]  ;;  %v1590_v29 = vld [vmem:[#allocation2 + $0x151] sm:$0xff] }
 0x1fc   :  { %v10436_v5 = vld [vmem:[#allocation2 + $0x4a] sm:$0xff]  ;;  %v1634_v9 = vld [vmem:[#allocation2 + $0x62] sm:$0xff]  ;;  %v1639_v62 = vld [vmem:[#allocation2 + $0x9a] sm:$0xff] }
 0x1fd   :  { %2163 = vrot.lane.b32.xlu0 %v1574_v7, %s8226_s0  ;;  %v1589_v7 = vld [vmem:[#allocation2 + $0x141] sm:$0xff]  ;;  %v1641_v6 = vld [vmem:[#allocation2 + $0xb2] sm:$0xff]  ;;  %v1643_v34 = vld [vmem:[#allocation2 + $0xca] sm:$0xff] }
 0x1fe   :  { %v1642_v39 = vld [vmem:[#allocation2 + $0xc2] sm:$0xff]  ;;  %v1644_v61 = vld [vmem:[#allocation2 + $0xda] sm:$0xff]  ;;  %v1646_v47 = vld [vmem:[#allocation2 + $0xf2] sm:$0xff] }
 0x1ff   :  { %2161 = vrot.lane.b32.xlu1 %v1573_v3, %s8226_s0  ;;  %v1592_v3 = vld [vmem:[#allocation2 + $0x169] sm:$0xff]  ;;  %v1647_v10 = vld [vmem:[#allocation2 + $0xfa] sm:$0xff]  ;;  %v1649_v49 = vld [vmem:[#allocation2 + $0x112] sm:$0xff] }
 0x200   :  { %v1645_v17 = vld [vmem:[#allocation2 + $0xe2] sm:$0xff]  ;;  %v1648_v15 = vld [vmem:[#allocation2 + $0x10a] sm:$0xff]  ;;  %v1652_v12 = vld [vmem:[#allocation2 + $0x13a] sm:$0xff] }
 0x201   :  { %2167 = vrot.lane.b32.xlu0 %v1576_v30, %s8226_s0  ;;  %v1591_v30 = vld [vmem:[#allocation2 + $0x159] sm:$0xff]  ;;  %v1650_v22 = vld [vmem:[#allocation2 + $0x122] sm:$0xff]  ;;  %v1651_v35 = vld [vmem:[#allocation2 + $0x12a] sm:$0xff] }
 0x202   :  { %v1654_v33 = vld [vmem:[#allocation2 + $0x152] sm:$0xff]  ;;  %v1653_v31 = vld [vmem:[#allocation2 + $0x142] sm:$0xff]  ;;  %v1656_v19 = vld [vmem:[#allocation2 + $0x16a] sm:$0xff] }
 0x203   :  { %2165 = vrot.lane.b32.xlu1 %v1575_v28, %s8226_s0  ;;  %v1596_v28 = vld [vmem:[#allocation2 + $0x1c9] sm:$0xff]  ;;  %v1655_v16 = vld [vmem:[#allocation2 + $0x15a] sm:$0xff]  ;;  %v1657_v4 = vld [vmem:[#allocation2 + $0x172] sm:$0xff] }
 0x204   :  { %v1660_v38 = vld [vmem:[#allocation2 + $0x1ca] sm:$0xff]  ;;  %v1662_v1 = vld [vmem:[#allocation2 + $0x1e2] sm:$0xff]  ;;  %v1661_v57 = vld [vmem:[#allocation2 + $0x1d2] sm:$0xff] }
 0x205   :  { %2171 = vrot.lane.b32.xlu0 %v1578_v63, %s8226_s0  ;;  %v1593_v63 = vld [vmem:[#allocation2 + $0x171] sm:$0xff]  ;;  %v1664_v23 = vld [vmem:[#allocation2 + $0x1fa] sm:$0xff]  ;;  %v1665_v27 = vld [vmem:[#allocation2 + $0x202] sm:$0xff] }
 0x206   :  { %v1663_v13 = vld [vmem:[#allocation2 + $0x1ea] sm:$0xff]  ;;  %v1666_v40 = vld [vmem:[#allocation2 + $0x212] sm:$0xff]  ;;  %v1667_v0 = vld [vmem:[#allocation2 + $0x21a] sm:$0xff] }
 0x207   :  { %2169 = vrot.lane.b32.xlu1 %v1577_v59, %s8226_s0  ;;  %v1598_v59 = vld [vmem:[#allocation2 + $0x1e1] sm:$0xff]  ;;  %v1668_v20 = vld [vmem:[#allocation2 + $0x22a] sm:$0xff]  ;;  %v1669_v32 = vld [vmem:[#allocation2 + $0x232] sm:$0xff] }
 0x208   :  { %v1670_v48 = vld [vmem:[#allocation2 + $0x242] sm:$0xff]  ;;  %v1672_v51 = vld [vmem:[#allocation2 + $0x25a] sm:$0xff] }
 0x209   :  { %2175 = vrot.lane.b32.xlu0 %v1580_v26, %s8226_s0  ;;  %v1597_v26 = vld [vmem:[#allocation2 + $0x1d1] sm:$0xff] }
 0x20b   :  { %2173 = vrot.lane.b32.xlu1 %v1579_v52, %s8226_s0  ;;  %v1600_v52 = vld [vmem:[#allocation2 + $0x1f9] sm:$0xff] }
 0x20d   :  { %2179 = vrot.lane.b32.xlu0 %v1582_v60, %s8226_s0  ;;  %v1599_v60 = vld [vmem:[#allocation2 + $0x1e9] sm:$0xff] }
 0x20f   :  { %2177 = vrot.lane.b32.xlu1 %v1581_v54, %s8226_s0  ;;  %v1602_v54 = vld [vmem:[#allocation2 + $0x211] sm:$0xff] }
 0x211   :  { %2183 = vrot.lane.b32.xlu0 %v1584_v2, %s8226_s0  ;;  %v1601_v2 = vld [vmem:[#allocation2 + $0x201] sm:$0xff] }
 0x213   :  { %2181 = vrot.lane.b32.xlu1 %v1583_v58, %s8226_s0  ;;  %v1604_v58 = vld [vmem:[#allocation2 + $0x229] sm:$0xff] }
 0x215   :  { %2187 = vrot.lane.b32.xlu0 %v1586_v36, %s8226_s0  ;;  %v1603_v36 = vld [vmem:[#allocation2 + $0x219] sm:$0xff] }
 0x217   :  { %2185 = vrot.lane.b32.xlu1 %v1585_v43, %s8226_s0  ;;  %v1606_v43 = vld [vmem:[#allocation2 + $0x241] sm:$0xff] }
 0x219   :  { %2191 = vrot.lane.b32.xlu0 %v1588_v41, %s8226_s0  ;;  %v1605_v41 = vld [vmem:[#allocation2 + $0x231] sm:$0xff] }
 0x21b   :  { %2189 = vrot.lane.b32.xlu1 %v1587_v53, %s8226_s0  ;;  %v1608_v53 = vld [vmem:[#allocation2 + $0x259] sm:$0xff] }
 0x21d   :  { %2195 = vrot.lane.b32.xlu0 %v1590_v29, %s8226_s0  ;;  %v1607_v29 = vld [vmem:[#allocation2 + $0x249] sm:$0xff] }
 0x21f   :  { %2193 = vrot.lane.b32.xlu1 %v1589_v7, %s8226_s0  ;;  %v1610_v7 = vld [vmem:[#allocation2 + $0x271] sm:$0xff] }
 0x221   :  { %2199 = vrot.lane.b32.xlu0 %v1592_v3, %s8226_s0  ;;  %v1609_v3 = vld [vmem:[#allocation2 + $0x261] sm:$0xff] }
 0x223   :  { %2197 = vrot.lane.b32.xlu1 %v1591_v30, %s8226_s0  ;;  %v10382_v30 = vpop.permute.xlu0 %2139 }
 0x225   :  { %2207 = vrot.lane.b32.xlu0 %v1596_v28, %s8226_s0  ;;  %v1612_v28 = vld [vmem:[#allocation2 + $0x289] sm:$0xff] }
 0x227   :  { %2201 = vrot.lane.b32.xlu1 %v1593_v63, %s8226_s0  ;;  %v1611_v63 = vld [vmem:[#allocation2 + $0x279] sm:$0xff] }
 0x229   :  { %2211 = vrot.lane.b32.xlu0 %v1598_v59, %s8226_s0  ;;  %v1614_v59 = vld [vmem:[#allocation2 + $0x2a1] sm:$0xff] }
 0x22b   :  { %2209 = vrot.lane.b32.xlu1 %v1597_v26, %s8226_s0  ;;  %v10388_v26 = vpop.permute.xlu0 %2141 }
 0x22d   :  { %2215 = vrot.lane.b32.xlu0 %v1600_v52, %s8226_s0  ;;  %v1613_v52 = vld [vmem:[#allocation2 + $0x291] sm:$0xff] }
 0x22f   :  { %2213 = vrot.lane.b32.xlu1 %v1599_v60, %s8226_s0  ;;  %v1616_v60 = vld [vmem:[#allocation2 + $0x2b9] sm:$0xff] }
 0x231   :  { %2219 = vrot.lane.b32.xlu0 %v1602_v54, %s8226_s0  ;;  %v10392_v54 = vpop.permute.xlu1 %2205 }
 0x232   :  { %16167 = vst [vmem:[#allocation67_spill] sm:$0xff] %v10392_v54  ;;  %v10675_v54 = vld [vmem:[#allocation2 + $0x80] sm:$0xff] }
 0x233   :  { %2217 = vrot.lane.b32.xlu1 %v1601_v2, %s8226_s0  ;;  %v10394_v2 = vpop.permute.xlu0 %2203 }
 0x234   :  { %16168 = vst [vmem:[#allocation68_spill] sm:$0xff] %v10394_v2 }
 0x235   :  { %2223 = vrot.lane.b32.xlu0 %v1604_v58, %s8226_s0  ;;  %v1615_v58 = vld [vmem:[#allocation2 + $0x2a9] sm:$0xff] }
 0x237   :  { %2221 = vrot.lane.b32.xlu1 %v1603_v36, %s8226_s0  ;;  %v1618_v36 = vld [vmem:[#allocation2 + $0x2d1] sm:$0xff] }
 0x239   :  { %2227 = vrot.lane.b32.xlu0 %v1606_v43, %s8226_s0  ;;  %v1617_v43 = vld [vmem:[#allocation2 + $0x2c1] sm:$0xff] }
 0x23b   :  { %2225 = vrot.lane.b32.xlu1 %v1605_v41, %s8226_s0  ;;  %v10398_v41 = vpop.permute.xlu1 %2397 }
 0x23d   :  { %2231 = vrot.lane.b32.xlu0 %v1608_v53, %s8226_s0  ;;  %v1620_v53 = vld [vmem:[#allocation2 + $0x2e9] sm:$0xff] }
 0x23f   :  { %2229 = vrot.lane.b32.xlu1 %v1607_v29, %s8226_s0  ;;  %v10401_v29 = vpop.permute.xlu0 %2395 }
 0x241   :  { %2235 = vrot.lane.b32.xlu0 %v1610_v7, %s8226_s0  ;;  %v1619_v7 = vld [vmem:[#allocation2 + $0x2d9] sm:$0xff] }
 0x243   :  { %2233 = vrot.lane.b32.xlu1 %v1609_v3, %s8226_s0  ;;  %v1622_v3 = vld [vmem:[#allocation2 + $0x301] sm:$0xff] }
 0x245   :  { %2239 = vrot.lane.b32.xlu0 %v1612_v28, %s8226_s0  ;;  %v10406_v28 = vpop.permute.xlu0 %2459 }
 0x246   :  { %16169 = vst [vmem:[#allocation69_spill] sm:$0xff] %v10406_v28 }
 0x247   :  { %2237 = vrot.lane.b32.xlu1 %v1611_v63, %s8226_s0  ;;  %v10408_v63 = vpop.permute.xlu1 %2461 }
 0x248   :  { %16170 = vst [vmem:[#allocation70_spill] sm:$0xff] %v10408_v63  ;;  %v1510_v63 = vld [vmem:[#allocation2 + $0x90] sm:$0xff] }
 0x249   :  { %2243 = vrot.lane.b32.xlu0 %v1614_v59, %s8226_s0  ;;  %v1621_v59 = vld [vmem:[#allocation2 + $0x2f1] sm:$0xff] }
 0x24b   :  { %2241 = vrot.lane.b32.xlu1 %v1613_v52, %s8226_s0  ;;  %v1624_v52 = vld [vmem:[#allocation2 + $0x319] sm:$0xff] }
 0x24d   :  { %2247 = vrot.lane.b32.xlu0 %v1616_v60, %s8226_s0 }
 0x24f   :  { %2245 = vrot.lane.b32.xlu1 %v1615_v58, %s8226_s0 }
 0x251   :  { %2251 = vrot.lane.b32.xlu0 %v1618_v36, %s8226_s0  ;;  %v1623_v36 = vld [vmem:[#allocation2 + $0x309] sm:$0xff] }
 0x253   :  { %2249 = vrot.lane.b32.xlu1 %v1617_v43, %s8226_s0  ;;  %v10416_v43 = vld [vmem:[#allocation2 + $0x1a] sm:$0xff] }
 0x255   :  { %2255 = vrot.lane.b32.xlu0 %v1620_v53, %s8226_s0 }
 0x257   :  { %2253 = vrot.lane.b32.xlu1 %v1619_v7, %s8226_s0 }
 0x258   :  { %v10412_v60 = vpop.permute.xlu1 %2143 }
 0x259   :  { %2259 = vrot.lane.b32.xlu0 %v1622_v3, %s8226_s0  ;;  %v1625_v3 = vld [vmem:[#allocation2 + $0x321] sm:$0xff] }
 0x25a   :  { %v10414_v58 = vpop.permute.xlu0 %2147 }
 0x25b   :  { %2257 = vrot.lane.b32.xlu1 %v1621_v59, %s8226_s0  ;;  %v10425_v59 = vld [vmem:[#allocation2 + $0x32] sm:$0xff] }
 0x25d   :  { %2263 = vrot.lane.b32.xlu0 %v1624_v52, %s8226_s0 }
 0x25f   :  { %2261 = vrot.lane.b32.xlu1 %v1623_v36, %s8226_s0  ;;  %v10434_v36 = vld [vmem:[#allocation2 + $0x22] sm:$0xff] }
 0x260   :  { %v10421_v53 = vpop.permute.xlu1 %2145 }
 0x261   :  { %2399 = vrot.lane.b32.xlu0 %v10416_v43, %s8227_s17 }
 0x263   :  { %v10423_v7 = vpop.permute.xlu0 %2151  ;;  %2265 = vrot.lane.b32.xlu1 %v1625_v3, %s8226_s0 }
 0x265   :  { %2403 = vrot.lane.b32.xlu0 %v10425_v59, %s8227_s17  ;;  %v10430_v52 = vpop.permute.xlu1 %2149 }
 0x267   :  { %v10432_v11 = vpop.permute.xlu0 %2155  ;;  %2401 = vrot.lane.b32.xlu1 %v10434_v36, %s8227_s17 }
 0x269   :  { %2407 = vrot.lane.b32.xlu0 %v10436_v5, %s8227_s17  ;;  %v10442_v25 = vpop.permute.xlu1 %2153 }
 0x26b   :  { %v10444_v3 = vpop.permute.xlu0 %2159  ;;  %2405 = vrot.lane.b32.xlu1 %v10446_v50, %s8227_s17 }
 0x26d   :  { %2411 = vrot.lane.b32.xlu0 %v1634_v9, %s8227_s17  ;;  %v10451_v45 = vpop.permute.xlu1 %2157 }
 0x26f   :  { %v10453_v37 = vpop.permute.xlu0 %2163  ;;  %2409 = vrot.lane.b32.xlu1 %v10455_v55, %s8227_s17 }
 0x271   :  { %2415 = vrot.lane.b32.xlu0 %v1636_v42, %s8227_s17  ;;  %v10460_v56 = vpop.permute.xlu1 %2161 }
 0x273   :  { %v10462_v46 = vpop.permute.xlu0 %2167  ;;  %2413 = vrot.lane.b32.xlu1 %v1635_v18, %s8227_s17 }
 0x274   :  { %16171 = vst [vmem:[#allocation71_spill] sm:$0xff] %v10462_v46 }
 0x275   :  { %2419 = vrot.lane.b32.xlu0 %v1638_v8, %s8227_s17  ;;  %v10466_v9 = vpop.permute.xlu1 %2165 }
 0x276   :  { %16172 = vst [vmem:[#allocation72_spill] sm:$0xff] %v10466_v9  ;;  %v1895_v9 = vld [vmem:[#allocation2 + $0xc0] sm:$0xff] }
 0x277   :  { %v10468_v14 = vpop.permute.xlu0 %2171  ;;  %2417 = vrot.lane.b32.xlu1 %v1637_v21, %s8227_s17 }
 0x278   :  { %16173 = vst [vmem:[#allocation73_spill] sm:$0xff] %v10468_v14  ;;  %v1954_v14 = vld [vmem:[#allocation2 + $0x81] sm:$0xff] }
 0x279   :  { %2423 = vrot.lane.b32.xlu0 %v1640_v24, %s8227_s17  ;;  %v10472_v42 = vpop.permute.xlu1 %2169 }
 0x27a   :  { %16174 = vst [vmem:[#allocation74_spill] sm:$0xff] %v10472_v42  ;;  %v1827_v42 = vld [vmem:[#allocation2 + $0x82] sm:$0xff] }
 0x27b   :  { %v10474_v44 = vpop.permute.xlu0 %2175  ;;  %2421 = vrot.lane.b32.xlu1 %v1639_v62, %s8227_s17 }
 0x27c   :  { %16175 = vst [vmem:[#allocation75_spill] sm:$0xff] %v10474_v44  ;;  %v1889_v44 = vld [vmem:[#allocation2 + $0x78] sm:$0xff] }
 0x27d   :  { %2427 = vrot.lane.b32.xlu0 %v1642_v39, %s8227_s17  ;;  %v10478_v8 = vpop.permute.xlu1 %2173 }
 0x27e   :  { %16176 = vst [vmem:[#allocation76_spill] sm:$0xff] %v10478_v8 }
 0x27f   :  { %v10480_v18 = vpop.permute.xlu0 %2179  ;;  %2425 = vrot.lane.b32.xlu1 %v1641_v6, %s8227_s17 }
 0x280   :  { %16177 = vst [vmem:[#allocation77_spill] sm:$0xff] %v10480_v18  ;;  %v1518_v18 = vld [vmem:[#allocation2 + $0xf0] sm:$0xff] }
 0x281   :  { %2431 = vrot.lane.b32.xlu0 %v1644_v61, %s8227_s17  ;;  %v10484_v24 = vpop.permute.xlu1 %2177 }
 0x282   :  { %16178 = vst [vmem:[#allocation78_spill] sm:$0xff] %v10484_v24 }
 0x283   :  { %v10486_v21 = vpop.permute.xlu0 %2183  ;;  %2429 = vrot.lane.b32.xlu1 %v1643_v34, %s8227_s17 }
 0x284   :  { %16179 = vst [vmem:[#allocation79_spill] sm:$0xff] %v10486_v21  ;;  %v1515_v21 = vld [vmem:[#allocation2 + $0xc8] sm:$0xff] }
 0x285   :  { %2435 = vrot.lane.b32.xlu0 %v1646_v47, %s8227_s17  ;;  %v10490_v39 = vpop.permute.xlu1 %2181 }
 0x286   :  { %16180 = vst [vmem:[#allocation80_spill] sm:$0xff] %v10490_v39 }
 0x287   :  { %v10492_v62 = vpop.permute.xlu0 %2187  ;;  %2433 = vrot.lane.b32.xlu1 %v1645_v17, %s8227_s17 }
 0x288   :  { %16181 = vst [vmem:[#allocation81_spill] sm:$0xff] %v10492_v62 }
 0x289   :  { %2439 = vrot.lane.b32.xlu0 %v1648_v15, %s8227_s17  ;;  %v10496_v61 = vpop.permute.xlu1 %2185 }
 0x28a   :  { %16182 = vst [vmem:[#allocation82_spill] sm:$0xff] %v10496_v61  ;;  %v1516_v61 = vld [vmem:[#allocation2 + $0xd8] sm:$0xff] }
 0x28b   :  { %v10498_v6 = vpop.permute.xlu0 %2191  ;;  %2437 = vrot.lane.b32.xlu1 %v1647_v10, %s8227_s17 }
 0x28c   :  { %16183 = vst [vmem:[#allocation83_spill] sm:$0xff] %v10498_v6  ;;  %v1514_v6 = vld [vmem:[#allocation2 + $0xc0] sm:$0xff] }
 0x28d   :  { %2443 = vrot.lane.b32.xlu0 %v1650_v22, %s8227_s17  ;;  %v10502_v34 = vpop.permute.xlu1 %2189 }
 0x28e   :  { %16184 = vst [vmem:[#allocation84_spill] sm:$0xff] %v10502_v34  ;;  %v1513_v34 = vld [vmem:[#allocation2 + $0xb0] sm:$0xff] }
 0x28f   :  { %v10504_v47 = vpop.permute.xlu0 %2195  ;;  %2441 = vrot.lane.b32.xlu1 %v1649_v49, %s8227_s17 }
 0x290   :  { %16185 = vst [vmem:[#allocation85_spill] sm:$0xff] %v10504_v47  ;;  %v1511_v47 = vld [vmem:[#allocation2 + $0x98] sm:$0xff] }
 0x291   :  { %2447 = vrot.lane.b32.xlu0 %v1652_v12, %s8227_s17  ;;  %v10508_v17 = vpop.permute.xlu1 %2193 }
 0x292   :  { %16186 = vst [vmem:[#allocation86_spill] sm:$0xff] %v10508_v17 }
 0x293   :  { %v10510_v15 = vpop.permute.xlu0 %2199  ;;  %2445 = vrot.lane.b32.xlu1 %v1651_v35, %s8227_s17 }
 0x294   :  { %16187 = vst [vmem:[#allocation87_spill] sm:$0xff] %v10510_v15  ;;  %v1512_v15 = vld [vmem:[#allocation2 + $0xa8] sm:$0xff] }
 0x295   :  { %2451 = vrot.lane.b32.xlu0 %v1654_v33, %s8227_s17  ;;  %v10514_v10 = vpop.permute.xlu1 %2197 }
 0x296   :  { %16188 = vst [vmem:[#allocation88_spill] sm:$0xff] %v10514_v10 }
 0x297   :  { %v10516_v22 = vpop.permute.xlu0 %2207  ;;  %2449 = vrot.lane.b32.xlu1 %v1653_v31, %s8227_s17 }
 0x298   :  { %16189 = vst [vmem:[#allocation89_spill] sm:$0xff] %v10516_v22  ;;  %v10666_v22 = vld [vmem:[#allocation2 + $0x68] sm:$0xff] }
 0x299   :  { %2455 = vrot.lane.b32.xlu0 %v1656_v19, %s8227_s17  ;;  %v10520_v49 = vpop.permute.xlu1 %2201 }
 0x29a   :  { %16190 = vst [vmem:[#allocation90_spill] sm:$0xff] %v10520_v49 }
 0x29b   :  { %v10522_v12 = vpop.permute.xlu0 %2211  ;;  %2453 = vrot.lane.b32.xlu1 %v1655_v16, %s8227_s17 }
 0x29c   :  { %16191 = vst [vmem:[#allocation91_spill] sm:$0xff] %v10522_v12  ;;  %v10658_v12 = vld [vmem:[#allocation2 + $0x78] sm:$0xff] }
 0x29d   :  { %2463 = vrot.lane.b32.xlu0 %v1660_v38, %s8227_s17  ;;  %v10526_v35 = vpop.permute.xlu1 %2209 }
 0x29e   :  { %16192 = vst [vmem:[#allocation92_spill] sm:$0xff] %v10526_v35 }
 0x29f   :  { %v10528_v33 = vpop.permute.xlu0 %2215  ;;  %2457 = vrot.lane.b32.xlu1 %v1657_v4, %s8227_s17 }
 0x2a0   :  { %16193 = vst [vmem:[#allocation93_spill] sm:$0xff] %v10528_v33  ;;  %v10654_v33 = vld [vmem:[#allocation2 + $0x50] sm:$0xff] }
 0x2a1   :  { %2467 = vrot.lane.b32.xlu0 %v1662_v1, %s8227_s17  ;;  %v10532_v31 = vpop.permute.xlu1 %2213 }
 0x2a2   :  { %16194 = vst [vmem:[#allocation94_spill] sm:$0xff] %v10532_v31 }
 0x2a3   :  { %v10534_v19 = vpop.permute.xlu0 %2219  ;;  %2465 = vrot.lane.b32.xlu1 %v1661_v57, %s8227_s17 }
 0x2a4   :  { %16195 = vst [vmem:[#allocation95_spill] sm:$0xff] %v10534_v19  ;;  %v10646_v19 = vld [vmem:[#allocation2 + $0x60] sm:$0xff] }
 0x2a5   :  { %2471 = vrot.lane.b32.xlu0 %v1664_v23, %s8227_s17  ;;  %v10538_v16 = vpop.permute.xlu1 %2217 }
 0x2a6   :  { %16196 = vst [vmem:[#allocation96_spill] sm:$0xff] %v10538_v16 }
 0x2a7   :  { %v10540_v38 = vpop.permute.xlu0 %2223  ;;  %2469 = vrot.lane.b32.xlu1 %v1663_v13, %s8227_s17 }
 0x2a8   :  { %16197 = vst [vmem:[#allocation97_spill] sm:$0xff] %v10540_v38 }
 0x2a9   :  { %2475 = vrot.lane.b32.xlu0 %v1666_v40, %s8227_s17  ;;  %v10544_v4 = vpop.permute.xlu1 %2221 }
 0x2aa   :  { %16198 = vst [vmem:[#allocation98_spill] sm:$0xff] %v10544_v4 }
 0x2ab   :  { %v10546_v1 = vpop.permute.xlu0 %2227  ;;  %2473 = vrot.lane.b32.xlu1 %v1665_v27, %s8227_s17 }
 0x2ac   :  { %16199 = vst [vmem:[#allocation99_spill] sm:$0xff] %v10546_v1  ;;  %v1674_v1 = vld [vmem:[#allocation2 + $0x272] sm:$0xff] }
 0x2ad   :  { %2479 = vrot.lane.b32.xlu0 %v1668_v20, %s8227_s17  ;;  %v10550_v57 = vpop.permute.xlu1 %2225 }
 0x2ae   :  { %16200 = vst [vmem:[#allocation100_spill] sm:$0xff] %v10550_v57  ;;  %v10634_v57 = vld [vmem:[#allocation2 + $0x48] sm:$0xff] }
 0x2af   :  { %v10552_v23 = vpop.permute.xlu0 %2231  ;;  %2477 = vrot.lane.b32.xlu1 %v1667_v0, %s8227_s17 }
 0x2b0   :  { %16201 = vst [vmem:[#allocation101_spill] sm:$0xff] %v10552_v23  ;;  %v1671_v23 = vld [vmem:[#allocation2 + $0x24a] sm:$0xff] }
 0x2b1   :  { %2483 = vrot.lane.b32.xlu0 %v1670_v48, %s8227_s17  ;;  %v10556_v13 = vpop.permute.xlu1 %2229 }
 0x2b2   :  { %16202 = vst [vmem:[#allocation102_spill] sm:$0xff] %v10556_v13  ;;  %v1676_v13 = vld [vmem:[#allocation2 + $0x28a] sm:$0xff] }
 0x2b3   :  { %v10558_v40 = vpop.permute.xlu0 %2235  ;;  %2481 = vrot.lane.b32.xlu1 %v1669_v32, %s8227_s17 }
 0x2b4   :  { %16203 = vst [vmem:[#allocation103_spill] sm:$0xff] %v10558_v40  ;;  %v1673_v40 = vld [vmem:[#allocation2 + $0x262] sm:$0xff] }
 0x2b5   :  { %2487 = vrot.lane.b32.xlu0 %v1672_v51, %s8227_s17  ;;  %v10562_v20 = vpop.permute.xlu1 %2233 }
 0x2b6   :  { %16204 = vst [vmem:[#allocation104_spill] sm:$0xff] %v10562_v20  ;;  %v1678_v20 = vld [vmem:[#allocation2 + $0x2a2] sm:$0xff] }
 0x2b7   :  { %v10564_v27 = vpop.permute.xlu0 %2239  ;;  %2485 = vrot.lane.b32.xlu1 %v1671_v23, %s8227_s17 }
 0x2b8   :  { %16205 = vst [vmem:[#allocation105_spill] sm:$0xff] %v10564_v27  ;;  %v1675_v27 = vld [vmem:[#allocation2 + $0x27a] sm:$0xff] }
 0x2b9   :  { %2491 = vrot.lane.b32.xlu0 %v1674_v1, %s8227_s17  ;;  %v10568_v48 = vpop.permute.xlu1 %2237 }
 0x2ba   :  { %16206 = vst [vmem:[#allocation106_spill] sm:$0xff] %v10568_v48  ;;  %v1680_v48 = vld [vmem:[#allocation2 + $0x2ba] sm:$0xff] }
 0x2bb   :  { %v10570_v0 = vpop.permute.xlu0 %2243  ;;  %2489 = vrot.lane.b32.xlu1 %v1673_v40, %s8227_s17 }
 0x2bc   :  { %16207 = vst [vmem:[#allocation107_spill] sm:$0xff] %v10570_v0  ;;  %v1677_v0 = vld [vmem:[#allocation2 + $0x292] sm:$0xff] }
 0x2bd   :  { %2495 = vrot.lane.b32.xlu0 %v1676_v13, %s8227_s17  ;;  %v10574_v51 = vpop.permute.xlu1 %2241 }
 0x2be   :  { %16208 = vst [vmem:[#allocation108_spill] sm:$0xff] %v10574_v51  ;;  %v1682_v51 = vld [vmem:[#allocation2 + $0x2d2] sm:$0xff] }
 0x2bf   :  { %v10576_v32 = vpop.permute.xlu0 %2247  ;;  %2493 = vrot.lane.b32.xlu1 %v1675_v27, %s8227_s17 }
 0x2c0   :  { %16209 = vst [vmem:[#allocation109_spill] sm:$0xff] %v10576_v32  ;;  %v1679_v32 = vld [vmem:[#allocation2 + $0x2aa] sm:$0xff] }
 0x2c1   :  { %2499 = vrot.lane.b32.xlu0 %v1678_v20, %s8227_s17  ;;  %v10580_v1 = vpop.permute.xlu1 %2245 }
 0x2c2   :  { %16210 = vst [vmem:[#allocation110_spill] sm:$0xff] %v10580_v1  ;;  %v1684_v1 = vld [vmem:[#allocation2 + $0x2ea] sm:$0xff] }
 0x2c3   :  { %v10582_v23 = vpop.permute.xlu0 %2251  ;;  %2497 = vrot.lane.b32.xlu1 %v1677_v0, %s8227_s17 }
 0x2c4   :  { %16211 = vst [vmem:[#allocation111_spill] sm:$0xff] %v10582_v23  ;;  %v1681_v23 = vld [vmem:[#allocation2 + $0x2c2] sm:$0xff] }
 0x2c5   :  { %2503 = vrot.lane.b32.xlu0 %v1680_v48, %s8227_s17  ;;  %v10586_v13 = vpop.permute.xlu1 %2249 }
 0x2c6   :  { %16212 = vst [vmem:[#allocation112_spill] sm:$0xff] %v10586_v13  ;;  %v1686_v13 = vld [vmem:[#allocation2 + $0x302] sm:$0xff] }
 0x2c7   :  { %v10588_v40 = vpop.permute.xlu0 %2255  ;;  %2501 = vrot.lane.b32.xlu1 %v1679_v32, %s8227_s17 }
 0x2c8   :  { %16213 = vst [vmem:[#allocation113_spill] sm:$0xff] %v10588_v40  ;;  %v1683_v40 = vld [vmem:[#allocation2 + $0x2da] sm:$0xff] }
 0x2c9   :  { %2507 = vrot.lane.b32.xlu0 %v1682_v51, %s8227_s17  ;;  %v10592_v20 = vpop.permute.xlu1 %2253 }
 0x2ca   :  { %16214 = vst [vmem:[#allocation114_spill] sm:$0xff] %v10592_v20  ;;  %v1688_v20 = vld [vmem:[#allocation2 + $0x31a] sm:$0xff] }
 0x2cb   :  { %v10594_v27 = vpop.permute.xlu0 %2259  ;;  %2505 = vrot.lane.b32.xlu1 %v1681_v23, %s8227_s17 }
 0x2cc   :  { %16215 = vst [vmem:[#allocation115_spill] sm:$0xff] %v10594_v27  ;;  %v1685_v27 = vld [vmem:[#allocation2 + $0x2f2] sm:$0xff] }
 0x2cd   :  { %2511 = vrot.lane.b32.xlu0 %v1684_v1, %s8227_s17  ;;  %v10598_v48 = vpop.permute.xlu1 %2257 }
 0x2ce   :  { %16216 = vst [vmem:[#allocation116_spill] sm:$0xff] %v10598_v48  ;;  %v10614_v48 = vld [vmem:[#allocation2 + $0x18] sm:$0xff] }
 0x2cf   :  { %v10600_v0 = vpop.permute.xlu0 %2263  ;;  %2509 = vrot.lane.b32.xlu1 %v1683_v40, %s8227_s17 }
 0x2d0   :  { %16217 = vst [vmem:[#allocation117_spill] sm:$0xff] %v10600_v0  ;;  %v1687_v0 = vld [vmem:[#allocation2 + $0x30a] sm:$0xff] }
 0x2d1   :  { %2515 = vrot.lane.b32.xlu0 %v1686_v13, %s8227_s17  ;;  %v10604_v51 = vpop.permute.xlu1 %2261 }
 0x2d2   :  { %16218 = vst [vmem:[#allocation118_spill] sm:$0xff] %v10604_v51  ;;  %v10623_v51 = vld [vmem:[#allocation2 + $0x30] sm:$0xff] }
 0x2d3   :  { %v10606_v32 = vpop.permute.xlu0 %2399  ;;  %2513 = vrot.lane.b32.xlu1 %v1685_v27, %s8227_s17  ;;  %v1689_v27 = vld [vmem:[#allocation2 + $0x322] sm:$0xff] }
 0x2d5   :  { %2519 = vrot.lane.b32.xlu0 %v1688_v20, %s8227_s17  ;;  %v10610_v1 = vpop.permute.xlu1 %2265 }
 0x2d6   :  { %16219 = vst [vmem:[#allocation119_spill] sm:$0xff] %v10610_v1  ;;  %v10630_v1 = vld [vmem:[#allocation2 + $0x20] sm:$0xff] }
 0x2d7   :  { %v10612_v23 = vpop.permute.xlu0 %2403  ;;  %2517 = vrot.lane.b32.xlu1 %v1687_v0, %s8227_s17 }
 0x2d9   :  { %2651 = vrot.lane.b32.xlu0 %v10614_v48, %s8228_s3  ;;  %v10619_v13 = vpop.permute.xlu1 %2401 }
 0x2db   :  { %v10621_v40 = vpop.permute.xlu0 %2407  ;;  %2521 = vrot.lane.b32.xlu1 %v1689_v27, %s8227_s17  ;;  %v10642_v27 = vld [vmem:[#allocation2 + $0x38] sm:$0xff] }
 0x2dd   :  { %2655 = vrot.lane.b32.xlu0 %v10623_v51, %s8228_s3  ;;  %v10628_v20 = vpop.permute.xlu1 %2405 }
 0x2df   :  { %v10632_v0 = vpop.permute.xlu0 %2411  ;;  %2653 = vrot.lane.b32.xlu1 %v10630_v1, %s8228_s3 }
 0x2e1   :  { %2659 = vrot.lane.b32.xlu0 %v10634_v57, %s8228_s3  ;;  %v10640_v38 = vpop.permute.xlu1 %2409 }
 0x2e3   :  { %v10644_v4 = vpop.permute.xlu0 %2415  ;;  %2657 = vrot.lane.b32.xlu1 %v10642_v27, %s8228_s3 }
 0x2e5   :  { %2663 = vrot.lane.b32.xlu0 %v10646_v19, %s8228_s3  ;;  %v10652_v16 = vpop.permute.xlu1 %2413 }
 0x2e7   :  { %v10656_v31 = vpop.permute.xlu0 %2419  ;;  %2661 = vrot.lane.b32.xlu1 %v10654_v33, %s8228_s3 }
 0x2e9   :  { %2667 = vrot.lane.b32.xlu0 %v10658_v12, %s8228_s3  ;;  %v10664_v35 = vpop.permute.xlu1 %2417 }
 0x2eb   :  { %v10668_v28 = vpop.permute.xlu0 %2423  ;;  %2665 = vrot.lane.b32.xlu1 %v10666_v22, %s8228_s3 }
 0x2ec   :  { %16220 = vst [vmem:[#allocation120_spill] sm:$0xff] %v10668_v28  ;;  %v1831_v28 = vld [vmem:[#allocation2 + $0xb2] sm:$0xff] }
 0x2ed   :  { %2671 = vrot.lane.b32.xlu0 %v1510_v63, %s8228_s3  ;;  %v10673_v2 = vpop.permute.xlu1 %2421 }
 0x2ee   :  { %16221 = vst [vmem:[#allocation121_spill] sm:$0xff] %v10673_v2 }
 0x2ef   :  { %v10677_v49 = vpop.permute.xlu0 %2427  ;;  %2669 = vrot.lane.b32.xlu1 %v10675_v54, %s8228_s3 }
 0x2f0   :  { %16222 = vst [vmem:[#allocation122_spill] sm:$0xff] %v10677_v49  ;;  %v2017_v49 = vld [vmem:[#allocation2 + $0x7a] sm:$0xff] }
 0x2f1   :  { %2675 = vrot.lane.b32.xlu0 %v1512_v15, %s8228_s3  ;;  %v10682_v10 = vpop.permute.xlu1 %2425 }
 0x2f2   :  { %16223 = vst [vmem:[#allocation123_spill] sm:$0xff] %v10682_v10 }
 0x2f3   :  { %v10684_v17 = vpop.permute.xlu0 %2431  ;;  %2673 = vrot.lane.b32.xlu1 %v1511_v47, %s8228_s3  ;;  %v1517_v47 = vld [vmem:[#allocation2 + $0xe0] sm:$0xff] }
 0x2f4   :  { %16224 = vst [vmem:[#allocation124_spill] sm:$0xff] %v10684_v17 }
 0x2f5   :  { %2679 = vrot.lane.b32.xlu0 %v1514_v6, %s8228_s3  ;;  %v10688_v63 = vpop.permute.xlu1 %2429 }
 0x2f6   :  { %16225 = vst [vmem:[#allocation125_spill] sm:$0xff] %v10688_v63  ;;  %v1762_v63 = vld [vmem:[#allocation2 + $0x79] sm:$0xff] }
 0x2f7   :  { %v10690_v62 = vpop.permute.xlu0 %2435  ;;  %2677 = vrot.lane.b32.xlu1 %v1513_v34, %s8228_s3  ;;  %v1519_v34 = vld [vmem:[#allocation2 + $0xf8] sm:$0xff] }
 0x2f8   :  { %16226 = vst [vmem:[#allocation126_spill] sm:$0xff] %v10690_v62  ;;  %v1520_v62 = vld [vmem:[#allocation2 + $0x108] sm:$0xff] }
 0x2f9   :  { %2683 = vrot.lane.b32.xlu0 %v1516_v61, %s8228_s3  ;;  %v10694_v15 = vpop.permute.xlu1 %2433 }
 0x2fa   :  { %16227 = vst [vmem:[#allocation127_spill] sm:$0xff] %v10694_v15 }
 0x2fb   :  { %v10696_v39 = vpop.permute.xlu0 %2439  ;;  %2681 = vrot.lane.b32.xlu1 %v1515_v21, %s8228_s3  ;;  %v1521_v21 = vld [vmem:[#allocation2 + $0x110] sm:$0xff] }
 0x2fc   :  { %16228 = vst [vmem:[#allocation128_spill] sm:$0xff] %v10696_v39  ;;  %v1522_v39 = vld [vmem:[#allocation2 + $0x120] sm:$0xff] }
 0x2fd   :  { %2687 = vrot.lane.b32.xlu0 %v1518_v18, %s8228_s3  ;;  %v10700_v6 = vpop.permute.xlu1 %2437 }
 0x2fe   :  { %16229 = vst [vmem:[#allocation129_spill] sm:$0xff] %v10700_v6 }
 0x2ff   :  { %v10702_v24 = vpop.permute.xlu0 %2443  ;;  %2685 = vrot.lane.b32.xlu1 %v1517_v47, %s8228_s3  ;;  %v1523_v47 = vld [vmem:[#allocation2 + $0x128] sm:$0xff] }
 0x300   :  { %16230 = vst [vmem:[#allocation130_spill] sm:$0xff] %v10702_v24  ;;  %v1524_v24 = vld [vmem:[#allocation2 + $0x138] sm:$0xff] }
 0x301   :  { %2691 = vrot.lane.b32.xlu0 %v1520_v62, %s8228_s3  ;;  %v10706_v61 = vpop.permute.xlu1 %2441 }
 0x302   :  { %16231 = vst [vmem:[#allocation131_spill] sm:$0xff] %v10706_v61 }
 0x303   :  { %v10708_v15 = vpop.permute.xlu0 %2447  ;;  %2689 = vrot.lane.b32.xlu1 %v1519_v34, %s8228_s3  ;;  %v1525_v34 = vld [vmem:[#allocation2 + $0x140] sm:$0xff] }
 0x304   :  { %16232 = vst [vmem:[#allocation132_spill] sm:$0xff] %v10708_v15  ;;  %v1526_v15 = vld [vmem:[#allocation2 + $0x150] sm:$0xff] }
 0x305   :  { %2695 = vrot.lane.b32.xlu0 %v1522_v39, %s8228_s3  ;;  %v10712_v18 = vpop.permute.xlu1 %2445 }
 0x306   :  { %16233 = vst [vmem:[#allocation133_spill] sm:$0xff] %v10712_v18 }
 0x307   :  { %v10714_v6 = vpop.permute.xlu0 %2451  ;;  %2693 = vrot.lane.b32.xlu1 %v1521_v21, %s8228_s3  ;;  %v1527_v21 = vld [vmem:[#allocation2 + $0x158] sm:$0xff] }
 0x308   :  { %16234 = vst [vmem:[#allocation134_spill] sm:$0xff] %v10714_v6  ;;  %v1528_v6 = vld [vmem:[#allocation2 + $0x168] sm:$0xff] }
 0x309   :  { %2699 = vrot.lane.b32.xlu0 %v1524_v24, %s8228_s3  ;;  %v10718_v62 = vpop.permute.xlu1 %2449 }
 0x30a   :  { %16235 = vst [vmem:[#allocation135_spill] sm:$0xff] %v10718_v62 }
 0x30b   :  { %v10720_v61 = vpop.permute.xlu0 %2455  ;;  %2697 = vrot.lane.b32.xlu1 %v1523_v47, %s8228_s3  ;;  %v1529_v47 = vld [vmem:[#allocation2 + $0x170] sm:$0xff] }
 0x30c   :  { %16236 = vst [vmem:[#allocation136_spill] sm:$0xff] %v10720_v61  ;;  %v1720_v61 = vld [vmem:[#allocation2 + $0x180] sm:$0xff] }
 0x30d   :  { %2703 = vrot.lane.b32.xlu0 %v1526_v15, %s8228_s3  ;;  %v10724_v39 = vpop.permute.xlu1 %2453 }
 0x30e   :  { %16237 = vst [vmem:[#allocation137_spill] sm:$0xff] %v10724_v39 }
 0x30f   :  { %v10726_v18 = vpop.permute.xlu0 %2463  ;;  %2701 = vrot.lane.b32.xlu1 %v1525_v34, %s8228_s3 }
 0x310   :  { %16238 = vst [vmem:[#allocation138_spill] sm:$0xff] %v10726_v18  ;;  %v1532_v18 = vld [vmem:[#allocation2 + $0x1c8] sm:$0xff] }
 0x311   :  { %2707 = vrot.lane.b32.xlu0 %v1528_v6, %s8228_s3  ;;  %v10730_v24 = vpop.permute.xlu1 %2457 }
 0x312   :  { %16239 = vst [vmem:[#allocation139_spill] sm:$0xff] %v10730_v24  ;;  %v1534_v24 = vld [vmem:[#allocation2 + $0x1e0] sm:$0xff] }
 0x313   :  { %v10732_v62 = vpop.permute.xlu0 %2467  ;;  %2705 = vrot.lane.b32.xlu1 %v1527_v21, %s8228_s3  ;;  %v1533_v21 = vld [vmem:[#allocation2 + $0x1d0] sm:$0xff] }
 0x314   :  { %16240 = vst [vmem:[#allocation140_spill] sm:$0xff] %v10732_v62  ;;  %v1721_v62 = vld [vmem:[#allocation2 + $0x188] sm:$0xff] }
 0x315   :  { %2711 = vrot.lane.b32.xlu0 %v1720_v61, %s8228_s3  ;;  %v10736_v15 = vpop.permute.xlu1 %2465 }
 0x316   :  { %16241 = vst [vmem:[#allocation141_spill] sm:$0xff] %v10736_v15 }
 0x317   :  { %v10738_v39 = vpop.permute.xlu0 %2471  ;;  %2709 = vrot.lane.b32.xlu1 %v1529_v47, %s8228_s3 }
 0x318   :  { %16242 = vst [vmem:[#allocation142_spill] sm:$0xff] %v10738_v39  ;;  %v1755_v39 = vld [vmem:[#allocation2 + $0x21] sm:$0xff] }
 0x319   :  { %2715 = vrot.lane.b32.xlu0 %v1532_v18, %s8228_s3  ;;  %v10742_v6 = vpop.permute.xlu1 %2469 }
 0x31a   :  { %16243 = vst [vmem:[#allocation143_spill] sm:$0xff] %v10742_v6  ;;  %v1890_v6 = vld [vmem:[#allocation2 + $0x80] sm:$0xff] }
 0x31b   :  { %v10744_v34 = vpop.permute.xlu0 %2475  ;;  %2713 = vrot.lane.b32.xlu1 %v1721_v62, %s8228_s3 }
 0x31c   :  { %16244 = vst [vmem:[#allocation144_spill] sm:$0xff] %v10744_v34  ;;  %v1754_v34 = vld [vmem:[#allocation2 + $0x19] sm:$0xff] }
 0x31d   :  { %2719 = vrot.lane.b32.xlu0 %v1534_v24, %s8228_s3  ;;  %v10748_v61 = vpop.permute.xlu1 %2473  ;;  %v4641_v24 = vld [vmem:[%s15716_s4] sm:$0xff] }
 0x31e   :  { %16245 = vst [vmem:[#allocation145_spill] sm:$0xff] %v10748_v61 }
 0x31f   :  { %v10750_v15 = vpop.permute.xlu0 %2479  ;;  %2717 = vrot.lane.b32.xlu1 %v1533_v21, %s8228_s3 }
 0x320   :  { %16246 = vst [vmem:[#allocation146_spill] sm:$0xff] %v10750_v15  ;;  %v4645_v15 = vld [vmem:[%s15716_s4 + $0x20] sm:$0xf] }
 0x321   :  { %2909 = vrot.lane.b32.xlu0 %v1755_v39, %s8229_s1  ;;  %v10754_v18 = vpop.permute.xlu1 %2477  ;;  %v4642_v39 = vld [vmem:[%s15716_s4 + $0x8] sm:$0xff] }
 0x322   :  { %16247 = vst [vmem:[#allocation147_spill] sm:$0xff] %v10754_v18 }
 0x323   :  { %v10756_v47 = vpop.permute.xlu0 %2483  ;;  %2907 = vrot.lane.b32.xlu1 %v1754_v34, %s8229_s1  ;;  %v4644_v34 = vld [vmem:[%s15716_s4 + $0x18] sm:$0xff] }
 0x324   :  { %16248 = vst [vmem:[#allocation148_spill] sm:$0xff] %v10756_v47  ;;  %v8176_v47 = vpack.c.bf16 %v4642_v39, %v4641_v24 }
 0x325   :  { %3165 = vrot.lane.b32.xlu0 %v10434_v36, %s8230_s21  ;;  %v10761_v62 = vpop.permute.xlu1 %2481  ;;  %v4643_v36 = vld [vmem:[%s15716_s4 + $0x10] sm:$0xff]  ;;  %s8234_s4 = smov 124  }
 0x326   :  { %16249 = vst [vmem:[#allocation149_spill] sm:$0xff] %v10761_v62  ;;  %8177 = vmatprep.subr.bf16.mxu1 %v8176_v47  ;;  %v8180_v24 = vpack.c.bf16 %v4644_v34, %v4643_v36  ;;  %v1948_v34 = vld [vmem:[#allocation2 + $0x39] sm:$0xff] }
 0x327   :  { %v10769_v21 = vpop.permute.xlu0 %2487  ;;  %3163 = vrot.lane.b32.xlu1 %v10416_v43, %s8230_s21  ;;  %8179 = vmatpush3.bf16.msra.mxu1 %v8176_v47  ;;  %v1883_v43 = vld [vmem:[#allocation2 + $0x30] sm:$0xff] }
 0x328   :  { %16250 = vst [vmem:[#allocation150_spill] sm:$0xff] %v10769_v21  ;;  %v1756_v21 = vld [vmem:[#allocation2 + $0x31] sm:$0xff]  ;;  %8181 = vmatprep.subr.bf16.mxu1 %v8180_v24 }
 0x329   :  { %3421 = vrot.lane.b32.xlu0 %v10642_v27, %s8231_s26  ;;  %v10781_v62 = vpop.permute.xlu1 %2485 }
 0x32a   :  { %16251 = vst [vmem:[#allocation151_spill] sm:$0xff] %v10781_v62 }
 0x32b   :  { %v10783_v39 = vpop.permute.xlu0 %2491  ;;  %3419 = vrot.lane.b32.xlu1 %v1883_v43, %s8231_s26  ;;  %8183 = vmatpush3.bf16.msra.mxu1 %v8180_v24 }
 0x32c   :  { %16252 = vst [vmem:[#allocation152_spill] sm:$0xff] %v10783_v39  ;;  %7980 = vmatprep.subr.msk.mxu1 %vm293_vm0, %v4645_v15 }
 0x32d   :  { %2911 = vrot.lane.b32.xlu0 %v1756_v21, %s8229_s1  ;;  %v10790_v18 = vpop.permute.xlu1 %2489 }
 0x32e   :  { %16253 = vst [vmem:[#allocation153_spill] sm:$0xff] %v10790_v18  ;;  %v1825_v18 = vld [vmem:[#allocation2 + $0x6a] sm:$0xff] }
 0x32f   :  { %v10792_v61 = vpop.permute.xlu0 %2495  ;;  %3675 = vrot.lane.b32.xlu1 %v1756_v21, %s8232_s13  ;;  %7981 = vmatpush3.msk.msra.mxu1 %vm293_vm0, %v4645_v15 }
 0x330   :  { %16254 = vst [vmem:[#allocation154_spill] sm:$0xff] %v10792_v61 }
 0x331   :  { %3931 = vrot.lane.b32.xlu0 %v10425_v59, %s8233_s14  ;;  %v10798_v47 = vpop.permute.xlu1 %2493 }
 0x332   :  { %16255 = vst [vmem:[#allocation155_spill] sm:$0xff] %v10798_v47  ;;  %v1952_v47 = vld [vmem:[#allocation2 + $0x69] sm:$0xff] }
 0x333   :  { %v10801_v36 = vpop.permute.xlu0 %2499  ;;  %3677 = vrot.lane.b32.xlu1 %v1948_v34, %s8232_s13 }
 0x334   :  { %16256 = vst [vmem:[#allocation156_spill] sm:$0xff] %v10801_v36 }
 0x335   :  { %3167 = vrot.lane.b32.xlu0 %v10425_v59, %s8230_s21  ;;  %v10806_v24 = vpop.permute.xlu1 %2497 }
 0x336   :  { %16257 = vst [vmem:[#allocation157_spill] sm:$0xff] %v10806_v24  ;;  %v2015_v24 = vld [vmem:[#allocation2 + $0x62] sm:$0xff] }
 0x337   :  { %v10808_v43 = vpop.permute.xlu0 %2503  ;;  %2913 = vrot.lane.b32.xlu1 %v1948_v34, %s8229_s1 }
 0x338   :  { %16258 = vst [vmem:[#allocation158_spill] sm:$0xff] %v10808_v43  ;;  %v1758_v43 = vld [vmem:[#allocation2 + $0x49] sm:$0xff] }
 0x339   :  { %3169 = vrot.lane.b32.xlu0 %v10446_v50, %s8230_s21  ;;  %v10813_v21 = vpop.permute.xlu1 %2501 }
 0x33a   :  { %16259 = vst [vmem:[#allocation159_spill] sm:$0xff] %v10813_v21 }
 0x33b   :  { %v10815_v15 = vpop.permute.xlu0 %2507  ;;  %3933 = vrot.lane.b32.xlu1 %v10446_v50, %s8233_s14 }
 0x33c   :  { %16260 = vst [vmem:[#allocation160_spill] sm:$0xff] %v10815_v15 }
 0x33d   :  { %3425 = vrot.lane.b32.xlu0 %v10654_v33, %s8231_s26  ;;  %v10821_v59 = vpop.permute.xlu1 %2505 }
 0x33e   :  { %16261 = vst [vmem:[#allocation161_spill] sm:$0xff] %v10821_v59 }
 0x33f   :  { %v10823_v36 = vpop.permute.xlu0 %2511  ;;  %3423 = vrot.lane.b32.xlu1 %v10634_v57, %s8231_s26 }
 0x340   :  { %16262 = vst [vmem:[#allocation162_spill] sm:$0xff] %v10823_v36  ;;  %v1950_v36 = vld [vmem:[#allocation2 + $0x51] sm:$0xff] }
 0x341   :  { %2915 = vrot.lane.b32.xlu0 %v1758_v43, %s8229_s1  ;;  %v10828_v34 = vpop.permute.xlu1 %2509 }
 0x342   :  { %16263 = vst [vmem:[#allocation163_spill] sm:$0xff] %v10828_v34 }
 0x343   :  { %v10830_v21 = vpop.permute.xlu0 %2515  ;;  %3679 = vrot.lane.b32.xlu1 %v1758_v43, %s8232_s13 }
 0x344   :  { %16264 = vst [vmem:[#allocation164_spill] sm:$0xff] %v10830_v21 }
 0x345   :  { %3935 = vrot.lane.b32.xlu0 %v10436_v5, %s8233_s14  ;;  %v10835_v50 = vpop.permute.xlu1 %2513 }
 0x346   :  { %16265 = vst [vmem:[#allocation165_spill] sm:$0xff] %v10835_v50  ;;  %v1760_v50 = vld [vmem:[#allocation2 + $0x61] sm:$0xff] }
 0x347   :  { %v10837_v15 = vpop.permute.xlu0 %2519  ;;  %3681 = vrot.lane.b32.xlu1 %v1950_v36, %s8232_s13 }
 0x348   :  { %16266 = vst [vmem:[#allocation166_spill] sm:$0xff] %v10837_v15 }
 0x349   :  { %3171 = vrot.lane.b32.xlu0 %v10436_v5, %s8230_s21  ;;  %v10842_v59 = vpop.permute.xlu1 %2517 }
 0x34a   :  { %16267 = vst [vmem:[#allocation167_spill] sm:$0xff] %v10842_v59  ;;  %v1887_v59 = vld [vmem:[#allocation2 + $0x60] sm:$0xff] }
 0x34b   :  { %v10844_v34 = vpop.permute.xlu0 %2651  ;;  %2917 = vrot.lane.b32.xlu1 %v1950_v36, %s8229_s1 }
 0x34d   :  { %3173 = vrot.lane.b32.xlu0 %v10455_v55, %s8230_s21  ;;  %v10849_v43 = vpop.permute.xlu1 %2521 }
 0x34e   :  { %16268 = vst [vmem:[#allocation168_spill] sm:$0xff] %v10849_v43 }
 0x34f   :  { %v10851_v21 = vpop.permute.xlu0 %2655  ;;  %3937 = vrot.lane.b32.xlu1 %v10455_v55, %s8233_s14 }
 0x351   :  { %3429 = vrot.lane.b32.xlu0 %v10666_v22, %s8231_s26  ;;  %v10857_v5 = vpop.permute.xlu1 %2653 }
 0x353   :  { %v10859_v15 = vpop.permute.xlu0 %2659  ;;  %3427 = vrot.lane.b32.xlu1 %v1887_v59, %s8231_s26 }
 0x355   :  { %2919 = vrot.lane.b32.xlu0 %v1760_v50, %s8229_s1  ;;  %v10863_v36 = vpop.permute.xlu1 %2657 }
 0x357   :  { %v10865_v43 = vpop.permute.xlu0 %2663  ;;  %3683 = vrot.lane.b32.xlu1 %v1760_v50, %s8232_s13 }
 0x359   :  { %3939 = vrot.lane.b32.xlu0 %v2015_v24, %s8233_s14  ;;  %v10869_v55 = vpop.permute.xlu1 %2661 }
 0x35b   :  { %v10871_v61 = vpop.permute.xlu0 %2667  ;;  %3685 = vrot.lane.b32.xlu1 %v1952_v47, %s8232_s13 }
 0x35d   :  { %3175 = vrot.lane.b32.xlu0 %v2015_v24, %s8230_s21  ;;  %v10875_v59 = vpop.permute.xlu1 %2665 }
 0x35f   :  { %v10877_v39 = vpop.permute.xlu0 %2671  ;;  %2921 = vrot.lane.b32.xlu1 %v1952_v47, %s8229_s1 }
 0x361   :  { %3177 = vrot.lane.b32.xlu0 %v1825_v18, %s8230_s21  ;;  %v10881_v50 = vpop.permute.xlu1 %2669 }
 0x363   :  { %v10883_v62 = vpop.permute.xlu0 %2675  ;;  %3941 = vrot.lane.b32.xlu1 %v1825_v18, %s8233_s14 }
 0x365   :  { %3433 = vrot.lane.b32.xlu0 %v1890_v6, %s8231_s26  ;;  %v10887_v17 = vpop.permute.xlu1 %2673 }
 0x367   :  { %v10889_v24 = vpop.permute.xlu0 %2679  ;;  %3431 = vrot.lane.b32.xlu1 %v1889_v44, %s8231_s26 }
 0x368   :  { %16269 = vst [vmem:[#allocation169_spill] sm:$0xff] %v10889_v24  ;;  %v2021_v24 = vld [vmem:[#allocation2 + $0xaa] sm:$0xff] }
 0x369   :  { %2923 = vrot.lane.b32.xlu0 %v1762_v63, %s8229_s1  ;;  %v10893_v47 = vpop.permute.xlu1 %2677 }
 0x36a   :  { %16270 = vst [vmem:[#allocation170_spill] sm:$0xff] %v10893_v47 }
 0x36b   :  { %v10895_v8 = vpop.permute.xlu0 %2683  ;;  %3687 = vrot.lane.b32.xlu1 %v1762_v63, %s8232_s13 }
 0x36c   :  { %16271 = vst [vmem:[#allocation171_spill] sm:$0xff] %v10895_v8 }
 0x36d   :  { %3943 = vrot.lane.b32.xlu0 %v2017_v49, %s8233_s14  ;;  %v10899_v6 = vpop.permute.xlu1 %2681 }
 0x36e   :  { %16272 = vst [vmem:[#allocation172_spill] sm:$0xff] %v10899_v6  ;;  %v1892_v6 = vld [vmem:[#allocation2 + $0x98] sm:$0xff] }
 0x36f   :  { %v10901_v18 = vpop.permute.xlu0 %2687  ;;  %3689 = vrot.lane.b32.xlu1 %v1954_v14, %s8232_s13 }
 0x370   :  { %16273 = vst [vmem:[#allocation173_spill] sm:$0xff] %v10901_v18 }
 0x371   :  { %3179 = vrot.lane.b32.xlu0 %v2017_v49, %s8230_s21  ;;  %v10905_v44 = vpop.permute.xlu1 %2685 }
 0x372   :  { %16274 = vst [vmem:[#allocation174_spill] sm:$0xff] %v10905_v44  ;;  %v1891_v44 = vld [vmem:[#allocation2 + $0x90] sm:$0xff] }
 0x373   :  { %v10907_v10 = vpop.permute.xlu0 %2691  ;;  %2925 = vrot.lane.b32.xlu1 %v1954_v14, %s8229_s1 }
 0x374   :  { %16275 = vst [vmem:[#allocation175_spill] sm:$0xff] %v10907_v10  ;;  %v1764_v10 = vld [vmem:[#allocation2 + $0x91] sm:$0xff] }
 0x375   :  { %3181 = vrot.lane.b32.xlu0 %v1827_v42, %s8230_s21  ;;  %v10911_v63 = vpop.permute.xlu1 %2689 }
 0x376   :  { %16276 = vst [vmem:[#allocation176_spill] sm:$0xff] %v10911_v63 }
 0x377   :  { %v10913_v8 = vpop.permute.xlu0 %2695  ;;  %3945 = vrot.lane.b32.xlu1 %v1827_v42, %s8233_s14 }
 0x378   :  { %16277 = vst [vmem:[#allocation177_spill] sm:$0xff] %v10913_v8  ;;  %v2019_v8 = vld [vmem:[#allocation2 + $0x92] sm:$0xff] }
 0x379   :  { %3437 = vrot.lane.b32.xlu0 %v1892_v6, %s8231_s26  ;;  %v10917_v18 = vpop.permute.xlu1 %2693 }
 0x37a   :  { %16278 = vst [vmem:[#allocation178_spill] sm:$0xff] %v10917_v18 }
 0x37b   :  { %v10919_v49 = vpop.permute.xlu0 %2699  ;;  %3435 = vrot.lane.b32.xlu1 %v1891_v44, %s8231_s26 }
 0x37c   :  { %16279 = vst [vmem:[#allocation179_spill] sm:$0xff] %v10919_v49  ;;  %v1956_v49 = vld [vmem:[#allocation2 + $0x99] sm:$0xff] }
 0x37d   :  { %2927 = vrot.lane.b32.xlu0 %v1764_v10, %s8229_s1  ;;  %v10923_v14 = vpop.permute.xlu1 %2697 }
 0x37e   :  { %16280 = vst [vmem:[#allocation180_spill] sm:$0xff] %v10923_v14  ;;  %v1829_v14 = vld [vmem:[#allocation2 + $0x9a] sm:$0xff] }
 0x37f   :  { %v10925_v63 = vpop.permute.xlu0 %2703  ;;  %3691 = vrot.lane.b32.xlu1 %v1764_v10, %s8232_s13 }
 0x380   :  { %16281 = vst [vmem:[#allocation181_spill] sm:$0xff] %v10925_v63 }
 0x381   :  { %3947 = vrot.lane.b32.xlu0 %v2019_v8, %s8233_s14  ;;  %v10929_v42 = vpop.permute.xlu1 %2701 }
 0x382   :  { %16282 = vst [vmem:[#allocation182_spill] sm:$0xff] %v10929_v42  ;;  %v1894_v42 = vld [vmem:[#allocation2 + $0xb0] sm:$0xff] }
 0x383   :  { %v10931_v6 = vpop.permute.xlu0 %2707  ;;  %3693 = vrot.lane.b32.xlu1 %v1956_v49, %s8232_s13 }
 0x384   :  { %16283 = vst [vmem:[#allocation183_spill] sm:$0xff] %v10931_v6 }
 0x385   :  { %3183 = vrot.lane.b32.xlu0 %v2019_v8, %s8230_s21  ;;  %v10935_v44 = vpop.permute.xlu1 %2705 }
 0x386   :  { %16284 = vst [vmem:[#allocation184_spill] sm:$0xff] %v10935_v44  ;;  %v1893_v44 = vld [vmem:[#allocation2 + $0xa8] sm:$0xff] }
 0x387   :  { %v10937_v18 = vpop.permute.xlu0 %2711  ;;  %2929 = vrot.lane.b32.xlu1 %v1956_v49, %s8229_s1 }
 0x388   :  { %16285 = vst [vmem:[#allocation185_spill] sm:$0xff] %v10937_v18  ;;  %v1766_v18 = vld [vmem:[#allocation2 + $0xa9] sm:$0xff] }
 0x389   :  { %3185 = vrot.lane.b32.xlu0 %v1829_v14, %s8230_s21  ;;  %v10941_v10 = vpop.permute.xlu1 %2709 }
 0x38a   :  { %16286 = vst [vmem:[#allocation186_spill] sm:$0xff] %v10941_v10 }
 0x38b   :  { %v10943_v63 = vpop.permute.xlu0 %2715  ;;  %3949 = vrot.lane.b32.xlu1 %v1829_v14, %s8233_s14 }
 0x38c   :  { %16287 = vst [vmem:[#allocation187_spill] sm:$0xff] %v10943_v63  ;;  %v1958_v63 = vld [vmem:[#allocation2 + $0xb1] sm:$0xff] }
 0x38d   :  { %3441 = vrot.lane.b32.xlu0 %v1894_v42, %s8231_s26  ;;  %v10947_v6 = vpop.permute.xlu1 %2713 }
 0x38e   :  { %16288 = vst [vmem:[#allocation188_spill] sm:$0xff] %v10947_v6  ;;  %v1498_v6 = vld [vmem:[#allocation2] sm:$0xff] }
 0x38f   :  { %v10949_v8 = vpop.permute.xlu0 %2719  ;;  %3439 = vrot.lane.b32.xlu1 %v1893_v44, %s8231_s26  ;;  %v4123_v44 = vsel %vm100_vm1, %v1498_v6, %v10382_v30  ;;  %v1896_v30 = vld [vmem:[#allocation2 + $0xc8] sm:$0xff] }
 0x390   :  { %16289 = vst [vmem:[#allocation189_spill] sm:$0xff] %v10949_v8 }
 0x391   :  { %2931 = vrot.lane.b32.xlu0 %v1766_v18, %s8229_s1  ;;  %v10953_v49 = vpop.permute.xlu1 %2717 }
 0x392   :  { %16290 = vst [vmem:[#allocation190_spill] sm:$0xff] %v10953_v49 }
 0x393   :  { %v2910_v10 = vpop.permute.xlu0 %2909  ;;  %3695 = vrot.lane.b32.xlu1 %v1766_v18, %s8232_s13  ;;  %v4188_v18 = vsel %vm4187_vm5, %v4123_v44, %v10401_v29 }
 0x394   :  { %v4252_v47 = vsel %vm684_vm2, %v4188_v18, %v10844_v34  ;;  %v1499_v34 = vld [vmem:[#allocation2 + $0x8] sm:$0xff] }
 0x395   :  { %3951 = vrot.lane.b32.xlu0 %v2021_v24, %s8233_s14  ;;  %v2908_v14 = vpop.permute.xlu1 %2907 }
 0x396   :  { %v4317_v2 = vsel %vm4316_vm6, %v4252_v47, %v2908_v14  ;;  %v1768_v47 = vld [vmem:[#allocation2 + $0xc1] sm:$0xff] }
 0x397   :  { %v3166_v42 = vpop.permute.xlu0 %3165  ;;  %3697 = vrot.lane.b32.xlu1 %v1958_v63, %s8232_s13  ;;  %v2023_v14 = vld [vmem:[#allocation2 + $0xc2] sm:$0xff] }
 0x399   :  { %3187 = vrot.lane.b32.xlu0 %v2021_v24, %s8230_s21  ;;  %v3164_v8 = vpop.permute.xlu1 %3163 }
 0x39b   :  { %v3422_v49 = vpop.permute.xlu0 %3421  ;;  %2933 = vrot.lane.b32.xlu1 %v1958_v63, %s8229_s1  ;;  %v4382_v63 = vsel %vm4381_vm7, %v4317_v2, %v3164_v8  ;;  %v4124_v2 = vsel %vm100_vm1, %v1499_v34, %v10388_v26 }
 0x39d   :  { %3189 = vrot.lane.b32.xlu0 %v1831_v28, %s8230_s21  ;;  %v3420_v46 = vpop.permute.xlu1 %3419 }
 0x39e   :  { %v4447_v29 = vsel %vm4446_vm9, %v4382_v63, %v3420_v46 }
 0x39f   :  { %v2912_v24 = vpop.permute.xlu0 %2911  ;;  %3953 = vrot.lane.b32.xlu1 %v1831_v28, %s8233_s14 }
 0x3a1   :  { %3445 = vrot.lane.b32.xlu0 %v1896_v30, %s8231_s26  ;;  %v3676_v6 = vpop.permute.xlu1 %3675  ;;  %v4189_v30 = vsel %vm4187_vm5, %v4124_v2, %v10398_v41 }
 0x3a2   :  { %v4512_v18 = vsel %vm4511_vm8, %v4447_v29, %v3676_v6 }
 0x3a3   :  { %v3932_v44 = vpop.permute.xlu0 %3931  ;;  %3443 = vrot.lane.b32.xlu1 %v1895_v9, %s8231_s26  ;;  %v4253_v9 = vsel %vm684_vm2, %v4189_v30, %v10857_v5  ;;  %v1833_v5 = vld [vmem:[#allocation2 + $0xca] sm:$0xff]  ;;  %v1898_v30 = vld [vmem:[#allocation2 + $0xe0] sm:$0xff] }
 0x3a4   :  { %v4577_v28 = vsel %vm4576_vm10, %v4512_v18, %v3932_v44  ;;  %v4318_v29 = vsel %vm4316_vm6, %v4253_v9, %v2910_v10  ;;  %v1960_v44 = vld [vmem:[#allocation2 + $0xc9] sm:$0xff]  ;;  %v4125_v10 = vsel %vm100_vm1, %v10614_v48, %v10412_v60 }
 0x3a5   :  { %2935 = vrot.lane.b32.xlu0 %v1768_v47, %s8229_s1  ;;  %7982 = vmatprep.mubr.msk.f32.mxu1 %vm4646_vm11, %v4577_v28  ;;  %v3678_v46 = vpop.permute.xlu1 %3677  ;;  %v4383_v26 = vsel %vm4381_vm7, %v4318_v29, %v3166_v42 }
 0x3a6   :  { %v4448_v34 = vsel %vm4446_vm9, %v4383_v26, %v3422_v49  ;;  %v4190_v49 = vsel %vm4187_vm5, %v4125_v10, %v10606_v32  ;;  %v1770_v26 = vld [vmem:[#allocation2 + $0xd9] sm:$0xff] }
 0x3a7   :  { %v3168_v8 = vpop.permute.xlu0 %3167  ;;  %3699 = vrot.lane.b32.xlu1 %v1768_v47, %s8232_s13  ;;  %v4513_v41 = vsel %vm4511_vm8, %v4448_v34, %v3678_v46  ;;  %v4254_v2 = vsel %vm684_vm2, %v4190_v49, %v10851_v21 }
 0x3a9   :  { %3955 = vrot.lane.b32.xlu0 %v2023_v14, %s8233_s14  ;;  %v2914_v63 = vpop.permute.xlu1 %2913 }
 0x3ab   :  { %v3170_v6 = vpop.permute.xlu0 %3169  ;;  %3701 = vrot.lane.b32.xlu1 %v1960_v44, %s8232_s13 }
 0x3ad   :  { %3191 = vrot.lane.b32.xlu0 %v2023_v14, %s8230_s21  ;;  %v3934_v18 = vpop.permute.xlu1 %3933  ;;  %v4319_v14 = vsel %vm4316_vm6, %v4254_v2, %v2912_v24  ;;  %v4126_v24 = vsel %vm100_vm1, %v10630_v1, %v10421_v53 }
 0x3ae   :  { %v4578_v28 = vsel %vm4576_vm10, %v4513_v41, %v3934_v18  ;;  %v4384_v9 = vsel %vm4381_vm7, %v4319_v14, %v3168_v8  ;;  %v4191_v34 = vsel %vm4187_vm5, %v4126_v24, %v10619_v13 }
 0x3af   :  { %v3426_v47 = vpop.permute.xlu0 %3425  ;;  %2937 = vrot.lane.b32.xlu1 %v1960_v44, %s8229_s1  ;;  %7983 = vmatmul.mubr.msk.f32.vlgmr.msra.gmra.mrb[32].mxu1 %vm4646_vm11, %v4578_v28  ;;  %v1897_v44 = vld [vmem:[#allocation2 + $0xd8] sm:$0xff]  ;;  %v4255_v18 = vsel %vm684_vm2, %v4191_v34, %v10863_v36 }
 0x3b0   :  { %v2025_v28 = vld [vmem:[#allocation2 + $0xda] sm:$0xff] }
 0x3b1   :  { %3193 = vrot.lane.b32.xlu0 %v1833_v5, %s8230_s21  ;;  %v3424_v42 = vpop.permute.xlu1 %3423 }
 0x3b2   :  { %v4449_v60 = vsel %vm4446_vm9, %v4384_v9, %v3424_v42  ;;  %v1962_v42 = vld [vmem:[#allocation2 + $0xe1] sm:$0xff] }
 0x3b3   :  { %v2916_v46 = vpop.permute.xlu0 %2915  ;;  %3957 = vrot.lane.b32.xlu1 %v1833_v5, %s8233_s14  ;;  %v4320_v5 = vsel %vm4316_vm6, %v4255_v18, %v2914_v63  ;;  %v1835_v63 = vld [vmem:[#allocation2 + $0xe2] sm:$0xff]  ;;  %v2027_v18 = vld [vmem:[#allocation2 + $0xf2] sm:$0xff] }
 0x3b4   :  { %v4385_v53 = vsel %vm4381_vm7, %v4320_v5, %v3170_v6  ;;  %v4127_v6 = vsel %vm100_vm1, %v10623_v51, %v10414_v58 }
 0x3b5   :  { %3449 = vrot.lane.b32.xlu0 %v1898_v30, %s8231_s26  ;;  %v3680_v48 = vpop.permute.xlu1 %3679  ;;  %v4450_v1 = vsel %vm4446_vm9, %v4385_v53, %v3426_v47  ;;  %v4192_v47 = vsel %vm4187_vm5, %v4127_v6, %v10612_v23  ;;  %v1964_v53 = vld [vmem:[#allocation2 + $0xf9] sm:$0xff] }
 0x3b6   :  { %v4514_v32 = vsel %vm4511_vm8, %v4449_v60, %v3680_v48  ;;  %v4256_v9 = vsel %vm684_vm2, %v4192_v47, %v10859_v15  ;;  %v1902_v47 = vld [vmem:[#allocation2 + $0x110] sm:$0xff] }
 0x3b7   :  { %v3936_v29 = vpop.permute.xlu0 %3935  ;;  %3447 = vrot.lane.b32.xlu1 %v1897_v44, %s8231_s26  ;;  %v4321_v48 = vsel %vm4316_vm6, %v4256_v9, %v2916_v46  ;;  %v4128_v46 = vsel %vm100_vm1, %v10642_v27, %v10430_v52 }
 0x3b8   :  { %v4579_v21 = vsel %vm4576_vm10, %v4514_v32, %v3936_v29  ;;  %v1900_v29 = vld [vmem:[#allocation2 + $0xf8] sm:$0xff] }
 0x3b9   :  { %2939 = vrot.lane.b32.xlu0 %v1770_v26, %s8229_s1  ;;  %7985 = vmatprep.mubr.msk.f32.mxu1 %vm4646_vm11, %v4579_v21  ;;  %v3682_v8 = vpop.permute.xlu1 %3681  ;;  %v1772_v21 = vld [vmem:[#allocation2 + $0xf1] sm:$0xff] }
 0x3ba   :  { %v4515_v13 = vsel %vm4511_vm8, %v4450_v1, %v3682_v8  ;;  %v4193_v8 = vsel %vm4187_vm5, %v4128_v46, %v10628_v20  ;;  %v1966_v46 = vld [vmem:[#allocation2 + $0x111] sm:$0xff] }
 0x3bb   :  { %v3172_v41 = vpop.permute.xlu0 %3171  ;;  %3703 = vrot.lane.b32.xlu1 %v1770_v26, %s8232_s13  ;;  %v1899_v26 = vld [vmem:[#allocation2 + $0xf0] sm:$0xff] }
 0x3bc   :  { %v4386_v32 = vsel %vm4381_vm7, %v4321_v48, %v3172_v41  ;;  %v4257_v41 = vsel %vm684_vm2, %v4193_v8, %v10869_v55  ;;  %v1901_v48 = vld [vmem:[#allocation2 + $0x108] sm:$0xff] }
 0x3bd   :  { %3959 = vrot.lane.b32.xlu0 %v2025_v28, %s8233_s14  ;;  %v2918_v10 = vpop.permute.xlu1 %2917 }
 0x3bf   :  { %v3174_v49 = vpop.permute.xlu0 %3173  ;;  %3705 = vrot.lane.b32.xlu1 %v1962_v42, %s8232_s13 }
 0x3c1   :  { %3195 = vrot.lane.b32.xlu0 %v2025_v28, %s8230_s21  ;;  %v3938_v36 = vpop.permute.xlu1 %3937  ;;  %v4322_v28 = vsel %vm4316_vm6, %v4257_v41, %v2918_v10  ;;  %v1837_v10 = vld [vmem:[#allocation2 + $0xfa] sm:$0xff]  ;;  %v4131_v41 = vsel %vm100_vm1, %v10646_v19, %v10432_v11 }
 0x3c2   :  { %v4580_v14 = vsel %vm4576_vm10, %v4515_v13, %v3938_v36  ;;  %v4387_v52 = vsel %vm4381_vm7, %v4322_v28, %v3174_v49  ;;  %v4129_v49 = vsel %vm100_vm1, %v10634_v57, %v10423_v7 }
 0x3c3   :  { %v3430_v2 = vpop.permute.xlu0 %3429  ;;  %2941 = vrot.lane.b32.xlu1 %v1962_v42, %s8229_s1  ;;  %7986 = vmatmul.mubr.msk.f32.gmra.mrb[34].mxu1 %vm4646_vm11, %v4580_v14  ;;  %v4194_v36 = vsel %vm4187_vm5, %v4129_v49, %v10621_v40 }
 0x3c4   :  { %v4452_v20 = vsel %vm4446_vm9, %v4387_v52, %v3430_v2  ;;  %v4258_v14 = vsel %vm684_vm2, %v4194_v36, %v10865_v43  ;;  %v1904_v52 = vld [vmem:[#allocation2 + $0x128] sm:$0xff] }
 0x3c5   :  { %3197 = vrot.lane.b32.xlu0 %v1835_v63, %s8230_s21  ;;  %v3428_v30 = vpop.permute.xlu1 %3427 }
 0x3c6   :  { %v4451_v58 = vsel %vm4446_vm9, %v4386_v32, %v3428_v30 }
 0x3c7   :  { %v2920_v60 = vpop.permute.xlu0 %2919  ;;  %3961 = vrot.lane.b32.xlu1 %v1835_v63, %s8233_s14 }
 0x3c8   :  { %v4323_v6 = vsel %vm4316_vm6, %v4258_v14, %v2920_v60  ;;  %v4130_v60 = vsel %vm100_vm1, %v10654_v33, %v10442_v25  ;;  %v2031_v14 = vld [vmem:[#allocation2 + $0x122] sm:$0xff] }
 0x3c9   :  { %3453 = vrot.lane.b32.xlu0 %v1900_v29, %s8231_s26  ;;  %v3684_v51 = vpop.permute.xlu1 %3683  ;;  %v1774_v29 = vld [vmem:[#allocation2 + $0x109] sm:$0xff] }
 0x3ca   :  { %v4516_v23 = vsel %vm4511_vm8, %v4451_v58, %v3684_v51  ;;  %v4195_v58 = vsel %vm4187_vm5, %v4130_v60, %v10640_v38 }
 0x3cb   :  { %v3940_v44 = vpop.permute.xlu0 %3939  ;;  %3451 = vrot.lane.b32.xlu1 %v1899_v26, %s8231_s26 }
 0x3cc   :  { %v4581_v15 = vsel %vm4576_vm10, %v4516_v23, %v3940_v44  ;;  %v4259_v44 = vsel %vm684_vm2, %v4195_v58, %v10875_v59  ;;  %v2029_v23 = vld [vmem:[#allocation2 + $0x10a] sm:$0xff]  ;;  %v1906_v58 = vld [vmem:[#allocation2 + $0x140] sm:$0xff] }
 0x3cd   :  { %2943 = vrot.lane.b32.xlu0 %v1772_v21, %s8229_s1  ;;  %7988 = vmatprep.mubr.msk.f32.mxu1 %vm4646_vm11, %v4581_v15  ;;  %v3686_v24 = vpop.permute.xlu1 %3685 }
 0x3ce   :  { %v4517_v27 = vsel %vm4511_vm8, %v4452_v20, %v3686_v24 }
 0x3cf   :  { %v3176_v34 = vpop.permute.xlu0 %3175  ;;  %3707 = vrot.lane.b32.xlu1 %v1772_v21, %s8232_s13 }
 0x3d0   :  { %v4388_v30 = vsel %vm4381_vm7, %v4323_v6, %v3176_v34  ;;  %v1839_v34 = vld [vmem:[#allocation2 + $0x112] sm:$0xff] }
 0x3d1   :  { %3963 = vrot.lane.b32.xlu0 %v2027_v18, %s8233_s14  ;;  %v2922_v5 = vpop.permute.xlu1 %2921 }
 0x3d2   :  { %v4324_v26 = vsel %vm4316_vm6, %v4259_v44, %v2922_v5 }
 0x3d3   :  { %v3178_v42 = vpop.permute.xlu0 %3177  ;;  %3709 = vrot.lane.b32.xlu1 %v1964_v53, %s8232_s13 }
 0x3d4   :  { %v4389_v25 = vsel %vm4381_vm7, %v4324_v26, %v3178_v42  ;;  %v1778_v26 = vld [vmem:[#allocation2 + $0x139] sm:$0xff] }
 0x3d5   :  { %3199 = vrot.lane.b32.xlu0 %v2027_v18, %s8230_s21  ;;  %v3942_v55 = vpop.permute.xlu1 %3941  ;;  %v4196_v18 = vsel %vm4187_vm5, %v4131_v41, %v10632_v0 }
 0x3d6   :  { %v4582_v13 = vsel %vm4576_vm10, %v4517_v27, %v3942_v55  ;;  %v4260_v5 = vsel %vm684_vm2, %v4196_v18, %v10871_v61  ;;  %v1903_v55 = vld [vmem:[#allocation2 + $0x120] sm:$0xff] }
 0x3d7   :  { %v3434_v1 = vpop.permute.xlu0 %3433  ;;  %2945 = vrot.lane.b32.xlu1 %v1964_v53, %s8229_s1  ;;  %7989 = vmatmul.mubr.msk.f32.gmra.mrb[36].mxu1 %vm4646_vm11, %v4582_v13  ;;  %v4132_v13 = vsel %vm100_vm1, %v10666_v22, %v10451_v45 }
 0x3d8   :  { %v4454_v33 = vsel %vm4446_vm9, %v4389_v25, %v3434_v1  ;;  %v1776_v1 = vld [vmem:[#allocation2 + $0x121] sm:$0xff]  ;;  %v4197_v49 = vsel %vm4187_vm5, %v4132_v13, %v10652_v16  ;;  %v1780_v13 = vld [vmem:[#allocation2 + $0x151] sm:$0xff] }
 0x3d9   :  { %3201 = vrot.lane.b32.xlu0 %v1837_v10, %s8230_s21  ;;  %v3432_v2 = vpop.permute.xlu1 %3431 }
 0x3da   :  { %v4453_v7 = vsel %vm4446_vm9, %v4388_v30, %v3432_v2  ;;  %v4261_v2 = vsel %vm684_vm2, %v4197_v49, %v10881_v50  ;;  %v1968_v30 = vld [vmem:[#allocation2 + $0x129] sm:$0xff] }
 0x3db   :  { %v2924_v63 = vpop.permute.xlu0 %2923  ;;  %3965 = vrot.lane.b32.xlu1 %v1837_v10, %s8233_s14  ;;  %v16291_v49 = vld [vmem:[#allocation72_spill] sm:$0xff] }
 0x3dc   :  { %v4325_v53 = vsel %vm4316_vm6, %v4260_v5, %v2924_v63  ;;  %v8202_v5 = vld [vmem:[#allocation2 + $0x90] sm:$0xff] }
 0x3dd   :  { %3457 = vrot.lane.b32.xlu0 %v1902_v47, %s8231_s26  ;;  %v3688_v57 = vpop.permute.xlu1 %3687 }
 0x3de   :  { %v4518_v40 = vsel %vm4511_vm8, %v4453_v7, %v3688_v57 }
 0x3df   :  { %v3944_v9 = vpop.permute.xlu0 %3943  ;;  %3455 = vrot.lane.b32.xlu1 %v1901_v48, %s8231_s26 }
 0x3e0   :  { %v4583_v43 = vsel %vm4576_vm10, %v4518_v40, %v3944_v9  ;;  %v1841_v9 = vld [vmem:[#allocation2 + $0x12a] sm:$0xff]  ;;  %v4133_v40 = vsel %vm100_vm1, %v10658_v12, %v10444_v3 }
 0x3e1   :  { %2947 = vrot.lane.b32.xlu0 %v1774_v29, %s8229_s1  ;;  %7991 = vmatprep.mubr.msk.f32.mxu1 %vm4646_vm11, %v4583_v43  ;;  %v3690_v32 = vpop.permute.xlu1 %3689  ;;  %v4198_v48 = vsel %vm4187_vm5, %v4133_v40, %v10644_v4 }
 0x3e2   :  { %v4519_v38 = vsel %vm4511_vm8, %v4454_v33, %v3690_v32  ;;  %v4262_v43 = vsel %vm684_vm2, %v4198_v48, %v10877_v39 }
 0x3e3   :  { %v3180_v51 = vpop.permute.xlu0 %3179  ;;  %3711 = vrot.lane.b32.xlu1 %v1774_v29, %s8232_s13 }
 0x3e4   :  { %v4390_v20 = vsel %vm4381_vm7, %v4325_v53, %v3180_v51 }
 0x3e5   :  { %3967 = vrot.lane.b32.xlu0 %v2029_v23, %s8233_s14  ;;  %v2926_v21 = vpop.permute.xlu1 %2925 }
 0x3e6   :  { %v4326_v63 = vsel %vm4316_vm6, %v4261_v2, %v2926_v21  ;;  %v4134_v21 = vsel %vm100_vm1, %v10675_v54, %v10460_v56 }
 0x3e7   :  { %v3182_v15 = vpop.permute.xlu0 %3181  ;;  %3713 = vrot.lane.b32.xlu1 %v1966_v46, %s8232_s13 }
 0x3e8   :  { %v4391_v45 = vsel %vm4381_vm7, %v4326_v63, %v3182_v15 }
 0x3e9   :  { %3203 = vrot.lane.b32.xlu0 %v2029_v23, %s8230_s21  ;;  %v3946_v59 = vpop.permute.xlu1 %3945  ;;  %v1905_v23 = vld [vmem:[#allocation2 + $0x138] sm:$0xff] }
 0x3ea   :  { %v4584_v8 = vsel %vm4576_vm10, %v4519_v38, %v3946_v59  ;;  %v2033_v38 = vld [vmem:[#allocation2 + $0x13a] sm:$0xff] }
 0x3eb   :  { %v3438_v24 = vpop.permute.xlu0 %3437  ;;  %2949 = vrot.lane.b32.xlu1 %v1966_v46, %s8229_s1  ;;  %7992 = vmatmul.mubr.msk.f32.gmra.mrb[38].mxu1 %vm4646_vm11, %v4584_v8  ;;  %v4199_v46 = vsel %vm4187_vm5, %v4134_v21, %v10664_v35  ;;  %v1910_v21 = vld [vmem:[#allocation2 + $0x170] sm:$0xff] }
 0x3ec   :  { %v4456_v22 = vsel %vm4446_vm9, %v4391_v45, %v3438_v24  ;;  %v4263_v33 = vsel %vm684_vm2, %v4199_v46, %v10887_v17  ;;  %v2035_v45 = vld [vmem:[#allocation2 + $0x152] sm:$0xff] }
 0x3ed   :  { %3205 = vrot.lane.b32.xlu0 %v1839_v34, %s8230_s21  ;;  %v3436_v28 = vpop.permute.xlu1 %3435 }
 0x3ee   :  { %v4455_v11 = vsel %vm4446_vm9, %v4390_v20, %v3436_v28  ;;  %v1843_v28 = vld [vmem:[#allocation2 + $0x142] sm:$0xff] }
 0x3ef   :  { %v2928_v42 = vpop.permute.xlu0 %2927  ;;  %3969 = vrot.lane.b32.xlu1 %v1839_v34, %s8233_s14  ;;  %v1970_v34 = vld [vmem:[#allocation2 + $0x141] sm:$0xff] }
 0x3f0   :  { %v4327_v32 = vsel %vm4316_vm6, %v4262_v43, %v2928_v42  ;;  %v4135_v42 = vsel %vm100_vm1, %v8202_v5, %v10453_v37 }
 0x3f1   :  { %3461 = vrot.lane.b32.xlu0 %v1904_v52, %s8231_s26  ;;  %v3692_v19 = vpop.permute.xlu1 %3691  ;;  %v4200_v53 = vsel %vm4187_vm5, %v4135_v42, %v10656_v31  ;;  %v2037_v42 = vld [vmem:[#allocation2 + $0x16a] sm:$0xff] }
 0x3f2   :  { %v4520_v0 = vsel %vm4511_vm8, %v4455_v11, %v3692_v19  ;;  %v4264_v20 = vsel %vm684_vm2, %v4200_v53, %v10883_v62 }
 0x3f3   :  { %v3948_v27 = vpop.permute.xlu0 %3947  ;;  %3459 = vrot.lane.b32.xlu1 %v1903_v55, %s8231_s26 }
 0x3f4   :  { %v4585_v61 = vsel %vm4576_vm10, %v4520_v0, %v3948_v27  ;;  %v1908_v27 = vld [vmem:[#allocation2 + $0x158] sm:$0xff] }
 0x3f5   :  { %2951 = vrot.lane.b32.xlu0 %v1776_v1, %s8229_s1  ;;  %7994 = vmatprep.mubr.msk.f32.mxu1 %vm4646_vm11, %v4585_v61  ;;  %v3694_v10 = vpop.permute.xlu1 %3693  ;;  %v1907_v61 = vld [vmem:[#allocation2 + $0x150] sm:$0xff] }
 0x3f6   :  { %v4521_v16 = vsel %vm4511_vm8, %v4456_v22, %v3694_v10  ;;  %v8203_v10 = vld [vmem:[#allocation2 + $0x98] sm:$0xff] }
 0x3f7   :  { %v3184_v36 = vpop.permute.xlu0 %3183  ;;  %3715 = vrot.lane.b32.xlu1 %v1776_v1, %s8232_s13 }
 0x3f8   :  { %v4392_v51 = vsel %vm4381_vm7, %v4327_v32, %v3184_v36  ;;  %v4136_v36 = vsel %vm100_vm1, %v8203_v10, %v16291_v49  ;;  %v8204_v32 = vld [vmem:[#allocation2 + $0xa8] sm:$0xff]  ;;  %v16301_v10 = vld [vmem:[#allocation122_spill] sm:$0xff] }
 0x3f9   :  { %3971 = vrot.lane.b32.xlu0 %v2031_v14, %s8233_s14  ;;  %v2930_v6 = vpop.permute.xlu1 %2929 }
 0x3fa   :  { %v4328_v59 = vsel %vm4316_vm6, %v4263_v33, %v2930_v6 }
 0x3fb   :  { %v3186_v47 = vpop.permute.xlu0 %3185  ;;  %3717 = vrot.lane.b32.xlu1 %v1968_v30, %s8232_s13 }
 0x3fc   :  { %v4393_v56 = vsel %vm4381_vm7, %v4328_v59, %v3186_v47  ;;  %v16293_v47 = vld [vmem:[#allocation170_spill] sm:$0xff]  ;;  %v1909_v59 = vld [vmem:[#allocation2 + $0x168] sm:$0xff] }
 0x3fd   :  { %3207 = vrot.lane.b32.xlu0 %v2031_v14, %s8230_s21  ;;  %v3950_v50 = vpop.permute.xlu1 %3949  ;;  %v16292_v14 = vld [vmem:[#allocation121_spill] sm:$0xff] }
 0x3fe   :  { %v4586_v57 = vsel %vm4576_vm10, %v4521_v16, %v3950_v50  ;;  %v4201_v63 = vsel %vm4187_vm5, %v4136_v36, %v16292_v14 }
 0x3ff   :  { %v3442_v7 = vpop.permute.xlu0 %3441  ;;  %2953 = vrot.lane.b32.xlu1 %v1968_v30, %s8229_s1  ;;  %7995 = vmatmul.mubr.msk.f32.gmra.mrb[40].mxu1 %vm4646_vm11, %v4586_v57  ;;  %v4265_v30 = vsel %vm684_vm2, %v4201_v63, %v16293_v47  ;;  %v1912_v47 = vld [vmem:[#allocation2 + $0x188] sm:$0xff] }
 0x400   :  { %v4458_v54 = vsel %vm4446_vm9, %v4393_v56, %v3442_v7  ;;  %v1972_v7 = vld [vmem:[#allocation2 + $0x159] sm:$0xff] }
 0x401   :  { %3209 = vrot.lane.b32.xlu0 %v1841_v9, %s8230_s21  ;;  %v3440_v29 = vpop.permute.xlu1 %3439  ;;  %v16297_v56 = vld [vmem:[#allocation74_spill] sm:$0xff] }
 0x402   :  { %v4457_v3 = vsel %vm4446_vm9, %v4392_v51, %v3440_v29 }
 0x403   :  { %v2932_v60 = vpop.permute.xlu0 %2931  ;;  %3973 = vrot.lane.b32.xlu1 %v1841_v9, %s8233_s14 }
 0x404   :  { %v4329_v19 = vsel %vm4316_vm6, %v4264_v20, %v2932_v60  ;;  %v1845_v60 = vld [vmem:[#allocation2 + $0x15a] sm:$0xff] }
 0x405   :  { %3465 = vrot.lane.b32.xlu0 %v1906_v58, %s8231_s26  ;;  %v3696_v12 = vpop.permute.xlu1 %3695  ;;  %v16294_v58 = vld [vmem:[#allocation71_spill] sm:$0xff] }
 0x406   :  { %v4522_v4 = vsel %vm4511_vm8, %v4457_v3, %v3696_v12  ;;  %v4137_v51 = vsel %vm100_vm1, %v8204_v32, %v16294_v58  ;;  %v16295_v3 = vld [vmem:[#allocation120_spill] sm:$0xff] }
 0x407   :  { %v3952_v44 = vpop.permute.xlu0 %3951  ;;  %3463 = vrot.lane.b32.xlu1 %v1905_v23, %s8231_s26  ;;  %v4202_v12 = vsel %vm4187_vm5, %v4137_v51, %v16295_v3  ;;  %v16305_v51 = vld [vmem:[#allocation174_spill] sm:$0xff] }
 0x408   :  { %v4587_v39 = vsel %vm4576_vm10, %v4522_v4, %v3952_v44  ;;  %v16296_v4 = vld [vmem:[#allocation169_spill] sm:$0xff] }
 0x409   :  { %2955 = vrot.lane.b32.xlu0 %v1778_v26, %s8229_s1  ;;  %7997 = vmatprep.mubr.msk.f32.mxu1 %vm4646_vm11, %v4587_v39  ;;  %v3698_v15 = vpop.permute.xlu1 %3697  ;;  %v4266_v23 = vsel %vm684_vm2, %v4202_v12, %v16296_v4  ;;  %v2039_v12 = vld [vmem:[#allocation2 + $0x182] sm:$0xff] }
 0x40a   :  { %v4523_v17 = vsel %vm4511_vm8, %v4458_v54, %v3698_v15 }
 0x40b   :  { %v3188_v25 = vpop.permute.xlu0 %3187  ;;  %3719 = vrot.lane.b32.xlu1 %v1778_v26, %s8232_s13 }
 0x40c   :  { %v4394_v0 = vsel %vm4381_vm7, %v4329_v19, %v3188_v25 }
 0x40d   :  { %3975 = vrot.lane.b32.xlu0 %v2033_v38, %s8233_s14  ;;  %v2934_v24 = vpop.permute.xlu1 %2933 }
 0x40e   :  { %v4330_v22 = vsel %vm4316_vm6, %v4265_v30, %v2934_v24  ;;  %v1782_v24 = vld [vmem:[#allocation2 + $0x169] sm:$0xff] }
 0x40f   :  { %v3190_v8 = vpop.permute.xlu0 %3189  ;;  %3721 = vrot.lane.b32.xlu1 %v1970_v34, %s8232_s13 }
 0x410   :  { %v4395_v57 = vsel %vm4381_vm7, %v4330_v22, %v3190_v8 }
 0x411   :  { %3211 = vrot.lane.b32.xlu0 %v2033_v38, %s8230_s21  ;;  %v3954_v35 = vpop.permute.xlu1 %3953 }
 0x412   :  { %v4588_v18 = vsel %vm4576_vm10, %v4523_v17, %v3954_v35  ;;  %v16298_v35 = vld [vmem:[#allocation123_spill] sm:$0xff] }
 0x413   :  { %v3446_v41 = vpop.permute.xlu0 %3445  ;;  %2957 = vrot.lane.b32.xlu1 %v1970_v34, %s8229_s1  ;;  %7998 = vmatmul.mubr.msk.f32.gmra.mrb[42].mxu1 %vm4646_vm11, %v4588_v18  ;;  %v8205_v34 = vld [vmem:[#allocation2 + $0xb0] sm:$0xff] }
 0x414   :  { %v4460_v9 = vsel %vm4446_vm9, %v4395_v57, %v3446_v41  ;;  %v4138_v54 = vsel %vm100_vm1, %v8205_v34, %v16297_v56  ;;  %v1784_v57 = vld [vmem:[#allocation2 + $0x181] sm:$0xff] }
 0x415   :  { %3213 = vrot.lane.b32.xlu0 %v1843_v28, %s8230_s21  ;;  %v3444_v52 = vpop.permute.xlu1 %3443  ;;  %v4203_v41 = vsel %vm4187_vm5, %v4138_v54, %v16298_v35  ;;  %v16307_v34 = vld [vmem:[#allocation124_spill] sm:$0xff]  ;;  %v16308_v35 = vld [vmem:[#allocation173_spill] sm:$0xff] }
 0x416   :  { %v4459_v37 = vsel %vm4446_vm9, %v4394_v0, %v3444_v52 }
 0x417   :  { %v2936_v11 = vpop.permute.xlu0 %2935  ;;  %3977 = vrot.lane.b32.xlu1 %v1843_v28, %s8233_s14  ;;  %v16299_v28 = vld [vmem:[#allocation172_spill] sm:$0xff] }
 0x418   :  { %v4331_v39 = vsel %vm4316_vm6, %v4266_v23, %v2936_v11  ;;  %v4267_v5 = vsel %vm684_vm2, %v4203_v41, %v16299_v28  ;;  %v1974_v11 = vld [vmem:[#allocation2 + $0x171] sm:$0xff] }
 0x419   :  { %3469 = vrot.lane.b32.xlu0 %v1908_v27, %s8231_s26  ;;  %v3700_v55 = vpop.permute.xlu1 %3699 }
 0x41a   :  { %v4524_v31 = vsel %vm4511_vm8, %v4459_v37, %v3700_v55 }
 0x41b   :  { %v3956_v1 = vpop.permute.xlu0 %3955  ;;  %3467 = vrot.lane.b32.xlu1 %v1907_v61, %s8231_s26  ;;  %v8206_v61 = vld [vmem:[#allocation2 + $0xc0] sm:$0xff] }
 0x41c   :  { %v4589_v62 = vsel %vm4576_vm10, %v4524_v31, %v3956_v1  ;;  %v1847_v31 = vld [vmem:[#allocation2 + $0x172] sm:$0xff] }
 0x41d   :  { %2959 = vrot.lane.b32.xlu0 %v1780_v13, %s8229_s1  ;;  %8000 = vmatprep.mubr.msk.f32.mxu1 %vm4646_vm11, %v4589_v62  ;;  %v3702_v2 = vpop.permute.xlu1 %3701 }
 0x41e   :  { %v4525_v40 = vsel %vm4511_vm8, %v4460_v9, %v3702_v2  ;;  %v16302_v2 = vld [vmem:[#allocation171_spill] sm:$0xff] }
 0x41f   :  { %v3192_v6 = vpop.permute.xlu0 %3191  ;;  %3723 = vrot.lane.b32.xlu1 %v1780_v13, %s8232_s13  ;;  %v16300_v13 = vld [vmem:[#allocation73_spill] sm:$0xff] }
 0x420   :  { %v4396_v15 = vsel %vm4381_vm7, %v4331_v39, %v3192_v6  ;;  %v4139_v62 = vsel %vm100_vm1, %v8206_v61, %v16300_v13  ;;  %v2041_v61 = vld [vmem:[#allocation2 + $0x19a] sm:$0xff] }
 0x421   :  { %3979 = vrot.lane.b32.xlu0 %v2035_v45, %s8233_s14  ;;  %v2938_v16 = vpop.permute.xlu1 %2937  ;;  %v4204_v49 = vsel %vm4187_vm5, %v4139_v62, %v16301_v10  ;;  %v16310_v13 = vld [vmem:[#allocation127_spill] sm:$0xff] }
 0x422   :  { %v4332_v53 = vsel %vm4316_vm6, %v4267_v5, %v2938_v16  ;;  %v4268_v14 = vsel %vm684_vm2, %v4204_v49, %v16302_v2  ;;  %v16311_v49 = vld [vmem:[#allocation176_spill] sm:$0xff] }
 0x423   :  { %v3194_v50 = vpop.permute.xlu0 %3193  ;;  %3725 = vrot.lane.b32.xlu1 %v1972_v7, %s8232_s13 }
 0x424   :  { %v4397_v19 = vsel %vm4381_vm7, %v4332_v53, %v3194_v50 }
 0x425   :  { %3215 = vrot.lane.b32.xlu0 %v2035_v45, %s8230_s21  ;;  %v3958_v48 = vpop.permute.xlu1 %3957 }
 0x426   :  { %v4590_v43 = vsel %vm4576_vm10, %v4525_v40, %v3958_v48  ;;  %v8207_v40 = vld [vmem:[#allocation2 + $0xc8] sm:$0xff] }
 0x427   :  { %v3450_v29 = vpop.permute.xlu0 %3449  ;;  %2961 = vrot.lane.b32.xlu1 %v1972_v7, %s8229_s1  ;;  %8001 = vmatmul.mubr.msk.f32.gmra.mrb[44].mxu1 %vm4646_vm11, %v4590_v43  ;;  %v1911_v7 = vld [vmem:[#allocation2 + $0x180] sm:$0xff]  ;;  %v16303_v48 = vld [vmem:[#allocation76_spill] sm:$0xff] }
 0x428   :  { %v4462_v27 = vsel %vm4446_vm9, %v4397_v19, %v3450_v29  ;;  %v4140_v29 = vsel %vm100_vm1, %v8207_v40, %v16303_v48  ;;  %v1786_v19 = vld [vmem:[#allocation2 + $0x1c9] sm:$0xff] }
 0x429   :  { %3217 = vrot.lane.b32.xlu0 %v1845_v60, %s8230_s21  ;;  %v3448_v44 = vpop.permute.xlu1 %3447  ;;  %v8210_v40 = vld [vmem:[#allocation2 + $0xf0] sm:$0xff] }
 0x42a   :  { %v4461_v46 = vsel %vm4446_vm9, %v4396_v15, %v3448_v44  ;;  %v16312_v48 = vld [vmem:[#allocation77_spill] sm:$0xff] }
 0x42b   :  { %v2940_v26 = vpop.permute.xlu0 %2939  ;;  %3981 = vrot.lane.b32.xlu1 %v1845_v60, %s8233_s14  ;;  %v16304_v60 = vld [vmem:[#allocation125_spill] sm:$0xff] }
 0x42c   :  { %v4333_v6 = vsel %vm4316_vm6, %v4268_v14, %v2940_v26  ;;  %v4205_v32 = vsel %vm4187_vm5, %v4140_v29, %v16304_v60  ;;  %v1976_v26 = vld [vmem:[#allocation2 + $0x189] sm:$0xff]  ;;  %v1978_v14 = vld [vmem:[#allocation2 + $0x1a1] sm:$0xff]  ;;  %v4143_v29 = vsel %vm100_vm1, %v8210_v40, %v16312_v48  ;;  %v16313_v60 = vld [vmem:[#allocation126_spill] sm:$0xff] }
 0x42d   :  { %3473 = vrot.lane.b32.xlu0 %v1910_v21, %s8231_s26  ;;  %v3704_v25 = vpop.permute.xlu1 %3703  ;;  %v4269_v3 = vsel %vm684_vm2, %v4205_v32, %v16305_v51  ;;  %v4208_v32 = vsel %vm4187_vm5, %v4143_v29, %v16313_v60  ;;  %v16314_v51 = vld [vmem:[#allocation175_spill] sm:$0xff] }
 0x42e   :  { %v4526_v38 = vsel %vm4511_vm8, %v4461_v46, %v3704_v25 }
 0x42f   :  { %v3960_v33 = vpop.permute.xlu0 %3959  ;;  %3471 = vrot.lane.b32.xlu1 %v1909_v59, %s8231_s26  ;;  %v8208_v59 = vld [vmem:[#allocation2 + $0xd8] sm:$0xff] }
 0x430   :  { %v4591_v8 = vsel %vm4576_vm10, %v4526_v38, %v3960_v33  ;;  %v1849_v38 = vld [vmem:[#allocation2 + $0x18a] sm:$0xff] }
 0x431   :  { %2963 = vrot.lane.b32.xlu0 %v1782_v24, %s8229_s1  ;;  %8003 = vmatprep.mubr.msk.f32.mxu1 %vm4646_vm11, %v4591_v8  ;;  %v3706_v17 = vpop.permute.xlu1 %3705 }
 0x432   :  { %v4527_v0 = vsel %vm4511_vm8, %v4462_v27, %v3706_v17  ;;  %v1914_v17 = vld [vmem:[#allocation2 + $0x1a0] sm:$0xff] }
 0x433   :  { %v3196_v18 = vpop.permute.xlu0 %3195  ;;  %3727 = vrot.lane.b32.xlu1 %v1782_v24, %s8232_s13  ;;  %v16306_v24 = vld [vmem:[#allocation75_spill] sm:$0xff] }
 0x434   :  { %v4398_v30 = vsel %vm4381_vm7, %v4333_v6, %v3196_v18  ;;  %v4141_v8 = vsel %vm100_vm1, %v8208_v59, %v16306_v24 }
 0x435   :  { %3983 = vrot.lane.b32.xlu0 %v2037_v42, %s8233_s14  ;;  %v2942_v52 = vpop.permute.xlu1 %2941  ;;  %v4206_v56 = vsel %vm4187_vm5, %v4141_v8, %v16307_v34  ;;  %v16316_v8 = vld [vmem:[#allocation129_spill] sm:$0xff] }
 0x436   :  { %v4334_v44 = vsel %vm4316_vm6, %v4269_v3, %v2942_v52  ;;  %v4270_v41 = vsel %vm684_vm2, %v4206_v56, %v16308_v35  ;;  %v4272_v3 = vsel %vm684_vm2, %v4208_v32, %v16314_v51 }
 0x437   :  { %v3198_v20 = vpop.permute.xlu0 %3197  ;;  %3729 = vrot.lane.b32.xlu1 %v1974_v11, %s8232_s13 }
 0x438   :  { %v4399_v39 = vsel %vm4381_vm7, %v4334_v44, %v3198_v20 }
 0x439   :  { %3219 = vrot.lane.b32.xlu0 %v2037_v42, %s8230_s21  ;;  %v3962_v37 = vpop.permute.xlu1 %3961  ;;  %v1913_v42 = vld [vmem:[#allocation2 + $0x198] sm:$0xff] }
 0x43a   :  { %v4592_v1 = vsel %vm4576_vm10, %v4527_v0, %v3962_v37  ;;  %v1977_v0 = vld [vmem:[#allocation2 + $0x199] sm:$0xff] }
 0x43b   :  { %v3454_v55 = vpop.permute.xlu0 %3453  ;;  %2965 = vrot.lane.b32.xlu1 %v1974_v11, %s8229_s1  ;;  %8004 = vmatmul.mubr.msk.f32.gmra.mrb[46].mxu1 %vm4646_vm11, %v4592_v1  ;;  %v8209_v37 = vld [vmem:[#allocation2 + $0xe0] sm:$0xff] }
 0x43c   :  { %v4464_v21 = vsel %vm4446_vm9, %v4399_v39, %v3454_v55  ;;  %v16309_v55 = vld [vmem:[#allocation78_spill] sm:$0xff] }
 0x43d   :  { %3221 = vrot.lane.b32.xlu0 %v1847_v31, %s8230_s21  ;;  %v3452_v36 = vpop.permute.xlu1 %3451  ;;  %v4142_v1 = vsel %vm100_vm1, %v8209_v37, %v16309_v55  ;;  %v8212_v37 = vld [vmem:[#allocation2 + $0x108] sm:$0xff]  ;;  %v16318_v55 = vld [vmem:[#allocation79_spill] sm:$0xff] }
 0x43e   :  { %v4463_v45 = vsel %vm4446_vm9, %v4398_v30, %v3452_v36  ;;  %v4207_v62 = vsel %vm4187_vm5, %v4142_v1, %v16310_v13  ;;  %v1850_v30 = vld [vmem:[#allocation2 + $0x1ca] sm:$0xff]  ;;  %v4145_v1 = vsel %vm100_vm1, %v8212_v37, %v16318_v55 }
 0x43f   :  { %v2944_v63 = vpop.permute.xlu0 %2943  ;;  %3985 = vrot.lane.b32.xlu1 %v1847_v31, %s8233_s14  ;;  %v4271_v36 = vsel %vm684_vm2, %v4207_v62, %v16311_v49  ;;  %v16320_v62 = vld [vmem:[#allocation177_spill] sm:$0xff] }
 0x440   :  { %v4335_v28 = vsel %vm4316_vm6, %v4270_v41, %v2944_v63  ;;  %v1980_v41 = vld [vmem:[#allocation2 + $0x1e9] sm:$0xff] }
 0x441   :  { %3477 = vrot.lane.b32.xlu0 %v1912_v47, %s8231_s26  ;;  %v3708_v22 = vpop.permute.xlu1 %3707  ;;  %v1919_v55 = vld [vmem:[#allocation2 + $0x210] sm:$0xff] }
 0x442   :  { %v4528_v50 = vsel %vm4511_vm8, %v4463_v45, %v3708_v22 }
 0x443   :  { %v3964_v16 = vpop.permute.xlu0 %3963  ;;  %3475 = vrot.lane.b32.xlu1 %v1911_v7, %s8231_s26 }
 0x444   :  { %v4593_v9 = vsel %vm4576_vm10, %v4528_v50, %v3964_v16 }
 0x445   :  { %2967 = vrot.lane.b32.xlu0 %v1784_v57, %s8229_s1  ;;  %8006 = vmatprep.mubr.msk.f32.mxu1 %vm4646_vm11, %v4593_v9  ;;  %v3710_v43 = vpop.permute.xlu1 %3709  ;;  %v1851_v9 = vld [vmem:[#allocation2 + $0x1d2] sm:$0xff] }
 0x446   :  { %v4529_v15 = vsel %vm4511_vm8, %v4464_v21, %v3710_v43  ;;  %v2042_v43 = vld [vmem:[#allocation2 + $0x1a2] sm:$0xff] }
 0x447   :  { %v3200_v58 = vpop.permute.xlu0 %3199  ;;  %3731 = vrot.lane.b32.xlu1 %v1784_v57, %s8232_s13  ;;  %v1787_v57 = vld [vmem:[#allocation2 + $0x1d1] sm:$0xff] }
 0x448   :  { %v4400_v5 = vsel %vm4381_vm7, %v4335_v28, %v3200_v58 }
 0x449   :  { %3987 = vrot.lane.b32.xlu0 %v2039_v12, %s8233_s14  ;;  %v2946_v4 = vpop.permute.xlu1 %2945 }
 0x44a   :  { %v4336_v2 = vsel %vm4316_vm6, %v4271_v36, %v2946_v4  ;;  %v1916_v4 = vld [vmem:[#allocation2 + $0x1e8] sm:$0xff] }
 0x44b   :  { %v3202_v23 = vpop.permute.xlu0 %3201  ;;  %3733 = vrot.lane.b32.xlu1 %v1976_v26, %s8232_s13 }
 0x44c   :  { %v4401_v47 = vsel %vm4381_vm7, %v4336_v2, %v3202_v23  ;;  %v1917_v2 = vld [vmem:[#allocation2 + $0x1f8] sm:$0xff] }
 0x44d   :  { %3223 = vrot.lane.b32.xlu0 %v2039_v12, %s8230_s21  ;;  %v3966_v46 = vpop.permute.xlu1 %3965 }
 0x44e   :  { %v4594_v33 = vsel %vm4576_vm10, %v4529_v15, %v3966_v46  ;;  %v1915_v46 = vld [vmem:[#allocation2 + $0x1e0] sm:$0xff] }
 0x44f   :  { %v3458_v25 = vpop.permute.xlu0 %3457  ;;  %2969 = vrot.lane.b32.xlu1 %v1976_v26, %s8229_s1  ;;  %8007 = vmatmul.mubr.msk.f32.gmra.mrb[48].mxu1 %vm4646_vm11, %v4594_v33  ;;  %v8211_v33 = vld [vmem:[#allocation2 + $0xf8] sm:$0xff] }
 0x450   :  { %v4466_v45 = vsel %vm4446_vm9, %v4401_v47, %v3458_v25 }
 0x451   :  { %3225 = vrot.lane.b32.xlu0 %v1849_v38, %s8230_s21  ;;  %v3456_v54 = vpop.permute.xlu1 %3455 }
 0x452   :  { %v4465_v53 = vsel %vm4446_vm9, %v4400_v5, %v3456_v54  ;;  %v1979_v54 = vld [vmem:[#allocation2 + $0x1e1] sm:$0xff] }
 0x453   :  { %v2948_v18 = vpop.permute.xlu0 %2947  ;;  %3989 = vrot.lane.b32.xlu1 %v1849_v38, %s8233_s14  ;;  %v16315_v38 = vld [vmem:[#allocation80_spill] sm:$0xff] }
 0x454   :  { %v4337_v44 = vsel %vm4316_vm6, %v4272_v3, %v2948_v18  ;;  %v4144_v59 = vsel %vm100_vm1, %v8211_v33, %v16315_v38  ;;  %v1982_v33 = vld [vmem:[#allocation2 + $0x201] sm:$0xff] }
 0x455   :  { %3481 = vrot.lane.b32.xlu0 %v1914_v17, %s8231_s26  ;;  %v3712_v52 = vpop.permute.xlu1 %3711  ;;  %v4209_v34 = vsel %vm4187_vm5, %v4144_v59, %v16316_v8  ;;  %v16317_v17 = vld [vmem:[#allocation178_spill] sm:$0xff] }
 0x456   :  { %v4530_v11 = vsel %vm4511_vm8, %v4465_v53, %v3712_v52  ;;  %v4273_v35 = vsel %vm684_vm2, %v4209_v34, %v16317_v17 }
 0x457   :  { %v3968_v20 = vpop.permute.xlu0 %3967  ;;  %3479 = vrot.lane.b32.xlu1 %v1913_v42, %s8231_s26 }
 0x458   :  { %v4595_v27 = vsel %vm4576_vm10, %v4530_v11, %v3968_v20 }
 0x459   :  { %2971 = vrot.lane.b32.xlu0 %v1786_v19, %s8229_s1  ;;  %8009 = vmatprep.mubr.msk.f32.mxu1 %vm4646_vm11, %v4595_v27  ;;  %v3714_v31 = vpop.permute.xlu1 %3713  ;;  %v2043_v27 = vld [vmem:[#allocation2 + $0x1e2] sm:$0xff] }
 0x45a   :  { %v4531_v22 = vsel %vm4511_vm8, %v4466_v45, %v3714_v31  ;;  %v16319_v31 = vld [vmem:[#allocation128_spill] sm:$0xff]  ;;  %v1918_v45 = vld [vmem:[#allocation2 + $0x200] sm:$0xff] }
 0x45b   :  { %v3204_v10 = vpop.permute.xlu0 %3203  ;;  %3735 = vrot.lane.b32.xlu1 %v1977_v0, %s8232_s13  ;;  %v2044_v0 = vld [vmem:[#allocation2 + $0x1ea] sm:$0xff] }
 0x45c   :  { %v4402_v23 = vsel %vm4381_vm7, %v4337_v44, %v3204_v10 }
 0x45d   :  { %3991 = vrot.lane.b32.xlu0 %v2041_v61, %s8233_s14  ;;  %v2950_v63 = vpop.permute.xlu1 %2949  ;;  %v4210_v61 = vsel %vm4187_vm5, %v4145_v1, %v16319_v31  ;;  %v8215_v31 = vld [vmem:[#allocation2 + $0x128] sm:$0xff] }
 0x45e   :  { %v4338_v18 = vsel %vm4316_vm6, %v4273_v35, %v2950_v63  ;;  %v4274_v10 = vsel %vm684_vm2, %v4210_v61, %v16320_v62  ;;  %v16325_v35 = vld [vmem:[#allocation130_spill] sm:$0xff]  ;;  %v16327_v61 = vld [vmem:[#allocation84_spill] sm:$0xff] }
 0x45f   :  { %v3206_v6 = vpop.permute.xlu0 %3205  ;;  %3737 = vrot.lane.b32.xlu1 %v1978_v14, %s8232_s13 }
 0x460   :  { %v4403_v42 = vsel %vm4381_vm7, %v4338_v18, %v3206_v6 }
 0x461   :  { %3227 = vrot.lane.b32.xlu0 %v1850_v30, %s8230_s21  ;;  %v3970_v16 = vpop.permute.xlu1 %3969 }
 0x462   :  { %v4596_v7 = vsel %vm4576_vm10, %v4531_v22, %v3970_v16  ;;  %v8213_v16 = vld [vmem:[#allocation2 + $0x110] sm:$0xff] }
 0x463   :  { %v3462_v50 = vpop.permute.xlu0 %3461  ;;  %2973 = vrot.lane.b32.xlu1 %v1787_v57, %s8229_s1  ;;  %8010 = vmatmul.mubr.msk.f32.gmra.mrb[50].mxu1 %vm4646_vm11, %v4596_v7 }
 0x464   :  { %v4468_v53 = vsel %vm4446_vm9, %v4403_v42, %v3462_v50  ;;  %v16321_v50 = vld [vmem:[#allocation82_spill] sm:$0xff] }
 0x465   :  { %3229 = vrot.lane.b32.xlu0 %v1851_v9, %s8230_s21  ;;  %v3460_v58 = vpop.permute.xlu1 %3459  ;;  %v4146_v7 = vsel %vm100_vm1, %v8213_v16, %v16321_v50  ;;  %v16322_v9 = vld [vmem:[#allocation131_spill] sm:$0xff] }
 0x466   :  { %v4467_v26 = vsel %vm4446_vm9, %v4402_v23, %v3460_v58  ;;  %v4211_v40 = vsel %vm4187_vm5, %v4146_v7, %v16322_v9 }
 0x467   :  { %v2952_v12 = vpop.permute.xlu0 %2951  ;;  %3993 = vrot.lane.b32.xlu1 %v2042_v43, %s8233_s14  ;;  %v16323_v43 = vld [vmem:[#allocation180_spill] sm:$0xff] }
 0x468   :  { %v4339_v36 = vsel %vm4316_vm6, %v4274_v10, %v2952_v12  ;;  %v4275_v60 = vsel %vm684_vm2, %v4211_v40, %v16323_v43  ;;  %v16328_v10 = vld [vmem:[#allocation133_spill] sm:$0xff] }
 0x469   :  { %3485 = vrot.lane.b32.xlu0 %v1916_v4, %s8231_s26  ;;  %v3716_v39 = vpop.permute.xlu1 %3715 }
 0x46a   :  { %v4532_v15 = vsel %vm4511_vm8, %v4467_v26, %v3716_v39 }
 0x46b   :  { %v3972_v21 = vpop.permute.xlu0 %3971  ;;  %3483 = vrot.lane.b32.xlu1 %v1915_v46, %s8231_s26 }
 0x46c   :  { %v4597_v25 = vsel %vm4576_vm10, %v4532_v15, %v3972_v21  ;;  %v1981_v15 = vld [vmem:[#allocation2 + $0x1f9] sm:$0xff] }
 0x46d   :  { %2721 = vrot.lane.b32.xlu0 %v1916_v4, %s8228_s3  ;;  %8012 = vmatprep.mubr.msk.f32.mxu1 %vm4646_vm11, %v4597_v25  ;;  %v3718_v24 = vpop.permute.xlu1 %3717 }
 0x46e   :  { %v4533_v52 = vsel %vm4511_vm8, %v4468_v53, %v3718_v24  ;;  %v2045_v53 = vld [vmem:[#allocation2 + $0x1fa] sm:$0xff] }
 0x46f   :  { %v3208_v56 = vpop.permute.xlu0 %3207  ;;  %3739 = vrot.lane.b32.xlu1 %v1979_v54, %s8232_s13 }
 0x470   :  { %v4404_v14 = vsel %vm4381_vm7, %v4339_v36, %v3208_v56  ;;  %v8214_v56 = vld [vmem:[#allocation2 + $0x120] sm:$0xff] }
 0x471   :  { %3741 = vrot.lane.b32.xlu0 %v1980_v41, %s8232_s13  ;;  %v2954_v28 = vpop.permute.xlu1 %2953 }
 0x472   :  { %v4340_v3 = vsel %vm4316_vm6, %v4275_v60, %v2954_v28  ;;  %v16326_v28 = vld [vmem:[#allocation179_spill] sm:$0xff] }
 0x473   :  { %v3210_v5 = vpop.permute.xlu0 %3209  ;;  %2975 = vrot.lane.b32.xlu1 %v1979_v54, %s8229_s1  ;;  %v16324_v54 = vld [vmem:[#allocation81_spill] sm:$0xff] }
 0x474   :  { %v4405_v46 = vsel %vm4381_vm7, %v4340_v3, %v3210_v5  ;;  %v4147_v17 = vsel %vm100_vm1, %v8214_v56, %v16324_v54 }
 0x475   :  { %2977 = vrot.lane.b32.xlu0 %v1980_v41, %s8229_s1  ;;  %v3974_v20 = vpop.permute.xlu1 %3973  ;;  %v4212_v41 = vsel %vm4187_vm5, %v4147_v17, %v16325_v35 }
 0x476   :  { %v4598_v19 = vsel %vm4576_vm10, %v4533_v52, %v3974_v20  ;;  %v4276_v5 = vsel %vm684_vm2, %v4212_v41, %v16326_v28  ;;  %v2046_v20 = vld [vmem:[#allocation2 + $0x202] sm:$0xff]  ;;  %v2048_v28 = vld [vmem:[#allocation2 + $0x21a] sm:$0xff] }
 0x477   :  { %v3466_v11 = vpop.permute.xlu0 %3465  ;;  %3995 = vrot.lane.b32.xlu1 %v2043_v27, %s8233_s14  ;;  %8013 = vmatmul.mubr.msk.f32.gmra.mrb[52].mxu1 %vm4646_vm11, %v4598_v19 }
 0x478   :  { %v4470_v38 = vsel %vm4446_vm9, %v4405_v46, %v3466_v11 }
 0x479   :  { %3997 = vrot.lane.b32.xlu0 %v2044_v0, %s8233_s14  ;;  %v3464_v13 = vpop.permute.xlu1 %3463 }
 0x47a   :  { %v4469_v63 = vsel %vm4446_vm9, %v4404_v14, %v3464_v13  ;;  %v4148_v13 = vsel %vm100_vm1, %v8215_v31, %v16327_v61  ;;  %v16329_v14 = vld [vmem:[#allocation182_spill] sm:$0xff] }
 0x47b   :  { %v2956_v49 = vpop.permute.xlu0 %2955  ;;  %3231 = vrot.lane.b32.xlu1 %v2043_v27, %s8230_s21 }
 0x47c   :  { %v4341_v52 = vsel %vm4316_vm6, %v4276_v5, %v2956_v49  ;;  %v4213_v49 = vsel %vm4187_vm5, %v4148_v13, %v16328_v10 }
 0x47d   :  { %3487 = vrot.lane.b32.xlu0 %v1917_v2, %s8231_s26  ;;  %v3720_v6 = vpop.permute.xlu1 %3719 }
 0x47e   :  { %v4534_v30 = vsel %vm4511_vm8, %v4469_v63, %v3720_v6  ;;  %v4277_v63 = vsel %vm684_vm2, %v4213_v49, %v16329_v14  ;;  %v1920_v6 = vld [vmem:[#allocation2 + $0x218] sm:$0xff] }
 0x47f   :  { %v3976_v47 = vpop.permute.xlu0 %3975  ;;  %3233 = vrot.lane.b32.xlu1 %v2044_v0, %s8230_s21 }
 0x480   :  { %v4599_v22 = vsel %vm4576_vm10, %v4534_v30, %v3976_v47 }
 0x481   :  { %3489 = vrot.lane.b32.xlu0 %v1918_v45, %s8231_s26  ;;  %8015 = vmatprep.mubr.msk.f32.mxu1 %vm4646_vm11, %v4599_v22  ;;  %v3722_v57 = vpop.permute.xlu1 %3721 }
 0x482   :  { %v11365_v29 = vpop.f32.mrb[32].mxu1  ;;  %v4535_v59 = vsel %vm4511_vm8, %v4470_v38, %v3722_v57 }
 0x483   :  { %v3212_v48 = vpop.permute.xlu0 %3211  ;;  %v5230_v32 = vsel %vm100_vm1, %v11365_v29, 0.0  ;;  %v5363_v58 = vmul.f32 %v11365_v29, %v11365_v29  ;;  %v11373_v51 = vpop.f32.mrb[33].mxu1  ;;  %2723 = vrot.lane.b32.xlu1 %v1917_v2, %s8228_s3 }
 0x484   :  { %v5229_v12 = vsel %vm100_vm1, %v11373_v51, 0.0  ;;  %v5362_v44 = vmul.f32 %v11373_v51, %v11373_v51  ;;  %v4406_v11 = vsel %vm4381_vm7, %v4341_v52, %v3212_v48 }
 0x485   :  { %2725 = vrot.lane.b32.xlu0 %v1918_v45, %s8228_s3  ;;  %v5427_v4 = vsel %vm100_vm1, %v5363_v58, 0.0  ;;  %v5231_v23 = vadd.f32 %v5230_v32, %v5229_v12  ;;  %v2958_v26 = vpop.permute.xlu1 %2957 }
 0x486   :  { %v5426_v39 = vsel %vm100_vm1, %v5362_v44, 0.0  ;;  %v4342_v30 = vsel %vm4316_vm6, %v4277_v63, %v2958_v26  ;;  %v1983_v26 = vld [vmem:[#allocation2 + $0x211] sm:$0xff] }
 0x487   :  { %v3214_v21 = vpop.permute.xlu0 %3213  ;;  %v5428_v25 = vadd.f32 %v5427_v4, %v5426_v39  ;;  %3743 = vrot.lane.b32.xlu1 %v1981_v15, %s8232_s13  ;;  %v1984_v39 = vld [vmem:[#allocation2 + $0x219] sm:$0xff] }
 0x488   :  { %v4407_v48 = vsel %vm4381_vm7, %v4342_v30, %v3214_v21  ;;  %v8216_v21 = vld [vmem:[#allocation2 + $0x138] sm:$0xff] }
 0x489   :  { %3745 = vrot.lane.b32.xlu0 %v1982_v33, %s8232_s13  ;;  %v3978_v24 = vpop.permute.xlu1 %3977 }
 0x48a   :  { %v4600_v34 = vsel %vm4576_vm10, %v4535_v59, %v3978_v24  ;;  %v16332_v59 = vld [vmem:[#allocation181_spill] sm:$0xff] }
 0x48b   :  { %v3470_v8 = vpop.permute.xlu0 %3469  ;;  %2979 = vrot.lane.b32.xlu1 %v1981_v15, %s8229_s1  ;;  %8016 = vmatmul.mubr.msk.f32.gmra.mrb[54].mxu1 %vm4646_vm11, %v4600_v34  ;;  %v16330_v15 = vld [vmem:[#allocation83_spill] sm:$0xff] }
 0x48c   :  { %v4472_v32 = vsel %vm4446_vm9, %v4407_v48, %v3470_v8  ;;  %v4149_v46 = vsel %vm100_vm1, %v8216_v21, %v16330_v15  ;;  %v1986_v15 = vld [vmem:[#allocation2 + $0x231] sm:$0xff] }
 0x48d   :  { %2981 = vrot.lane.b32.xlu0 %v1982_v33, %s8229_s1  ;;  %v3468_v18 = vpop.permute.xlu1 %3467 }
 0x48e   :  { %v4471_v19 = vsel %vm4446_vm9, %v4406_v11, %v3468_v18  ;;  %v2047_v18 = vld [vmem:[#allocation2 + $0x212] sm:$0xff]  ;;  %v16334_v11 = vld [vmem:[#allocation135_spill] sm:$0xff] }
 0x48f   :  { %v2960_v42 = vpop.permute.xlu0 %2959  ;;  %3999 = vrot.lane.b32.xlu1 %v2045_v53, %s8233_s14 }
 0x491   :  { %4001 = vrot.lane.b32.xlu0 %v2046_v20, %s8233_s14  ;;  %v3724_v27 = vpop.permute.xlu1 %3723 }
 0x492   :  { %v4536_v37 = vsel %vm4511_vm8, %v4471_v19, %v3724_v27 }
 0x493   :  { %v3980_v0 = vpop.permute.xlu0 %3979  ;;  %3235 = vrot.lane.b32.xlu1 %v2045_v53, %s8230_s21  ;;  %v16333_v53 = vld [vmem:[#allocation86_spill] sm:$0xff] }
 0x494   :  { %v4601_v1 = vsel %vm4576_vm10, %v4536_v37, %v3980_v0  ;;  %v16335_v37 = vld [vmem:[#allocation184_spill] sm:$0xff] }
 0x495   :  { %3491 = vrot.lane.b32.xlu0 %v1919_v55, %s8231_s26  ;;  %8018 = vmatprep.mubr.msk.f32.mxu1 %vm4646_vm11, %v4601_v1  ;;  %v3726_v62 = vpop.permute.xlu1 %3725  ;;  %v1921_v1 = vld [vmem:[#allocation2 + $0x228] sm:$0xff] }
 0x496   :  { %v11413_v2 = vpop.f32.mrb[34].mxu1  ;;  %v4537_v3 = vsel %vm4511_vm8, %v4472_v32, %v3726_v62  ;;  %v16336_v32 = vld [vmem:[#allocation85_spill] sm:$0xff] }
 0x497   :  { %v3216_v36 = vpop.permute.xlu0 %3215  ;;  %3237 = vrot.lane.b32.xlu1 %v2046_v20, %s8230_s21  ;;  %v11418_v47 = vpop.f32.mrb[35].mxu1  ;;  %v5365_v45 = vmul.f32 %v11413_v2, %v11413_v2  ;;  %v5234_v57 = vsel %vm100_vm1, %v11413_v2, 0.0 }
 0x498   :  { %v5232_v22 = vsel %vm100_vm1, %v11418_v47, 0.0  ;;  %v5364_v16 = vmul.f32 %v11418_v47, %v11418_v47 }
 0x499   :  { %3493 = vrot.lane.b32.xlu0 %v1920_v6, %s8231_s26  ;;  %v5233_v50 = vadd.f32 %v5232_v22, %v5231_v23  ;;  %v2962_v7 = vpop.permute.xlu1 %2961  ;;  %v5431_v58 = vsel %vm100_vm1, %v5365_v45, 0.0  ;;  %v1922_v22 = vld [vmem:[#allocation2 + $0x230] sm:$0xff] }
 0x49a   :  { %v5429_v9 = vsel %vm100_vm1, %v5364_v16, 0.0 }
 0x49b   :  { %v3218_v40 = vpop.permute.xlu0 %3217  ;;  %v5235_v43 = vadd.f32 %v5234_v57, %v5233_v50  ;;  %v5430_v60 = vadd.f32 %v5429_v9, %v5428_v25  ;;  %2727 = vrot.lane.b32.xlu1 %v1919_v55, %s8228_s3  ;;  %v16331_v25 = vld [vmem:[#allocation132_spill] sm:$0xff] }
 0x49c   :  { %v4214_v33 = vsel %vm4187_vm5, %v4149_v46, %v16331_v25 }
 0x49d   :  { %2729 = vrot.lane.b32.xlu0 %v1920_v6, %s8228_s3  ;;  %v5432_v12 = vadd.f32 %v5431_v58, %v5430_v60  ;;  %v3982_v44 = vpop.permute.xlu1 %3981  ;;  %v4278_v24 = vsel %vm684_vm2, %v4214_v33, %v16332_v59 }
 0x49e   :  { %v4602_v23 = vsel %vm4576_vm10, %v4537_v3, %v3982_v44  ;;  %v4343_v34 = vsel %vm4316_vm6, %v4278_v24, %v2960_v42  ;;  %v8217_v42 = vld [vmem:[#allocation2 + $0x140] sm:$0xff]  ;;  %v16337_v3 = vld [vmem:[#allocation134_spill] sm:$0xff] }
 0x49f   :  { %v3474_v4 = vpop.permute.xlu0 %3473  ;;  %3747 = vrot.lane.b32.xlu1 %v1983_v26, %s8232_s13  ;;  %8019 = vmatmul.mubr.msk.f32.gmra.mrb[56].mxu1 %vm4646_vm11, %v4602_v23  ;;  %v4408_v56 = vsel %vm4381_vm7, %v4343_v34, %v3216_v36  ;;  %v4150_v52 = vsel %vm100_vm1, %v8217_v42, %v16333_v53  ;;  %v16339_v34 = vld [vmem:[#allocation88_spill] sm:$0xff]  ;;  %v2050_v53 = vld [vmem:[#allocation2 + $0x232] sm:$0xff] }
 0x4a0   :  { %v4215_v19 = vsel %vm4187_vm5, %v4150_v52, %v16334_v11 }
 0x4a1   :  { %3749 = vrot.lane.b32.xlu0 %v1984_v39, %s8232_s13  ;;  %v3472_v38 = vpop.permute.xlu1 %3471  ;;  %v4279_v55 = vsel %vm684_vm2, %v4215_v19, %v16335_v37 }
 0x4a2   :  { %v4473_v54 = vsel %vm4446_vm9, %v4408_v56, %v3472_v38  ;;  %v4344_v61 = vsel %vm4316_vm6, %v4279_v55, %v2962_v7 }
 0x4a3   :  { %v2964_v8 = vpop.permute.xlu0 %2963  ;;  %2983 = vrot.lane.b32.xlu1 %v1983_v26, %s8229_s1  ;;  %v4409_v30 = vsel %vm4381_vm7, %v4344_v61, %v3218_v40  ;;  %v8218_v40 = vld [vmem:[#allocation2 + $0x150] sm:$0xff] }
 0x4a4   :  { %v4474_v50 = vsel %vm4446_vm9, %v4409_v30, %v3474_v4  ;;  %v4151_v58 = vsel %vm100_vm1, %v8218_v40, %v16336_v32  ;;  %v16338_v4 = vld [vmem:[#allocation183_spill] sm:$0xff]  ;;  %v16344_v40 = vld [vmem:[#allocation185_spill] sm:$0xff] }
 0x4a5   :  { %2985 = vrot.lane.b32.xlu0 %v1984_v39, %s8229_s1  ;;  %v3728_v17 = vpop.permute.xlu1 %3727  ;;  %v1985_v39 = vld [vmem:[#allocation2 + $0x229] sm:$0xff] }
 0x4a6   :  { %v4538_v41 = vsel %vm4511_vm8, %v4473_v54, %v3728_v17  ;;  %v16340_v17 = vld [vmem:[#allocation137_spill] sm:$0xff] }
 0x4a7   :  { %v3984_v35 = vpop.permute.xlu0 %3983  ;;  %4003 = vrot.lane.b32.xlu1 %v2047_v18, %s8233_s14 }
 0x4a8   :  { %v4603_v5 = vsel %vm4576_vm10, %v4538_v41, %v3984_v35 }
 0x4a9   :  { %4005 = vrot.lane.b32.xlu0 %v2048_v28, %s8233_s14  ;;  %8021 = vmatprep.mubr.msk.f32.mxu1 %vm4646_vm11, %v4603_v5  ;;  %v3730_v20 = vpop.permute.xlu1 %3729  ;;  %v16341_v5 = vld [vmem:[#allocation186_spill] sm:$0xff] }
 0x4aa   :  { %v11461_v0 = vpop.f32.mrb[36].mxu1  ;;  %v4539_v57 = vsel %vm4511_vm8, %v4474_v50, %v3730_v20 }
 0x4ab   :  { %v3220_v27 = vpop.permute.xlu0 %3219  ;;  %3239 = vrot.lane.b32.xlu1 %v2047_v18, %s8230_s21  ;;  %v11466_v31 = vpop.f32.mrb[37].mxu1  ;;  %v5367_v13 = vmul.f32 %v11461_v0, %v11461_v0  ;;  %v5238_v14 = vsel %vm100_vm1, %v11461_v0, 0.0 }
 0x4ac   :  { %v5236_v62 = vsel %vm100_vm1, %v11466_v31, 0.0  ;;  %v5366_v10 = vmul.f32 %v11466_v31, %v11466_v31 }
 0x4ad   :  { %3495 = vrot.lane.b32.xlu0 %v1921_v1, %s8231_s26  ;;  %v5237_v49 = vadd.f32 %v5236_v62, %v5235_v43  ;;  %v2966_v36 = vpop.permute.xlu1 %2965  ;;  %v5435_v7 = vsel %vm100_vm1, %v5367_v13, 0.0 }
 0x4ae   :  { %v5433_v63 = vsel %vm100_vm1, %v5366_v10, 0.0 }
 0x4af   :  { %v3222_v6 = vpop.permute.xlu0 %3221  ;;  %v5434_v45 = vadd.f32 %v5433_v63, %v5432_v12  ;;  %3241 = vrot.lane.b32.xlu1 %v2048_v28, %s8230_s21  ;;  %v5239_v16 = vadd.f32 %v5238_v14, %v5237_v49  ;;  %v4216_v12 = vsel %vm4187_vm5, %v4151_v58, %v16337_v3  ;;  %v2049_v28 = vld [vmem:[#allocation2 + $0x22a] sm:$0xff]  ;;  %v1923_v49 = vld [vmem:[#allocation2 + $0x240] sm:$0xff] }
 0x4b0   :  { %v4280_v23 = vsel %vm684_vm2, %v4216_v12, %v16338_v4 }
 0x4b1   :  { %3497 = vrot.lane.b32.xlu0 %v1922_v22, %s8231_s26  ;;  %v3986_v9 = vpop.permute.xlu1 %3985  ;;  %v5436_v48 = vadd.f32 %v5435_v7, %v5434_v45  ;;  %v4345_v21 = vsel %vm4316_vm6, %v4280_v23, %v2964_v8  ;;  %v8219_v8 = vld [vmem:[#allocation2 + $0x158] sm:$0xff]  ;;  %v1924_v7 = vld [vmem:[#allocation2 + $0x248] sm:$0xff] }
 0x4b2   :  { %v4604_v60 = vsel %vm4576_vm10, %v4539_v57, %v3986_v9  ;;  %v4410_v46 = vsel %vm4381_vm7, %v4345_v21, %v3220_v27  ;;  %v4152_v56 = vsel %vm100_vm1, %v8219_v8, %v16339_v34  ;;  %v16342_v57 = vld [vmem:[#allocation87_spill] sm:$0xff] }
 0x4b3   :  { %v3478_v43 = vpop.permute.xlu0 %3477  ;;  %2731 = vrot.lane.b32.xlu1 %v1921_v1, %s8228_s3  ;;  %8022 = vmatmul.mubr.msk.f32.gmra.mrb[58].mxu1 %vm4646_vm11, %v4604_v60  ;;  %v4217_v35 = vsel %vm4187_vm5, %v4152_v56, %v16340_v17  ;;  %v1987_v21 = vld [vmem:[#allocation2 + $0x241] sm:$0xff] }
 0x4b4   :  { %v4281_v42 = vsel %vm684_vm2, %v4217_v35, %v16341_v5  ;;  %v16347_v56 = vld [vmem:[#allocation188_spill] sm:$0xff] }
 0x4b5   :  { %2733 = vrot.lane.b32.xlu0 %v1922_v22, %s8228_s3  ;;  %v3476_v44 = vpop.permute.xlu1 %3475  ;;  %v4346_v20 = vsel %vm4316_vm6, %v4281_v42, %v2966_v36 }
 0x4b6   :  { %v4475_v25 = vsel %vm4446_vm9, %v4410_v46, %v3476_v44  ;;  %v4411_v62 = vsel %vm4381_vm7, %v4346_v20, %v3222_v6  ;;  %v8220_v6 = vld [vmem:[#allocation2 + $0x168] sm:$0xff] }
 0x4b7   :  { %v2968_v26 = vpop.permute.xlu0 %2967  ;;  %3751 = vrot.lane.b32.xlu1 %v1985_v39, %s8232_s13  ;;  %v4476_v14 = vsel %vm4446_vm9, %v4411_v62, %v3478_v43  ;;  %v4153_v9 = vsel %vm100_vm1, %v8220_v6, %v16342_v57  ;;  %v1926_v57 = vld [vmem:[#allocation2 + $0x260] sm:$0xff] }
 0x4b9   :  { %3753 = vrot.lane.b32.xlu0 %v1986_v15, %s8232_s13  ;;  %v3732_v33 = vpop.permute.xlu1 %3731 }
 0x4ba   :  { %v4540_v59 = vsel %vm4511_vm8, %v4475_v25, %v3732_v33  ;;  %v16345_v25 = vld [vmem:[#allocation90_spill] sm:$0xff] }
 0x4bb   :  { %v3988_v38 = vpop.permute.xlu0 %3987  ;;  %2987 = vrot.lane.b32.xlu1 %v1985_v39, %s8229_s1 }
 0x4bc   :  { %v4605_v24 = vsel %vm4576_vm10, %v4540_v59, %v3988_v38  ;;  %v16346_v59 = vld [vmem:[#allocation139_spill] sm:$0xff] }
 0x4bd   :  { %2989 = vrot.lane.b32.xlu0 %v1986_v15, %s8229_s1  ;;  %8024 = vmatprep.mubr.msk.f32.mxu1 %vm4646_vm11, %v4605_v24  ;;  %v3734_v54 = vpop.permute.xlu1 %3733  ;;  %v1988_v15 = vld [vmem:[#allocation2 + $0x249] sm:$0xff] }
 0x4be   :  { %v11509_v18 = vpop.f32.mrb[38].mxu1  ;;  %v4541_v30 = vsel %vm4511_vm8, %v4476_v14, %v3734_v54 }
 0x4bf   :  { %v3224_v41 = vpop.permute.xlu0 %3223  ;;  %4007 = vrot.lane.b32.xlu1 %v2049_v28, %s8233_s14  ;;  %v11514_v52 = vpop.f32.mrb[39].mxu1  ;;  %v5369_v11 = vmul.f32 %v11509_v18, %v11509_v18  ;;  %v5242_v1 = vsel %vm100_vm1, %v11509_v18, 0.0 }
 0x4c0   :  { %v5240_v19 = vsel %vm100_vm1, %v11514_v52, 0.0  ;;  %v5368_v27 = vmul.f32 %v11514_v52, %v11514_v52 }
 0x4c1   :  { %4009 = vrot.lane.b32.xlu0 %v2050_v53, %s8233_s14  ;;  %v5241_v37 = vadd.f32 %v5240_v19, %v5239_v16  ;;  %v2970_v55 = vpop.permute.xlu1 %2969  ;;  %v5439_v63 = vsel %vm100_vm1, %v5369_v11, 0.0 }
 0x4c2   :  { %v5437_v61 = vsel %vm100_vm1, %v5368_v27, 0.0  ;;  %v2051_v27 = vld [vmem:[#allocation2 + $0x242] sm:$0xff] }
 0x4c3   :  { %v3226_v13 = vpop.permute.xlu0 %3225  ;;  %v5438_v10 = vadd.f32 %v5437_v61, %v5436_v48  ;;  %3243 = vrot.lane.b32.xlu1 %v2049_v28, %s8230_s21  ;;  %v5243_v36 = vadd.f32 %v5242_v1, %v5241_v37  ;;  %v16343_v48 = vld [vmem:[#allocation136_spill] sm:$0xff] }
 0x4c4   :  { %v4218_v43 = vsel %vm4187_vm5, %v4153_v9, %v16343_v48  ;;  %v2052_v1 = vld [vmem:[#allocation2 + $0x24a] sm:$0xff] }
 0x4c5   :  { %3499 = vrot.lane.b32.xlu0 %v1923_v49, %s8231_s26  ;;  %v3990_v45 = vpop.permute.xlu1 %3989  ;;  %v5440_v22 = vadd.f32 %v5439_v63, %v5438_v10  ;;  %v4282_v32 = vsel %vm684_vm2, %v4218_v43, %v16344_v40  ;;  %v16349_v9 = vld [vmem:[#allocation68_spill] sm:$0xff] }
 0x4c6   :  { %v4606_v50 = vsel %vm4576_vm10, %v4541_v30, %v3990_v45  ;;  %v4347_v3 = vsel %vm4316_vm6, %v4282_v32, %v2968_v26  ;;  %v8221_v26 = vld [vmem:[#allocation2 + $0x170] sm:$0xff]  ;;  %v1925_v45 = vld [vmem:[#allocation2 + $0x258] sm:$0xff] }
 0x4c7   :  { %v3482_v16 = vpop.permute.xlu0 %3481  ;;  %3245 = vrot.lane.b32.xlu1 %v2050_v53, %s8230_s21  ;;  %8025 = vmatmul.mubr.msk.f32.gmra.mrb[60].mxu1 %vm4646_vm11, %v4606_v50  ;;  %v4412_v12 = vsel %vm4381_vm7, %v4347_v3, %v3224_v41  ;;  %v4154_v33 = vsel %vm100_vm1, %v8221_v26, %v16345_v25  ;;  %v16351_v3 = vld [vmem:[#allocation190_spill] sm:$0xff] }
 0x4c8   :  { %v4219_v24 = vsel %vm4187_vm5, %v4154_v33, %v16346_v59  ;;  %v1989_v33 = vld [vmem:[#allocation2 + $0x259] sm:$0xff] }
 0x4c9   :  { %3501 = vrot.lane.b32.xlu0 %v1924_v7, %s8231_s26  ;;  %v3480_v60 = vpop.permute.xlu1 %3479  ;;  %v4283_v54 = vsel %vm684_vm2, %v4219_v24, %v16347_v56  ;;  %v1990_v24 = vld [vmem:[#allocation2 + $0x261] sm:$0xff] }
 0x4ca   :  { %v4477_v44 = vsel %vm4446_vm9, %v4412_v12, %v3480_v60  ;;  %v4348_v35 = vsel %vm4316_vm6, %v4283_v54, %v2970_v55  ;;  %v16350_v60 = vld [vmem:[#allocation70_spill] sm:$0xff] }
 0x4cb   :  { %v11543_v58 = vpop.permute.xlu0 %2971  ;;  %2735 = vrot.lane.b32.xlu1 %v1923_v49, %s8228_s3  ;;  %v4413_v37 = vsel %vm4381_vm7, %v4348_v35, %v3226_v13  ;;  %v1531_v13 = vld [vmem:[#allocation2 + $0x1b8] sm:$0xff] }
 0x4cc   :  { %v4478_v62 = vsel %vm4446_vm9, %v4413_v37, %v3482_v16  ;;  %v1530_v16 = vld [vmem:[#allocation2 + $0x1b0] sm:$0xff] }
 0x4cd   :  { %2737 = vrot.lane.b32.xlu0 %v1924_v7, %s8228_s3  ;;  %v3736_v4 = vpop.permute.xlu1 %3735  ;;  %v16348_v7 = vld [vmem:[#allocation67_spill] sm:$0xff]  ;;  %v4155_v48 = vsel %vm100_vm1, %v1530_v16, %v16349_v9  ;;  %v1928_v16 = vld [vmem:[#allocation2 + $0x278] sm:$0xff]  ;;  %v8223_v9 = vld [vmem:[#allocation2 + $0x1d0] sm:$0xff] }
 0x4ce   :  { %v4542_v39 = vsel %vm4511_vm8, %v4477_v44, %v3736_v4  ;;  %v4156_v6 = vsel %vm100_vm1, %v1531_v13, %v16348_v7  ;;  %v16352_v44 = vld [vmem:[#allocation69_spill] sm:$0xff]  ;;  %v8222_v7 = vld [vmem:[#allocation2 + $0x1c8] sm:$0xff] }
 0x4cf   :  { %v3992_v23 = vpop.permute.xlu0 %3991  ;;  %3755 = vrot.lane.b32.xlu1 %v1987_v21, %s8232_s13  ;;  %v4221_v40 = vsel %vm4187_vm5, %v4156_v6, %v16350_v60  ;;  %v4220_v4 = vsel %vm4187_vm5, %v4155_v48, %v16352_v44  ;;  %v16354_v6 = vld [vmem:[#allocation89_spill] sm:$0xff]  ;;  %v16355_v48 = vld [vmem:[#allocation92_spill] sm:$0xff] }
 0x4d0   :  { %v4607_v46 = vsel %vm4576_vm10, %v4542_v39, %v3992_v23  ;;  %v4285_v12 = vsel %vm684_vm2, %v4221_v40, %v16351_v3  ;;  %v16353_v39 = vld [vmem:[#allocation187_spill] sm:$0xff]  ;;  %v16356_v40 = vld [vmem:[#allocation138_spill] sm:$0xff]  ;;  %v16357_v3 = vld [vmem:[#allocation141_spill] sm:$0xff] }
 0x4d1   :  { %3757 = vrot.lane.b32.xlu0 %v1988_v15, %s8232_s13  ;;  %8027 = vmatprep.mubr.msk.f32.mxu1 %vm4646_vm11, %v4607_v46  ;;  %v3738_v38 = vpop.permute.xlu1 %3737 }
 0x4d2   :  { %v11559_v34 = vpop.f32.mrb[40].mxu1  ;;  %v4543_v49 = vsel %vm4511_vm8, %v4478_v62, %v3738_v38 }
 0x4d3   :  { %v3228_v8 = vpop.permute.xlu0 %3227  ;;  %2991 = vrot.lane.b32.xlu1 %v1987_v21, %s8229_s1  ;;  %v11564_v17 = vpop.f32.mrb[41].mxu1  ;;  %v5371_v41 = vmul.f32 %v11559_v34, %v11559_v34  ;;  %v5246_v20 = vsel %vm100_vm1, %v11559_v34, 0.0  ;;  %v4284_v21 = vsel %vm684_vm2, %v4220_v4, %v16353_v39 }
 0x4d4   :  { %v5244_v28 = vsel %vm100_vm1, %v11564_v17, 0.0  ;;  %v5370_v5 = vmul.f32 %v11564_v17, %v11564_v17  ;;  %v4349_v46 = vsel %vm4316_vm6, %v4284_v21, %v11543_v58 }
 0x4d5   :  { %2993 = vrot.lane.b32.xlu0 %v1988_v15, %s8229_s1  ;;  %v5245_v42 = vadd.f32 %v5244_v28, %v5243_v36  ;;  %v2974_v53 = vpop.permute.xlu1 %2973  ;;  %v5443_v10 = vsel %vm100_vm1, %v5371_v41, 0.0  ;;  %v4414_v38 = vsel %vm4381_vm7, %v4349_v46, %v3228_v8 }
 0x4d6   :  { %v5441_v11 = vsel %vm100_vm1, %v5370_v5, 0.0  ;;  %v4350_v23 = vsel %vm4316_vm6, %v4285_v12, %v2974_v53 }
 0x4d7   :  { %v3230_v19 = vpop.permute.xlu0 %3229  ;;  %v5442_v55 = vadd.f32 %v5441_v11, %v5440_v22  ;;  %4011 = vrot.lane.b32.xlu1 %v2051_v27, %s8233_s14  ;;  %v5247_v61 = vadd.f32 %v5246_v20, %v5245_v42 }
 0x4d8   :  { %v4415_v59 = vsel %vm4381_vm7, %v4350_v23, %v3230_v19  ;;  %v16358_v23 = vld [vmem:[#allocation189_spill] sm:$0xff] }
 0x4d9   :  { %4013 = vrot.lane.b32.xlu0 %v2052_v1, %s8233_s14  ;;  %v3994_v36 = vpop.permute.xlu1 %3993  ;;  %v5444_v14 = vadd.f32 %v5443_v10, %v5442_v55 }
 0x4da   :  { %v4608_v30 = vsel %vm4576_vm10, %v4543_v49, %v3994_v36  ;;  %v2053_v36 = vld [vmem:[#allocation2 + $0x25a] sm:$0xff] }
 0x4db   :  { %v3486_v63 = vpop.permute.xlu0 %3485  ;;  %3247 = vrot.lane.b32.xlu1 %v2051_v27, %s8230_s21  ;;  %8028 = vmatmul.mubr.msk.f32.gmra.mrb[62].mxu1 %vm4646_vm11, %v4608_v30 }
 0x4dc   :  { %v4480_v41 = vsel %vm4446_vm9, %v4415_v59, %v3486_v63  ;;  %v2054_v63 = vld [vmem:[#allocation2 + $0x262] sm:$0xff] }
 0x4dd   :  { %3503 = vrot.lane.b32.xlu0 %v1925_v45, %s8231_s26  ;;  %v3484_v22 = vpop.permute.xlu1 %3483 }
 0x4de   :  { %v4479_v54 = vsel %vm4446_vm9, %v4414_v38, %v3484_v22 }
 0x4df   :  { %v11587_v50 = vpop.permute.xlu0 %2721  ;;  %3249 = vrot.lane.b32.xlu1 %v2052_v1, %s8230_s21 }
 0x4e1   :  { %3505 = vrot.lane.b32.xlu0 %v1926_v57, %s8231_s26  ;;  %v3740_v43 = vpop.permute.xlu1 %3739 }
 0x4e2   :  { %v4544_v28 = vsel %vm4511_vm8, %v4479_v54, %v3740_v43  ;;  %v4158_v43 = vsel %vm100_vm1, %v8223_v9, %v16355_v48  ;;  %v1930_v9 = vld [vmem:[#allocation2 + $0x290] sm:$0xff] }
 0x4e3   :  { %v3742_v32 = vpop.permute.xlu0 %3741  ;;  %2739 = vrot.lane.b32.xlu1 %v1925_v45, %s8228_s3  ;;  %v1927_v45 = vld [vmem:[#allocation2 + $0x270] sm:$0xff]  ;;  %v4223_v12 = vsel %vm4187_vm5, %v4158_v43, %v16357_v3  ;;  %v16359_v3 = vld [vmem:[#allocation91_spill] sm:$0xff] }
 0x4e4   :  { %v4545_v53 = vsel %vm4511_vm8, %v4480_v41, %v3742_v32  ;;  %v4287_v21 = vsel %vm684_vm2, %v4223_v12, %v11587_v50 }
 0x4e5   :  { %2741 = vrot.lane.b32.xlu0 %v1926_v57, %s8228_s3  ;;  %v11606_v15 = vpop.permute.xlu1 %2975  ;;  %v4157_v57 = vsel %vm100_vm1, %v8222_v7, %v16354_v6 }
 0x4e6   :  { %v11612_v25 = vpop.f32.mrb[42].mxu1  ;;  %v4222_v32 = vsel %vm4187_vm5, %v4157_v57, %v16356_v40 }
 0x4e7   :  { %v11610_v26 = vpop.permute.xlu0 %2977  ;;  %3759 = vrot.lane.b32.xlu1 %v1989_v33, %s8232_s13  ;;  %v11617_v56 = vpop.f32.mrb[43].mxu1  ;;  %v5373_v35 = vmul.f32 %v11612_v25, %v11612_v25  ;;  %v5250_v20 = vsel %vm100_vm1, %v11612_v25, 0.0  ;;  %v4286_v39 = vsel %vm684_vm2, %v4222_v32, %v16358_v23  ;;  %v8224_v32 = vld [vmem:[#allocation2 + $0x1e0] sm:$0xff] }
 0x4e8   :  { %v5248_v58 = vsel %vm100_vm1, %v11617_v56, 0.0  ;;  %v5372_v8 = vmul.f32 %v11617_v56, %v11617_v56  ;;  %v4352_v50 = vsel %vm4316_vm6, %v4287_v21, %v11610_v26  ;;  %v4159_v12 = vsel %vm100_vm1, %v8224_v32, %v16359_v3  ;;  %v16360_v21 = vld [vmem:[#allocation94_spill] sm:$0xff] }
 0x4e9   :  { %3761 = vrot.lane.b32.xlu0 %v1990_v24, %s8232_s13  ;;  %v5249_v5 = vadd.f32 %v5248_v58, %v5247_v61  ;;  %v3996_v42 = vpop.permute.xlu1 %3995  ;;  %v5447_v61 = vsel %vm100_vm1, %v5373_v35, 0.0 }
 0x4ea   :  { %v5445_v11 = vsel %vm100_vm1, %v5372_v8, 0.0  ;;  %v4609_v27 = vsel %vm4576_vm10, %v4544_v28, %v3996_v42 }
 0x4eb   :  { %v3998_v19 = vpop.permute.xlu0 %3997  ;;  %v5446_v37 = vadd.f32 %v5445_v11, %v5444_v14  ;;  %2995 = vrot.lane.b32.xlu1 %v1989_v33, %s8229_s1  ;;  %8030 = vmatprep.mubr.msk.f32.mxu1 %vm4646_vm11, %v4609_v27  ;;  %v5251_v1 = vadd.f32 %v5250_v20, %v5249_v5  ;;  %v4351_v33 = vsel %vm4316_vm6, %v4286_v39, %v11606_v15  ;;  %v1991_v5 = vld [vmem:[#allocation2 + $0x271] sm:$0xff] }
 0x4ec   :  { %v4610_v55 = vsel %vm4576_vm10, %v4545_v53, %v3998_v19  ;;  %v1992_v53 = vld [vmem:[#allocation2 + $0x279] sm:$0xff] }
 0x4ed   :  { %2997 = vrot.lane.b32.xlu0 %v1990_v24, %s8229_s1  ;;  %8031 = vmatmul.mubr.msk.f32.gmra.mrb[64].mxu1 %vm4646_vm11, %v4610_v55  ;;  %v3232_v62 = vpop.permute.xlu1 %3231  ;;  %v5448_v10 = vadd.f32 %v5447_v61, %v5446_v37 }
 0x4ee   :  { %v4416_v54 = vsel %vm4381_vm7, %v4351_v33, %v3232_v62 }
 0x4ef   :  { %v3488_v49 = vpop.permute.xlu0 %3487  ;;  %4015 = vrot.lane.b32.xlu1 %v2053_v36, %s8233_s14 }
 0x4f0   :  { %v4481_v26 = vsel %vm4446_vm9, %v4416_v54, %v3488_v49 }
 0x4f1   :  { %4017 = vrot.lane.b32.xlu0 %v2054_v63, %s8233_s14  ;;  %v3234_v14 = vpop.permute.xlu1 %3233 }
 0x4f2   :  { %v4417_v15 = vsel %vm4381_vm7, %v4352_v50, %v3234_v14  ;;  %v2056_v14 = vld [vmem:[#allocation2 + $0x27a] sm:$0xff] }
 0x4f3   :  { %v3490_v30 = vpop.permute.xlu0 %3489  ;;  %3251 = vrot.lane.b32.xlu1 %v2053_v36, %s8230_s21 }
 0x4f4   :  { %v4482_v19 = vsel %vm4446_vm9, %v4417_v15, %v3490_v30 }
 0x4f5   :  { %3507 = vrot.lane.b32.xlu0 %v1927_v45, %s8231_s26  ;;  %v11644_v13 = vpop.permute.xlu1 %2723 }
 0x4f7   :  { %v11646_v22 = vpop.permute.xlu0 %2725  ;;  %3253 = vrot.lane.b32.xlu1 %v2054_v63, %s8230_s21  ;;  %v2055_v63 = vld [vmem:[#allocation2 + $0x272] sm:$0xff] }
 0x4f9   :  { %3509 = vrot.lane.b32.xlu0 %v1928_v16, %s8231_s26  ;;  %v3744_v60 = vpop.permute.xlu1 %3743 }
 0x4fa   :  { %v11658_v4 = vpop.f32.mrb[44].mxu1  ;;  %v4546_v27 = vsel %vm4511_vm8, %v4481_v26, %v3744_v60 }
 0x4fb   :  { %v3746_v44 = vpop.permute.xlu0 %3745  ;;  %2743 = vrot.lane.b32.xlu1 %v1927_v45, %s8228_s3  ;;  %v11665_v46 = vpop.f32.mrb[45].mxu1  ;;  %v5375_v38 = vmul.f32 %v11658_v4, %v11658_v4  ;;  %v5254_v8 = vsel %vm100_vm1, %v11658_v4, 0.0 }
 0x4fc   :  { %v5252_v59 = vsel %vm100_vm1, %v11665_v46, 0.0  ;;  %v5374_v24 = vmul.f32 %v11665_v46, %v11665_v46 }
 0x4fd   :  { %2745 = vrot.lane.b32.xlu0 %v1928_v16, %s8228_s3  ;;  %v5253_v35 = vadd.f32 %v5252_v59, %v5251_v1  ;;  %v11679_v58 = vpop.permute.xlu1 %2979  ;;  %v5451_v11 = vsel %vm100_vm1, %v5375_v38, 0.0  ;;  %v4547_v1 = vsel %vm4511_vm8, %v4482_v19, %v3746_v44  ;;  %v1929_v16 = vld [vmem:[#allocation2 + $0x288] sm:$0xff] }
 0x4fe   :  { %v5449_v41 = vsel %vm100_vm1, %v5374_v24, 0.0  ;;  %v1535_v44 = vld [vmem:[#allocation2 + $0x1e8] sm:$0xff] }
 0x4ff   :  { %v2982_v28 = vpop.permute.xlu0 %2981  ;;  %v5450_v42 = vadd.f32 %v5449_v41, %v5448_v10  ;;  %3763 = vrot.lane.b32.xlu1 %v1991_v5, %s8232_s13  ;;  %v5255_v20 = vadd.f32 %v5254_v8, %v5253_v35  ;;  %v4160_v33 = vsel %vm100_vm1, %v1535_v44, %v16360_v21  ;;  %v16361_v38 = vld [vmem:[#allocation140_spill] sm:$0xff]  ;;  %v16362_v35 = vld [vmem:[#allocation143_spill] sm:$0xff] }
 0x500   :  { %v4224_v59 = vsel %vm4187_vm5, %v4159_v12, %v16361_v38  ;;  %v4225_v15 = vsel %vm4187_vm5, %v4160_v33, %v16362_v35  ;;  %v16363_v35 = vld [vmem:[#allocation93_spill] sm:$0xff] }
 0x501   :  { %3765 = vrot.lane.b32.xlu0 %v1992_v53, %s8232_s13  ;;  %v4000_v37 = vpop.permute.xlu1 %3999  ;;  %v5452_v55 = vadd.f32 %v5451_v11, %v5450_v42  ;;  %v4288_v8 = vsel %vm684_vm2, %v4224_v59, %v11644_v13  ;;  %v4289_v42 = vsel %vm684_vm2, %v4225_v15, %v11646_v22  ;;  %v1932_v59 = vld [vmem:[#allocation2 + $0x2a8] sm:$0xff] }
 0x502   :  { %v4611_v62 = vsel %vm4576_vm10, %v4546_v27, %v4000_v37  ;;  %v4354_v26 = vsel %vm4316_vm6, %v4289_v42, %v2982_v28  ;;  %v16364_v42 = vld [vmem:[#allocation96_spill] sm:$0xff] }
 0x503   :  { %v4002_v61 = vpop.permute.xlu0 %4001  ;;  %2999 = vrot.lane.b32.xlu1 %v1991_v5, %s8229_s1  ;;  %8033 = vmatprep.mubr.msk.f32.mxu1 %vm4646_vm11, %v4611_v62 }
 0x504   :  { %v4612_v10 = vsel %vm4576_vm10, %v4547_v1, %v4002_v61  ;;  %v1994_v1 = vld [vmem:[#allocation2 + $0x291] sm:$0xff] }
 0x505   :  { %3001 = vrot.lane.b32.xlu0 %v1992_v53, %s8229_s1  ;;  %8034 = vmatmul.mubr.msk.f32.gmra.mrb[66].mxu1 %vm4646_vm11, %v4612_v10  ;;  %v3236_v49 = vpop.permute.xlu1 %3235  ;;  %v4353_v53 = vsel %vm4316_vm6, %v4288_v8, %v11679_v58  ;;  %v1537_v8 = vld [vmem:[#allocation2 + $0x200] sm:$0xff] }
 0x506   :  { %v4418_v11 = vsel %vm4381_vm7, %v4353_v53, %v3236_v49  ;;  %v4162_v53 = vsel %vm100_vm1, %v1537_v8, %v16364_v42  ;;  %v1933_v8 = vld [vmem:[#allocation2 + $0x2b8] sm:$0xff] }
 0x507   :  { %v3492_v36 = vpop.permute.xlu0 %3491  ;;  %4019 = vrot.lane.b32.xlu1 %v2055_v63, %s8233_s14 }
 0x508   :  { %v4483_v22 = vsel %vm4446_vm9, %v4418_v11, %v3492_v36 }
 0x509   :  { %4021 = vrot.lane.b32.xlu0 %v2056_v14, %s8233_s14  ;;  %v3238_v30 = vpop.permute.xlu1 %3237 }
 0x50a   :  { %v4419_v27 = vsel %vm4381_vm7, %v4354_v26, %v3238_v30  ;;  %v2057_v30 = vld [vmem:[#allocation2 + $0x28a] sm:$0xff] }
 0x50b   :  { %v3494_v45 = vpop.permute.xlu0 %3493  ;;  %3255 = vrot.lane.b32.xlu1 %v2055_v63, %s8230_s21 }
 0x50c   :  { %v4484_v58 = vsel %vm4446_vm9, %v4419_v27, %v3494_v45  ;;  %v2058_v45 = vld [vmem:[#allocation2 + $0x292] sm:$0xff] }
 0x50d   :  { %3511 = vrot.lane.b32.xlu0 %v1929_v16, %s8231_s26  ;;  %v11702_v7 = vpop.permute.xlu1 %2727 }
 0x50e   :  { %v11706_v57 = vpop.f32.mrb[46].mxu1 }
 0x50f   :  { %v11704_v6 = vpop.permute.xlu0 %2729  ;;  %3257 = vrot.lane.b32.xlu1 %v2056_v14, %s8230_s21  ;;  %v11709_v48 = vpop.f32.mrb[47].mxu1  ;;  %v5377_v43 = vmul.f32 %v11706_v57, %v11706_v57  ;;  %v5258_v24 = vsel %vm100_vm1, %v11706_v57, 0.0 }
 0x510   :  { %v5256_v60 = vsel %vm100_vm1, %v11709_v48, 0.0  ;;  %v5376_v40 = vmul.f32 %v11709_v48, %v11709_v48 }
 0x511   :  { %3513 = vrot.lane.b32.xlu0 %v1930_v9, %s8231_s26  ;;  %v5257_v23 = vadd.f32 %v5256_v60, %v5255_v20  ;;  %v3748_v39 = vpop.permute.xlu1 %3747  ;;  %v5455_v20 = vsel %vm100_vm1, %v5377_v43, 0.0  ;;  %v1931_v60 = vld [vmem:[#allocation2 + $0x2a0] sm:$0xff] }
 0x512   :  { %v5453_v50 = vsel %vm100_vm1, %v5376_v40, 0.0  ;;  %v4548_v61 = vsel %vm4511_vm8, %v4483_v22, %v3748_v39 }
 0x513   :  { %v3750_v54 = vpop.permute.xlu0 %3749  ;;  %v5454_v41 = vadd.f32 %v5453_v50, %v5452_v55  ;;  %2747 = vrot.lane.b32.xlu1 %v1929_v16, %s8228_s3  ;;  %v5259_v5 = vadd.f32 %v5258_v24, %v5257_v23  ;;  %v1993_v55 = vld [vmem:[#allocation2 + $0x289] sm:$0xff]  ;;  %v1536_v50 = vld [vmem:[#allocation2 + $0x1f8] sm:$0xff] }
 0x514   :  { %v4549_v62 = vsel %vm4511_vm8, %v4484_v58, %v3750_v54  ;;  %v4161_v15 = vsel %vm100_vm1, %v1536_v50, %v16363_v35 }
 0x515   :  { %2749 = vrot.lane.b32.xlu0 %v1930_v9, %s8228_s3  ;;  %v2984_v19 = vpop.permute.xlu1 %2983  ;;  %v5456_v13 = vadd.f32 %v5455_v20, %v5454_v41  ;;  %v16365_v20 = vld [vmem:[#allocation142_spill] sm:$0xff] }
 0x516   :  { %v4226_v26 = vsel %vm4187_vm5, %v4161_v15, %v16365_v20 }
 0x517   :  { %v2986_v37 = vpop.permute.xlu0 %2985  ;;  %3767 = vrot.lane.b32.xlu1 %v1993_v55, %s8232_s13 }
 0x519   :  { %3769 = vrot.lane.b32.xlu0 %v1994_v1, %s8232_s13  ;;  %v4004_v28 = vpop.permute.xlu1 %4003 }
 0x51a   :  { %v4613_v49 = vsel %vm4576_vm10, %v4548_v61, %v4004_v28 }
 0x51b   :  { %v4006_v10 = vpop.permute.xlu0 %4005  ;;  %3003 = vrot.lane.b32.xlu1 %v1993_v55, %s8229_s1  ;;  %8036 = vmatprep.mubr.msk.f32.mxu1 %vm4646_vm11, %v4613_v49  ;;  %v4290_v55 = vsel %vm684_vm2, %v4226_v26, %v11702_v7  ;;  %v1995_v49 = vld [vmem:[#allocation2 + $0x2a1] sm:$0xff] }
 0x51c   :  { %v4614_v63 = vsel %vm4576_vm10, %v4549_v62, %v4006_v10  ;;  %v4355_v22 = vsel %vm4316_vm6, %v4290_v55, %v2984_v19  ;;  %v1934_v26 = vld [vmem:[#allocation2 + $0x2c0] sm:$0xff] }
 0x51d   :  { %3005 = vrot.lane.b32.xlu0 %v1994_v1, %s8229_s1  ;;  %8037 = vmatmul.mubr.msk.f32.gmra.mrb[68].mxu1 %vm4646_vm11, %v4614_v63  ;;  %v3240_v36 = vpop.permute.xlu1 %3239  ;;  %v1996_v63 = vld [vmem:[#allocation2 + $0x2a9] sm:$0xff] }
 0x51e   :  { %v4420_v61 = vsel %vm4381_vm7, %v4355_v22, %v3240_v36 }
 0x51f   :  { %v3496_v14 = vpop.permute.xlu0 %3495  ;;  %4023 = vrot.lane.b32.xlu1 %v2057_v30, %s8233_s14 }
 0x520   :  { %v4485_v7 = vsel %vm4446_vm9, %v4420_v61, %v3496_v14 }
 0x521   :  { %4025 = vrot.lane.b32.xlu0 %v2058_v45, %s8233_s14  ;;  %v3242_v16 = vpop.permute.xlu1 %3241 }
 0x522   :  { %v11755_v43 = vpop.f32.mrb[48].mxu1 }
 0x523   :  { %v3498_v9 = vpop.permute.xlu0 %3497  ;;  %3259 = vrot.lane.b32.xlu1 %v2057_v30, %s8230_s21  ;;  %v11758_v40 = vpop.f32.mrb[49].mxu1  ;;  %v5379_v32 = vmul.f32 %v11755_v43, %v11755_v43  ;;  %v5262_v39 = vsel %vm100_vm1, %v11755_v43, 0.0 }
 0x524   :  { %v5260_v3 = vsel %vm100_vm1, %v11758_v40, 0.0  ;;  %v5378_v12 = vmul.f32 %v11758_v40, %v11758_v40 }
 0x525   :  { %3515 = vrot.lane.b32.xlu0 %v1931_v60, %s8231_s26  ;;  %v5261_v44 = vadd.f32 %v5260_v3, %v5259_v5  ;;  %v11767_v23 = vpop.permute.xlu1 %2731  ;;  %v5459_v54 = vsel %vm100_vm1, %v5379_v32, 0.0  ;;  %v2059_v32 = vld [vmem:[#allocation2 + $0x2a2] sm:$0xff]  ;;  %v2060_v3 = vld [vmem:[#allocation2 + $0x2aa] sm:$0xff] }
 0x526   :  { %v5457_v21 = vsel %vm100_vm1, %v5378_v12, 0.0 }
 0x527   :  { %v11772_v33 = vpop.permute.xlu0 %2733  ;;  %v5458_v38 = vadd.f32 %v5457_v21, %v5456_v13  ;;  %3261 = vrot.lane.b32.xlu1 %v2058_v45, %s8230_s21  ;;  %v5263_v24 = vadd.f32 %v5262_v39, %v5261_v44  ;;  %v16366_v13 = vld [vmem:[#allocation145_spill] sm:$0xff] }
 0x528   :  { %v4227_v27 = vsel %vm4187_vm5, %v4162_v53, %v16366_v13 }
 0x529   :  { %3517 = vrot.lane.b32.xlu0 %v1932_v59, %s8231_s26  ;;  %v3752_v41 = vpop.permute.xlu1 %3751  ;;  %v5460_v5 = vadd.f32 %v5459_v54, %v5458_v38  ;;  %v4291_v1 = vsel %vm684_vm2, %v4227_v27, %v11704_v6  ;;  %v1539_v27 = vld [vmem:[#allocation2 + $0x218] sm:$0xff] }
 0x52a   :  { %v4356_v58 = vsel %vm4316_vm6, %v4291_v1, %v2986_v37  ;;  %v4550_v19 = vsel %vm4511_vm8, %v4485_v7, %v3752_v41  ;;  %v16368_v1 = vld [vmem:[#allocation98_spill] sm:$0xff] }
 0x52b   :  { %v3754_v11 = vpop.permute.xlu0 %3753  ;;  %2751 = vrot.lane.b32.xlu1 %v1931_v60, %s8228_s3  ;;  %v4421_v62 = vsel %vm4381_vm7, %v4356_v58, %v3242_v16  ;;  %v4164_v22 = vsel %vm100_vm1, %v1539_v27, %v16368_v1  ;;  %v16369_v58 = vld [vmem:[#allocation144_spill] sm:$0xff] }
 0x52c   :  { %v4486_v6 = vsel %vm4446_vm9, %v4421_v62, %v3498_v9 }
 0x52d   :  { %2753 = vrot.lane.b32.xlu0 %v1932_v59, %s8228_s3  ;;  %v2988_v28 = vpop.permute.xlu1 %2987  ;;  %v4551_v37 = vsel %vm4511_vm8, %v4486_v6, %v3754_v11  ;;  %v1538_v11 = vld [vmem:[#allocation2 + $0x210] sm:$0xff] }
 0x52f   :  { %v2990_v10 = vpop.permute.xlu0 %2989  ;;  %3771 = vrot.lane.b32.xlu1 %v1995_v49, %s8232_s13 }
 0x531   :  { %3773 = vrot.lane.b32.xlu0 %v1996_v63, %s8232_s13  ;;  %v4008_v30 = vpop.permute.xlu1 %4007 }
 0x532   :  { %v4615_v45 = vsel %vm4576_vm10, %v4550_v19, %v4008_v30 }
 0x533   :  { %v4010_v36 = vpop.permute.xlu0 %4009  ;;  %3007 = vrot.lane.b32.xlu1 %v1995_v49, %s8229_s1  ;;  %8039 = vmatprep.mubr.msk.f32.mxu1 %vm4646_vm11, %v4615_v45  ;;  %v16370_v49 = vld [vmem:[#allocation147_spill] sm:$0xff] }
 0x534   :  { %v4616_v16 = vsel %vm4576_vm10, %v4551_v37, %v4010_v36 }
 0x535   :  { %3009 = vrot.lane.b32.xlu0 %v1996_v63, %s8229_s1  ;;  %8040 = vmatmul.mubr.msk.f32.gmra.mrb[70].mxu1 %vm4646_vm11, %v4616_v16  ;;  %v3244_v14 = vpop.permute.xlu1 %3243  ;;  %v4229_v63 = vsel %vm4187_vm5, %v4164_v22, %v16370_v49  ;;  %v1540_v49 = vld [vmem:[#allocation2 + $0x228] sm:$0xff] }
 0x536   :  { %v11807_v60 = vpop.f32.mrb[50].mxu1  ;;  %v4293_v6 = vsel %vm684_vm2, %v4229_v63, %v11772_v33  ;;  %v16371_v63 = vld [vmem:[#allocation97_spill] sm:$0xff] }
 0x537   :  { %v3500_v9 = vpop.permute.xlu0 %3499  ;;  %4027 = vrot.lane.b32.xlu1 %v2059_v32, %s8233_s14  ;;  %v11810_v12 = vpop.f32.mrb[51].mxu1  ;;  %v5381_v44 = vmul.f32 %v11807_v60, %v11807_v60  ;;  %v5266_v50 = vsel %vm100_vm1, %v11807_v60, 0.0  ;;  %v4358_v30 = vsel %vm4316_vm6, %v4293_v6, %v2990_v10  ;;  %v1541_v6 = vld [vmem:[#allocation2 + $0x230] sm:$0xff] }
 0x538   :  { %v5264_v39 = vsel %vm100_vm1, %v11810_v12, 0.0  ;;  %v5380_v21 = vmul.f32 %v11810_v12, %v11810_v12 }
 0x539   :  { %4029 = vrot.lane.b32.xlu0 %v2060_v3, %s8233_s14  ;;  %v5265_v38 = vadd.f32 %v5264_v39, %v5263_v24  ;;  %v3246_v59 = vpop.permute.xlu1 %3245  ;;  %v5463_v42 = vsel %vm100_vm1, %v5381_v44, 0.0 }
 0x53a   :  { %v5461_v54 = vsel %vm100_vm1, %v5380_v21, 0.0  ;;  %v4423_v45 = vsel %vm4381_vm7, %v4358_v30, %v3246_v59  ;;  %v16372_v30 = vld [vmem:[#allocation100_spill] sm:$0xff] }
 0x53b   :  { %v3502_v35 = vpop.permute.xlu0 %3501  ;;  %v5462_v15 = vadd.f32 %v5461_v54, %v5460_v5  ;;  %3263 = vrot.lane.b32.xlu1 %v2059_v32, %s8230_s21  ;;  %v5267_v41 = vadd.f32 %v5266_v50, %v5265_v38  ;;  %v16367_v5 = vld [vmem:[#allocation95_spill] sm:$0xff] }
 0x53c   :  { %v4163_v13 = vsel %vm100_vm1, %v1538_v11, %v16367_v5  ;;  %v1997_v32 = vld [vmem:[#allocation2 + $0x2b9] sm:$0xff]  ;;  %v4488_v33 = vsel %vm4446_vm9, %v4423_v45, %v3502_v35 }
 0x53d   :  { %3519 = vrot.lane.b32.xlu0 %v1933_v8, %s8231_s26  ;;  %v11825_v53 = vpop.permute.xlu1 %2735  ;;  %v5464_v20 = vadd.f32 %v5463_v42, %v5462_v15  ;;  %v4228_v61 = vsel %vm4187_vm5, %v4163_v13, %v16369_v58  ;;  %v2061_v11 = vld [vmem:[#allocation2 + $0x2ba] sm:$0xff]  ;;  %v2062_v13 = vld [vmem:[#allocation2 + $0x2c2] sm:$0xff]  ;;  %v1935_v58 = vld [vmem:[#allocation2 + $0x2d0] sm:$0xff] }
 0x53e   :  { %v4292_v7 = vsel %vm684_vm2, %v4228_v61, %v11767_v23  ;;  %v16373_v45 = vld [vmem:[#allocation146_spill] sm:$0xff] }
 0x53f   :  { %v11827_v24 = vpop.permute.xlu0 %2737  ;;  %3265 = vrot.lane.b32.xlu1 %v2060_v3, %s8230_s21  ;;  %v4357_v19 = vsel %vm4316_vm6, %v4292_v7, %v2988_v28  ;;  %v1998_v3 = vld [vmem:[#allocation2 + $0x2c1] sm:$0xff]  ;;  %v4165_v7 = vsel %vm100_vm1, %v1540_v49, %v16371_v63 }
 0x540   :  { %v4422_v37 = vsel %vm4381_vm7, %v4357_v19, %v3244_v14 }
 0x541   :  { %3521 = vrot.lane.b32.xlu0 %v1934_v26, %s8231_s26  ;;  %v3756_v55 = vpop.permute.xlu1 %3755  ;;  %v4487_v23 = vsel %vm4446_vm9, %v4422_v37, %v3500_v9  ;;  %v4166_v37 = vsel %vm100_vm1, %v1541_v6, %v16372_v30  ;;  %v2063_v30 = vld [vmem:[#allocation2 + $0x2d2] sm:$0xff] }
 0x542   :  { %v4552_v28 = vsel %vm4511_vm8, %v4487_v23, %v3756_v55  ;;  %v16374_v23 = vld [vmem:[#allocation149_spill] sm:$0xff] }
 0x543   :  { %v3758_v62 = vpop.permute.xlu0 %3757  ;;  %2755 = vrot.lane.b32.xlu1 %v1933_v8, %s8228_s3 }
 0x544   :  { %v4553_v10 = vsel %vm4511_vm8, %v4488_v33, %v3758_v62  ;;  %v4231_v33 = vsel %vm4187_vm5, %v4166_v37, %v16374_v23  ;;  %v2064_v37 = vld [vmem:[#allocation2 + $0x2da] sm:$0xff] }
 0x545   :  { %2757 = vrot.lane.b32.xlu0 %v1934_v26, %s8228_s3  ;;  %v2992_v36 = vpop.permute.xlu1 %2991 }
 0x547   :  { %v2994_v16 = vpop.permute.xlu0 %2993  ;;  %3775 = vrot.lane.b32.xlu1 %v1997_v32, %s8232_s13 }
 0x549   :  { %3777 = vrot.lane.b32.xlu0 %v1998_v3, %s8232_s13  ;;  %v4012_v44 = vpop.permute.xlu1 %4011 }
 0x54a   :  { %v4617_v39 = vsel %vm4576_vm10, %v4552_v28, %v4012_v44  ;;  %v11856_v21 = vpop.f32.mrb[52].mxu1  ;;  %v4295_v44 = vsel %vm684_vm2, %v4231_v33, %v11827_v24  ;;  %v1938_v33 = vld [vmem:[#allocation2 + $0x2f0] sm:$0xff] }
 0x54b   :  { %v4014_v14 = vpop.permute.xlu0 %4013  ;;  %3011 = vrot.lane.b32.xlu1 %v1997_v32, %s8229_s1  ;;  %v11860_v59 = vpop.f32.mrb[53].mxu1  ;;  %8042 = vmatprep.mubr.msk.f32.mxu1 %vm4646_vm11, %v4617_v39  ;;  %v5383_v9 = vmul.f32 %v11856_v21, %v11856_v21  ;;  %v5270_v8 = vsel %vm100_vm1, %v11856_v21, 0.0  ;;  %v4230_v32 = vsel %vm4187_vm5, %v4165_v7, %v16373_v45 }
 0x54c   :  { %v4618_v38 = vsel %vm4576_vm10, %v4553_v10, %v4014_v14  ;;  %v5268_v50 = vsel %vm100_vm1, %v11860_v59, 0.0  ;;  %v5382_v54 = vmul.f32 %v11860_v59, %v11860_v59  ;;  %v4294_v28 = vsel %vm684_vm2, %v4230_v32, %v11825_v53  ;;  %v1999_v53 = vld [vmem:[#allocation2 + $0x2d1] sm:$0xff]  ;;  %v1937_v32 = vld [vmem:[#allocation2 + $0x2e8] sm:$0xff] }
 0x54d   :  { %3013 = vrot.lane.b32.xlu0 %v1998_v3, %s8229_s1  ;;  %8043 = vmatmul.mubr.msk.f32.gmra.mrb[72].mxu1 %vm4646_vm11, %v4618_v38  ;;  %v5269_v35 = vadd.f32 %v5268_v50, %v5267_v41  ;;  %v3248_v15 = vpop.permute.xlu1 %3247  ;;  %v5467_v55 = vsel %vm100_vm1, %v5383_v9, 0.0  ;;  %v4359_v10 = vsel %vm4316_vm6, %v4294_v28, %v2992_v36  ;;  %v4360_v14 = vsel %vm4316_vm6, %v4295_v44, %v2994_v16  ;;  %v1542_v28 = vld [vmem:[#allocation2 + $0x240] sm:$0xff]  ;;  %v1543_v44 = vld [vmem:[#allocation2 + $0x248] sm:$0xff] }
 0x54e   :  { %v5465_v42 = vsel %vm100_vm1, %v5382_v54, 0.0  ;;  %v4424_v39 = vsel %vm4381_vm7, %v4359_v10, %v3248_v15  ;;  %v16375_v10 = vld [vmem:[#allocation99_spill] sm:$0xff] }
 0x54f   :  { %v3504_v26 = vpop.permute.xlu0 %3503  ;;  %v5466_v5 = vadd.f32 %v5465_v42, %v5464_v20  ;;  %4031 = vrot.lane.b32.xlu1 %v2061_v11, %s8233_s14  ;;  %v5271_v27 = vadd.f32 %v5270_v8, %v5269_v35  ;;  %v1936_v20 = vld [vmem:[#allocation2 + $0x2d8] sm:$0xff] }
 0x550   :  { %v2000_v35 = vld [vmem:[#allocation2 + $0x2d9] sm:$0xff]  ;;  %v4489_v36 = vsel %vm4446_vm9, %v4424_v39, %v3504_v26 }
 0x551   :  { %4033 = vrot.lane.b32.xlu0 %v2062_v13, %s8233_s14  ;;  %v3250_v1 = vpop.permute.xlu1 %3249  ;;  %v5468_v22 = vadd.f32 %v5467_v55, %v5466_v5  ;;  %v16376_v39 = vld [vmem:[#allocation102_spill] sm:$0xff] }
 0x552   :  { %v4425_v9 = vsel %vm4381_vm7, %v4360_v14, %v3250_v1  ;;  %v4167_v14 = vsel %vm100_vm1, %v1542_v28, %v16375_v10 }
 0x553   :  { %v3506_v41 = vpop.permute.xlu0 %3505  ;;  %3267 = vrot.lane.b32.xlu1 %v2061_v11, %s8230_s21 }
 0x554   :  { %v4490_v42 = vsel %vm4446_vm9, %v4425_v9, %v3506_v41  ;;  %v4168_v9 = vsel %vm100_vm1, %v1543_v44, %v16376_v39 }
 0x555   :  { %3523 = vrot.lane.b32.xlu0 %v1935_v58, %s8231_s26  ;;  %v11879_v61 = vpop.permute.xlu1 %2739 }
 0x557   :  { %v11881_v62 = vpop.permute.xlu0 %2741  ;;  %3269 = vrot.lane.b32.xlu1 %v2062_v13, %s8230_s21 }
 0x559   :  { %3525 = vrot.lane.b32.xlu0 %v1936_v20, %s8231_s26  ;;  %v3760_v19 = vpop.permute.xlu1 %3759 }
 0x55a   :  { %v4554_v11 = vsel %vm4511_vm8, %v4489_v36, %v3760_v19 }
 0x55b   :  { %v3762_v3 = vpop.permute.xlu0 %3761  ;;  %2759 = vrot.lane.b32.xlu1 %v1935_v58, %s8228_s3 }
 0x55c   :  { %v4555_v55 = vsel %vm4511_vm8, %v4490_v42, %v3762_v3 }
 0x55d   :  { %2761 = vrot.lane.b32.xlu0 %v1936_v20, %s8228_s3  ;;  %v2996_v38 = vpop.permute.xlu1 %2995 }
 0x55e   :  { %v11905_v54 = vpop.f32.mrb[54].mxu1 }
 0x55f   :  { %v11903_v50 = vpop.permute.xlu0 %2997  ;;  %3779 = vrot.lane.b32.xlu1 %v1999_v53, %s8232_s13  ;;  %v11908_v24 = vpop.f32.mrb[55].mxu1  ;;  %v5385_v16 = vmul.f32 %v11905_v54, %v11905_v54  ;;  %v5274_v26 = vsel %vm100_vm1, %v11905_v54, 0.0 }
 0x560   :  { %v5272_v15 = vsel %vm100_vm1, %v11908_v24, 0.0  ;;  %v5384_v8 = vmul.f32 %v11908_v24, %v11908_v24 }
 0x561   :  { %3781 = vrot.lane.b32.xlu0 %v2000_v35, %s8232_s13  ;;  %v5273_v5 = vadd.f32 %v5272_v15, %v5271_v27  ;;  %v4016_v13 = vpop.permute.xlu1 %4015  ;;  %v5471_v27 = vsel %vm100_vm1, %v5385_v16, 0.0  ;;  %v16378_v16 = vld [vmem:[#allocation151_spill] sm:$0xff] }
 0x562   :  { %v5469_v1 = vsel %vm100_vm1, %v5384_v8, 0.0  ;;  %v4619_v20 = vsel %vm4576_vm10, %v4554_v11, %v4016_v13  ;;  %v4233_v15 = vsel %vm4187_vm5, %v4168_v9, %v16378_v16 }
 0x563   :  { %v4018_v58 = vpop.permute.xlu0 %4017  ;;  %v5470_v49 = vadd.f32 %v5469_v1, %v5468_v22  ;;  %3015 = vrot.lane.b32.xlu1 %v1999_v53, %s8229_s1  ;;  %8045 = vmatprep.mubr.msk.f32.mxu1 %vm4646_vm11, %v4619_v20  ;;  %v5275_v41 = vadd.f32 %v5274_v26, %v5273_v5  ;;  %v4297_v11 = vsel %vm684_vm2, %v4233_v15, %v11881_v62  ;;  %v1939_v15 = vld [vmem:[#allocation2 + $0x300] sm:$0xff] }
 0x564   :  { %v4620_v63 = vsel %vm4576_vm10, %v4555_v55, %v4018_v58 }
 0x565   :  { %3017 = vrot.lane.b32.xlu0 %v2000_v35, %s8229_s1  ;;  %8046 = vmatmul.mubr.msk.f32.gmra.mrb[74].mxu1 %vm4646_vm11, %v4620_v63  ;;  %v3252_v7 = vpop.permute.xlu1 %3251  ;;  %v5472_v6 = vadd.f32 %v5471_v27, %v5470_v49  ;;  %v16377_v35 = vld [vmem:[#allocation148_spill] sm:$0xff] }
 0x566   :  { %v4232_v36 = vsel %vm4187_vm5, %v4167_v14, %v16377_v35  ;;  %v2066_v35 = vld [vmem:[#allocation2 + $0x2f2] sm:$0xff] }
 0x567   :  { %v3508_v19 = vpop.permute.xlu0 %3507  ;;  %4035 = vrot.lane.b32.xlu1 %v2063_v30, %s8233_s14  ;;  %v4296_v5 = vsel %vm684_vm2, %v4232_v36, %v11879_v61  ;;  %v4362_v61 = vsel %vm4316_vm6, %v4297_v11, %v11903_v50 }
 0x568   :  { %v4361_v55 = vsel %vm4316_vm6, %v4296_v5, %v2996_v38 }
 0x569   :  { %4037 = vrot.lane.b32.xlu0 %v2064_v37, %s8233_s14  ;;  %v3254_v22 = vpop.permute.xlu1 %3253  ;;  %v4426_v58 = vsel %vm4381_vm7, %v4361_v55, %v3252_v7  ;;  %v1940_v55 = vld [vmem:[#allocation2 + $0x308] sm:$0xff] }
 0x56a   :  { %v4427_v38 = vsel %vm4381_vm7, %v4362_v61, %v3254_v22  ;;  %v4491_v50 = vsel %vm4446_vm9, %v4426_v58, %v3508_v19 }
 0x56b   :  { %v3510_v45 = vpop.permute.xlu0 %3509  ;;  %3271 = vrot.lane.b32.xlu1 %v2063_v30, %s8230_s21 }
 0x56c   :  { %v4492_v7 = vsel %vm4446_vm9, %v4427_v38, %v3510_v45 }
 0x56d   :  { %3527 = vrot.lane.b32.xlu0 %v1937_v32, %s8231_s26  ;;  %v11935_v3 = vpop.permute.xlu1 %2743 }
 0x56f   :  { %v11937_v23 = vpop.permute.xlu0 %2745  ;;  %3273 = vrot.lane.b32.xlu1 %v2064_v37, %s8230_s21  ;;  %v2001_v37 = vld [vmem:[#allocation2 + $0x2e9] sm:$0xff] }
 0x571   :  { %3529 = vrot.lane.b32.xlu0 %v1938_v33, %s8231_s26  ;;  %v3764_v53 = vpop.permute.xlu1 %3763 }
 0x572   :  { %v11949_v42 = vpop.f32.mrb[56].mxu1  ;;  %v4556_v22 = vsel %vm4511_vm8, %v4491_v50, %v3764_v53  ;;  %v2065_v53 = vld [vmem:[#allocation2 + $0x2ea] sm:$0xff]  ;;  %v16381_v50 = vld [vmem:[#allocation150_spill] sm:$0xff] }
 0x573   :  { %v3766_v8 = vpop.permute.xlu0 %3765  ;;  %2763 = vrot.lane.b32.xlu1 %v1937_v32, %s8228_s3  ;;  %v11956_v13 = vpop.f32.mrb[57].mxu1  ;;  %v5387_v26 = vmul.f32 %v11949_v42, %v11949_v42  ;;  %v5278_v63 = vsel %vm100_vm1, %v11949_v42, 0.0 }
 0x574   :  { %v5276_v1 = vsel %vm100_vm1, %v11956_v13, 0.0  ;;  %v5386_v62 = vmul.f32 %v11956_v13, %v11956_v13  ;;  %v4557_v14 = vsel %vm4511_vm8, %v4492_v7, %v3766_v8 }
 0x575   :  { %2765 = vrot.lane.b32.xlu0 %v1938_v33, %s8228_s3  ;;  %v5277_v20 = vadd.f32 %v5276_v1, %v5275_v41  ;;  %v11969_v49 = vpop.permute.xlu1 %2999  ;;  %v2002_v33 = vld [vmem:[#allocation2 + $0x2f1] sm:$0xff]  ;;  %v5475_v41 = vsel %vm100_vm1, %v5387_v26, 0.0 }
 0x576   :  { %v5473_v27 = vsel %vm100_vm1, %v5386_v62, 0.0  ;;  %v1544_v1 = vld [vmem:[#allocation2 + $0x258] sm:$0xff] }
 0x577   :  { %v3002_v30 = vpop.permute.xlu0 %3001  ;;  %v5474_v32 = vadd.f32 %v5473_v27, %v5472_v6  ;;  %3783 = vrot.lane.b32.xlu1 %v2001_v37, %s8232_s13  ;;  %v5279_v28 = vadd.f32 %v5278_v63, %v5277_v20  ;;  %v16379_v20 = vld [vmem:[#allocation101_spill] sm:$0xff]  ;;  %v1545_v63 = vld [vmem:[#allocation2 + $0x260] sm:$0xff] }
 0x578   :  { %v4169_v38 = vsel %vm100_vm1, %v1544_v1, %v16379_v20 }
 0x579   :  { %3785 = vrot.lane.b32.xlu0 %v2002_v33, %s8232_s13  ;;  %v4020_v44 = vpop.permute.xlu1 %4019  ;;  %v5476_v10 = vadd.f32 %v5475_v41, %v5474_v32  ;;  %v16380_v32 = vld [vmem:[#allocation104_spill] sm:$0xff]  ;;  %v4234_v41 = vsel %vm4187_vm5, %v4169_v38, %v16381_v50 }
 0x57a   :  { %v4621_v6 = vsel %vm4576_vm10, %v4556_v22, %v4020_v44  ;;  %v2003_v38 = vld [vmem:[#allocation2 + $0x301] sm:$0xff] }
 0x57b   :  { %v4022_v39 = vpop.permute.xlu0 %4021  ;;  %3019 = vrot.lane.b32.xlu1 %v2001_v37, %s8229_s1  ;;  %8048 = vmatprep.mubr.msk.f32.mxu1 %vm4646_vm11, %v4621_v6  ;;  %v4298_v6 = vsel %vm684_vm2, %v4234_v41, %v11935_v3 }
 0x57c   :  { %v4622_v9 = vsel %vm4576_vm10, %v4557_v14, %v4022_v39  ;;  %v16382_v14 = vld [vmem:[#allocation153_spill] sm:$0xff] }
 0x57d   :  { %3021 = vrot.lane.b32.xlu0 %v2002_v33, %s8229_s1  ;;  %8049 = vmatmul.mubr.msk.f32.gmra.mrb[76].mxu1 %vm4646_vm11, %v4622_v9  ;;  %v3256_v19 = vpop.permute.xlu1 %3255  ;;  %v4170_v33 = vsel %vm100_vm1, %v1545_v63, %v16380_v32  ;;  %v2004_v63 = vld [vmem:[#allocation2 + $0x309] sm:$0xff] }
 0x57e   :  { %v4235_v39 = vsel %vm4187_vm5, %v4170_v33, %v16382_v14  ;;  %v2067_v32 = vld [vmem:[#allocation2 + $0x302] sm:$0xff] }
 0x57f   :  { %v3512_v45 = vpop.permute.xlu0 %3511  ;;  %4039 = vrot.lane.b32.xlu1 %v2065_v53, %s8233_s14 }
 0x581   :  { %4041 = vrot.lane.b32.xlu0 %v2066_v35, %s8233_s14  ;;  %v3258_v36 = vpop.permute.xlu1 %3257 }
 0x583   :  { %v3514_v16 = vpop.permute.xlu0 %3513  ;;  %3275 = vrot.lane.b32.xlu1 %v2065_v53, %s8230_s21  ;;  %v4299_v53 = vsel %vm684_vm2, %v4235_v39, %v11937_v23 }
 0x585   :  { %3531 = vrot.lane.b32.xlu0 %v1939_v15, %s8231_s26  ;;  %v11992_v8 = vpop.permute.xlu1 %2747 }
 0x586   :  { %v11996_v5 = vpop.f32.mrb[58].mxu1 }
 0x587   :  { %v11994_v11 = vpop.permute.xlu0 %2749  ;;  %3277 = vrot.lane.b32.xlu1 %v2066_v35, %s8230_s21  ;;  %v11999_v26 = vpop.f32.mrb[59].mxu1  ;;  %v5389_v62 = vmul.f32 %v11996_v5, %v11996_v5  ;;  %v5282_v7 = vsel %vm100_vm1, %v11996_v5, 0.0  ;;  %v4363_v35 = vsel %vm4316_vm6, %v4298_v6, %v11969_v49 }
 0x588   :  { %v5280_v61 = vsel %vm100_vm1, %v11999_v26, 0.0  ;;  %v5388_v58 = vmul.f32 %v11999_v26, %v11999_v26 }
 0x589   :  { %3533 = vrot.lane.b32.xlu0 %v1940_v55, %s8231_s26  ;;  %v5281_v27 = vadd.f32 %v5280_v61, %v5279_v28  ;;  %v3768_v37 = vpop.permute.xlu1 %3767  ;;  %v5479_v1 = vsel %vm100_vm1, %v5389_v62, 0.0  ;;  %v4364_v61 = vsel %vm4316_vm6, %v4299_v53, %v3002_v30 }
 0x58a   :  { %v5477_v22 = vsel %vm100_vm1, %v5388_v58, 0.0  ;;  %v4428_v58 = vsel %vm4381_vm7, %v4363_v35, %v3256_v19 }
 0x58b   :  { %v3770_v44 = vpop.permute.xlu0 %3769  ;;  %v5478_v28 = vadd.f32 %v5477_v22, %v5476_v10  ;;  %2767 = vrot.lane.b32.xlu1 %v1939_v15, %s8228_s3  ;;  %v5283_v9 = vadd.f32 %v5282_v7, %v5281_v27  ;;  %v4429_v10 = vsel %vm4381_vm7, %v4364_v61, %v3258_v36  ;;  %v4493_v23 = vsel %vm4446_vm9, %v4428_v58, %v3512_v45  ;;  %v1941_v7 = vld [vmem:[#allocation2 + $0x318] sm:$0xff]  ;;  %v1942_v58 = vld [vmem:[#allocation2 + $0x320] sm:$0xff] }
 0x58c   :  { %v4494_v49 = vsel %vm4446_vm9, %v4429_v10, %v3514_v16 }
 0x58d   :  { %2769 = vrot.lane.b32.xlu0 %v1940_v55, %s8228_s3  ;;  %v3004_v20 = vpop.permute.xlu1 %3003  ;;  %v5480_v3 = vadd.f32 %v5479_v1, %v5478_v28  ;;  %v4558_v55 = vsel %vm4511_vm8, %v4493_v23, %v3768_v37  ;;  %v4559_v19 = vsel %vm4511_vm8, %v4494_v49, %v3770_v44  ;;  %v2068_v37 = vld [vmem:[#allocation2 + $0x30a] sm:$0xff]  ;;  %v1547_v49 = vld [vmem:[#allocation2 + $0x278] sm:$0xff] }
 0x58f   :  { %v3006_v15 = vpop.permute.xlu0 %3005  ;;  %3787 = vrot.lane.b32.xlu1 %v2003_v38, %s8232_s13 }
 0x591   :  { %3789 = vrot.lane.b32.xlu0 %v2004_v63, %s8232_s13  ;;  %v4024_v30 = vpop.permute.xlu1 %4023 }
 0x592   :  { %v4623_v27 = vsel %vm4576_vm10, %v4558_v55, %v4024_v30 }
 0x593   :  { %v4026_v62 = vpop.permute.xlu0 %4025  ;;  %3023 = vrot.lane.b32.xlu1 %v2003_v38, %s8229_s1  ;;  %8051 = vmatprep.mubr.msk.f32.mxu1 %vm4646_vm11, %v4623_v27  ;;  %v1546_v38 = vld [vmem:[#allocation2 + $0x270] sm:$0xff]  ;;  %v16385_v27 = vld [vmem:[#allocation152_spill] sm:$0xff] }
 0x594   :  { %v4624_v36 = vsel %vm4576_vm10, %v4559_v19, %v4026_v62  ;;  %v16384_v19 = vld [vmem:[#allocation106_spill] sm:$0xff] }
 0x595   :  { %3025 = vrot.lane.b32.xlu0 %v2004_v63, %s8229_s1  ;;  %8052 = vmatmul.mubr.msk.f32.gmra.mrb[78].mxu1 %vm4646_vm11, %v4624_v36  ;;  %v3260_v45 = vpop.permute.xlu1 %3259  ;;  %v4172_v62 = vsel %vm100_vm1, %v1547_v49, %v16384_v19  ;;  %v2069_v49 = vld [vmem:[#allocation2 + $0x31a] sm:$0xff] }
 0x597   :  { %v3516_v16 = vpop.permute.xlu0 %3515  ;;  %4043 = vrot.lane.b32.xlu1 %v2067_v32, %s8233_s14 }
 0x599   :  { %4045 = vrot.lane.b32.xlu0 %v2068_v37, %s8233_s14  ;;  %v3262_v33 = vpop.permute.xlu1 %3261 }
 0x59a   :  { %v12045_v41 = vpop.f32.mrb[60].mxu1 }
 0x59b   :  { %v3518_v50 = vpop.permute.xlu0 %3517  ;;  %3279 = vrot.lane.b32.xlu1 %v2067_v32, %s8230_s21  ;;  %v12048_v22 = vpop.f32.mrb[61].mxu1  ;;  %v5391_v44 = vmul.f32 %v12045_v41, %v12045_v41  ;;  %v5286_v53 = vsel %vm100_vm1, %v12045_v41, 0.0  ;;  %v16386_v32 = vld [vmem:[#allocation155_spill] sm:$0xff] }
 0x59c   :  { %v5284_v14 = vsel %vm100_vm1, %v12048_v22, 0.0  ;;  %v5390_v39 = vmul.f32 %v12048_v22, %v12048_v22 }
 0x59d   :  { %3535 = vrot.lane.b32.xlu0 %v1941_v7, %s8231_s26  ;;  %v5285_v6 = vadd.f32 %v5284_v14, %v5283_v9  ;;  %v12057_v28 = vpop.permute.xlu1 %2751  ;;  %v5483_v63 = vsel %vm100_vm1, %v5391_v44, 0.0  ;;  %v16383_v9 = vld [vmem:[#allocation103_spill] sm:$0xff] }
 0x59e   :  { %v5481_v35 = vsel %vm100_vm1, %v5390_v39, 0.0  ;;  %v4171_v23 = vsel %vm100_vm1, %v1546_v38, %v16383_v9  ;;  %v2006_v9 = vld [vmem:[#allocation2 + $0x321] sm:$0xff] }
 0x59f   :  { %v12062_v1 = vpop.permute.xlu0 %2753  ;;  %v5482_v61 = vadd.f32 %v5481_v35, %v5480_v3  ;;  %3281 = vrot.lane.b32.xlu1 %v2068_v37, %s8230_s21  ;;  %v5287_v10 = vadd.f32 %v5286_v53, %v5285_v6  ;;  %v4236_v3 = vsel %vm4187_vm5, %v4171_v23, %v16385_v27  ;;  %v4237_v37 = vsel %vm4187_vm5, %v4172_v62, %v16386_v32 }
 0x5a0   :  { %v4300_v44 = vsel %vm684_vm2, %v4236_v3, %v11992_v8  ;;  %v4301_v14 = vsel %vm684_vm2, %v4237_v37, %v11994_v11 }
 0x5a1   :  { %3537 = vrot.lane.b32.xlu0 %v1942_v58, %s8231_s26  ;;  %v3772_v55 = vpop.permute.xlu1 %3771  ;;  %v5484_v30 = vadd.f32 %v5483_v63, %v5482_v61  ;;  %v4365_v39 = vsel %vm4316_vm6, %v4300_v44, %v3004_v20  ;;  %v4366_v6 = vsel %vm4316_vm6, %v4301_v14, %v3006_v15  ;;  %v2005_v63 = vld [vmem:[#allocation2 + $0x319] sm:$0xff] }
 0x5a2   :  { %v4430_v53 = vsel %vm4381_vm7, %v4365_v39, %v3260_v45  ;;  %v4431_v61 = vsel %vm4381_vm7, %v4366_v6, %v3262_v33  ;;  %v1943_v6 = vld [vmem:[#allocation2 + $0x330] sm:$0xff] }
 0x5a3   :  { %v3774_v36 = vpop.permute.xlu0 %3773  ;;  %2771 = vrot.lane.b32.xlu1 %v1941_v7, %s8228_s3  ;;  %v4495_v8 = vsel %vm4446_vm9, %v4430_v53, %v3516_v16  ;;  %v4496_v11 = vsel %vm4446_vm9, %v4431_v61, %v3518_v50 }
 0x5a4   :  { %v4560_v20 = vsel %vm4511_vm8, %v4495_v8, %v3772_v55  ;;  %v4561_v15 = vsel %vm4511_vm8, %v4496_v11, %v3774_v36  ;;  %v2070_v55 = vld [vmem:[#allocation2 + $0x322] sm:$0xff]  ;;  %v1944_v8 = vld [vmem:[#allocation2 + $0x338] sm:$0xff] }
 0x5a5   :  { %2773 = vrot.lane.b32.xlu0 %v1942_v58, %s8228_s3  ;;  %v3008_v35 = vpop.permute.xlu1 %3007  ;;  %v1548_v11 = vld [vmem:[#allocation2 + $0x288] sm:$0xff] }
 0x5a7   :  { %v3010_v38 = vpop.permute.xlu0 %3009  ;;  %3791 = vrot.lane.b32.xlu1 %v2005_v63, %s8232_s13 }
 0x5a9   :  { %3793 = vrot.lane.b32.xlu0 %v2006_v9, %s8232_s13  ;;  %v4028_v7 = vpop.permute.xlu1 %4027 }
 0x5aa   :  { %v4625_v58 = vsel %vm4576_vm10, %v4560_v20, %v4028_v7  ;;  %v1549_v20 = vld [vmem:[#allocation2 + $0x290] sm:$0xff] }
 0x5ab   :  { %v4030_v45 = vpop.permute.xlu0 %4029  ;;  %3027 = vrot.lane.b32.xlu1 %v2005_v63, %s8229_s1  ;;  %8054 = vmatprep.mubr.msk.f32.mxu1 %vm4646_vm11, %v4625_v58 }
 0x5ac   :  { %v4626_v33 = vsel %vm4576_vm10, %v4561_v15, %v4030_v45  ;;  %v16388_v15 = vld [vmem:[#allocation108_spill] sm:$0xff] }
 0x5ad   :  { %3029 = vrot.lane.b32.xlu0 %v2006_v9, %s8229_s1  ;;  %8055 = vmatmul.mubr.msk.f32.gmra.mrb[80].mxu1 %vm4646_vm11, %v4626_v33  ;;  %v3264_v16 = vpop.permute.xlu1 %3263  ;;  %v4174_v45 = vsel %vm100_vm1, %v1549_v20, %v16388_v15  ;;  %v16389_v33 = vld [vmem:[#allocation154_spill] sm:$0xff] }
 0x5ae   :  { %v12097_v23 = vpop.f32.mrb[62].mxu1 }
 0x5af   :  { %v3520_v50 = vpop.permute.xlu0 %3519  ;;  %4047 = vrot.lane.b32.xlu1 %v2069_v49, %s8233_s14  ;;  %v12100_v19 = vpop.f32.mrb[63].mxu1  ;;  %v5393_v62 = vmul.f32 %v12097_v23, %v12097_v23  ;;  %v5290_v37 = vsel %vm100_vm1, %v12097_v23, 0.0 }
 0x5b0   :  { %v5288_v27 = vsel %vm100_vm1, %v12100_v19, 0.0  ;;  %v5392_v3 = vmul.f32 %v12100_v19, %v12100_v19 }
 0x5b1   :  { %4049 = vrot.lane.b32.xlu0 %v2070_v55, %s8233_s14  ;;  %v5289_v36 = vadd.f32 %v5288_v27, %v5287_v10  ;;  %v3266_v32 = vpop.permute.xlu1 %3265  ;;  %v5487_v61 = vsel %vm100_vm1, %v5393_v62, 0.0  ;;  %v16390_v62 = vld [vmem:[#allocation157_spill] sm:$0xff] }
 0x5b2   :  { %v5485_v44 = vsel %vm100_vm1, %v5392_v3, 0.0  ;;  %v4239_v27 = vsel %vm4187_vm5, %v4174_v45, %v16390_v62 }
 0x5b3   :  { %v3522_v14 = vpop.permute.xlu0 %3521  ;;  %v5486_v39 = vadd.f32 %v5485_v44, %v5484_v30  ;;  %3283 = vrot.lane.b32.xlu1 %v2069_v49, %s8230_s21  ;;  %v5291_v53 = vadd.f32 %v5290_v37, %v5289_v36  ;;  %v16387_v30 = vld [vmem:[#allocation105_spill] sm:$0xff] }
 0x5b4   :  { %v4173_v7 = vsel %vm100_vm1, %v1548_v11, %v16387_v30  ;;  %v2007_v30 = vld [vmem:[#allocation2 + $0x331] sm:$0xff] }
 0x5b5   :  { %3539 = vrot.lane.b32.xlu0 %v1943_v6, %s8231_s26  ;;  %v12115_v63 = vpop.permute.xlu1 %2755  ;;  %v5488_v9 = vadd.f32 %v5487_v61, %v5486_v39  ;;  %v4238_v49 = vsel %vm4187_vm5, %v4173_v7, %v16389_v33  ;;  %v2008_v7 = vld [vmem:[#allocation2 + $0x339] sm:$0xff] }
 0x5b6   :  { %v4302_v36 = vsel %vm684_vm2, %v4238_v49, %v12057_v28 }
 0x5b7   :  { %v12117_v10 = vpop.permute.xlu0 %2757  ;;  %3285 = vrot.lane.b32.xlu1 %v2070_v55, %s8230_s21  ;;  %v4303_v55 = vsel %vm684_vm2, %v4239_v27, %v12062_v1  ;;  %v4367_v44 = vsel %vm4316_vm6, %v4302_v36, %v3008_v35 }
 0x5b8   :  { %v4368_v37 = vsel %vm4316_vm6, %v4303_v55, %v3010_v38  ;;  %v4432_v39 = vsel %vm4381_vm7, %v4367_v44, %v3264_v16 }
 0x5b9   :  { %3541 = vrot.lane.b32.xlu0 %v1944_v8, %s8231_s26  ;;  %v3776_v58 = vpop.permute.xlu1 %3775  ;;  %v4433_v61 = vsel %vm4381_vm7, %v4368_v37, %v3266_v32  ;;  %v4497_v38 = vsel %vm4446_vm9, %v4432_v39, %v3520_v50  ;;  %v2071_v37 = vld [vmem:[#allocation2 + $0x332] sm:$0xff]  ;;  %v2072_v39 = vld [vmem:[#allocation2 + $0x33a] sm:$0xff] }
 0x5ba   :  { %v4498_v28 = vsel %vm4446_vm9, %v4433_v61, %v3522_v14  ;;  %v4562_v16 = vsel %vm4511_vm8, %v4497_v38, %v3776_v58 }
 0x5bb   :  { %v3778_v3 = vpop.permute.xlu0 %3777  ;;  %2775 = vrot.lane.b32.xlu1 %v1943_v6, %s8228_s3 }
 0x5bc   :  { %v4563_v14 = vsel %vm4511_vm8, %v4498_v28, %v3778_v3 }
 0x5bd   :  { %2777 = vrot.lane.b32.xlu0 %v1944_v8, %s8228_s3  ;;  %v3012_v11 = vpop.permute.xlu1 %3011 }
 0x5bf   :  { %v3014_v20 = vpop.permute.xlu0 %3013  ;;  %3795 = vrot.lane.b32.xlu1 %v2007_v30, %s8232_s13 }
 0x5c0   :  { %v12140_v1 = vpop.f32.mrb[64].mxu1 }
 0x5c1   :  { %3797 = vrot.lane.b32.xlu0 %v2008_v7, %s8232_s13  ;;  %v12145_v35 = vpop.f32.mrb[65].mxu1  ;;  %v5395_v32 = vmul.f32 %v12140_v1, %v12140_v1  ;;  %v4032_v15 = vpop.permute.xlu1 %4031  ;;  %v5294_v49 = vsel %vm100_vm1, %v12140_v1, 0.0 }
 0x5c2   :  { %v5292_v6 = vsel %vm100_vm1, %v12145_v35, 0.0  ;;  %v5394_v8 = vmul.f32 %v12145_v35, %v12145_v35  ;;  %v4627_v33 = vsel %vm4576_vm10, %v4562_v16, %v4032_v15  ;;  %v1550_v16 = vld [vmem:[#allocation2 + $0x2a0] sm:$0xff] }
 0x5c3   :  { %v5293_v45 = vadd.f32 %v5292_v6, %v5291_v53  ;;  %v4034_v50 = vpop.permute.xlu0 %4033  ;;  %3031 = vrot.lane.b32.xlu1 %v2007_v30, %s8229_s1  ;;  %8057 = vmatprep.mubr.msk.f32.mxu1 %vm4646_vm11, %v4627_v33  ;;  %v5491_v3 = vsel %vm100_vm1, %v5395_v32, 0.0  ;;  %v1945_v30 = vld [vmem:[#allocation2 + $0x348] sm:$0xff]  ;;  %v1946_v6 = vld [vmem:[#allocation2 + $0x350] sm:$0xff] }
 0x5c4   :  { %v5489_v58 = vsel %vm100_vm1, %v5394_v8, 0.0  ;;  %v4628_v62 = vsel %vm4576_vm10, %v4563_v14, %v4034_v50  ;;  %v1551_v32 = vld [vmem:[#allocation2 + $0x2a8] sm:$0xff]  ;;  %v16391_v8 = vld [vmem:[#allocation107_spill] sm:$0xff]  ;;  %v16392_v14 = vld [vmem:[#allocation110_spill] sm:$0xff] }
 0x5c5   :  { %v5490_v27 = vadd.f32 %v5489_v58, %v5488_v9  ;;  %3033 = vrot.lane.b32.xlu0 %v2008_v7, %s8229_s1  ;;  %8058 = vmatmul.mubr.msk.f32.gmra.mrb[82].mxu1 %vm4646_vm11, %v4628_v62  ;;  %v5295_v53 = vadd.f32 %v5294_v49, %v5293_v45  ;;  %v3268_v55 = vpop.permute.xlu1 %3267  ;;  %v2009_v7 = vld [vmem:[#allocation2 + $0x349] sm:$0xff]  ;;  %v4175_v15 = vsel %vm100_vm1, %v1550_v16, %v16391_v8  ;;  %v16394_v62 = vld [vmem:[#allocation159_spill] sm:$0xff]  ;;  %v2010_v16 = vld [vmem:[#allocation2 + $0x351] sm:$0xff] }
 0x5c6   :  { %v4176_v45 = vsel %vm100_vm1, %v1551_v32, %v16392_v14  ;;  %v2073_v33 = vld [vmem:[#allocation2 + $0x34a] sm:$0xff] }
 0x5c7   :  { %v3524_v36 = vpop.permute.xlu0 %3523  ;;  %v5492_v44 = vadd.f32 %v5491_v3, %v5490_v27  ;;  %4051 = vrot.lane.b32.xlu1 %v2071_v37, %s8233_s14  ;;  %v16393_v49 = vld [vmem:[#allocation156_spill] sm:$0xff]  ;;  %v4241_v27 = vsel %vm4187_vm5, %v4176_v45, %v16394_v62  ;;  %v2074_v45 = vld [vmem:[#allocation2 + $0x352] sm:$0xff] }
 0x5c8   :  { %v4240_v58 = vsel %vm4187_vm5, %v4175_v15, %v16393_v49 }
 0x5c9   :  { %4053 = vrot.lane.b32.xlu0 %v2072_v39, %s8233_s14  ;;  %v3270_v61 = vpop.permute.xlu1 %3269 }
 0x5cb   :  { %v3526_v28 = vpop.permute.xlu0 %3525  ;;  %3287 = vrot.lane.b32.xlu1 %v2071_v37, %s8230_s21  ;;  %v4305_v37 = vsel %vm684_vm2, %v4241_v27, %v12117_v10 }
 0x5cd   :  { %3543 = vrot.lane.b32.xlu0 %v1945_v30, %s8231_s26  ;;  %v12169_v9 = vpop.permute.xlu1 %2759  ;;  %v4370_v30 = vsel %vm4316_vm6, %v4305_v37, %v3014_v20 }
 0x5ce   :  { %v4435_v8 = vsel %vm4381_vm7, %v4370_v30, %v3270_v61 }
 0x5cf   :  { %v12171_v38 = vpop.permute.xlu0 %2761  ;;  %3289 = vrot.lane.b32.xlu1 %v2072_v39, %s8230_s21  ;;  %v4304_v39 = vsel %vm684_vm2, %v4240_v58, %v12115_v63  ;;  %v4500_v63 = vsel %vm4446_vm9, %v4435_v8, %v3526_v28 }
 0x5d1   :  { %3799 = vrot.lane.b32.xlu0 %v2009_v7, %s8232_s13  ;;  %v3780_v50 = vpop.permute.xlu1 %3779  ;;  %v4369_v7 = vsel %vm4316_vm6, %v4304_v39, %v3012_v11  ;;  %v16395_v11 = vld [vmem:[#allocation15_spill] sm:$0xff] }
 0x5d2   :  { %v4434_v32 = vsel %vm4381_vm7, %v4369_v7, %v3268_v55  ;;  %v16396_v7 = vld [vmem:[#allocation19_spill] sm:$0xff] }
 0x5d3   :  { %v3782_v3 = vpop.permute.xlu0 %3781  ;;  %3545 = vrot.lane.b32.xlu1 %v1946_v6, %s8231_s26  ;;  %v4499_v6 = vsel %vm4446_vm9, %v4434_v32, %v3524_v36 }
 0x5d4   :  { %v4564_v55 = vsel %vm4511_vm8, %v4499_v6, %v3780_v50  ;;  %v4565_v36 = vsel %vm4511_vm8, %v4500_v63, %v3782_v3  ;;  %v16397_v63 = vld [vmem:[#allocation20_spill] sm:$0xff]  ;;  %v16398_v6 = vld [vmem:[#allocation14_spill] sm:$0xff] }
 0x5d5   :  { %4055 = vrot.lane.b32.xlu0 %v2073_v33, %s8233_s14  ;;  %v3016_v15 = vpop.permute.xlu1 %3015 }
 0x5d7   :  { %v3018_v14 = vpop.permute.xlu0 %3017  ;;  %3801 = vrot.lane.b32.xlu1 %v2010_v16, %s8232_s13 }
 0x5d8   :  { %v12194_v10 = vpop.f32.mrb[66].mxu1 }
 0x5d9   :  { %7150 = vrot.lane.b32.xlu0 %v16395_v11, %s8234_s4  ;;  %v12200_v20 = vpop.f32.mrb[67].mxu1  ;;  %v5397_v61 = vmul.f32 %v12194_v10, %v12194_v10  ;;  %v4036_v49 = vpop.permute.xlu1 %4035  ;;  %v5298_v37 = vsel %vm100_vm1, %v12194_v10, 0.0 }
 0x5da   :  { %v5296_v33 = vsel %vm100_vm1, %v12200_v20, 0.0  ;;  %v5396_v28 = vmul.f32 %v12200_v20, %v12200_v20  ;;  %v4629_v27 = vsel %vm4576_vm10, %v4564_v55, %v4036_v49  ;;  %v16400_v55 = vld [vmem:[#allocation18_spill] sm:$0xff] }
 0x5db   :  { %v5297_v58 = vadd.f32 %v5296_v33, %v5295_v53  ;;  %v4038_v62 = vpop.permute.xlu0 %4037  ;;  %4057 = vrot.lane.b32.xlu1 %v2074_v45, %s8233_s14  ;;  %8060 = vmatprep.mubr.msk.f32.mxu1 %vm4646_vm11, %v4629_v27  ;;  %v5495_v3 = vsel %vm100_vm1, %v5397_v61, 0.0  ;;  %v1552_v49 = vld [vmem:[#allocation2 + $0x2b8] sm:$0xff] }
 0x5dc   :  { %v5493_v50 = vsel %vm100_vm1, %v5396_v28, 0.0  ;;  %v4630_v39 = vsel %vm4576_vm10, %v4565_v36, %v4038_v62  ;;  %v16401_v28 = vld [vmem:[#allocation13_spill] sm:$0xff]  ;;  %v1553_v36 = vld [vmem:[#allocation2 + $0x2c0] sm:$0xff] }
 0x5dd   :  { %v5494_v30 = vadd.f32 %v5493_v50, %v5492_v44  ;;  %7154 = vrot.lane.b32.xlu0 %v16396_v7, %s8234_s4  ;;  %8061 = vmatmul.mubr.msk.f32.gmra.mrb[84].mxu1 %vm4646_vm11, %v4630_v39  ;;  %v5299_v53 = vadd.f32 %v5298_v37, %v5297_v58  ;;  %v3272_v16 = vpop.permute.xlu1 %3271  ;;  %v16399_v44 = vld [vmem:[#allocation22_spill] sm:$0xff]  ;;  %v16402_v58 = vld [vmem:[#allocation21_spill] sm:$0xff]  ;;  %v16404_v37 = vld [vmem:[#allocation112_spill] sm:$0xff] }
 0x5de   :  { %v16403_v62 = vld [vmem:[#allocation109_spill] sm:$0xff]  ;;  %v4178_v50 = vsel %vm100_vm1, %v1553_v36, %v16404_v37 }
 0x5df   :  { %v3528_v32 = vpop.permute.xlu0 %3527  ;;  %v5496_v8 = vadd.f32 %v5495_v3, %v5494_v30  ;;  %7152 = vrot.lane.b32.xlu1 %v16397_v63, %s8234_s4  ;;  %v4177_v27 = vsel %vm100_vm1, %v1552_v49, %v16403_v62  ;;  %v16405_v30 = vld [vmem:[#allocation158_spill] sm:$0xff]  ;;  %v16406_v3 = vld [vmem:[#allocation161_spill] sm:$0xff] }
 0x5e0   :  { %v4242_v7 = vsel %vm4187_vm5, %v4177_v27, %v16405_v30  ;;  %v4243_v63 = vsel %vm4187_vm5, %v4178_v50, %v16406_v3 }
 0x5e1   :  { %7158 = vrot.lane.b32.xlu0 %v16398_v6, %s8234_s4  ;;  %v3274_v11 = vpop.permute.xlu1 %3273 }
 0x5e3   :  { %v3530_v45 = vpop.permute.xlu0 %3529  ;;  %7156 = vrot.lane.b32.xlu1 %v16399_v44, %s8234_s4  ;;  %v4307_v44 = vsel %vm684_vm2, %v4243_v63, %v12171_v38  ;;  %v16409_v38 = vld [vmem:[#allocation24_spill] sm:$0xff] }
 0x5e4   :  { %v4372_v49 = vsel %vm4316_vm6, %v4307_v44, %v3018_v14 }
 0x5e5   :  { %7162 = vrot.lane.b32.xlu0 %v16400_v55, %s8234_s4  ;;  %v12229_v33 = vpop.permute.xlu1 %2763  ;;  %v4306_v55 = vsel %vm684_vm2, %v4242_v7, %v12169_v9  ;;  %v4437_v27 = vsel %vm4381_vm7, %v4372_v49, %v3274_v11 }
 0x5e6   :  { %v4371_v36 = vsel %vm4316_vm6, %v4306_v55, %v3016_v15  ;;  %v4502_v30 = vsel %vm4446_vm9, %v4437_v27, %v3530_v45  ;;  %v16411_v15 = vld [vmem:[#allocation12_spill] sm:$0xff] }
 0x5e7   :  { %v12231_v61 = vpop.permute.xlu0 %2765  ;;  %7160 = vrot.lane.b32.xlu1 %v16401_v28, %s8234_s4  ;;  %v16407_v28 = vld [vmem:[#allocation17_spill] sm:$0xff]  ;;  %v4436_v62 = vsel %vm4381_vm7, %v4371_v36, %v3272_v16  ;;  %v16413_v27 = vld [vmem:[#allocation16_spill] sm:$0xff] }
 0x5e8   :  { %v4501_v14 = vsel %vm4446_vm9, %v4436_v62, %v3528_v32 }
 0x5e9   :  { %7166 = vrot.lane.b32.xlu0 %v16402_v58, %s8234_s4  ;;  %v3784_v39 = vpop.permute.xlu1 %3783  ;;  %v16408_v58 = vld [vmem:[#allocation8_spill] sm:$0xff] }
 0x5ea   :  { %v4566_v16 = vsel %vm4511_vm8, %v4501_v14, %v3784_v39 }
 0x5eb   :  { %v3786_v6 = vpop.permute.xlu0 %3785  ;;  %7164 = vrot.lane.b32.xlu1 %v16407_v28, %s8234_s4 }
 0x5ec   :  { %v4567_v45 = vsel %vm4511_vm8, %v4502_v30, %v3786_v6 }
 0x5ed   :  { %7170 = vrot.lane.b32.xlu0 %v16408_v58, %s8234_s4  ;;  %v3020_v37 = vpop.permute.xlu1 %3019  ;;  %v16412_v58 = vld [vmem:[#allocation9_spill] sm:$0xff] }
 0x5ef   :  { %v3022_v50 = vpop.permute.xlu0 %3021  ;;  %7168 = vrot.lane.b32.xlu1 %v16409_v38, %s8234_s4 }
 0x5f0   :  { %v12259_v9 = vpop.f32.mrb[68].mxu1 }
 0x5f1   :  { %16410 = vst [vmem:[#allocation72_spill] sm:$0xff] %v12259_v9  ;;  %7174 = vrot.lane.b32.xlu0 %v16411_v15, %s8234_s4  ;;  %v12265_v7 = vpop.f32.mrb[69].mxu1  ;;  %v5399_v11 = vmul.f32 %v12259_v9, %v12259_v9  ;;  %v4040_v44 = vpop.permute.xlu1 %4039  ;;  %v5302_v49 = vsel %vm100_vm1, %v12259_v9, 0.0  ;;  %v16414_v15 = vld [vmem:[#allocation11_spill] sm:$0xff] }
 0x5f2   :  { %v5300_v3 = vsel %vm100_vm1, %v12265_v7, 0.0  ;;  %v5398_v63 = vmul.f32 %v12265_v7, %v12265_v7  ;;  %v4631_v28 = vsel %vm4576_vm10, %v4566_v16, %v4040_v44  ;;  %v16415_v16 = vld [vmem:[#allocation26_spill] sm:$0xff]  ;;  %v16417_v44 = vld [vmem:[#allocation4_spill] sm:$0xff]  ;;  %v16424_v9 = vld [vmem:[#allocation3_spill] sm:$0xff] }
 0x5f3   :  { %v5301_v32 = vadd.f32 %v5300_v3, %v5299_v53  ;;  %v4042_v55 = vpop.permute.xlu0 %4041  ;;  %7172 = vrot.lane.b32.xlu1 %v16412_v58, %s8234_s4  ;;  %8063 = vmatprep.mubr.msk.f32.mxu1 %vm4646_vm11, %v4631_v28  ;;  %v5499_v6 = vsel %vm100_vm1, %v5399_v11, 0.0  ;;  %v1555_v28 = vld [vmem:[#allocation2 + $0x2d8] sm:$0xff] }
 0x5f4   :  { %v5497_v39 = vsel %vm100_vm1, %v5398_v63, 0.0  ;;  %v4632_v36 = vsel %vm4576_vm10, %v4567_v45, %v4042_v55  ;;  %v1554_v55 = vld [vmem:[#allocation2 + $0x2d0] sm:$0xff]  ;;  %v16421_v58 = vld [vmem:[#allocation114_spill] sm:$0xff] }
 0x5f5   :  { %v5498_v62 = vadd.f32 %v5497_v39, %v5496_v8  ;;  %7178 = vrot.lane.b32.xlu0 %v16413_v27, %s8234_s4  ;;  %8064 = vmatmul.mubr.msk.f32.gmra.mrb[86].mxu1 %vm4646_vm11, %v4632_v36  ;;  %v5303_v53 = vadd.f32 %v5302_v49, %v5301_v32  ;;  %v3276_v38 = vpop.permute.xlu1 %3275  ;;  %v16416_v8 = vld [vmem:[#allocation23_spill] sm:$0xff]  ;;  %v16418_v32 = vld [vmem:[#allocation25_spill] sm:$0xff] }
 0x5f6   :  { %v16419_v49 = vld [vmem:[#allocation7_spill] sm:$0xff] }
 0x5f7   :  { %v3532_v30 = vpop.permute.xlu0 %3531  ;;  %v5500_v14 = vadd.f32 %v5499_v6, %v5498_v62  ;;  %7176 = vrot.lane.b32.xlu1 %v16414_v15, %s8234_s4  ;;  %v16420_v39 = vld [vmem:[#allocation111_spill] sm:$0xff]  ;;  %v4180_v62 = vsel %vm100_vm1, %v1555_v28, %v16421_v58  ;;  %v16422_v6 = vld [vmem:[#allocation160_spill] sm:$0xff] }
 0x5f8   :  { %v4179_v36 = vsel %vm100_vm1, %v1554_v55, %v16420_v39  ;;  %v16425_v39 = vld [vmem:[#allocation32_spill] sm:$0xff] }
 0x5f9   :  { %7182 = vrot.lane.b32.xlu0 %v16415_v16, %s8234_s4  ;;  %v3278_v3 = vpop.permute.xlu1 %3277  ;;  %v4244_v15 = vsel %vm4187_vm5, %v4179_v36, %v16422_v6  ;;  %v16423_v16 = vld [vmem:[#allocation163_spill] sm:$0xff] }
 0x5fb   :  { %v3534_v63 = vpop.permute.xlu0 %3533  ;;  %7180 = vrot.lane.b32.xlu1 %v16416_v8, %s8234_s4  ;;  %v4245_v8 = vsel %vm4187_vm5, %v4180_v62, %v16423_v16 }
 0x5fd   :  { %7186 = vrot.lane.b32.xlu0 %v16417_v44, %s8234_s4  ;;  %v12295_v45 = vpop.permute.xlu1 %2767 }
 0x5ff   :  { %v12297_v11 = vpop.permute.xlu0 %2769  ;;  %7184 = vrot.lane.b32.xlu1 %v16418_v32, %s8234_s4  ;;  %v4309_v32 = vsel %vm684_vm2, %v4245_v8, %v12231_v61  ;;  %v16426_v61 = vld [vmem:[#allocation31_spill] sm:$0xff] }
 0x600   :  { %v4374_v55 = vsel %vm4316_vm6, %v4309_v32, %v3022_v50 }
 0x601   :  { %7190 = vrot.lane.b32.xlu0 %v16419_v49, %s8234_s4  ;;  %v3788_v27 = vpop.permute.xlu1 %3787  ;;  %v4308_v49 = vsel %vm684_vm2, %v4244_v15, %v12229_v33  ;;  %v4439_v58 = vsel %vm4381_vm7, %v4374_v55, %v3278_v3 }
 0x602   :  { %v4373_v28 = vsel %vm4316_vm6, %v4308_v49, %v3020_v37  ;;  %v16428_v37 = vld [vmem:[#allocation34_spill] sm:$0xff] }
 0x603   :  { %v3790_v44 = vpop.permute.xlu0 %3789  ;;  %7188 = vrot.lane.b32.xlu1 %v16424_v9, %s8234_s4  ;;  %v4438_v36 = vsel %vm4381_vm7, %v4373_v28, %v3276_v38  ;;  %v4504_v9 = vsel %vm4446_vm9, %v4439_v58, %v3534_v63 }
 0x604   :  { %v4503_v50 = vsel %vm4446_vm9, %v4438_v36, %v3532_v30  ;;  %v4569_v63 = vsel %vm4511_vm8, %v4504_v9, %v3790_v44  ;;  %v16430_v36 = vld [vmem:[#allocation33_spill] sm:$0xff] }
 0x605   :  { %7194 = vrot.lane.b32.xlu0 %v16425_v39, %s8234_s4  ;;  %v3024_v62 = vpop.permute.xlu1 %3023  ;;  %v4568_v38 = vsel %vm4511_vm8, %v4503_v50, %v3788_v27 }
 0x607   :  { %v3026_v6 = vpop.permute.xlu0 %3025  ;;  %7192 = vrot.lane.b32.xlu1 %v16426_v61, %s8234_s4  ;;  %v16431_v61 = vld [vmem:[#allocation36_spill] sm:$0xff] }
 0x608   :  { %v12325_v33 = vpop.f32.mrb[70].mxu1 }
 0x609   :  { %16427 = vst [vmem:[#allocation121_spill] sm:$0xff] %v12325_v33  ;;  %7198 = vrot.lane.b32.xlu0 %v16428_v37, %s8234_s4  ;;  %v12331_v15 = vpop.f32.mrb[71].mxu1  ;;  %v5401_v3 = vmul.f32 %v12325_v33, %v12325_v33  ;;  %v4044_v32 = vpop.permute.xlu1 %4043  ;;  %v5306_v28 = vsel %vm100_vm1, %v12325_v33, 0.0 }
 0x60a   :  { %16429 = vst [vmem:[#allocation170_spill] sm:$0xff] %v12331_v15  ;;  %v5304_v16 = vsel %vm100_vm1, %v12331_v15, 0.0  ;;  %v5400_v8 = vmul.f32 %v12331_v15, %v12331_v15  ;;  %v4633_v55 = vsel %vm4576_vm10, %v4568_v38, %v4044_v32  ;;  %v16432_v38 = vld [vmem:[#allocation35_spill] sm:$0xff]  ;;  %v16442_v15 = vld [vmem:[#allocation41_spill] sm:$0xff] }
 0x60b   :  { %v5305_v30 = vadd.f32 %v5304_v16, %v5303_v53  ;;  %v4046_v49 = vpop.permute.xlu0 %4045  ;;  %7196 = vrot.lane.b32.xlu1 %v16430_v36, %s8234_s4  ;;  %8066 = vmatprep.mubr.msk.f32.mxu1 %vm4646_vm11, %v4633_v55  ;;  %v5503_v44 = vsel %vm100_vm1, %v5401_v3, 0.0  ;;  %v16433_v16 = vld [vmem:[#allocation38_spill] sm:$0xff]  ;;  %v1556_v55 = vld [vmem:[#allocation2 + $0x2e8] sm:$0xff] }
 0x60c   :  { %v5501_v27 = vsel %vm100_vm1, %v5400_v8, 0.0  ;;  %v4634_v39 = vsel %vm4576_vm10, %v4569_v63, %v4046_v49  ;;  %v16435_v63 = vld [vmem:[#allocation40_spill] sm:$0xff]  ;;  %v16436_v49 = vld [vmem:[#allocation39_spill] sm:$0xff] }
 0x60d   :  { %v5502_v58 = vadd.f32 %v5501_v27, %v5500_v14  ;;  %7202 = vrot.lane.b32.xlu0 %v16431_v61, %s8234_s4  ;;  %8067 = vmatmul.mubr.msk.f32.gmra.mrb[88].mxu1 %vm4646_vm11, %v4634_v39  ;;  %v5307_v53 = vadd.f32 %v5306_v28, %v5305_v30  ;;  %v3280_v9 = vpop.permute.xlu1 %3279  ;;  %v16434_v14 = vld [vmem:[#allocation37_spill] sm:$0xff]  ;;  %v16437_v27 = vld [vmem:[#allocation42_spill] sm:$0xff] }
 0x60e   :  { %v1557_v28 = vld [vmem:[#allocation2 + $0x2f0] sm:$0xff] }
 0x60f   :  { %v3536_v50 = vpop.permute.xlu0 %3535  ;;  %v5504_v37 = vadd.f32 %v5503_v44, %v5502_v58  ;;  %7200 = vrot.lane.b32.xlu1 %v16432_v38, %s8234_s4  ;;  %v16438_v39 = vld [vmem:[#allocation113_spill] sm:$0xff]  ;;  %v16439_v58 = vld [vmem:[#allocation116_spill] sm:$0xff]  ;;  %v16440_v38 = vld [vmem:[#allocation162_spill] sm:$0xff] }
 0x610   :  { %v4181_v36 = vsel %vm100_vm1, %v1556_v55, %v16438_v39  ;;  %v4182_v61 = vsel %vm100_vm1, %v1557_v28, %v16439_v58  ;;  %v16443_v39 = vld [vmem:[#allocation44_spill] sm:$0xff] }
 0x611   :  { %7206 = vrot.lane.b32.xlu0 %v16433_v16, %s8234_s4  ;;  %v3282_v8 = vpop.permute.xlu1 %3281  ;;  %v4246_v16 = vsel %vm4187_vm5, %v4181_v36, %v16440_v38 }
 0x613   :  { %v3538_v32 = vpop.permute.xlu0 %3537  ;;  %7204 = vrot.lane.b32.xlu1 %v16434_v14, %s8234_s4  ;;  %v16441_v14 = vld [vmem:[#allocation165_spill] sm:$0xff] }
 0x615   :  { %7210 = vrot.lane.b32.xlu0 %v16435_v63, %s8234_s4  ;;  %v12361_v30 = vpop.permute.xlu1 %2771  ;;  %v4247_v63 = vsel %vm4187_vm5, %v4182_v61, %v16441_v14 }
 0x617   :  { %v12363_v3 = vpop.permute.xlu0 %2773  ;;  %7208 = vrot.lane.b32.xlu1 %v16436_v49, %s8234_s4  ;;  %v4311_v49 = vsel %vm684_vm2, %v4247_v63, %v12297_v11  ;;  %v16444_v11 = vld [vmem:[#allocation43_spill] sm:$0xff] }
 0x618   :  { %v4376_v55 = vsel %vm4316_vm6, %v4311_v49, %v3026_v6 }
 0x619   :  { %7214 = vrot.lane.b32.xlu0 %v16437_v27, %s8234_s4  ;;  %v3792_v44 = vpop.permute.xlu1 %3791  ;;  %v4310_v27 = vsel %vm684_vm2, %v4246_v16, %v12295_v45  ;;  %v4441_v58 = vsel %vm4381_vm7, %v4376_v55, %v3282_v8 }
 0x61a   :  { %v4375_v28 = vsel %vm4316_vm6, %v4310_v27, %v3024_v62  ;;  %v16446_v62 = vld [vmem:[#allocation46_spill] sm:$0xff] }
 0x61b   :  { %v3794_v33 = vpop.permute.xlu0 %3793  ;;  %7212 = vrot.lane.b32.xlu1 %v16442_v15, %s8234_s4  ;;  %v4440_v36 = vsel %vm4381_vm7, %v4375_v28, %v3280_v9  ;;  %v4506_v15 = vsel %vm4446_vm9, %v4441_v58, %v3538_v32 }
 0x61c   :  { %v4505_v6 = vsel %vm4446_vm9, %v4440_v36, %v3536_v50  ;;  %v4571_v32 = vsel %vm4511_vm8, %v4506_v15, %v3794_v33  ;;  %v16448_v36 = vld [vmem:[#allocation45_spill] sm:$0xff] }
 0x61d   :  { %7218 = vrot.lane.b32.xlu0 %v16443_v39, %s8234_s4  ;;  %v3028_v61 = vpop.permute.xlu1 %3027  ;;  %v4570_v9 = vsel %vm4511_vm8, %v4505_v6, %v3792_v44 }
 0x61f   :  { %v3030_v38 = vpop.permute.xlu0 %3029  ;;  %7216 = vrot.lane.b32.xlu1 %v16444_v11, %s8234_s4  ;;  %v16449_v11 = vld [vmem:[#allocation48_spill] sm:$0xff] }
 0x620   :  { %v12391_v45 = vpop.f32.mrb[72].mxu1 }
 0x621   :  { %16445 = vst [vmem:[#allocation71_spill] sm:$0xff] %v12391_v45  ;;  %7222 = vrot.lane.b32.xlu0 %v16446_v62, %s8234_s4  ;;  %v12397_v16 = vpop.f32.mrb[73].mxu1  ;;  %v5403_v8 = vmul.f32 %v12391_v45, %v12391_v45  ;;  %v4048_v49 = vpop.permute.xlu1 %4047  ;;  %v5310_v28 = vsel %vm100_vm1, %v12391_v45, 0.0 }
 0x622   :  { %16447 = vst [vmem:[#allocation120_spill] sm:$0xff] %v12397_v16  ;;  %v5308_v14 = vsel %vm100_vm1, %v12397_v16, 0.0  ;;  %v5402_v63 = vmul.f32 %v12397_v16, %v12397_v16  ;;  %v4635_v55 = vsel %vm4576_vm10, %v4570_v9, %v4048_v49  ;;  %v16450_v9 = vld [vmem:[#allocation47_spill] sm:$0xff]  ;;  %v16460_v16 = vld [vmem:[#allocation6_spill] sm:$0xff] }
 0x623   :  { %v5309_v50 = vadd.f32 %v5308_v14, %v5307_v53  ;;  %v4050_v27 = vpop.permute.xlu0 %4049  ;;  %7220 = vrot.lane.b32.xlu1 %v16448_v36, %s8234_s4  ;;  %8069 = vmatprep.mubr.msk.f32.mxu1 %vm4646_vm11, %v4635_v55  ;;  %v5507_v53 = vsel %vm100_vm1, %v5403_v8, 0.0  ;;  %v16451_v14 = vld [vmem:[#allocation50_spill] sm:$0xff]  ;;  %v16454_v8 = vld [vmem:[#allocation51_spill] sm:$0xff] }
 0x624   :  { %v5505_v44 = vsel %vm100_vm1, %v5402_v63, 0.0  ;;  %v4636_v39 = vsel %vm4576_vm10, %v4571_v32, %v4050_v27  ;;  %v16453_v32 = vld [vmem:[#allocation5_spill] sm:$0xff]  ;;  %v1558_v55 = vld [vmem:[#allocation2 + $0x300] sm:$0xff] }
 0x625   :  { %v5506_v58 = vadd.f32 %v5505_v44, %v5504_v37  ;;  %7226 = vrot.lane.b32.xlu0 %v16449_v11, %s8234_s4  ;;  %8070 = vmatmul.mubr.msk.f32.gmra.mrb[90].mxu1 %vm4646_vm11, %v4636_v39  ;;  %v5311_v33 = vadd.f32 %v5310_v28, %v5309_v50  ;;  %v3284_v15 = vpop.permute.xlu1 %3283  ;;  %v16452_v37 = vld [vmem:[#allocation49_spill] sm:$0xff]  ;;  %v1559_v28 = vld [vmem:[#allocation2 + $0x308] sm:$0xff]  ;;  %v16456_v39 = vld [vmem:[#allocation115_spill] sm:$0xff] }
 0x626   :  { %v16455_v44 = vld [vmem:[#allocation28_spill] sm:$0xff]  ;;  %v4183_v36 = vsel %vm100_vm1, %v1558_v55, %v16456_v39  ;;  %v16461_v39 = vld [vmem:[#allocation53_spill] sm:$0xff] }
 0x627   :  { %v3540_v6 = vpop.permute.xlu0 %3539  ;;  %v5508_v62 = vadd.f32 %v5507_v53, %v5506_v58  ;;  %7224 = vrot.lane.b32.xlu1 %v16450_v9, %s8234_s4  ;;  %v16457_v58 = vld [vmem:[#allocation118_spill] sm:$0xff]  ;;  %v16458_v9 = vld [vmem:[#allocation164_spill] sm:$0xff] }
 0x628   :  { %v4184_v11 = vsel %vm100_vm1, %v1559_v28, %v16457_v58 }
 0x629   :  { %7230 = vrot.lane.b32.xlu0 %v16451_v14, %s8234_s4  ;;  %v3286_v63 = vpop.permute.xlu1 %3285  ;;  %v4248_v14 = vsel %vm4187_vm5, %v4183_v36, %v16458_v9 }
 0x62b   :  { %v3542_v49 = vpop.permute.xlu0 %3541  ;;  %7228 = vrot.lane.b32.xlu1 %v16452_v37, %s8234_s4  ;;  %v16459_v37 = vld [vmem:[#allocation167_spill] sm:$0xff] }
 0x62d   :  { %7234 = vrot.lane.b32.xlu0 %v16453_v32, %s8234_s4  ;;  %v2776_v50 = vpop.permute.xlu1 %2775  ;;  %v4249_v32 = vsel %vm4187_vm5, %v4184_v11, %v16459_v37 }
 0x62f   :  { %v12427_v27 = vpop.permute.xlu0 %2777  ;;  %7232 = vrot.lane.b32.xlu1 %v16454_v8, %s8234_s4  ;;  %v4313_v8 = vsel %vm684_vm2, %v4249_v32, %v12363_v3  ;;  %v16462_v3 = vld [vmem:[#allocation52_spill] sm:$0xff] }
 0x630   :  { %v4378_v55 = vsel %vm4316_vm6, %v4313_v8, %v3030_v38 }
 0x631   :  { %7238 = vrot.lane.b32.xlu0 %v16455_v44, %s8234_s4  ;;  %v3796_v53 = vpop.permute.xlu1 %3795  ;;  %v4312_v44 = vsel %vm684_vm2, %v4248_v14, %v12361_v30  ;;  %v4443_v58 = vsel %vm4381_vm7, %v4378_v55, %v3286_v63 }
 0x632   :  { %v4377_v28 = vsel %vm4316_vm6, %v4312_v44, %v3028_v61  ;;  %v16463_v61 = vld [vmem:[#allocation54_spill] sm:$0xff] }
 0x633   :  { %v3798_v45 = vpop.permute.xlu0 %3797  ;;  %7236 = vrot.lane.b32.xlu1 %v16460_v16, %s8234_s4  ;;  %v4442_v36 = vsel %vm4381_vm7, %v4377_v28, %v3284_v15  ;;  %v4508_v16 = vsel %vm4446_vm9, %v4443_v58, %v3542_v49 }
 0x634   :  { %v4507_v38 = vsel %vm4446_vm9, %v4442_v36, %v3540_v6  ;;  %v4573_v49 = vsel %vm4511_vm8, %v4508_v16, %v3798_v45  ;;  %v16464_v36 = vld [vmem:[#allocation27_spill] sm:$0xff] }
 0x635   :  { %7242 = vrot.lane.b32.xlu0 %v16461_v39, %s8234_s4  ;;  %v3032_v11 = vpop.permute.xlu1 %3031  ;;  %v4572_v15 = vsel %vm4511_vm8, %v4507_v38, %v3796_v53 }
 0x637   :  { %v3034_v9 = vpop.permute.xlu0 %3033  ;;  %7240 = vrot.lane.b32.xlu1 %v16462_v3, %s8234_s4  ;;  %v16465_v3 = vld [vmem:[#allocation56_spill] sm:$0xff] }
 0x638   :  { %v12455_v30 = vpop.f32.mrb[74].mxu1 }
 0x639   :  { %7246 = vrot.lane.b32.xlu0 %v16463_v61, %s8234_s4  ;;  %v12461_v14 = vpop.f32.mrb[75].mxu1  ;;  %v5405_v63 = vmul.f32 %v12455_v30, %v12455_v30  ;;  %v4052_v8 = vpop.permute.xlu1 %4051  ;;  %v5314_v28 = vsel %vm100_vm1, %v12455_v30, 0.0  ;;  %v16466_v61 = vld [vmem:[#allocation117_spill] sm:$0xff] }
 0x63a   :  { %v5312_v37 = vsel %vm100_vm1, %v12461_v14, 0.0  ;;  %v5404_v32 = vmul.f32 %v12461_v14, %v12461_v14  ;;  %v4637_v55 = vsel %vm4576_vm10, %v4572_v15, %v4052_v8  ;;  %v16467_v8 = vld [vmem:[#allocation166_spill] sm:$0xff] }
 0x63b   :  { %v5313_v6 = vadd.f32 %v5312_v37, %v5311_v33  ;;  %v4054_v44 = vpop.permute.xlu0 %4053  ;;  %7244 = vrot.lane.b32.xlu1 %v16464_v36, %s8234_s4  ;;  %8072 = vmatprep.mubr.msk.f32.mxu1 %vm4646_vm11, %v4637_v55  ;;  %v1560_v33 = vld [vmem:[#allocation2 + $0x318] sm:$0xff]  ;;  %v5511_v16 = vsel %vm100_vm1, %v5405_v63, 0.0  ;;  %v16471_v36 = vld [vmem:[#allocation59_spill] sm:$0xff] }
 0x63c   :  { %v5509_v53 = vsel %vm100_vm1, %v5404_v32, 0.0  ;;  %v4638_v39 = vsel %vm4576_vm10, %v4573_v49, %v4054_v44  ;;  %v4185_v15 = vsel %vm100_vm1, %v1560_v33, %v16466_v61  ;;  %v16469_v55 = vld [vmem:[#allocation58_spill] sm:$0xff]  ;;  %v1561_v33 = vld [vmem:[#allocation2 + $0x320] sm:$0xff] }
 0x63d   :  { %v5510_v58 = vadd.f32 %v5509_v53, %v5508_v62  ;;  %7250 = vrot.lane.b32.xlu0 %v16465_v3, %s8234_s4  ;;  %8073 = vmatmul.mubr.msk.f32.gmra.mrb[92].mxu1 %vm4646_vm11, %v4638_v39  ;;  %v5315_v45 = vadd.f32 %v5314_v28, %v5313_v6  ;;  %v3288_v38 = vpop.permute.xlu1 %3287  ;;  %v4250_v49 = vsel %vm4187_vm5, %v4185_v15, %v16467_v8  ;;  %v16468_v62 = vld [vmem:[#allocation55_spill] sm:$0xff]  ;;  %v16470_v39 = vld [vmem:[#allocation57_spill] sm:$0xff]  ;;  %v16474_v8 = vld [vmem:[#allocation168_spill] sm:$0xff] }
 0x63e   :  { %v4314_v44 = vsel %vm684_vm2, %v4250_v49, %v2776_v50  ;;  %v16472_v61 = vld [vmem:[#allocation119_spill] sm:$0xff] }
 0x63f   :  { %v3544_v37 = vpop.permute.xlu0 %3543  ;;  %v5512_v32 = vadd.f32 %v5511_v16, %v5510_v58  ;;  %7248 = vrot.lane.b32.xlu1 %v16468_v62, %s8234_s4  ;;  %v4379_v6 = vsel %vm4316_vm6, %v4314_v44, %v3032_v11  ;;  %v4186_v11 = vsel %vm100_vm1, %v1561_v33, %v16472_v61  ;;  %v16475_v62 = vld [vmem:[#allocation61_spill] sm:$0xff] }
 0x640   :  { %v4444_v28 = vsel %vm4381_vm7, %v4379_v6, %v3288_v38  ;;  %v16473_v38 = vld [vmem:[#allocation30_spill] sm:$0xff]  ;;  %v4251_v49 = vsel %vm4187_vm5, %v4186_v11, %v16474_v8  ;;  %v16481_v8 = vld [vmem:[#allocation63_spill] sm:$0xff] }
 0x641   :  { %7254 = vrot.lane.b32.xlu0 %v16469_v55, %s8234_s4  ;;  %v3290_v63 = vpop.permute.xlu1 %3289  ;;  %v4509_v58 = vsel %vm4446_vm9, %v4444_v28, %v3544_v37  ;;  %v4315_v37 = vsel %vm684_vm2, %v4251_v49, %v12427_v27  ;;  %v16476_v28 = vld [vmem:[#allocation60_spill] sm:$0xff]  ;;  %v16478_v27 = vld [vmem:[#allocation29_spill] sm:$0xff] }
 0x642   :  { %v4380_v55 = vsel %vm4316_vm6, %v4315_v37, %v3034_v9  ;;  %v16480_v9 = vld [vmem:[#allocation64_spill] sm:$0xff] }
 0x643   :  { %v3800_v53 = vpop.permute.xlu0 %3799  ;;  %7252 = vrot.lane.b32.xlu1 %v16470_v39, %s8234_s4  ;;  %v4445_v6 = vsel %vm4381_vm7, %v4380_v55, %v3290_v63  ;;  %v16477_v39 = vld [vmem:[#allocation62_spill] sm:$0xff] }
 0x644   :  { %v4574_v50 = vsel %vm4511_vm8, %v4509_v58, %v3800_v53 }
 0x645   :  { %7258 = vrot.lane.b32.xlu0 %v16471_v36, %s8234_s4  ;;  %v3546_v3 = vpop.permute.xlu1 %3545 }
 0x646   :  { %v4510_v53 = vsel %vm4446_vm9, %v4445_v6, %v3546_v3  ;;  %v16483_v6 = vld [vmem:[#allocation65_spill] sm:$0xff] }
 0x647   :  { %v4056_v16 = vpop.permute.xlu0 %4055  ;;  %7256 = vrot.lane.b32.xlu1 %v16473_v38, %s8234_s4 }
 0x648   :  { %v4639_v15 = vsel %vm4576_vm10, %v4574_v50, %v4056_v16 }
 0x649   :  { %7262 = vrot.lane.b32.xlu0 %v16475_v62, %s8234_s4  ;;  %8075 = vmatprep.mubr.msk.f32.mxu1 %vm4646_vm11, %v4639_v15  ;;  %v3802_v44 = vpop.permute.xlu1 %3801  ;;  %v16482_v62 = vld [vmem:[#allocation10_spill] sm:$0xff] }
 0x64a   :  { %v4575_v36 = vsel %vm4511_vm8, %v4510_v53, %v3802_v44 }
 0x64b   :  { %7260 = vrot.lane.b32.xlu1 %v16476_v28, %s8234_s4 }
 0x64d   :  { %7266 = vrot.lane.b32.xlu0 %v16477_v39, %s8234_s4  ;;  %v4058_v58 = vpop.permute.xlu1 %4057 }
 0x64e   :  { %v4640_v33 = vsel %vm4576_vm10, %v4575_v36, %v4058_v58 }
 0x64f   :  { %7264 = vrot.lane.b32.xlu1 %v16478_v27, %s8234_s4  ;;  %8076 = vmatmul.mubr.msk.f32.gmra.mrb[94].mxu1 %vm4646_vm11, %v4640_v33 }
 0x650   :  { %v12523_v50 = vpop.f32.mrb[76].mxu1 }
 0x651   :  { %16479 = vst [vmem:[#allocation169_spill] sm:$0xff] %v12523_v50  ;;  %7270 = vrot.lane.b32.xlu0 %v16480_v9, %s8234_s4  ;;  %v12528_v63 = vpop.f32.mrb[77].mxu1  ;;  %v5407_v3 = vmul.f32 %v12523_v50, %v12523_v50  ;;  %v5318_v15 = vsel %vm100_vm1, %v12523_v50, 0.0 }
 0x652   :  { %v5316_v16 = vsel %vm100_vm1, %v12528_v63, 0.0  ;;  %v5406_v61 = vmul.f32 %v12528_v63, %v12528_v63 }
 0x653   :  { %v5317_v11 = vadd.f32 %v5316_v16, %v5315_v45  ;;  %7268 = vrot.lane.b32.xlu1 %v16481_v8, %s8234_s4  ;;  %v5515_v44 = vsel %vm100_vm1, %v5407_v3, 0.0  ;;  %v16484_v45 = vld [vmem:[#allocation66_spill] sm:$0xff] }
 0x654   :  { %v5513_v38 = vsel %vm100_vm1, %v5406_v61, 0.0 }
 0x655   :  { %v5514_v49 = vadd.f32 %v5513_v38, %v5512_v32  ;;  %7274 = vrot.lane.b32.xlu0 %v16482_v62, %s8234_s4  ;;  %v5319_v37 = vadd.f32 %v5318_v15, %v5317_v11 }
 0x657   :  { %v5516_v55 = vadd.f32 %v5515_v44, %v5514_v49  ;;  %7272 = vrot.lane.b32.xlu1 %v16483_v6, %s8234_s4 }
 0x65b   :  { %7276 = vrot.lane.b32.xlu1 %v16484_v45, %s8234_s4 }
 0x668   :  { %v12548_v28 = vpop.f32.mrb[78].mxu1 }
 0x669   :  { %16485 = vst [vmem:[#allocation74_spill] sm:$0xff] %v12548_v28  ;;  %v12550_v53 = vpop.f32.mrb[79].mxu1  ;;  %v5409_v32 = vmul.f32 %v12548_v28, %v12548_v28  ;;  %v5322_v33 = vsel %vm100_vm1, %v12548_v28, 0.0 }
 0x66a   :  { %16486 = vst [vmem:[#allocation123_spill] sm:$0xff] %v12550_v53  ;;  %v5320_v39 = vsel %vm100_vm1, %v12550_v53, 0.0  ;;  %v5408_v36 = vmul.f32 %v12550_v53, %v12550_v53 }
 0x66b   :  { %v5321_v58 = vadd.f32 %v5320_v39, %v5319_v37  ;;  %v5519_v16 = vsel %vm100_vm1, %v5409_v32, 0.0  ;;  %v5898_v39 = vld [vmem:[%s15717_s7] sm:$0xf] }
 0x66c   :  { %v5517_v27 = vsel %vm100_vm1, %v5408_v36, 0.0  ;;  %8078 = vmatprep.subr.msk.mxu0 %vm293_vm0, %v5898_v39 }
 0x66d   :  { %v5518_v9 = vadd.f32 %v5517_v27, %v5516_v55  ;;  %v5323_v3 = vadd.f32 %v5322_v33, %v5321_v58  ;;  %8079 = vmatpush3.msk.msra.mxu0 %vm293_vm0, %v5898_v39 }
 0x66f   :  { %v5520_v61 = vadd.f32 %v5519_v16, %v5518_v9 }
 0x680   :  { %v12562_v11 = vpop.f32.mrb[80].mxu1 }
 0x681   :  { %16487 = vst [vmem:[#allocation172_spill] sm:$0xff] %v12562_v11  ;;  %v12564_v15 = vpop.f32.mrb[81].mxu1  ;;  %v5411_v38 = vmul.f32 %v12562_v11, %v12562_v11  ;;  %v5326_v37 = vsel %vm100_vm1, %v12562_v11, 0.0 }
 0x682   :  { %16488 = vst [vmem:[#allocation73_spill] sm:$0xff] %v12564_v15  ;;  %v5324_v8 = vsel %vm100_vm1, %v12564_v15, 0.0  ;;  %v5410_v49 = vmul.f32 %v12564_v15, %v12564_v15 }
 0x683   :  { %v5325_v62 = vadd.f32 %v5324_v8, %v5323_v3  ;;  %v5523_v45 = vsel %vm100_vm1, %v5411_v38, 0.0 }
 0x684   :  { %v5521_v44 = vsel %vm100_vm1, %v5410_v49, 0.0 }
 0x685   :  { %v5522_v55 = vadd.f32 %v5521_v44, %v5520_v61  ;;  %v5327_v6 = vadd.f32 %v5326_v37, %v5325_v62 }
 0x687   :  { %v5524_v32 = vadd.f32 %v5523_v45, %v5522_v55 }
 0x698   :  { %v12580_v36 = vpop.f32.mrb[82].mxu1 }
 0x699   :  { %16489 = vst [vmem:[#allocation122_spill] sm:$0xff] %v12580_v36  ;;  %v12583_v58 = vpop.f32.mrb[83].mxu1  ;;  %v5413_v33 = vmul.f32 %v12580_v36, %v12580_v36  ;;  %v5330_v16 = vsel %vm100_vm1, %v12580_v36, 0.0 }
 0x69a   :  { %16490 = vst [vmem:[#allocation171_spill] sm:$0xff] %v12583_v58  ;;  %v5328_v27 = vsel %vm100_vm1, %v12583_v58, 0.0  ;;  %v5412_v9 = vmul.f32 %v12583_v58, %v12583_v58 }
 0x69b   :  { %v5329_v3 = vadd.f32 %v5328_v27, %v5327_v6  ;;  %v5527_v49 = vsel %vm100_vm1, %v5413_v33, 0.0 }
 0x69c   :  { %v5525_v61 = vsel %vm100_vm1, %v5412_v9, 0.0 }
 0x69d   :  { %v5526_v38 = vadd.f32 %v5525_v61, %v5524_v32  ;;  %v5331_v8 = vadd.f32 %v5330_v16, %v5329_v3 }
 0x69f   :  { %v5528_v62 = vadd.f32 %v5527_v49, %v5526_v38 }
 0x6b0   :  { %v12595_v37 = vpop.f32.mrb[84].mxu1 }
 0x6b1   :  { %16491 = vst [vmem:[#allocation76_spill] sm:$0xff] %v12595_v37  ;;  %v12597_v44 = vpop.f32.mrb[85].mxu1  ;;  %v5415_v55 = vmul.f32 %v12595_v37, %v12595_v37  ;;  %v5334_v32 = vsel %vm100_vm1, %v12595_v37, 0.0 }
 0x6b2   :  { %16492 = vst [vmem:[#allocation125_spill] sm:$0xff] %v12597_v44  ;;  %v5332_v6 = vsel %vm100_vm1, %v12597_v44, 0.0  ;;  %v5414_v45 = vmul.f32 %v12597_v44, %v12597_v44 }
 0x6b3   :  { %v5333_v39 = vadd.f32 %v5332_v6, %v5331_v8  ;;  %v5531_v3 = vsel %vm100_vm1, %v5415_v55, 0.0 }
 0x6b4   :  { %v5529_v33 = vsel %vm100_vm1, %v5414_v45, 0.0 }
 0x6b5   :  { %v5530_v27 = vadd.f32 %v5529_v33, %v5528_v62  ;;  %v5335_v9 = vadd.f32 %v5334_v32, %v5333_v39 }
 0x6b7   :  { %v5532_v16 = vadd.f32 %v5531_v3, %v5530_v27 }
 0x6c8   :  { %v12609_v61 = vpop.f32.mrb[86].mxu1 }
 0x6c9   :  { %16493 = vst [vmem:[#allocation174_spill] sm:$0xff] %v12609_v61  ;;  %v12611_v38 = vpop.f32.mrb[87].mxu1  ;;  %v5417_v49 = vmul.f32 %v12609_v61, %v12609_v61  ;;  %v5338_v62 = vsel %vm100_vm1, %v12609_v61, 0.0 }
 0x6ca   :  { %16494 = vst [vmem:[#allocation75_spill] sm:$0xff] %v12611_v38  ;;  %v5336_v8 = vsel %vm100_vm1, %v12611_v38, 0.0  ;;  %v5416_v6 = vmul.f32 %v12611_v38, %v12611_v38 }
 0x6cb   :  { %v5337_v37 = vadd.f32 %v5336_v8, %v5335_v9  ;;  %v5535_v32 = vsel %vm100_vm1, %v5417_v49, 0.0 }
 0x6cc   :  { %v5533_v55 = vsel %vm100_vm1, %v5416_v6, 0.0 }
 0x6cd   :  { %v5534_v45 = vadd.f32 %v5533_v55, %v5532_v16  ;;  %v5339_v39 = vadd.f32 %v5338_v62, %v5337_v37 }
 0x6cf   :  { %v5536_v33 = vadd.f32 %v5535_v32, %v5534_v45 }
 0x6e0   :  { %v12623_v27 = vpop.f32.mrb[88].mxu1 }
 0x6e1   :  { %16495 = vst [vmem:[#allocation124_spill] sm:$0xff] %v12623_v27  ;;  %v12625_v3 = vpop.f32.mrb[89].mxu1  ;;  %v5419_v44 = vmul.f32 %v12623_v27, %v12623_v27  ;;  %v5342_v37 = vsel %vm100_vm1, %v12623_v27, 0.0 }
 0x6e2   :  { %16496 = vst [vmem:[#allocation173_spill] sm:$0xff] %v12625_v3  ;;  %v5340_v9 = vsel %vm100_vm1, %v12625_v3, 0.0  ;;  %v5418_v8 = vmul.f32 %v12625_v3, %v12625_v3 }
 0x6e3   :  { %v5341_v61 = vadd.f32 %v5340_v9, %v5339_v39  ;;  %v5539_v62 = vsel %vm100_vm1, %v5419_v44, 0.0 }
 0x6e4   :  { %v5537_v16 = vsel %vm100_vm1, %v5418_v8, 0.0 }
 0x6e5   :  { %v5538_v49 = vadd.f32 %v5537_v16, %v5536_v33  ;;  %v5343_v6 = vadd.f32 %v5342_v37, %v5341_v61 }
 0x6e7   :  { %v5540_v55 = vadd.f32 %v5539_v62, %v5538_v49 }
 0x6f8   :  { %v12637_v45 = vpop.f32.mrb[90].mxu1 }
 0x6f9   :  { %16497 = vst [vmem:[#allocation78_spill] sm:$0xff] %v12637_v45  ;;  %v12639_v32 = vpop.f32.mrb[91].mxu1  ;;  %v5421_v38 = vmul.f32 %v12637_v45, %v12637_v45  ;;  %v5346_v61 = vsel %vm100_vm1, %v12637_v45, 0.0 }
 0x6fa   :  { %16498 = vst [vmem:[#allocation127_spill] sm:$0xff] %v12639_v32  ;;  %v5344_v39 = vsel %vm100_vm1, %v12639_v32, 0.0  ;;  %v5420_v9 = vmul.f32 %v12639_v32, %v12639_v32 }
 0x6fb   :  { %v5345_v27 = vadd.f32 %v5344_v39, %v5343_v6  ;;  %v5543_v37 = vsel %vm100_vm1, %v5421_v38, 0.0 }
 0x6fc   :  { %v5541_v44 = vsel %vm100_vm1, %v5420_v9, 0.0 }
 0x6fd   :  { %v5542_v33 = vadd.f32 %v5541_v44, %v5540_v55  ;;  %v5347_v8 = vadd.f32 %v5346_v61, %v5345_v27 }
 0x6ff   :  { %v5544_v16 = vadd.f32 %v5543_v37, %v5542_v33 }
 0x710   :  { %v12651_v49 = vpop.f32.mrb[92].mxu1 }
 0x711   :  { %16499 = vst [vmem:[#allocation176_spill] sm:$0xff] %v12651_v49  ;;  %v12653_v62 = vpop.f32.mrb[93].mxu1  ;;  %v5423_v3 = vmul.f32 %v12651_v49, %v12651_v49  ;;  %v5350_v27 = vsel %vm100_vm1, %v12651_v49, 0.0 }
 0x712   :  { %16500 = vst [vmem:[#allocation77_spill] sm:$0xff] %v12653_v62  ;;  %v5348_v6 = vsel %vm100_vm1, %v12653_v62, 0.0  ;;  %v5422_v39 = vmul.f32 %v12653_v62, %v12653_v62 }
 0x713   :  { %v5349_v45 = vadd.f32 %v5348_v6, %v5347_v8  ;;  %v5547_v61 = vsel %vm100_vm1, %v5423_v3, 0.0 }
 0x714   :  { %v5545_v38 = vsel %vm100_vm1, %v5422_v39, 0.0 }
 0x715   :  { %v5546_v55 = vadd.f32 %v5545_v38, %v5544_v16  ;;  %v5351_v9 = vadd.f32 %v5350_v27, %v5349_v45 }
 0x717   :  { %v5548_v44 = vadd.f32 %v5547_v61, %v5546_v55 }
 0x722   :  { %v12665_v33 = vpop.f32.mrb[94].mxu1 }
 0x723   :  { %16501 = vst [vmem:[#allocation126_spill] sm:$0xff] %v12665_v33  ;;  %v5218_v37 = vpop.f32.mrb[95].mxu1  ;;  %v5425_v32 = vmul.f32 %v12665_v33, %v12665_v33  ;;  %v5354_v6 = vsel %vm100_vm1, %v12665_v33, 0.0 }
 0x724   :  { %v5352_v36 = vsel %vm100_vm1, %v5218_v37, 0.0  ;;  %v5424_v62 = vmul.f32 %v5218_v37, %v5218_v37 }
 0x725   :  { %v5353_v8 = vadd.f32 %v5352_v36, %v5351_v9  ;;  %v5551_v3 = vsel %vm100_vm1, %v5425_v32, 0.0 }
 0x726   :  { %v5549_v39 = vsel %vm100_vm1, %v5424_v62, 0.0  ;;  %v12679_v62 = vld [vmem:[%s15718_s5] ss:$0 sm:$0xff] }
 0x727   :  { %v5355_v16 = vadd.f32 %v5354_v6, %v5353_v8  ;;  %v5550_v45 = vadd.f32 %v5549_v39, %v5548_v44 }
 0x729   :  { %v5356_v27 = vrot.slane %v5355_v16, 4  ;;  %v5552_v38 = vadd.f32 %v5551_v3, %v5550_v45  ;;  %v16523_v3 = vld [vmem:[#allocation176_spill] sm:$0xff] }
 0x72a   :  { %v16524_v45 = vld [vmem:[#allocation126_spill] sm:$0xff] }
 0x72b   :  { %v5357_v55 = vadd.f32 %v5356_v27, %v5355_v16  ;;  %v5553_v61 = vrot.slane %v5552_v38, 4  ;;  %v12824_v16 = vld [vmem:[%s15719_s6] ss:$0 sm:$0xff] }
 0x72c   :  { %16527 = vst [vmem:[#allocation80_spill] sm:$0xff] %v12824_v16 }
 0x72d   :  { %v5358_v49 = vrot.slane %v5357_v55, 2  ;;  %v5554_v58 = vadd.f32 %v5553_v61, %v5552_v38  ;;  %v16506_v61 = vld [vmem:[#allocation71_spill] sm:$0xff] }
 0x72e   :  { %v16508_v38 = vld [vmem:[#allocation123_spill] sm:$0xff] }
 0x72f   :  { %v5359_v11 = vadd.f32 %v5358_v49, %v5357_v55  ;;  %v5555_v15 = vrot.slane %v5554_v58, 2  ;;  %v16505_v55 = vld [vmem:[#allocation120_spill] sm:$0xff]  ;;  %v16522_v49 = vld [vmem:[#allocation77_spill] sm:$0xff] }
 0x731   :  { %v5360_v28 = vrot.slane %v5359_v11, 1  ;;  %v5556_v53 = vadd.f32 %v5555_v15, %v5554_v58 }
 0x733   :  { %v5361_v36 = vadd.f32 %v5360_v28, %v5359_v11  ;;  %v5557_v9 = vrot.slane %v5556_v53, 1  ;;  %v16521_v28 = vld [vmem:[#allocation78_spill] sm:$0xff] }
 0x735   :  { %v5558_v50 = vadd.f32 %v5557_v9, %v5556_v53  ;;  %v12674_v33 = vmul.f32 0.001953125, %v5361_v36  ;;  %v16520_v53 = vld [vmem:[#allocation127_spill] sm:$0xff] }
 0x737   :  { %v5560_v32 = vmul.f32 0.001953125, %v5558_v50  ;;  %v5561_v44 = vmul.f32 %v12674_v33, %v12674_v33  ;;  %v5626_v8 = vsub.f32 %v5218_v37, %v12674_v33  ;;  %v16518_v50 = vld [vmem:[#allocation173_spill] sm:$0xff]  ;;  %v16525_v36 = vsub.f32 %v11373_v51, %v12674_v33 }
 0x738   :  { %v16528_v39 = vsub.f32 %v11365_v29, %v12674_v33  ;;  %v16529_v37 = vsub.f32 %v11418_v47, %v12674_v33  ;;  %v16532_v47 = vsub.f32 %v11461_v0, %v12674_v33 }
 0x739   :  { %v5562_v15 = vsub.f32 %v5560_v32, %v5561_v44  ;;  %v12695_v58 = vmul.f32 %v12679_v62, %v5626_v8  ;;  %v16502_v32 = vld [vmem:[#allocation72_spill] sm:$0xff]  ;;  %v16507_v44 = vld [vmem:[#allocation169_spill] sm:$0xff]  ;;  %v12817_v9 = vmul.f32 %v12679_v62, %v16525_v36  ;;  %v16530_v36 = vsub.f32 %v11413_v2, %v12674_v33 }
 0x73a   :  { %v12830_v6 = vmul.f32 %v12679_v62, %v16528_v39  ;;  %v12836_v51 = vmul.f32 %v12679_v62, %v16529_v37  ;;  %v12856_v37 = vmul.f32 %v12679_v62, %v16532_v47  ;;  %v16533_v2 = vsub.f32 %v11514_v52, %v12674_v33 }
 0x73b   :  { %v5563_v27 = vmax.f32 %v5562_v15, 0.0  ;;  %v16504_v15 = vld [vmem:[#allocation121_spill] sm:$0xff]  ;;  %16526 = vst [vmem:[#allocation175_spill] sm:$0xff] %v12817_v9  ;;  %v16531_v9 = vsub.f32 %v11466_v31, %v12674_v33  ;;  %v16534_v31 = vsub.f32 %v11509_v18, %v12674_v33  ;;  %v16536_v47 = vsub.f32 %v11559_v34, %v12674_v33 }
 0x73c   :  { %v16540_v34 = vsub.f32 %v11665_v46, %v12674_v33 }
 0x73d   :  { %v5698_v8 = vadd.f32 1e-05, %v5563_v27  ;;  %v12842_v27 = vmul.f32 %v12679_v62, %v16530_v36  ;;  %v12848_v29 = vmul.f32 %v12679_v62, %v16531_v9  ;;  %v12862_v36 = vmul.f32 %v12679_v62, %v16533_v2 }
 0x73e   :  { %v12868_v9 = vmul.f32 %v12679_v62, %v16534_v31  ;;  %v12880_v52 = vmul.f32 %v12679_v62, %v16536_v47  ;;  %v16537_v2 = vsub.f32 %v11617_v56, %v12674_v33  ;;  %v16538_v31 = vsub.f32 %v11612_v25, %v12674_v33 }
 0x73f   :  { %8198 = vrsqrt.f32 %v5698_v8  ;;  %v16503_v8 = vld [vmem:[#allocation170_spill] sm:$0xff]  ;;  %v12901_v47 = vmul.f32 %v12679_v62, %v16540_v34  ;;  %v16541_v56 = vsub.f32 %v11658_v4, %v12674_v33  ;;  %v16542_v25 = vsub.f32 %v11709_v48, %v12674_v33 }
 0x740   :  { %v12886_v18 = vmul.f32 %v12679_v62, %v16537_v2  ;;  %v16544_v34 = vsub.f32 %v11758_v40, %v12674_v33 }
 0x741   :  { %v12907_v2 = vmul.f32 %v12679_v62, %v16541_v56  ;;  %v16545_v56 = vsub.f32 %v11755_v43, %v12674_v33 }
 0x742   :  { %v12925_v4 = vmul.f32 %v12679_v62, %v16544_v34  ;;  %v16548_v34 = vsub.f32 %v11860_v59, %v12674_v33 }
 0x743   :  { %v12931_v48 = vmul.f32 %v12679_v62, %v16545_v56  ;;  %v16549_v56 = vsub.f32 %v11856_v21, %v12674_v33 }
 0x744   :  { %v12949_v43 = vmul.f32 %v12679_v62, %v16548_v34  ;;  %v16552_v34 = vsub.f32 %v11956_v13, %v12674_v33 }
 0x746   :  { %v12973_v21 = vmul.f32 %v12679_v62, %v16552_v34  ;;  %v16556_v34 = vsub.f32 %v12048_v22, %v12674_v33 }
 0x749   :  { %v12819_v11 = vpop.eup %8198 }
 0x74a   :  { %v5762_v39 = vmul.f32 %v12819_v11, %v12695_v58  ;;  %v16535_v58 = vsub.f32 %v11564_v17, %v12674_v33  ;;  %v12892_v17 = vmul.f32 %v12679_v62, %v16538_v31  ;;  %v12913_v31 = vmul.f32 %v12679_v62, %v16542_v25 }
 0x74b   :  { %v16546_v25 = vsub.f32 %v11810_v12, %v12674_v33  ;;  %v12955_v12 = vmul.f32 %v12679_v62, %v16549_v56  ;;  %v16553_v56 = vsub.f32 %v11949_v42, %v12674_v33  ;;  %v12997_v42 = vmul.f32 %v12679_v62, %v16556_v34 }
 0x74c   :  { %v12874_v0 = vmul.f32 %v12679_v62, %v16535_v58  ;;  %v12895_v58 = vadd.f32 %v12824_v16, %v5762_v39  ;;  %v16543_v39 = vsub.f32 %v11706_v57, %v12674_v33  ;;  %v16560_v34 = vsub.f32 %v12145_v35, %v12674_v33 }
 0x74d   :  { %v12937_v57 = vmul.f32 %v12679_v62, %v16546_v25  ;;  %v16550_v25 = vsub.f32 %v11908_v24, %v12674_v33  ;;  %v12979_v24 = vmul.f32 %v12679_v62, %v16553_v56  ;;  %v16557_v56 = vsub.f32 %v12045_v41, %v12674_v33 }
 0x74e   :  { %16539 = vst [vmem:[#allocation129_spill] sm:$0xff] %v12895_v58  ;;  %v12919_v46 = vmul.f32 %v12679_v62, %v16543_v39  ;;  %v16547_v39 = vsub.f32 %v11807_v60, %v12674_v33  ;;  %v13021_v41 = vmul.f32 %v12679_v62, %v16560_v34  ;;  %v16564_v34 = vsub.f32 %v12265_v7, %v12674_v33 }
 0x74f   :  { %v12961_v60 = vmul.f32 %v12679_v62, %v16550_v25  ;;  %v16554_v25 = vsub.f32 %v11999_v26, %v12674_v33  ;;  %v13003_v26 = vmul.f32 %v12679_v62, %v16557_v56  ;;  %v16561_v56 = vsub.f32 %v12140_v1, %v12674_v33 }
 0x750   :  { %v12943_v40 = vmul.f32 %v12679_v62, %v16547_v39  ;;  %v16551_v39 = vsub.f32 %v11905_v54, %v12674_v33  ;;  %v13045_v1 = vmul.f32 %v12679_v62, %v16564_v34  ;;  %v16568_v34 = vsub.f32 %v16505_v55, %v12674_v33 }
 0x751   :  { %v12985_v54 = vmul.f32 %v12679_v62, %v16554_v25  ;;  %v16558_v25 = vsub.f32 %v12100_v19, %v12674_v33  ;;  %v13027_v19 = vmul.f32 %v12679_v62, %v16561_v56  ;;  %v16565_v56 = vsub.f32 %v16502_v32, %v12674_v33 }
 0x752   :  { %v12967_v59 = vmul.f32 %v12679_v62, %v16551_v39  ;;  %v16555_v39 = vsub.f32 %v11996_v5, %v12674_v33  ;;  %v13069_v32 = vmul.f32 %v12679_v62, %v16568_v34  ;;  %v16572_v34 = vsub.f32 %v12528_v63, %v12674_v33 }
 0x753   :  { %v13009_v5 = vmul.f32 %v12679_v62, %v16558_v25  ;;  %v16562_v25 = vsub.f32 %v12200_v20, %v12674_v33  ;;  %v13051_v20 = vmul.f32 %v12679_v62, %v16565_v56  ;;  %v16569_v56 = vsub.f32 %v16506_v61, %v12674_v33 }
 0x754   :  { %v12991_v13 = vmul.f32 %v12679_v62, %v16555_v39  ;;  %v16559_v39 = vsub.f32 %v12097_v23, %v12674_v33  ;;  %v13093_v61 = vmul.f32 %v12679_v62, %v16572_v34  ;;  %v16580_v34 = vld [vmem:[#allocation73_spill] sm:$0xff] }
 0x755   :  { %v13033_v23 = vmul.f32 %v12679_v62, %v16562_v25  ;;  %v16566_v25 = vsub.f32 %v16503_v8, %v12674_v33  ;;  %v13075_v8 = vmul.f32 %v12679_v62, %v16569_v56  ;;  %v16573_v56 = vsub.f32 %v16507_v44, %v12674_v33 }
 0x756   :  { %v13015_v22 = vmul.f32 %v12679_v62, %v16559_v39  ;;  %v16563_v39 = vsub.f32 %v12194_v10, %v12674_v33  ;;  %v16581_v16 = vsub.f32 %v16580_v34, %v12674_v33 }
 0x757   :  { %v13057_v10 = vmul.f32 %v12679_v62, %v16566_v25  ;;  %v16570_v25 = vsub.f32 %v12461_v14, %v12674_v33  ;;  %v13099_v14 = vmul.f32 %v12679_v62, %v16573_v56  ;;  %v16583_v56 = vld [vmem:[#allocation172_spill] sm:$0xff] }
 0x758   :  { %v13039_v35 = vmul.f32 %v12679_v62, %v16563_v39  ;;  %v16567_v39 = vsub.f32 %v16504_v15, %v12674_v33  ;;  %v13117_v44 = vmul.f32 %v12679_v62, %v16581_v16  ;;  %v16592_v16 = vld [vmem:[#allocation125_spill] sm:$0xff] }
 0x759   :  { %v13081_v15 = vmul.f32 %v12679_v62, %v16570_v25  ;;  %16574 = vst [vmem:[#allocation178_spill] sm:$0xff] %v13099_v14  ;;  %v16575_v25 = vsub.f32 %v16508_v38, %v12674_v33  ;;  %v16584_v14 = vsub.f32 %v16583_v56, %v12674_v33 }
 0x75a   :  { %v13063_v7 = vmul.f32 %v12679_v62, %v16567_v39  ;;  %v16571_v39 = vsub.f32 %v12455_v30, %v12674_v33  ;;  %16582 = vst [vmem:[#allocation177_spill] sm:$0xff] %v13117_v44  ;;  %v16593_v44 = vsub.f32 %v16592_v16, %v12674_v33 }
 0x75b   :  { %v13105_v30 = vmul.f32 %v12679_v62, %v16575_v25  ;;  %v13123_v38 = vmul.f32 %v12679_v62, %v16584_v14  ;;  %v16586_v25 = vld [vmem:[#allocation171_spill] sm:$0xff]  ;;  %v16594_v14 = vld [vmem:[#allocation76_spill] sm:$0xff] }
 0x75c   :  { %v13087_v55 = vmul.f32 %v12679_v62, %v16571_v39  ;;  %v16577_v39 = vld [vmem:[#allocation74_spill] sm:$0xff]  ;;  %v13141_v56 = vmul.f32 %v12679_v62, %v16593_v44  ;;  %v16601_v44 = vsub.f32 %v16518_v50, %v12674_v33 }
 0x75d   :  { %16576 = vst [vmem:[#allocation79_spill] sm:$0xff] %v13105_v30  ;;  %v16578_v58 = vsub.f32 %v16577_v39, %v12674_v33  ;;  %16585 = vst [vmem:[#allocation82_spill] sm:$0xff] %v13123_v38  ;;  %v16587_v30 = vsub.f32 %v16586_v25, %v12674_v33  ;;  %v16595_v38 = vsub.f32 %v16594_v14, %v12674_v33 }
 0x75e   :  { %v13165_v14 = vmul.f32 %v12679_v62, %v16601_v44  ;;  %v16607_v44 = vsub.f32 %v16522_v49, %v12674_v33  ;;  %v13209_v49 = vmul.f32 %v12819_v11, %v12830_v6  ;;  %v13229_v6 = vmul.f32 %v12819_v11, %v12862_v36 }
 0x75f   :  { %v13111_v63 = vmul.f32 %v12679_v62, %v16578_v58  ;;  %v13129_v39 = vmul.f32 %v12679_v62, %v16587_v30  ;;  %v16589_v58 = vld [vmem:[#allocation122_spill] sm:$0xff]  ;;  %v13147_v25 = vmul.f32 %v12679_v62, %v16595_v38  ;;  %v16597_v30 = vld [vmem:[#allocation75_spill] sm:$0xff]  ;;  %v16602_v38 = vld [vmem:[#allocation124_spill] sm:$0xff]  ;;  %v13253_v36 = vmul.f32 %v12819_v11, %v12901_v47 }
 0x760   :  { %v13277_v47 = vmul.f32 %v12819_v11, %v12937_v57  ;;  %v13301_v57 = vmul.f32 %v12819_v11, %v12973_v21  ;;  %v13325_v21 = vmul.f32 %v12819_v11, %v13009_v5  ;;  %v5736_v5 = vmul.f32 %v12819_v11, %v13045_v1 }
 0x761   :  { %16579 = vst [vmem:[#allocation128_spill] sm:$0xff] %v13111_v63  ;;  %16588 = vst [vmem:[#allocation131_spill] sm:$0xff] %v13129_v39  ;;  %v16590_v63 = vsub.f32 %v16589_v58, %v12674_v33  ;;  %v16598_v39 = vsub.f32 %v16597_v30, %v12674_v33  ;;  %v13363_v1 = vmul.f32 %v12819_v11, %v13087_v55 }
 0x762   :  { %16596 = vst [vmem:[#allocation81_spill] sm:$0xff] %v13147_v25  ;;  %v16603_v25 = vsub.f32 %v16602_v38, %v12674_v33  ;;  %v13189_v38 = vmul.f32 %v12679_v62, %v16607_v44  ;;  %v13217_v44 = vmul.f32 %v12819_v11, %v12842_v27  ;;  %v13237_v27 = vmul.f32 %v12819_v11, %v12874_v0 }
 0x763   :  { %v13135_v34 = vmul.f32 %v12679_v62, %v16590_v63  ;;  %v13153_v58 = vmul.f32 %v12679_v62, %v16598_v39  ;;  %v16599_v63 = vld [vmem:[#allocation174_spill] sm:$0xff]  ;;  %v16604_v39 = vsub.f32 %v16520_v53, %v12674_v33  ;;  %v13261_v0 = vmul.f32 %v12819_v11, %v12913_v31  ;;  %16611 = vst [vmem:[#allocation179_spill] sm:$0xff] %v13301_v57 }
 0x764   :  { %v13171_v30 = vmul.f32 %v12679_v62, %v16603_v25  ;;  %v16608_v25 = vsub.f32 %v16523_v3, %v12674_v33  ;;  %v13213_v3 = vmul.f32 %v12819_v11, %v12836_v51  ;;  %v13241_v51 = vmul.f32 %v12819_v11, %v12880_v52  ;;  %16617 = vst [vmem:[#allocation181_spill] sm:$0xff] %v13325_v21 }
 0x765   :  { %16591 = vst [vmem:[#allocation180_spill] sm:$0xff] %v13135_v34  ;;  %v16600_v34 = vsub.f32 %v16599_v63, %v12674_v33  ;;  %v13177_v63 = vmul.f32 %v12679_v62, %v16604_v39  ;;  %v16609_v39 = vsub.f32 %v16524_v45, %v12674_v33  ;;  %v13233_v45 = vmul.f32 %v12819_v11, %v12868_v9 }
 0x766   :  { %v13195_v53 = vmul.f32 %v12679_v62, %v16608_v25  ;;  %v13257_v9 = vmul.f32 %v12819_v11, %v12907_v2  ;;  %v13265_v52 = vmul.f32 %v12819_v11, %v12919_v46  ;;  %v13281_v2 = vmul.f32 %v12819_v11, %v12943_v40 }
 0x767   :  { %v13159_v16 = vmul.f32 %v12679_v62, %v16600_v34  ;;  %v16605_v34 = vsub.f32 %v16521_v28, %v12674_v33  ;;  %v13201_v28 = vmul.f32 %v12679_v62, %v16609_v39  ;;  %v13221_v33 = vmul.f32 %v12819_v11, %v12848_v29 }
 0x768   :  { %v13245_v29 = vmul.f32 %v12819_v11, %v12886_v18  ;;  %v13269_v18 = vmul.f32 %v12819_v11, %v12925_v4  ;;  %v13285_v31 = vmul.f32 %v12819_v11, %v12949_v43  ;;  %v13289_v46 = vmul.f32 %v12819_v11, %v12955_v12  ;;  %v16622_v39 = vld [vmem:[#allocation128_spill] sm:$0xff] }
 0x769   :  { %v13183_v50 = vmul.f32 %v12679_v62, %v16605_v34  ;;  %v16610_v34 = vld [vmem:[#allocation175_spill] sm:$0xff]  ;;  %v13225_v62 = vmul.f32 %v12819_v11, %v12856_v37  ;;  %v13249_v37 = vmul.f32 %v12819_v11, %v12892_v17  ;;  %v13273_v17 = vmul.f32 %v12819_v11, %v12931_v48 }
 0x76a   :  { %v13293_v4 = vmul.f32 %v12819_v11, %v12961_v60  ;;  %v13297_v48 = vmul.f32 %v12819_v11, %v12967_v59  ;;  %v13305_v40 = vmul.f32 %v12819_v11, %v12979_v24  ;;  %v13309_v43 = vmul.f32 %v12819_v11, %v12985_v54 }
 0x76b   :  { %16606 = vst [vmem:[#allocation130_spill] sm:$0xff] %v13183_v50  ;;  %v13205_v50 = vmul.f32 %v12819_v11, %v16610_v34  ;;  %v13313_v12 = vmul.f32 %v12819_v11, %v12991_v13  ;;  %v13317_v60 = vmul.f32 %v12819_v11, %v12997_v42  ;;  %v13321_v59 = vmul.f32 %v12819_v11, %v13003_v26  ;;  %v16623_v34 = vld [vmem:[#allocation177_spill] sm:$0xff] }
 0x76c   :  { %16612 = vst [vmem:[#allocation84_spill] sm:$0xff] %v13305_v40  ;;  %16613 = vst [vmem:[#allocation133_spill] sm:$0xff] %v13309_v43  ;;  %v13329_v24 = vmul.f32 %v12819_v11, %v13015_v22  ;;  %v13333_v54 = vmul.f32 %v12819_v11, %v13021_v41  ;;  %v5733_v13 = vmul.f32 %v12819_v11, %v13027_v19  ;;  %v16626_v21 = vld [vmem:[#allocation180_spill] sm:$0xff] }
 0x76d   :  { %16614 = vst [vmem:[#allocation182_spill] sm:$0xff] %v13313_v12  ;;  %16615 = vst [vmem:[#allocation83_spill] sm:$0xff] %v13317_v60  ;;  %v5734_v42 = vmul.f32 %v12819_v11, %v13033_v23  ;;  %v5735_v26 = vmul.f32 %v12819_v11, %v13039_v35  ;;  %v5737_v22 = vmul.f32 %v12819_v11, %v13051_v20  ;;  %v16629_v12 = vld [vmem:[#allocation80_spill] sm:$0xff] }
 0x76e   :  { %16616 = vst [vmem:[#allocation132_spill] sm:$0xff] %v13321_v59  ;;  %16618 = vst [vmem:[#allocation86_spill] sm:$0xff] %v13329_v24  ;;  %v5738_v25 = vmul.f32 %v12819_v11, %v13057_v10  ;;  %v5739_v41 = vmul.f32 %v12819_v11, %v13063_v7  ;;  %v13351_v19 = vmul.f32 %v12819_v11, %v13069_v32  ;;  %v16620_v10 = vld [vmem:[#allocation178_spill] sm:$0xff]  ;;  %v16621_v32 = vld [vmem:[#allocation79_spill] sm:$0xff] }
 0x76f   :  { %16619 = vst [vmem:[#allocation135_spill] sm:$0xff] %v13333_v54  ;;  %v13355_v23 = vmul.f32 %v12819_v11, %v13075_v8  ;;  %v13359_v35 = vmul.f32 %v12819_v11, %v13081_v15  ;;  %v13367_v20 = vmul.f32 %v12819_v11, %v13093_v61  ;;  %v13371_v7 = vmul.f32 %v12819_v11, %v16620_v10  ;;  %v16624_v54 = vld [vmem:[#allocation82_spill] sm:$0xff]  ;;  %v16625_v24 = vld [vmem:[#allocation131_spill] sm:$0xff]  ;;  %v16627_v59 = vld [vmem:[#allocation81_spill] sm:$0xff] }
 0x770   :  { %v13375_v8 = vmul.f32 %v12819_v11, %v16621_v32  ;;  %v13379_v15 = vmul.f32 %v12819_v11, %v16622_v39  ;;  %v13383_v55 = vmul.f32 %v12819_v11, %v16623_v34  ;;  %v13387_v61 = vmul.f32 %v12819_v11, %v16624_v54 }
 0x771   :  { %v13391_v10 = vmul.f32 %v12819_v11, %v16625_v24  ;;  %v13395_v32 = vmul.f32 %v12819_v11, %v16626_v21  ;;  %v13399_v39 = vmul.f32 %v12819_v11, %v13141_v56  ;;  %v13403_v34 = vmul.f32 %v12819_v11, %v16627_v59 }
 0x772   :  { %v13407_v54 = vmul.f32 %v12819_v11, %v13153_v58  ;;  %v13411_v24 = vmul.f32 %v12819_v11, %v13159_v16  ;;  %v13415_v21 = vmul.f32 %v12819_v11, %v13165_v14  ;;  %v13419_v56 = vmul.f32 %v12819_v11, %v13171_v30  ;;  %v16628_v60 = vld [vmem:[#allocation130_spill] sm:$0xff] }
 0x773   :  { %v13423_v59 = vmul.f32 %v12819_v11, %v13177_v63  ;;  %v13427_v58 = vmul.f32 %v12819_v11, %v16628_v60  ;;  %v13431_v16 = vmul.f32 %v12819_v11, %v13189_v38  ;;  %v13435_v14 = vmul.f32 %v12819_v11, %v13195_v53 }
 0x774   :  { %v13439_v30 = vmul.f32 %v12819_v11, %v13201_v28  ;;  %v5770_v63 = vadd.f32 %v16629_v12, %v13205_v50  ;;  %v5771_v43 = vadd.f32 %v16629_v12, %v13209_v49  ;;  %v5772_v60 = vadd.f32 %v16629_v12, %v13213_v3 }
 0x775   :  { %v5773_v57 = vadd.f32 %v16629_v12, %v13217_v44  ;;  %v5774_v11 = vadd.f32 %v16629_v12, %v13221_v33  ;;  %v5775_v28 = vadd.f32 %v16629_v12, %v13225_v62  ;;  %v5776_v3 = vadd.f32 %v16629_v12, %v13229_v6 }
 0x776   :  { %v5834_v40 = vmax.f32 %v5770_v63, 0.0  ;;  %v5835_v38 = vmax.f32 %v5771_v43, 0.0  ;;  %v5836_v53 = vmax.f32 %v5772_v60, 0.0  ;;  %v5777_v33 = vadd.f32 %v16629_v12, %v13233_v45 }
 0x777   :  { %v5837_v50 = vmax.f32 %v5773_v57, 0.0  ;;  %v5838_v49 = vmax.f32 %v5774_v11, 0.0  ;;  %v5839_v44 = vmax.f32 %v5775_v28, 0.0  ;;  %v5778_v43 = vadd.f32 %v16629_v12, %v13237_v27 }
 0x778   :  { %8080 = vmatprep.mubr.msk.f32.mxu0 %vm100_vm1, %v5834_v40  ;;  %v5840_v40 = vmax.f32 %v5776_v3, 0.0  ;;  %v5841_v62 = vmax.f32 %v5777_v33, 0.0  ;;  %v5779_v6 = vadd.f32 %v16629_v12, %v13241_v51  ;;  %v5780_v63 = vadd.f32 %v16629_v12, %v13245_v29 }
 0x779   :  { %8081 = vmatmul.mubr.msk.f32.vlgmr.msra.gmra.mrb[32].mxu0 %vm100_vm1, %v5835_v38  ;;  %v5842_v57 = vmax.f32 %v5778_v43, 0.0  ;;  %v13472_v45 = vadd.f32 %v16629_v12, %v5733_v13  ;;  %v13475_v60 = vadd.f32 %v16629_v12, %v5734_v42  ;;  %v13478_v27 = vadd.f32 %v16629_v12, %v5735_v26 }
 0x77a   :  { %8083 = vmatprep.mubr.msk.f32.mxu0 %vm100_vm1, %v5836_v53  ;;  %v13481_v38 = vadd.f32 %v16629_v12, %v5736_v5  ;;  %v13485_v51 = vadd.f32 %v16629_v12, %v5737_v22  ;;  %v13488_v29 = vadd.f32 %v16629_v12, %v5738_v25  ;;  %v13491_v13 = vadd.f32 %v16629_v12, %v5739_v41 }
 0x77b   :  { %v5843_v53 = vmax.f32 %v5779_v6, 0.0  ;;  %v5781_v42 = vadd.f32 %v16629_v12, %v13249_v37  ;;  %v5844_v26 = vmax.f32 %v5780_v63, 0.0  ;;  %v5782_v5 = vadd.f32 %v16629_v12, %v13253_v36  ;;  %v16630_v6 = vld [vmem:[#allocation179_spill] sm:$0xff]  ;;  %v16631_v63 = vld [vmem:[#allocation84_spill] sm:$0xff] }
 0x77c   :  { %v13499_v11 = vadd.f32 %v16629_v12, %v13351_v19  ;;  %v13504_v22 = vadd.f32 %v16629_v12, %v13355_v23  ;;  %v13508_v25 = vadd.f32 %v16629_v12, %v13359_v35  ;;  %v13512_v37 = vadd.f32 %v16629_v12, %v13363_v1 }
 0x77d   :  { %8084 = vmatmul.mubr.msk.f32.gmra.mrb[34].mxu0 %vm100_vm1, %v5837_v50  ;;  %v13516_v36 = vadd.f32 %v16629_v12, %v13367_v20  ;;  %v13521_v41 = vadd.f32 %v16629_v12, %v13371_v7  ;;  %v13525_v19 = vadd.f32 %v16629_v12, %v13375_v8  ;;  %v13529_v23 = vadd.f32 %v16629_v12, %v13379_v15 }
 0x77e   :  { %8086 = vmatprep.mubr.msk.f32.mxu0 %vm100_vm1, %v5838_v49  ;;  %v5845_v35 = vmax.f32 %v5781_v42, 0.0  ;;  %v5783_v1 = vadd.f32 %v16629_v12, %v13257_v9  ;;  %v5846_v20 = vmax.f32 %v5782_v5, 0.0  ;;  %v5784_v50 = vadd.f32 %v16629_v12, %v13261_v0  ;;  %v16632_v42 = vld [vmem:[#allocation133_spill] sm:$0xff]  ;;  %v16633_v5 = vld [vmem:[#allocation182_spill] sm:$0xff] }
 0x77f   :  { %v13537_v7 = vadd.f32 %v16629_v12, %v13383_v55  ;;  %v13542_v8 = vadd.f32 %v16629_v12, %v13387_v61  ;;  %v13546_v15 = vadd.f32 %v16629_v12, %v13391_v10  ;;  %v13550_v9 = vadd.f32 %v16629_v12, %v13395_v32 }
 0x780   :  { %v13554_v0 = vadd.f32 %v16629_v12, %v13399_v39  ;;  %v13559_v55 = vadd.f32 %v16629_v12, %v13403_v34  ;;  %v13563_v61 = vadd.f32 %v16629_v12, %v13407_v54  ;;  %v13567_v10 = vadd.f32 %v16629_v12, %v13411_v24 }
 0x781   :  { %8087 = vmatmul.mubr.msk.f32.gmra.mrb[36].mxu0 %vm100_vm1, %v5839_v44  ;;  %v5847_v32 = vmax.f32 %v5783_v1, 0.0  ;;  %v5785_v28 = vadd.f32 %v16629_v12, %v13265_v52  ;;  %v5848_v39 = vmax.f32 %v5784_v50, 0.0  ;;  %v5786_v49 = vadd.f32 %v16629_v12, %v13269_v18 }
 0x782   :  { %8089 = vmatprep.mubr.msk.f32.mxu0 %vm100_vm1, %v5840_v40  ;;  %v13575_v34 = vadd.f32 %v16629_v12, %v13415_v21  ;;  %v13580_v54 = vadd.f32 %v16629_v12, %v13419_v56  ;;  %v13584_v24 = vadd.f32 %v16629_v12, %v13423_v59  ;;  %v13588_v52 = vadd.f32 %v16629_v12, %v13427_v58 }
 0x783   :  { %v13592_v18 = vadd.f32 %v16629_v12, %v13431_v16  ;;  %v13597_v21 = vadd.f32 %v16629_v12, %v13435_v14  ;;  %v13601_v56 = vadd.f32 %v16629_v12, %v13439_v30  ;;  %v5849_v59 = vmax.f32 %v5785_v28, 0.0  ;;  %v16635_v28 = vld [vmem:[#allocation132_spill] sm:$0xff] }
 0x784   :  { %v5787_v3 = vadd.f32 %v16629_v12, %v13273_v17  ;;  %v5850_v58 = vmax.f32 %v5786_v49, 0.0  ;;  %v5788_v44 = vadd.f32 %v16629_v12, %v13277_v47  ;;  %v5789_v14 = vadd.f32 %v16629_v12, %v13281_v2 }
 0x785   :  { %8090 = vmatmul.mubr.msk.f32.gmra.mrb[38].mxu0 %vm100_vm1, %v5841_v62  ;;  %v5790_v30 = vadd.f32 %v16629_v12, %v13285_v31  ;;  %v5791_v47 = vadd.f32 %v16629_v12, %v13289_v46  ;;  %v5792_v43 = vadd.f32 %v16629_v12, %v13293_v4  ;;  %v5793_v31 = vadd.f32 %v16629_v12, %v13297_v48 }
 0x786   :  { %8092 = vmatprep.mubr.msk.f32.mxu0 %vm100_vm1, %v5842_v57  ;;  %v5851_v16 = vmax.f32 %v5787_v3, 0.0  ;;  %v5852_v33 = vmax.f32 %v5788_v44, 0.0  ;;  %v5853_v17 = vmax.f32 %v5789_v14, 0.0  ;;  %v5794_v57 = vadd.f32 %v16629_v12, %v16630_v6  ;;  %v16637_v44 = vld [vmem:[#allocation86_spill] sm:$0xff] }
 0x787   :  { %v5854_v40 = vmax.f32 %v5790_v30, 0.0  ;;  %v5855_v2 = vmax.f32 %v5791_v47, 0.0  ;;  %v5856_v62 = vmax.f32 %v5792_v43, 0.0  ;;  %v5857_v46 = vmax.f32 %v5793_v31, 0.0 }
 0x788   :  { %v5795_v4 = vadd.f32 %v16629_v12, %v16631_v63  ;;  %v5868_v43 = vmax.f32 %v13475_v60, 0.0  ;;  %v5871_v31 = vmax.f32 %v13485_v51, 0.0  ;;  %v5874_v60 = vmax.f32 %v13499_v11, 0.0 }
 0x789   :  { %8093 = vmatmul.mubr.msk.f32.gmra.mrb[40].mxu0 %vm100_vm1, %v5843_v53  ;;  %v5858_v53 = vmax.f32 %v5794_v57, 0.0  ;;  %v5877_v51 = vmax.f32 %v13512_v37, 0.0  ;;  %v5880_v11 = vmax.f32 %v13525_v19, 0.0  ;;  %v5883_v37 = vmax.f32 %v13542_v8, 0.0 }
 0x78a   :  { %8095 = vmatprep.mubr.msk.f32.mxu0 %vm100_vm1, %v5844_v26  ;;  %v5796_v26 = vadd.f32 %v16629_v12, %v16632_v42  ;;  %v5859_v48 = vmax.f32 %v5795_v4, 0.0  ;;  %v5886_v19 = vmax.f32 %v13554_v0, 0.0  ;;  %v5889_v8 = vmax.f32 %v13567_v10, 0.0 }
 0x78b   :  { %v5892_v0 = vmax.f32 %v13584_v24, 0.0  ;;  %v5895_v10 = vmax.f32 %v13597_v21, 0.0 }
 0x78c   :  { %v5860_v1 = vmax.f32 %v5796_v26, 0.0 }
 0x78d   :  { %8096 = vmatmul.mubr.msk.f32.gmra.mrb[42].mxu0 %vm100_vm1, %v5845_v35  ;;  %v5797_v35 = vadd.f32 %v16629_v12, %v16633_v5 }
 0x78e   :  { %8098 = vmatprep.mubr.msk.f32.mxu0 %vm100_vm1, %v5846_v20  ;;  %v16634_v20 = vld [vmem:[#allocation83_spill] sm:$0xff] }
 0x78f   :  { %v5798_v50 = vadd.f32 %v16629_v12, %v16634_v20 }
 0x791   :  { %8099 = vmatmul.mubr.msk.f32.gmra.mrb[44].mxu0 %vm100_vm1, %v5847_v32  ;;  %v5861_v32 = vmax.f32 %v5797_v35, 0.0  ;;  %v5862_v49 = vmax.f32 %v5798_v50, 0.0 }
 0x792   :  { %8101 = vmatprep.mubr.msk.f32.mxu0 %vm100_vm1, %v5848_v39  ;;  %v5799_v39 = vadd.f32 %v16629_v12, %v16635_v28 }
 0x795   :  { %8102 = vmatmul.mubr.msk.f32.gmra.mrb[46].mxu0 %vm100_vm1, %v5849_v59  ;;  %v16636_v59 = vld [vmem:[#allocation181_spill] sm:$0xff] }
 0x796   :  { %8104 = vmatprep.mubr.msk.f32.mxu0 %vm100_vm1, %v5850_v58  ;;  %v5800_v3 = vadd.f32 %v16629_v12, %v16636_v59  ;;  %v5863_v58 = vmax.f32 %v5799_v39, 0.0 }
 0x798   :  { %v5864_v14 = vmax.f32 %v5800_v3, 0.0 }
 0x799   :  { %8105 = vmatmul.mubr.msk.f32.gmra.mrb[48].mxu0 %vm100_vm1, %v5851_v16  ;;  %v5801_v16 = vadd.f32 %v16629_v12, %v16637_v44 }
 0x79a   :  { %8107 = vmatprep.mubr.msk.f32.mxu0 %vm100_vm1, %v5852_v33  ;;  %v16638_v33 = vld [vmem:[#allocation135_spill] sm:$0xff] }
 0x79b   :  { %v5802_v30 = vadd.f32 %v16629_v12, %v16638_v33  ;;  %v5869_v12 = vmax.f32 %v13478_v27, 0.0  ;;  %v5875_v27 = vmax.f32 %v13504_v22, 0.0  ;;  %v5881_v22 = vmax.f32 %v13529_v23, 0.0 }
 0x79c   :  { %v5887_v23 = vmax.f32 %v13559_v55, 0.0  ;;  %v5893_v55 = vmax.f32 %v13588_v52, 0.0 }
 0x79d   :  { %8108 = vmatmul.mubr.msk.f32.gmra.mrb[50].mxu0 %vm100_vm1, %v5853_v17  ;;  %v5865_v17 = vmax.f32 %v5801_v16, 0.0  ;;  %v5866_v47 = vmax.f32 %v5802_v30, 0.0 }
 0x79e   :  { %8110 = vmatprep.mubr.msk.f32.mxu0 %vm100_vm1, %v5854_v40  ;;  %v5867_v40 = vmax.f32 %v13472_v45, 0.0  ;;  %v5873_v45 = vmax.f32 %v13491_v13, 0.0  ;;  %v5879_v13 = vmax.f32 %v13521_v41, 0.0  ;;  %v5885_v41 = vmax.f32 %v13550_v9, 0.0 }
 0x79f   :  { %v5891_v9 = vmax.f32 %v13580_v54, 0.0  ;;  %v5897_v54 = vmax.f32 %v13601_v56, 0.0 }
 0x7a1   :  { %8111 = vmatmul.mubr.msk.f32.gmra.mrb[52].mxu0 %vm100_vm1, %v5855_v2  ;;  %v5870_v2 = vmax.f32 %v13481_v38, 0.0  ;;  %v5876_v38 = vmax.f32 %v13508_v25, 0.0  ;;  %v5882_v25 = vmax.f32 %v13537_v7, 0.0  ;;  %v5888_v7 = vmax.f32 %v13563_v61, 0.0 }
 0x7a2   :  { %8113 = vmatprep.mubr.msk.f32.mxu0 %vm100_vm1, %v5856_v62  ;;  %v5872_v62 = vmax.f32 %v13488_v29, 0.0  ;;  %v5878_v29 = vmax.f32 %v13516_v36, 0.0  ;;  %v5884_v36 = vmax.f32 %v13546_v15, 0.0  ;;  %v5890_v15 = vmax.f32 %v13575_v34, 0.0  ;;  %v16639_v34 = vld [vmem:[#allocation129_spill] sm:$0xff] }
 0x7a3   :  { %v5894_v61 = vmax.f32 %v13592_v18, 0.0  ;;  %v5896_v6 = vmax.f32 %v16639_v34, 0.0 }
 0x7a5   :  { %8114 = vmatmul.mubr.msk.f32.gmra.mrb[54].mxu0 %vm100_vm1, %v5857_v46 }
 0x7a6   :  { %8116 = vmatprep.mubr.msk.f32.mxu0 %vm100_vm1, %v5858_v53 }
 0x7a9   :  { %8117 = vmatmul.mubr.msk.f32.gmra.mrb[56].mxu0 %vm100_vm1, %v5859_v48 }
 0x7aa   :  { %8119 = vmatprep.mubr.msk.f32.mxu0 %vm100_vm1, %v5860_v1 }
 0x7ad   :  { %8120 = vmatmul.mubr.msk.f32.gmra.mrb[58].mxu0 %vm100_vm1, %v5861_v32 }
 0x7ae   :  { %8122 = vmatprep.mubr.msk.f32.mxu0 %vm100_vm1, %v5862_v49 }
 0x7b1   :  { %8123 = vmatmul.mubr.msk.f32.gmra.mrb[60].mxu0 %vm100_vm1, %v5863_v58 }
 0x7b2   :  { %8125 = vmatprep.mubr.msk.f32.mxu0 %vm100_vm1, %v5864_v14 }
 0x7b5   :  { %8126 = vmatmul.mubr.msk.f32.gmra.mrb[62].mxu0 %vm100_vm1, %v5865_v17 }
 0x7b6   :  { %8128 = vmatprep.mubr.msk.f32.mxu0 %vm100_vm1, %v5866_v47 }
 0x7b9   :  { %8129 = vmatmul.mubr.msk.f32.gmra.mrb[64].mxu0 %vm100_vm1, %v5867_v40 }
 0x7ba   :  { %8131 = vmatprep.mubr.msk.f32.mxu0 %vm100_vm1, %v5868_v43 }
 0x7bd   :  { %8132 = vmatmul.mubr.msk.f32.gmra.mrb[66].mxu0 %vm100_vm1, %v5869_v12 }
 0x7be   :  { %8134 = vmatprep.mubr.msk.f32.mxu0 %vm100_vm1, %v5870_v2 }
 0x7c1   :  { %8135 = vmatmul.mubr.msk.f32.gmra.mrb[68].mxu0 %vm100_vm1, %v5871_v31 }
 0x7c2   :  { %8137 = vmatprep.mubr.msk.f32.mxu0 %vm100_vm1, %v5872_v62 }
 0x7c5   :  { %8138 = vmatmul.mubr.msk.f32.gmra.mrb[70].mxu0 %vm100_vm1, %v5873_v45 }
 0x7c6   :  { %8140 = vmatprep.mubr.msk.f32.mxu0 %vm100_vm1, %v5874_v60 }
 0x7c9   :  { %8141 = vmatmul.mubr.msk.f32.gmra.mrb[72].mxu0 %vm100_vm1, %v5875_v27 }
 0x7ca   :  { %8143 = vmatprep.mubr.msk.f32.mxu0 %vm100_vm1, %v5876_v38 }
 0x7cd   :  { %8144 = vmatmul.mubr.msk.f32.gmra.mrb[74].mxu0 %vm100_vm1, %v5877_v51 }
 0x7ce   :  { %8146 = vmatprep.mubr.msk.f32.mxu0 %vm100_vm1, %v5878_v29 }
 0x7d1   :  { %8147 = vmatmul.mubr.msk.f32.gmra.mrb[76].mxu0 %vm100_vm1, %v5879_v13 }
 0x7d2   :  { %8149 = vmatprep.mubr.msk.f32.mxu0 %vm100_vm1, %v5880_v11 }
 0x7d5   :  { %8150 = vmatmul.mubr.msk.f32.gmra.mrb[78].mxu0 %vm100_vm1, %v5881_v22 }
 0x7d6   :  { %8152 = vmatprep.mubr.msk.f32.mxu0 %vm100_vm1, %v5882_v25 }
 0x7d9   :  { %8153 = vmatmul.mubr.msk.f32.gmra.mrb[80].mxu0 %vm100_vm1, %v5883_v37 }
 0x7da   :  { %8155 = vmatprep.mubr.msk.f32.mxu0 %vm100_vm1, %v5884_v36 }
 0x7dd   :  { %8156 = vmatmul.mubr.msk.f32.gmra.mrb[82].mxu0 %vm100_vm1, %v5885_v41 }
 0x7de   :  { %8158 = vmatprep.mubr.msk.f32.mxu0 %vm100_vm1, %v5886_v19 }
 0x7e1   :  { %8159 = vmatmul.mubr.msk.f32.gmra.mrb[84].mxu0 %vm100_vm1, %v5887_v23 }
 0x7e2   :  { %8161 = vmatprep.mubr.msk.f32.mxu0 %vm100_vm1, %v5888_v7 }
 0x7e5   :  { %8162 = vmatmul.mubr.msk.f32.gmra.mrb[86].mxu0 %vm100_vm1, %v5889_v8 }
 0x7e6   :  { %8164 = vmatprep.mubr.msk.f32.mxu0 %vm100_vm1, %v5890_v15 }
 0x7e9   :  { %8165 = vmatmul.mubr.msk.f32.gmra.mrb[88].mxu0 %vm100_vm1, %v5891_v9 }
 0x7ea   :  { %8167 = vmatprep.mubr.msk.f32.mxu0 %vm100_vm1, %v5892_v0 }
 0x7ed   :  { %8168 = vmatmul.mubr.msk.f32.gmra.mrb[90].mxu0 %vm100_vm1, %v5893_v55 }
 0x7ee   :  { %8170 = vmatprep.mubr.msk.f32.mxu0 %vm100_vm1, %v5894_v61 }
 0x7f1   :  { %8171 = vmatmul.mubr.msk.f32.gmra.mrb[92].mxu0 %vm100_vm1, %v5895_v10 }
 0x7f2   :  { %8173 = vmatprep.mubr.msk.f32.mxu0 %vm100_vm1, %v5896_v6 }
 0x7f5   :  { %8174 = vmatmul.mubr.msk.f32.gmra.mrb[94].mxu0 %vm100_vm1, %v5897_v54 }
 0x84c   :  { %v13715_v24 = vpop.f32.mrb[32].mxu0 }
 0x84d   :  { %v6482_v52 = vsel %vm4187_vm5, %v13715_v24, 0.0  ;;  %v6615_v18 = vmul.f32 %v13715_v24, %v13715_v24  ;;  %v13721_v57 = vpop.f32.mrb[33].mxu0 }
 0x84e   :  { %v6481_v21 = vsel %vm4187_vm5, %v13721_v57, 0.0  ;;  %v6614_v46 = vmul.f32 %v13721_v57, %v13721_v57 }
 0x84f   :  { %v6679_v56 = vsel %vm4187_vm5, %v6615_v18, 0.0  ;;  %v6483_v63 = vadd.f32 %v6482_v52, %v6481_v21 }
 0x850   :  { %v6678_v4 = vsel %vm4187_vm5, %v6614_v46, 0.0  ;;  %v13729_v53 = vpop.f32.mrb[34].mxu0 }
 0x851   :  { %v6680_v42 = vadd.f32 %v6679_v56, %v6678_v4  ;;  %v13731_v26 = vpop.f32.mrb[35].mxu0  ;;  %v6617_v48 = vmul.f32 %v13729_v53, %v13729_v53  ;;  %v6486_v20 = vsel %vm4187_vm5, %v13729_v53, 0.0 }
 0x852   :  { %v6484_v5 = vsel %vm4187_vm5, %v13731_v26, 0.0  ;;  %v6616_v35 = vmul.f32 %v13731_v26, %v13731_v26 }
 0x853   :  { %v6485_v1 = vadd.f32 %v6484_v5, %v6483_v63  ;;  %v6683_v59 = vsel %vm4187_vm5, %v6617_v48, 0.0 }
 0x854   :  { %v6681_v50 = vsel %vm4187_vm5, %v6616_v35, 0.0  ;;  %v13742_v32 = vpop.f32.mrb[36].mxu0 }
 0x855   :  { %v6487_v28 = vadd.f32 %v6486_v20, %v6485_v1  ;;  %v6682_v39 = vadd.f32 %v6681_v50, %v6680_v42  ;;  %v13744_v49 = vpop.f32.mrb[37].mxu0  ;;  %v6619_v3 = vmul.f32 %v13742_v32, %v13742_v32  ;;  %v6490_v33 = vsel %vm4187_vm5, %v13742_v32, 0.0 }
 0x856   :  { %v6488_v58 = vsel %vm4187_vm5, %v13744_v49, 0.0  ;;  %v6618_v44 = vmul.f32 %v13744_v49, %v13744_v49 }
 0x857   :  { %v6489_v16 = vadd.f32 %v6488_v58, %v6487_v28  ;;  %v6684_v14 = vadd.f32 %v6683_v59, %v6682_v39  ;;  %v6687_v12 = vsel %vm4187_vm5, %v6619_v3, 0.0 }
 0x858   :  { %v6685_v30 = vsel %vm4187_vm5, %v6618_v44, 0.0  ;;  %v13756_v17 = vpop.f32.mrb[38].mxu0 }
 0x859   :  { %v6686_v47 = vadd.f32 %v6685_v30, %v6684_v14  ;;  %v13758_v40 = vpop.f32.mrb[39].mxu0  ;;  %v6491_v43 = vadd.f32 %v6490_v33, %v6489_v16  ;;  %v6621_v2 = vmul.f32 %v13756_v17, %v13756_v17  ;;  %v6494_v27 = vsel %vm4187_vm5, %v13756_v17, 0.0 }
 0x85a   :  { %v6492_v31 = vsel %vm4187_vm5, %v13758_v40, 0.0  ;;  %v6620_v62 = vmul.f32 %v13758_v40, %v13758_v40 }
 0x85b   :  { %v6493_v45 = vadd.f32 %v6492_v31, %v6491_v43  ;;  %v6688_v60 = vadd.f32 %v6687_v12, %v6686_v47  ;;  %v6691_v22 = vsel %vm4187_vm5, %v6621_v2, 0.0 }
 0x85c   :  { %v6689_v38 = vsel %vm4187_vm5, %v6620_v62, 0.0  ;;  %v13770_v51 = vpop.f32.mrb[40].mxu0 }
 0x85d   :  { %v6690_v29 = vadd.f32 %v6689_v38, %v6688_v60  ;;  %v13772_v13 = vpop.f32.mrb[41].mxu0  ;;  %v6495_v11 = vadd.f32 %v6494_v27, %v6493_v45  ;;  %v6623_v25 = vmul.f32 %v13770_v51, %v13770_v51  ;;  %v6498_v23 = vsel %vm4187_vm5, %v13770_v51, 0.0 }
 0x85e   :  { %v6496_v37 = vsel %vm4187_vm5, %v13772_v13, 0.0  ;;  %v6622_v36 = vmul.f32 %v13772_v13, %v13772_v13 }
 0x85f   :  { %v6497_v41 = vadd.f32 %v6496_v37, %v6495_v11  ;;  %v6692_v19 = vadd.f32 %v6691_v22, %v6690_v29  ;;  %v6695_v55 = vsel %vm4187_vm5, %v6623_v25, 0.0 }
 0x860   :  { %v6693_v7 = vsel %vm4187_vm5, %v6622_v36, 0.0  ;;  %v13784_v8 = vpop.f32.mrb[42].mxu0 }
 0x861   :  { %v6694_v15 = vadd.f32 %v6693_v7, %v6692_v19  ;;  %v13786_v9 = vpop.f32.mrb[43].mxu0  ;;  %v6499_v0 = vadd.f32 %v6498_v23, %v6497_v41  ;;  %v6625_v61 = vmul.f32 %v13784_v8, %v13784_v8  ;;  %v6502_v52 = vsel %vm4187_vm5, %v13784_v8, 0.0 }
 0x862   :  { %v6500_v10 = vsel %vm4187_vm5, %v13786_v9, 0.0  ;;  %v6624_v34 = vmul.f32 %v13786_v9, %v13786_v9 }
 0x863   :  { %v6501_v6 = vadd.f32 %v6500_v10, %v6499_v0  ;;  %v6696_v54 = vadd.f32 %v6695_v55, %v6694_v15  ;;  %v6699_v4 = vsel %vm4187_vm5, %v6625_v61, 0.0 }
 0x864   :  { %v6697_v18 = vsel %vm4187_vm5, %v6624_v34, 0.0  ;;  %v13798_v21 = vpop.f32.mrb[44].mxu0 }
 0x865   :  { %v6698_v46 = vadd.f32 %v6697_v18, %v6696_v54  ;;  %v13800_v56 = vpop.f32.mrb[45].mxu0  ;;  %v6503_v63 = vadd.f32 %v6502_v52, %v6501_v6  ;;  %v6627_v42 = vmul.f32 %v13798_v21, %v13798_v21  ;;  %v6506_v20 = vsel %vm4187_vm5, %v13798_v21, 0.0 }
 0x866   :  { %v6504_v48 = vsel %vm4187_vm5, %v13800_v56, 0.0  ;;  %v6626_v5 = vmul.f32 %v13800_v56, %v13800_v56 }
 0x867   :  { %v6505_v35 = vadd.f32 %v6504_v48, %v6503_v63  ;;  %v6700_v1 = vadd.f32 %v6699_v4, %v6698_v46  ;;  %v6703_v58 = vsel %vm4187_vm5, %v6627_v42, 0.0 }
 0x868   :  { %v6701_v50 = vsel %vm4187_vm5, %v6626_v5, 0.0  ;;  %v13812_v28 = vpop.f32.mrb[46].mxu0 }
 0x869   :  { %v6702_v39 = vadd.f32 %v6701_v50, %v6700_v1  ;;  %v13814_v59 = vpop.f32.mrb[47].mxu0  ;;  %v6507_v3 = vadd.f32 %v6506_v20, %v6505_v35  ;;  %v6629_v44 = vmul.f32 %v13812_v28, %v13812_v28  ;;  %v6510_v47 = vsel %vm4187_vm5, %v13812_v28, 0.0 }
 0x86a   :  { %v6508_v16 = vsel %vm4187_vm5, %v13814_v59, 0.0  ;;  %v6628_v14 = vmul.f32 %v13814_v59, %v13814_v59 }
 0x86b   :  { %v6509_v33 = vadd.f32 %v6508_v16, %v6507_v3  ;;  %v6704_v30 = vadd.f32 %v6703_v58, %v6702_v39  ;;  %v6707_v45 = vsel %vm4187_vm5, %v6629_v44, 0.0 }
 0x86c   :  { %v6705_v43 = vsel %vm4187_vm5, %v6628_v14, 0.0  ;;  %v13826_v12 = vpop.f32.mrb[48].mxu0 }
 0x86d   :  { %v6706_v2 = vadd.f32 %v6705_v43, %v6704_v30  ;;  %v13828_v31 = vpop.f32.mrb[49].mxu0  ;;  %v6511_v62 = vadd.f32 %v6510_v47, %v6509_v33  ;;  %v6631_v60 = vmul.f32 %v13826_v12, %v13826_v12  ;;  %v6514_v22 = vsel %vm4187_vm5, %v13826_v12, 0.0 }
 0x86e   :  { %v6512_v27 = vsel %vm4187_vm5, %v13828_v31, 0.0  ;;  %v6630_v38 = vmul.f32 %v13828_v31, %v13828_v31 }
 0x86f   :  { %v6513_v29 = vadd.f32 %v6512_v27, %v6511_v62  ;;  %v6708_v11 = vadd.f32 %v6707_v45, %v6706_v2  ;;  %v6711_v23 = vsel %vm4187_vm5, %v6631_v60, 0.0  ;;  %v13886_v27 = vpop.permute.xlu0 %7150 }
 0x870   :  { %v6709_v25 = vsel %vm4187_vm5, %v6630_v38, 0.0  ;;  %v13840_v37 = vpop.f32.mrb[50].mxu0  ;;  %16640 = vst [vmem:[#allocation184_spill] sm:$0xff] %v13886_v27 }
 0x871   :  { %v6710_v36 = vadd.f32 %v6709_v25, %v6708_v11  ;;  %v13842_v41 = vpop.f32.mrb[51].mxu0  ;;  %v6515_v19 = vadd.f32 %v6514_v22, %v6513_v29  ;;  %v6633_v7 = vmul.f32 %v13840_v37, %v13840_v37  ;;  %v6518_v10 = vsel %vm4187_vm5, %v13840_v37, 0.0  ;;  %v13895_v25 = vpop.permute.xlu1 %7152 }
 0x872   :  { %v6516_v15 = vsel %vm4187_vm5, %v13842_v41, 0.0  ;;  %v6632_v0 = vmul.f32 %v13842_v41, %v13842_v41  ;;  %16641 = vst [vmem:[#allocation85_spill] sm:$0xff] %v13895_v25 }
 0x873   :  { %v6517_v55 = vadd.f32 %v6516_v15, %v6515_v19  ;;  %v6712_v61 = vadd.f32 %v6711_v23, %v6710_v36  ;;  %v6715_v46 = vsel %vm4187_vm5, %v6633_v7, 0.0 }
 0x874   :  { %v6713_v34 = vsel %vm4187_vm5, %v6632_v0, 0.0  ;;  %v13854_v6 = vpop.f32.mrb[52].mxu0 }
 0x875   :  { %v6714_v54 = vadd.f32 %v6713_v34, %v6712_v61  ;;  %v13856_v52 = vpop.f32.mrb[53].mxu0  ;;  %v6519_v18 = vadd.f32 %v6518_v10, %v6517_v55  ;;  %v6635_v63 = vmul.f32 %v13854_v6, %v13854_v6  ;;  %v6522_v35 = vsel %vm4187_vm5, %v13854_v6, 0.0 }
 0x876   :  { %v6520_v4 = vsel %vm4187_vm5, %v13856_v52, 0.0  ;;  %v6634_v42 = vmul.f32 %v13856_v52, %v13856_v52 }
 0x877   :  { %v6521_v48 = vadd.f32 %v6520_v4, %v6519_v18  ;;  %v6716_v5 = vadd.f32 %v6715_v46, %v6714_v54  ;;  %v6719_v58 = vsel %vm4187_vm5, %v6635_v63, 0.0  ;;  %v13911_v4 = vpop.permute.xlu0 %7154 }
 0x878   :  { %v6717_v1 = vsel %vm4187_vm5, %v6634_v42, 0.0  ;;  %v13868_v20 = vpop.f32.mrb[54].mxu0  ;;  %16642 = vst [vmem:[#allocation134_spill] sm:$0xff] %v13911_v4 }
 0x879   :  { %v6718_v50 = vadd.f32 %v6717_v1, %v6716_v5  ;;  %v13870_v39 = vpop.f32.mrb[55].mxu0  ;;  %v6523_v3 = vadd.f32 %v6522_v35, %v6521_v48  ;;  %v6637_v44 = vmul.f32 %v13868_v20, %v13868_v20  ;;  %v6526_v47 = vsel %vm4187_vm5, %v13868_v20, 0.0  ;;  %v13918_v35 = vpop.permute.xlu1 %7156 }
 0x87a   :  { %v6524_v16 = vsel %vm4187_vm5, %v13870_v39, 0.0  ;;  %v6636_v14 = vmul.f32 %v13870_v39, %v13870_v39  ;;  %16643 = vst [vmem:[#allocation183_spill] sm:$0xff] %v13918_v35 }
 0x87b   :  { %v6525_v33 = vadd.f32 %v6524_v16, %v6523_v3  ;;  %v6720_v30 = vadd.f32 %v6719_v58, %v6718_v50  ;;  %v6723_v38 = vsel %vm4187_vm5, %v6637_v44, 0.0 }
 0x87c   :  { %v6721_v43 = vsel %vm4187_vm5, %v6636_v14, 0.0  ;;  %v13882_v2 = vpop.f32.mrb[56].mxu0 }
 0x87d   :  { %v6722_v62 = vadd.f32 %v6721_v43, %v6720_v30  ;;  %v13884_v45 = vpop.f32.mrb[57].mxu0  ;;  %v6527_v60 = vadd.f32 %v6526_v47, %v6525_v33  ;;  %v6639_v29 = vmul.f32 %v13882_v2, %v13882_v2  ;;  %v6530_v23 = vsel %vm4187_vm5, %v13882_v2, 0.0 }
 0x87e   :  { %v6528_v11 = vsel %vm4187_vm5, %v13884_v45, 0.0  ;;  %v6638_v22 = vmul.f32 %v13884_v45, %v13884_v45 }
 0x87f   :  { %v6529_v36 = vadd.f32 %v6528_v11, %v6527_v60  ;;  %v6724_v19 = vadd.f32 %v6723_v38, %v6722_v62  ;;  %v6727_v10 = vsel %vm4187_vm5, %v6639_v29, 0.0  ;;  %v13936_v11 = vpop.permute.xlu0 %7158 }
 0x880   :  { %v6725_v7 = vsel %vm4187_vm5, %v6638_v22, 0.0  ;;  %v13900_v15 = vpop.f32.mrb[58].mxu0  ;;  %16644 = vst [vmem:[#allocation88_spill] sm:$0xff] %v13936_v11 }
 0x881   :  { %v6726_v0 = vadd.f32 %v6725_v7, %v6724_v19  ;;  %v13902_v55 = vpop.f32.mrb[59].mxu0  ;;  %v6531_v61 = vadd.f32 %v6530_v23, %v6529_v36  ;;  %v6641_v34 = vmul.f32 %v13900_v15, %v13900_v15  ;;  %v6534_v42 = vsel %vm4187_vm5, %v13900_v15, 0.0  ;;  %v13945_v7 = vpop.permute.xlu1 %7160 }
 0x882   :  { %v6532_v54 = vsel %vm4187_vm5, %v13902_v55, 0.0  ;;  %v6640_v18 = vmul.f32 %v13902_v55, %v13902_v55  ;;  %16645 = vst [vmem:[#allocation137_spill] sm:$0xff] %v13945_v7 }
 0x883   :  { %v6533_v46 = vadd.f32 %v6532_v54, %v6531_v61  ;;  %v6728_v63 = vadd.f32 %v6727_v10, %v6726_v0  ;;  %v6731_v58 = vsel %vm4187_vm5, %v6641_v34, 0.0 }
 0x884   :  { %v6729_v48 = vsel %vm4187_vm5, %v6640_v18, 0.0  ;;  %v13916_v5 = vpop.f32.mrb[60].mxu0 }
 0x885   :  { %v6730_v1 = vadd.f32 %v6729_v48, %v6728_v63  ;;  %v13920_v50 = vpop.f32.mrb[61].mxu0  ;;  %v6535_v3 = vadd.f32 %v6534_v42, %v6533_v46  ;;  %v6643_v44 = vmul.f32 %v13916_v5, %v13916_v5  ;;  %v6538_v47 = vsel %vm4187_vm5, %v13916_v5, 0.0 }
 0x886   :  { %v6536_v16 = vsel %vm4187_vm5, %v13920_v50, 0.0  ;;  %v6642_v14 = vmul.f32 %v13920_v50, %v13920_v50 }
 0x887   :  { %v6537_v33 = vadd.f32 %v6536_v16, %v6535_v3  ;;  %v6732_v30 = vadd.f32 %v6731_v58, %v6730_v1  ;;  %v6735_v22 = vsel %vm4187_vm5, %v6643_v44, 0.0  ;;  %v13961_v16 = vpop.permute.xlu0 %7162 }
 0x888   :  { %v6733_v43 = vsel %vm4187_vm5, %v6642_v14, 0.0  ;;  %v13932_v62 = vpop.f32.mrb[62].mxu0  ;;  %16646 = vst [vmem:[#allocation186_spill] sm:$0xff] %v13961_v16 }
 0x889   :  { %v6734_v60 = vadd.f32 %v6733_v43, %v6732_v30  ;;  %v13934_v38 = vpop.f32.mrb[63].mxu0  ;;  %v6539_v29 = vadd.f32 %v6538_v47, %v6537_v33  ;;  %v6645_v36 = vmul.f32 %v13932_v62, %v13932_v62  ;;  %v6542_v10 = vsel %vm4187_vm5, %v13932_v62, 0.0  ;;  %v13968_v47 = vpop.permute.xlu1 %7164 }
 0x88a   :  { %v6540_v19 = vsel %vm4187_vm5, %v13934_v38, 0.0  ;;  %v6644_v23 = vmul.f32 %v13934_v38, %v13934_v38  ;;  %16647 = vst [vmem:[#allocation87_spill] sm:$0xff] %v13968_v47 }
 0x88b   :  { %v6541_v0 = vadd.f32 %v6540_v19, %v6539_v29  ;;  %v6736_v61 = vadd.f32 %v6735_v22, %v6734_v60  ;;  %v6739_v42 = vsel %vm4187_vm5, %v6645_v36, 0.0 }
 0x88c   :  { %v6737_v34 = vsel %vm4187_vm5, %v6644_v23, 0.0  ;;  %v13950_v54 = vpop.f32.mrb[64].mxu0 }
 0x88d   :  { %v6738_v18 = vadd.f32 %v6737_v34, %v6736_v61  ;;  %v13952_v46 = vpop.f32.mrb[65].mxu0  ;;  %v6543_v63 = vadd.f32 %v6542_v10, %v6541_v0  ;;  %v6647_v48 = vmul.f32 %v13950_v54, %v13950_v54  ;;  %v6546_v14 = vsel %vm4187_vm5, %v13950_v54, 0.0 }
 0x88e   :  { %v6544_v1 = vsel %vm4187_vm5, %v13952_v46, 0.0  ;;  %v6646_v3 = vmul.f32 %v13952_v46, %v13952_v46 }
 0x88f   :  { %v6545_v58 = vadd.f32 %v6544_v1, %v6543_v63  ;;  %v6740_v44 = vadd.f32 %v6739_v42, %v6738_v18  ;;  %v6743_v22 = vsel %vm4187_vm5, %v6647_v48, 0.0  ;;  %v13986_v1 = vpop.permute.xlu0 %7166 }
 0x890   :  { %v6741_v33 = vsel %vm4187_vm5, %v6646_v3, 0.0  ;;  %v13966_v30 = vpop.f32.mrb[66].mxu0  ;;  %16648 = vst [vmem:[#allocation136_spill] sm:$0xff] %v13986_v1 }
 0x891   :  { %v6742_v43 = vadd.f32 %v6741_v33, %v6740_v44  ;;  %v13970_v60 = vpop.f32.mrb[67].mxu0  ;;  %v6547_v29 = vadd.f32 %v6546_v14, %v6545_v58  ;;  %v6649_v36 = vmul.f32 %v13966_v30, %v13966_v30  ;;  %v6550_v10 = vsel %vm4187_vm5, %v13966_v30, 0.0  ;;  %v13995_v33 = vpop.permute.xlu1 %7168 }
 0x892   :  { %v6548_v19 = vsel %vm4187_vm5, %v13970_v60, 0.0  ;;  %v6648_v23 = vmul.f32 %v13970_v60, %v13970_v60  ;;  %16649 = vst [vmem:[#allocation185_spill] sm:$0xff] %v13995_v33 }
 0x893   :  { %v6549_v0 = vadd.f32 %v6548_v19, %v6547_v29  ;;  %v6744_v61 = vadd.f32 %v6743_v22, %v6742_v43  ;;  %v6747_v3 = vsel %vm4187_vm5, %v6649_v36, 0.0 }
 0x894   :  { %v6745_v34 = vsel %vm4187_vm5, %v6648_v23, 0.0  ;;  %v13982_v18 = vpop.f32.mrb[68].mxu0 }
 0x895   :  { %v6746_v63 = vadd.f32 %v6745_v34, %v6744_v61  ;;  %v13984_v42 = vpop.f32.mrb[69].mxu0  ;;  %v6551_v48 = vadd.f32 %v6550_v10, %v6549_v0  ;;  %v6651_v58 = vmul.f32 %v13982_v18, %v13982_v18  ;;  %v6554_v22 = vsel %vm4187_vm5, %v13982_v18, 0.0 }
 0x896   :  { %v6552_v44 = vsel %vm4187_vm5, %v13984_v42, 0.0  ;;  %v6650_v14 = vmul.f32 %v13984_v42, %v13984_v42 }
 0x897   :  { %v6553_v43 = vadd.f32 %v6552_v44, %v6551_v48  ;;  %v6748_v29 = vadd.f32 %v6747_v3, %v6746_v63  ;;  %v6751_v10 = vsel %vm4187_vm5, %v6651_v58, 0.0  ;;  %v14018_v58 = vpop.permute.xlu1 %7172 }
 0x898   :  { %v6749_v19 = vsel %vm4187_vm5, %v6650_v14, 0.0  ;;  %v14000_v23 = vpop.f32.mrb[70].mxu0  ;;  %v14011_v14 = vpop.permute.xlu0 %7170  ;;  %16651 = vst [vmem:[#allocation139_spill] sm:$0xff] %v14018_v58 }
 0x899   :  { %v6750_v36 = vadd.f32 %v6749_v19, %v6748_v29  ;;  %v14002_v0 = vpop.f32.mrb[71].mxu0  ;;  %v6555_v61 = vadd.f32 %v6554_v22, %v6553_v43  ;;  %v6653_v34 = vmul.f32 %v14000_v23, %v14000_v23  ;;  %16650 = vst [vmem:[#allocation90_spill] sm:$0xff] %v14011_v14  ;;  %v6558_v29 = vsel %vm4187_vm5, %v14000_v23, 0.0 }
 0x89a   :  { %v6556_v48 = vsel %vm4187_vm5, %v14002_v0, 0.0  ;;  %v6652_v63 = vmul.f32 %v14002_v0, %v14002_v0 }
 0x89b   :  { %v6557_v3 = vadd.f32 %v6556_v48, %v6555_v61  ;;  %v6752_v44 = vadd.f32 %v6751_v10, %v6750_v36  ;;  %v6755_v47 = vsel %vm4187_vm5, %v6653_v34, 0.0 }
 0x89c   :  { %v6753_v43 = vsel %vm4187_vm5, %v6652_v63, 0.0  ;;  %v14016_v22 = vpop.f32.mrb[72].mxu0  ;;  %v14036_v14 = vpop.permute.xlu0 %7174 }
 0x89d   :  { %v6754_v19 = vadd.f32 %v6753_v43, %v6752_v44  ;;  %v14020_v33 = vpop.f32.mrb[73].mxu0  ;;  %v6559_v1 = vadd.f32 %v6558_v29, %v6557_v3  ;;  %v6655_v36 = vmul.f32 %v14016_v22, %v14016_v22  ;;  %v6562_v58 = vsel %vm4187_vm5, %v14016_v22, 0.0  ;;  %16654 = vst [vmem:[#allocation68_spill] sm:$0xff] %v14036_v14 }
 0x89e   :  { %v6560_v61 = vsel %vm4187_vm5, %v14020_v33, 0.0  ;;  %v6654_v10 = vmul.f32 %v14020_v33, %v14020_v33 }
 0x89f   :  { %v6561_v48 = vadd.f32 %v6560_v61, %v6559_v1  ;;  %v6756_v63 = vadd.f32 %v6755_v47, %v6754_v19  ;;  %v6759_v16 = vsel %vm4187_vm5, %v6655_v36, 0.0  ;;  %v14045_v19 = vpop.permute.xlu1 %7176 }
 0x8a0   :  { %v6757_v44 = vsel %vm4187_vm5, %v6654_v10, 0.0  ;;  %v14032_v43 = vpop.f32.mrb[74].mxu0  ;;  %16655 = vst [vmem:[#allocation70_spill] sm:$0xff] %v14045_v19 }
 0x8a1   :  { %16652 = vst [vmem:[#allocation188_spill] sm:$0xff] %v14032_v43  ;;  %v6758_v3 = vadd.f32 %v6757_v44, %v6756_v63  ;;  %v14034_v34 = vpop.f32.mrb[75].mxu0  ;;  %v6563_v29 = vadd.f32 %v6562_v58, %v6561_v48  ;;  %v6657_v7 = vmul.f32 %v14032_v43, %v14032_v43  ;;  %v6566_v58 = vsel %vm4187_vm5, %v14032_v43, 0.0 }
 0x8a2   :  { %16653 = vst [vmem:[#allocation67_spill] sm:$0xff] %v14034_v34  ;;  %v6564_v47 = vsel %vm4187_vm5, %v14034_v34, 0.0  ;;  %v6656_v1 = vmul.f32 %v14034_v34, %v14034_v34 }
 0x8a3   :  { %v6565_v61 = vadd.f32 %v6564_v47, %v6563_v29  ;;  %v6760_v10 = vadd.f32 %v6759_v16, %v6758_v3  ;;  %v6763_v11 = vsel %vm4187_vm5, %v6657_v7, 0.0  ;;  %v14068_v7 = vpop.permute.xlu1 %7180 }
 0x8a4   :  { %v6761_v48 = vsel %vm4187_vm5, %v6656_v1, 0.0  ;;  %v14050_v63 = vpop.f32.mrb[76].mxu0  ;;  %v14061_v1 = vpop.permute.xlu0 %7178  ;;  %16660 = vst [vmem:[#allocation92_spill] sm:$0xff] %v14068_v7 }
 0x8a5   :  { %16656 = vst [vmem:[#allocation190_spill] sm:$0xff] %v14050_v63  ;;  %v6762_v36 = vadd.f32 %v6761_v48, %v6760_v10  ;;  %v14052_v44 = vpop.f32.mrb[77].mxu0  ;;  %v6567_v14 = vadd.f32 %v6566_v58, %v6565_v61  ;;  %v6659_v35 = vmul.f32 %v14050_v63, %v14050_v63  ;;  %16658 = vst [vmem:[#allocation187_spill] sm:$0xff] %v14061_v1  ;;  %v6570_v10 = vsel %vm4187_vm5, %v14050_v63, 0.0 }
 0x8a6   :  { %16657 = vst [vmem:[#allocation69_spill] sm:$0xff] %v14052_v44  ;;  %v6568_v29 = vsel %vm4187_vm5, %v14052_v44, 0.0  ;;  %v6658_v16 = vmul.f32 %v14052_v44, %v14052_v44 }
 0x8a7   :  { %v6569_v3 = vadd.f32 %v6568_v29, %v6567_v14  ;;  %v6764_v47 = vadd.f32 %v6763_v11, %v6762_v36  ;;  %v6767_v25 = vsel %vm4187_vm5, %v6659_v35, 0.0 }
 0x8a8   :  { %v6765_v61 = vsel %vm4187_vm5, %v6658_v16, 0.0  ;;  %v14066_v58 = vpop.f32.mrb[78].mxu0  ;;  %v14086_v1 = vpop.permute.xlu0 %7182 }
 0x8a9   :  { %16659 = vst [vmem:[#allocation89_spill] sm:$0xff] %v14066_v58  ;;  %v6766_v48 = vadd.f32 %v6765_v61, %v6764_v47  ;;  %v14070_v19 = vpop.f32.mrb[79].mxu0  ;;  %v6571_v4 = vadd.f32 %v6570_v10, %v6569_v3  ;;  %v6661_v11 = vmul.f32 %v14066_v58, %v14066_v58  ;;  %v6574_v7 = vsel %vm4187_vm5, %v14066_v58, 0.0  ;;  %16664 = vst [vmem:[#allocation91_spill] sm:$0xff] %v14086_v1 }
 0x8aa   :  { %16661 = vst [vmem:[#allocation138_spill] sm:$0xff] %v14070_v19  ;;  %v6572_v14 = vsel %vm4187_vm5, %v14070_v19, 0.0  ;;  %v6660_v36 = vmul.f32 %v14070_v19, %v14070_v19 }
 0x8ab   :  { %v6573_v29 = vadd.f32 %v6572_v14, %v6571_v4  ;;  %v6768_v16 = vadd.f32 %v6767_v25, %v6766_v48  ;;  %v6771_v27 = vsel %vm4187_vm5, %v6661_v11, 0.0  ;;  %v14095_v48 = vpop.permute.xlu1 %7184 }
 0x8ac   :  { %v6769_v47 = vsel %vm4187_vm5, %v6660_v36, 0.0  ;;  %v14082_v61 = vpop.f32.mrb[80].mxu0  ;;  %16665 = vst [vmem:[#allocation94_spill] sm:$0xff] %v14095_v48 }
 0x8ad   :  { %16662 = vst [vmem:[#allocation141_spill] sm:$0xff] %v14082_v61  ;;  %v6770_v3 = vadd.f32 %v6769_v47, %v6768_v16  ;;  %v14084_v35 = vpop.f32.mrb[81].mxu0  ;;  %v6575_v10 = vadd.f32 %v6574_v7, %v6573_v29  ;;  %v6663_v19 = vmul.f32 %v14082_v61, %v14082_v61  ;;  %v6578_v7 = vsel %vm4187_vm5, %v14082_v61, 0.0 }
 0x8ae   :  { %16663 = vst [vmem:[#allocation189_spill] sm:$0xff] %v14084_v35  ;;  %v6576_v25 = vsel %vm4187_vm5, %v14084_v35, 0.0  ;;  %v6662_v4 = vmul.f32 %v14084_v35, %v14084_v35 }
 0x8af   :  { %v6577_v14 = vadd.f32 %v6576_v25, %v6575_v10  ;;  %v6772_v36 = vadd.f32 %v6771_v27, %v6770_v3  ;;  %v6775_v58 = vsel %vm4187_vm5, %v6663_v19, 0.0  ;;  %v14118_v19 = vpop.permute.xlu1 %7188 }
 0x8b0   :  { %v6773_v29 = vsel %vm4187_vm5, %v6662_v4, 0.0  ;;  %v14100_v16 = vpop.f32.mrb[82].mxu0  ;;  %v14111_v4 = vpop.permute.xlu0 %7186  ;;  %16670 = vst [vmem:[#allocation142_spill] sm:$0xff] %v14118_v19 }
 0x8b1   :  { %16666 = vst [vmem:[#allocation140_spill] sm:$0xff] %v14100_v16  ;;  %v6774_v11 = vadd.f32 %v6773_v29, %v6772_v36  ;;  %v14102_v47 = vpop.f32.mrb[83].mxu0  ;;  %v6579_v1 = vadd.f32 %v6578_v7, %v6577_v14  ;;  %v6665_v35 = vmul.f32 %v14100_v16, %v14100_v16  ;;  %16668 = vst [vmem:[#allocation93_spill] sm:$0xff] %v14111_v4  ;;  %v6582_v36 = vsel %vm4187_vm5, %v14100_v16, 0.0 }
 0x8b2   :  { %16667 = vst [vmem:[#allocation143_spill] sm:$0xff] %v14102_v47  ;;  %v6580_v10 = vsel %vm4187_vm5, %v14102_v47, 0.0  ;;  %v6664_v27 = vmul.f32 %v14102_v47, %v14102_v47 }
 0x8b3   :  { %v6581_v3 = vadd.f32 %v6580_v10, %v6579_v1  ;;  %v6776_v25 = vadd.f32 %v6775_v58, %v6774_v11  ;;  %v6779_v63 = vsel %vm4187_vm5, %v6665_v35, 0.0 }
 0x8b4   :  { %v6777_v14 = vsel %vm4187_vm5, %v6664_v27, 0.0  ;;  %v14116_v7 = vpop.f32.mrb[84].mxu0  ;;  %v14136_v4 = vpop.permute.xlu0 %7190 }
 0x8b5   :  { %16669 = vst [vmem:[#allocation96_spill] sm:$0xff] %v14116_v7  ;;  %v6778_v29 = vadd.f32 %v6777_v14, %v6776_v25  ;;  %v14120_v48 = vpop.f32.mrb[85].mxu0  ;;  %v6583_v61 = vadd.f32 %v6582_v36, %v6581_v3  ;;  %v6667_v1 = vmul.f32 %v14116_v7, %v14116_v7  ;;  %v6586_v19 = vsel %vm4187_vm5, %v14116_v7, 0.0  ;;  %16674 = vst [vmem:[#allocation144_spill] sm:$0xff] %v14136_v4 }
 0x8b6   :  { %16671 = vst [vmem:[#allocation145_spill] sm:$0xff] %v14120_v48  ;;  %v6584_v58 = vsel %vm4187_vm5, %v14120_v48, 0.0  ;;  %v6666_v11 = vmul.f32 %v14120_v48, %v14120_v48 }
 0x8b7   :  { %v6585_v10 = vadd.f32 %v6584_v58, %v6583_v61  ;;  %v6780_v27 = vadd.f32 %v6779_v63, %v6778_v29  ;;  %v6783_v16 = vsel %vm4187_vm5, %v6667_v1, 0.0  ;;  %v14145_v29 = vpop.permute.xlu1 %7192 }
 0x8b8   :  { %v6781_v25 = vsel %vm4187_vm5, %v6666_v11, 0.0  ;;  %v14132_v14 = vpop.f32.mrb[86].mxu0  ;;  %16675 = vst [vmem:[#allocation147_spill] sm:$0xff] %v14145_v29 }
 0x8b9   :  { %16672 = vst [vmem:[#allocation95_spill] sm:$0xff] %v14132_v14  ;;  %v6782_v3 = vadd.f32 %v6781_v25, %v6780_v27  ;;  %v14134_v35 = vpop.f32.mrb[87].mxu0  ;;  %v6587_v36 = vadd.f32 %v6586_v19, %v6585_v10  ;;  %v6669_v48 = vmul.f32 %v14132_v14, %v14132_v14  ;;  %v6590_v19 = vsel %vm4187_vm5, %v14132_v14, 0.0 }
 0x8ba   :  { %16673 = vst [vmem:[#allocation98_spill] sm:$0xff] %v14134_v35  ;;  %v6588_v63 = vsel %vm4187_vm5, %v14134_v35, 0.0  ;;  %v6668_v61 = vmul.f32 %v14134_v35, %v14134_v35 }
 0x8bb   :  { %v6589_v58 = vadd.f32 %v6588_v63, %v6587_v36  ;;  %v6784_v11 = vadd.f32 %v6783_v16, %v6782_v3  ;;  %v6787_v7 = vsel %vm4187_vm5, %v6669_v48, 0.0  ;;  %v14168_v48 = vpop.permute.xlu1 %7196 }
 0x8bc   :  { %v6785_v10 = vsel %vm4187_vm5, %v6668_v61, 0.0  ;;  %v14150_v27 = vpop.f32.mrb[88].mxu0  ;;  %v14161_v61 = vpop.permute.xlu0 %7194  ;;  %16680 = vst [vmem:[#allocation99_spill] sm:$0xff] %v14168_v48 }
 0x8bd   :  { %16676 = vst [vmem:[#allocation97_spill] sm:$0xff] %v14150_v27  ;;  %v6786_v1 = vadd.f32 %v6785_v10, %v6784_v11  ;;  %v14152_v25 = vpop.f32.mrb[89].mxu0  ;;  %v6591_v4 = vadd.f32 %v6590_v19, %v6589_v58  ;;  %v6671_v35 = vmul.f32 %v14150_v27, %v14150_v27  ;;  %16678 = vst [vmem:[#allocation146_spill] sm:$0xff] %v14161_v61  ;;  %v6594_v11 = vsel %vm4187_vm5, %v14150_v27, 0.0 }
 0x8be   :  { %16677 = vst [vmem:[#allocation100_spill] sm:$0xff] %v14152_v25  ;;  %v6592_v36 = vsel %vm4187_vm5, %v14152_v25, 0.0  ;;  %v6670_v16 = vmul.f32 %v14152_v25, %v14152_v25 }
 0x8bf   :  { %v6593_v3 = vadd.f32 %v6592_v36, %v6591_v4  ;;  %v6788_v63 = vadd.f32 %v6787_v7, %v6786_v1  ;;  %v6791_v47 = vsel %vm4187_vm5, %v6671_v35, 0.0 }
 0x8c0   :  { %v6789_v58 = vsel %vm4187_vm5, %v6670_v16, 0.0  ;;  %v14166_v19 = vpop.f32.mrb[90].mxu0 }
 0x8c1   :  { %16679 = vst [vmem:[#allocation149_spill] sm:$0xff] %v14166_v19  ;;  %v6790_v10 = vadd.f32 %v6789_v58, %v6788_v63  ;;  %v14170_v29 = vpop.f32.mrb[91].mxu0  ;;  %v6595_v14 = vadd.f32 %v6594_v11, %v6593_v3  ;;  %v6673_v4 = vmul.f32 %v14166_v19, %v14166_v19  ;;  %v6598_v48 = vsel %vm4187_vm5, %v14166_v19, 0.0 }
 0x8c2   :  { %16681 = vst [vmem:[#allocation102_spill] sm:$0xff] %v14170_v29  ;;  %v6596_v7 = vsel %vm4187_vm5, %v14170_v29, 0.0  ;;  %v6672_v1 = vmul.f32 %v14170_v29, %v14170_v29 }
 0x8c3   :  { %v6597_v36 = vadd.f32 %v6596_v7, %v6595_v14  ;;  %v6792_v16 = vadd.f32 %v6791_v47, %v6790_v10  ;;  %v6795_v61 = vsel %vm4187_vm5, %v6673_v4, 0.0  ;;  %v14193_v10 = vpop.permute.xlu0 %7198  ;;  %v14195_v7 = vpop.permute.xlu1 %7200 }
 0x8c4   :  { %v6793_v63 = vsel %vm4187_vm5, %v6672_v1, 0.0  ;;  %v14182_v58 = vpop.f32.mrb[92].mxu0  ;;  %16684 = vst [vmem:[#allocation101_spill] sm:$0xff] %v14193_v10  ;;  %16685 = vst [vmem:[#allocation104_spill] sm:$0xff] %v14195_v7 }
 0x8c5   :  { %16682 = vst [vmem:[#allocation148_spill] sm:$0xff] %v14182_v58  ;;  %v6794_v3 = vadd.f32 %v6793_v63, %v6792_v16  ;;  %v14184_v35 = vpop.f32.mrb[93].mxu0  ;;  %v6599_v11 = vadd.f32 %v6598_v48, %v6597_v36  ;;  %v6675_v27 = vmul.f32 %v14182_v58, %v14182_v58  ;;  %v6602_v48 = vsel %vm4187_vm5, %v14182_v58, 0.0 }
 0x8c6   :  { %16683 = vst [vmem:[#allocation151_spill] sm:$0xff] %v14184_v35  ;;  %v6600_v14 = vsel %vm4187_vm5, %v14184_v35, 0.0  ;;  %v6674_v47 = vmul.f32 %v14184_v35, %v14184_v35 }
 0x8c7   :  { %v6601_v1 = vadd.f32 %v6600_v14, %v6599_v11  ;;  %v6796_v16 = vadd.f32 %v6795_v61, %v6794_v3  ;;  %v6799_v25 = vsel %vm4187_vm5, %v6675_v27, 0.0 }
 0x8c8   :  { %v6797_v4 = vsel %vm4187_vm5, %v6674_v47, 0.0  ;;  %v14200_v36 = vpop.f32.mrb[94].mxu0 }
 0x8c9   :  { %16686 = vst [vmem:[#allocation150_spill] sm:$0xff] %v14200_v36  ;;  %v6798_v63 = vadd.f32 %v6797_v4, %v6796_v16  ;;  %v14202_v19 = vpop.f32.mrb[95].mxu0  ;;  %v6603_v29 = vadd.f32 %v6602_v48, %v6601_v1  ;;  %v6677_v10 = vmul.f32 %v14200_v36, %v14200_v36  ;;  %v6606_v47 = vsel %vm4187_vm5, %v14200_v36, 0.0  ;;  %v14214_v4 = vpop.permute.xlu0 %7202 }
 0x8ca   :  { %16687 = vst [vmem:[#allocation153_spill] sm:$0xff] %v14202_v19  ;;  %v6604_v11 = vsel %vm4187_vm5, %v14202_v19, 0.0  ;;  %v6676_v61 = vmul.f32 %v14202_v19, %v14202_v19  ;;  %16688 = vst [vmem:[#allocation103_spill] sm:$0xff] %v14214_v4  ;;  %v14216_v1 = vpop.permute.xlu1 %7204 }
 0x8cb   :  { %v6605_v3 = vadd.f32 %v6604_v11, %v6603_v29  ;;  %v6800_v14 = vadd.f32 %v6799_v25, %v6798_v63  ;;  %16689 = vst [vmem:[#allocation106_spill] sm:$0xff] %v14216_v1  ;;  %v6803_v7 = vsel %vm4187_vm5, %v6677_v10, 0.0  ;;  %v16717_v1 = vld [vmem:[#allocation149_spill] sm:$0xff] }
 0x8cc   :  { %v6801_v16 = vsel %vm4187_vm5, %v6676_v61, 0.0 }
 0x8cd   :  { %v6607_v27 = vadd.f32 %v6606_v47, %v6605_v3  ;;  %v6802_v48 = vadd.f32 %v6801_v16, %v6800_v14  ;;  %v14219_v19 = vpop.permute.xlu0 %7206 }
 0x8ce   :  { %16690 = vst [vmem:[#allocation152_spill] sm:$0xff] %v14219_v19  ;;  %v14221_v29 = vpop.permute.xlu1 %7208 }
 0x8cf   :  { %v6608_v58 = vrot.slane %v6607_v27, 4  ;;  %v6804_v35 = vadd.f32 %v6803_v7, %v6802_v48  ;;  %16691 = vst [vmem:[#allocation155_spill] sm:$0xff] %v14221_v29  ;;  %v16715_v29 = vld [vmem:[#allocation97_spill] sm:$0xff] }
 0x8d1   :  { %v6609_v44 = vadd.f32 %v6608_v58, %v6607_v27  ;;  %v6805_v43 = vrot.slane %v6804_v35, 4  ;;  %v14223_v34 = vpop.permute.xlu0 %7210  ;;  %v16701_v27 = vld [vmem:[#allocation190_spill] sm:$0xff] }
 0x8d2   :  { %16692 = vst [vmem:[#allocation105_spill] sm:$0xff] %v14223_v34  ;;  %v14225_v3 = vpop.permute.xlu1 %7212 }
 0x8d3   :  { %v6610_v25 = vrot.slane %v6609_v44, 2  ;;  %v6806_v63 = vadd.f32 %v6805_v43, %v6804_v35  ;;  %16693 = vst [vmem:[#allocation108_spill] sm:$0xff] %v14225_v3  ;;  %v16719_v35 = vld [vmem:[#allocation148_spill] sm:$0xff]  ;;  %v16721_v43 = vld [vmem:[#allocation150_spill] sm:$0xff] }
 0x8d5   :  { %v6611_v11 = vadd.f32 %v6610_v25, %v6609_v44  ;;  %v6807_v61 = vrot.slane %v6806_v63, 2  ;;  %v14247_v48 = vpop.permute.xlu0 %7214  ;;  %v16720_v44 = vld [vmem:[#allocation153_spill] sm:$0xff] }
 0x8d6   :  { %16694 = vst [vmem:[#allocation154_spill] sm:$0xff] %v14247_v48  ;;  %v14249_v25 = vpop.permute.xlu1 %7216 }
 0x8d7   :  { %v6612_v36 = vrot.slane %v6611_v11, 1  ;;  %v6808_v4 = vadd.f32 %v6807_v61, %v6806_v63  ;;  %16695 = vst [vmem:[#allocation157_spill] sm:$0xff] %v14249_v25  ;;  %v14388_v25 = vld [vmem:[%s15720_s8] ss:$0 sm:$0xff] }
 0x8d9   :  { %v6613_v14 = vadd.f32 %v6612_v36, %v6611_v11  ;;  %v6809_v10 = vrot.slane %v6808_v4, 1  ;;  %v14297_v36 = vpop.permute.xlu0 %7218  ;;  %v16718_v11 = vld [vmem:[#allocation151_spill] sm:$0xff] }
 0x8da   :  { %16696 = vst [vmem:[#allocation107_spill] sm:$0xff] %v14297_v36  ;;  %v14299_v61 = vpop.permute.xlu1 %7220 }
 0x8db   :  { %v6810_v47 = vadd.f32 %v6809_v10, %v6808_v4  ;;  %v14227_v7 = vmul.f32 0.001953125, %v6613_v14  ;;  %16697 = vst [vmem:[#allocation110_spill] sm:$0xff] %v14299_v61  ;;  %v16698_v14 = vld [vmem:[#allocation67_spill] sm:$0xff]  ;;  %v16699_v10 = vld [vmem:[#allocation188_spill] sm:$0xff] }
 0x8dd   :  { %v14229_v58 = vmul.f32 0.001953125, %v6810_v47  ;;  %v14233_v16 = vmul.f32 %v14227_v7, %v14227_v7  ;;  %v16700_v47 = vld [vmem:[#allocation69_spill] sm:$0xff]  ;;  %v14349_v19 = vpop.permute.xlu0 %7222  ;;  %v16727_v34 = vsub.f32 %v13721_v57, %v14227_v7 }
 0x8de   :  { %16708 = vst [vmem:[#allocation156_spill] sm:$0xff] %v14349_v19  ;;  %v14351_v61 = vpop.permute.xlu1 %7224 }
 0x8df   :  { %16709 = vst [vmem:[#allocation159_spill] sm:$0xff] %v14351_v61  ;;  %v16726_v48 = vsub.f32 %v14229_v58, %v14233_v16  ;;  %v14397_v36 = vmul.f32 %v14388_v25, %v16727_v34  ;;  %v16730_v58 = vsub.f32 %v13729_v53, %v14227_v7  ;;  %v16731_v34 = vsub.f32 %v13744_v49, %v14227_v7 }
 0x8e0   :  { %v16732_v16 = vsub.f32 %v13742_v32, %v14227_v7 }
 0x8e1   :  { %v14377_v4 = vpop.permute.xlu0 %7226  ;;  %v6815_v3 = vmax.f32 %v16726_v48, 0.0  ;;  %v14415_v57 = vmul.f32 %v14388_v25, %v16730_v58  ;;  %v16734_v48 = vsub.f32 %v13756_v17, %v14227_v7  ;;  %v16736_v58 = vsub.f32 %v13770_v51, %v14227_v7 }
 0x8e2   :  { %16722 = vst [vmem:[#allocation15_spill] sm:$0xff] %v14377_v4  ;;  %v14379_v19 = vpop.permute.xlu1 %7228  ;;  %v16739_v17 = vsub.f32 %v13786_v9, %v14227_v7  ;;  %v16741_v51 = vsub.f32 %v13800_v56, %v14227_v7 }
 0x8e3   :  { %16723 = vst [vmem:[#allocation19_spill] sm:$0xff] %v14379_v19  ;;  %v16729_v19 = vsub.f32 %v13731_v26, %v14227_v7  ;;  %v14427_v26 = vmul.f32 %v14388_v25, %v16732_v16  ;;  %v14439_v49 = vmul.f32 %v14388_v25, %v16734_v48 }
 0x8e5   :  { %v14381_v63 = vpop.permute.xlu0 %7230  ;;  %v14409_v4 = vmul.f32 %v14388_v25, %v16729_v19  ;;  %v16733_v19 = vsub.f32 %v13758_v40, %v14227_v7  ;;  %v14451_v40 = vmul.f32 %v14388_v25, %v16736_v58  ;;  %v16742_v58 = vsub.f32 %v13798_v21, %v14227_v7 }
 0x8e6   :  { %16724 = vst [vmem:[#allocation20_spill] sm:$0xff] %v14381_v63  ;;  %v14383_v61 = vpop.permute.xlu1 %7232  ;;  %v16728_v63 = vsub.f32 %v13715_v24, %v14227_v7  ;;  %v14421_v24 = vmul.f32 %v14388_v25, %v16731_v34 }
 0x8e7   :  { %16725 = vst [vmem:[#allocation14_spill] sm:$0xff] %v14383_v61  ;;  %v14433_v53 = vmul.f32 %v14388_v25, %v16733_v19  ;;  %v14461_v19 = vmul.f32 %v14388_v25, %v16739_v17  ;;  %v14479_v9 = vmul.f32 %v14388_v25, %v16742_v58  ;;  %v16743_v17 = vsub.f32 %v13814_v59, %v14227_v7 }
 0x8e8   :  { %v14403_v61 = vmul.f32 %v14388_v25, %v16728_v63  ;;  %v16735_v63 = vsub.f32 %v13772_v13, %v14227_v7  ;;  %v16740_v13 = vsub.f32 %v13784_v8, %v14227_v7  ;;  %v6950_v58 = vadd.f32 1e-05, %v6815_v3 }
 0x8e9   :  { %v14453_v34 = vpop.permute.xlu0 %7234  ;;  %v14485_v8 = vmul.f32 %v14388_v25, %v16743_v17  ;;  %v16747_v17 = vsub.f32 %v13842_v41, %v14227_v7  ;;  %v16749_v3 = vsub.f32 %v13856_v52, %v14227_v7 }
 0x8ea   :  { %v14445_v32 = vmul.f32 %v14388_v25, %v16735_v63  ;;  %16737 = vst [vmem:[#allocation22_spill] sm:$0xff] %v14453_v34  ;;  %v14455_v16 = vpop.permute.xlu1 %7236  ;;  %v14467_v48 = vmul.f32 %v14388_v25, %v16740_v13  ;;  %v14473_v63 = vmul.f32 %v14388_v25, %v16741_v51  ;;  %v16744_v13 = vsub.f32 %v13812_v28, %v14227_v7 }
 0x8eb   :  { %16738 = vst [vmem:[#allocation18_spill] sm:$0xff] %v14455_v16  ;;  %v16745_v51 = vsub.f32 %v13828_v31, %v14227_v7  ;;  %v16746_v16 = vsub.f32 %v13826_v12, %v14227_v7  ;;  %v14509_v28 = vmul.f32 %v14388_v25, %v16747_v17  ;;  %v14521_v12 = vmul.f32 %v14388_v25, %v16749_v3 }
 0x8ec   :  { %v14491_v56 = vmul.f32 %v14388_v25, %v16744_v13  ;;  %v16748_v13 = vsub.f32 %v13840_v37, %v14227_v7  ;;  %v16752_v17 = vsub.f32 %v13868_v20, %v14227_v7  ;;  %8200 = vrsqrt.f32 %v6950_v58 }
 0x8ed   :  { %v14497_v21 = vmul.f32 %v14388_v25, %v16745_v51  ;;  %v14503_v59 = vmul.f32 %v14388_v25, %v16746_v16  ;;  %v16750_v16 = vsub.f32 %v13854_v6, %v14227_v7  ;;  %v16751_v51 = vsub.f32 %v13870_v39, %v14227_v7 }
 0x8ee   :  { %v14515_v31 = vmul.f32 %v14388_v25, %v16748_v13  ;;  %v14539_v52 = vmul.f32 %v14388_v25, %v16752_v17  ;;  %v16753_v13 = vsub.f32 %v13884_v45, %v14227_v7  ;;  %v16754_v3 = vsub.f32 %v13882_v2, %v14227_v7 }
 0x8ef   :  { %v14527_v41 = vmul.f32 %v14388_v25, %v16750_v16  ;;  %v14533_v37 = vmul.f32 %v14388_v25, %v16751_v51  ;;  %v16755_v16 = vsub.f32 %v13902_v55, %v14227_v7  ;;  %v16756_v58 = vsub.f32 %v13900_v15, %v14227_v7 }
 0x8f0   :  { %v14545_v6 = vmul.f32 %v14388_v25, %v16753_v13  ;;  %v14551_v39 = vmul.f32 %v14388_v25, %v16754_v3  ;;  %v16757_v51 = vsub.f32 %v13920_v50, %v14227_v7  ;;  %v16758_v17 = vsub.f32 %v13916_v5, %v14227_v7 }
 0x8f1   :  { %v14557_v20 = vmul.f32 %v14388_v25, %v16755_v16  ;;  %v14563_v45 = vmul.f32 %v14388_v25, %v16756_v58  ;;  %v16759_v13 = vsub.f32 %v13934_v38, %v14227_v7  ;;  %v16760_v3 = vsub.f32 %v13932_v62, %v14227_v7  ;;  %v14589_v16 = vpop.permute.xlu0 %7238  ;;  %v14591_v58 = vpop.permute.xlu1 %7240 }
 0x8f2   :  { %v14569_v2 = vmul.f32 %v14388_v25, %v16757_v51  ;;  %v14575_v55 = vmul.f32 %v14388_v25, %v16758_v17  ;;  %16761 = vst [vmem:[#allocation13_spill] sm:$0xff] %v14589_v16  ;;  %16762 = vst [vmem:[#allocation21_spill] sm:$0xff] %v14591_v58  ;;  %v16763_v5 = vsub.f32 %v13952_v46, %v14227_v7 }
 0x8f3   :  { %v14581_v15 = vmul.f32 %v14388_v25, %v16759_v13  ;;  %v14587_v50 = vmul.f32 %v14388_v25, %v16760_v3  ;;  %v16764_v38 = vsub.f32 %v13950_v54, %v14227_v7  ;;  %v16765_v62 = vsub.f32 %v13970_v60, %v14227_v7 }
 0x8f4   :  { %v14597_v51 = vmul.f32 %v14388_v25, %v16763_v5  ;;  %v16766_v3 = vsub.f32 %v13966_v30, %v14227_v7  ;;  %v16767_v5 = vsub.f32 %v13984_v42, %v14227_v7 }
 0x8f5   :  { %v14603_v17 = vmul.f32 %v14388_v25, %v16764_v38  ;;  %v14609_v13 = vmul.f32 %v14388_v25, %v16765_v62  ;;  %v16768_v38 = vsub.f32 %v13982_v18, %v14227_v7  ;;  %v16769_v62 = vsub.f32 %v14002_v0, %v14227_v7 }
 0x8f6   :  { %v14615_v46 = vmul.f32 %v14388_v25, %v16766_v3  ;;  %v14621_v54 = vmul.f32 %v14388_v25, %v16767_v5  ;;  %v16770_v3 = vsub.f32 %v14000_v23, %v14227_v7  ;;  %v16771_v5 = vsub.f32 %v14020_v33, %v14227_v7 }
 0x8f7   :  { %v14627_v60 = vmul.f32 %v14388_v25, %v16768_v38  ;;  %v14633_v30 = vmul.f32 %v14388_v25, %v16769_v62  ;;  %v16772_v38 = vsub.f32 %v14016_v22, %v14227_v7  ;;  %v16773_v62 = vsub.f32 %v16698_v14, %v14227_v7 }
 0x8f8   :  { %v14639_v42 = vmul.f32 %v14388_v25, %v16770_v3  ;;  %v14645_v18 = vmul.f32 %v14388_v25, %v16771_v5  ;;  %v16774_v3 = vsub.f32 %v16699_v10, %v14227_v7  ;;  %v16775_v5 = vsub.f32 %v16700_v47, %v14227_v7 }
 0x8f9   :  { %v14651_v0 = vmul.f32 %v14388_v25, %v16772_v38  ;;  %v14657_v23 = vmul.f32 %v14388_v25, %v16773_v62  ;;  %v16776_v38 = vsub.f32 %v16701_v27, %v14227_v7  ;;  %v16778_v62 = vld [vmem:[#allocation138_spill] sm:$0xff] }
 0x8fa   :  { %v14663_v33 = vmul.f32 %v14388_v25, %v16774_v3  ;;  %v14669_v22 = vmul.f32 %v14388_v25, %v16775_v5  ;;  %v16779_v58 = vsub.f32 %v16778_v62, %v14227_v7  ;;  %v16781_v3 = vld [vmem:[#allocation89_spill] sm:$0xff] }
 0x8fb   :  { %v14675_v14 = vmul.f32 %v14388_v25, %v16776_v38  ;;  %v16782_v16 = vsub.f32 %v16781_v3, %v14227_v7  ;;  %v16784_v5 = vld [vmem:[#allocation189_spill] sm:$0xff] }
 0x8fc   :  { %v14681_v10 = vmul.f32 %v14388_v25, %v16779_v58  ;;  %v16785_v34 = vsub.f32 %v16784_v5, %v14227_v7  ;;  %v16787_v38 = vld [vmem:[#allocation141_spill] sm:$0xff]  ;;  %v16790_v58 = vld [vmem:[#allocation143_spill] sm:$0xff] }
 0x8fd   :  { %16777 = vst [vmem:[#allocation109_spill] sm:$0xff] %v14675_v14  ;;  %v14687_v47 = vmul.f32 %v14388_v25, %v16782_v16  ;;  %v16788_v14 = vsub.f32 %v16787_v38, %v14227_v7  ;;  %v16793_v16 = vld [vmem:[#allocation140_spill] sm:$0xff] }
 0x8fe   :  { %16780 = vst [vmem:[#allocation112_spill] sm:$0xff] %v14681_v10  ;;  %v14693_v27 = vmul.f32 %v14388_v25, %v16785_v34  ;;  %v16791_v10 = vsub.f32 %v16790_v58, %v14227_v7  ;;  %v16796_v34 = vld [vmem:[#allocation145_spill] sm:$0xff] }
 0x8ff   :  { %16783 = vst [vmem:[#allocation158_spill] sm:$0xff] %v14687_v47  ;;  %v14699_v62 = vmul.f32 %v14388_v25, %v16788_v14  ;;  %v16794_v47 = vsub.f32 %v16793_v16, %v14227_v7  ;;  %v16799_v14 = vld [vmem:[#allocation96_spill] sm:$0xff] }
 0x900   :  { %16786 = vst [vmem:[#allocation161_spill] sm:$0xff] %v14693_v27  ;;  %v14705_v3 = vmul.f32 %v14388_v25, %v16791_v10  ;;  %v16797_v27 = vsub.f32 %v16796_v34, %v14227_v7  ;;  %v16802_v10 = vld [vmem:[#allocation98_spill] sm:$0xff] }
 0x901   :  { %16789 = vst [vmem:[#allocation17_spill] sm:$0xff] %v14699_v62  ;;  %v14711_v5 = vmul.f32 %v14388_v25, %v16794_v47  ;;  %v16800_v62 = vsub.f32 %v16799_v14, %v14227_v7  ;;  %v16804_v47 = vld [vmem:[#allocation95_spill] sm:$0xff]  ;;  %v16809_v14 = vld [vmem:[#allocation100_spill] sm:$0xff] }
 0x902   :  { %16792 = vst [vmem:[#allocation8_spill] sm:$0xff] %v14705_v3  ;;  %v14717_v38 = vmul.f32 %v14388_v25, %v16797_v27  ;;  %v16803_v3 = vsub.f32 %v16802_v10, %v14227_v7  ;;  %v14737_v27 = vpop.permute.xlu0 %7242 }
 0x903   :  { %16795 = vst [vmem:[#allocation24_spill] sm:$0xff] %v14711_v5  ;;  %v14723_v58 = vmul.f32 %v14388_v25, %v16800_v62  ;;  %v16805_v5 = vsub.f32 %v16804_v47, %v14227_v7  ;;  %16807 = vst [vmem:[#allocation11_spill] sm:$0xff] %v14737_v27  ;;  %v16810_v62 = vsub.f32 %v16809_v14, %v14227_v7  ;;  %v16812_v47 = vld [vmem:[#allocation102_spill] sm:$0xff] }
 0x904   :  { %16798 = vst [vmem:[#allocation12_spill] sm:$0xff] %v14717_v38  ;;  %v14729_v16 = vmul.f32 %v14388_v25, %v16803_v3  ;;  %v14739_v38 = vpop.permute.xlu1 %7244  ;;  %v16811_v3 = vsub.f32 %v16715_v29, %v14227_v7  ;;  %v16815_v29 = vsub.f32 %v16718_v11, %v14227_v7  ;;  %v16818_v27 = vsub.f32 %v16721_v43, %v14227_v7 }
 0x905   :  { %16801 = vst [vmem:[#allocation9_spill] sm:$0xff] %v14723_v58  ;;  %v14735_v34 = vmul.f32 %v14388_v25, %v16805_v5  ;;  %16808 = vst [vmem:[#allocation26_spill] sm:$0xff] %v14739_v38  ;;  %v14745_v58 = vmul.f32 %v14388_v25, %v16810_v62  ;;  %v16813_v5 = vsub.f32 %v16812_v47, %v14227_v7  ;;  %v14765_v62 = vpop.eup %8200 }
 0x906   :  { %v14751_v10 = vmul.f32 %v14388_v25, %v16811_v3  ;;  %v16814_v38 = vsub.f32 %v16717_v1, %v14227_v7  ;;  %v14771_v3 = vmul.f32 %v14388_v25, %v16815_v29  ;;  %v16816_v47 = vsub.f32 %v16719_v35, %v14227_v7 }
 0x907   :  { %16806 = vst [vmem:[#allocation16_spill] sm:$0xff] %v14735_v34  ;;  %v14757_v34 = vmul.f32 %v14388_v25, %v16813_v5  ;;  %v16817_v1 = vsub.f32 %v16720_v44, %v14227_v7  ;;  %v14789_v11 = vmul.f32 %v14388_v25, %v16818_v27  ;;  %v14793_v29 = vmul.f32 %v14765_v62, %v14397_v36 }
 0x908   :  { %v14763_v14 = vmul.f32 %v14388_v25, %v16814_v38  ;;  %v14777_v5 = vmul.f32 %v14388_v25, %v16816_v47  ;;  %v14797_v35 = vmul.f32 %v14765_v62, %v14403_v61  ;;  %v14801_v44 = vmul.f32 %v14765_v62, %v14409_v4 }
 0x909   :  { %v14783_v38 = vmul.f32 %v14388_v25, %v16817_v1  ;;  %v14805_v47 = vmul.f32 %v14765_v62, %v14415_v57  ;;  %v14809_v7 = vmul.f32 %v14765_v62, %v14421_v24  ;;  %v14813_v43 = vmul.f32 %v14765_v62, %v14427_v26 }
 0x90a   :  { %v14817_v36 = vmul.f32 %v14765_v62, %v14433_v53  ;;  %v14821_v4 = vmul.f32 %v14765_v62, %v14439_v49  ;;  %v14825_v25 = vmul.f32 %v14765_v62, %v14445_v32  ;;  %v14829_v61 = vmul.f32 %v14765_v62, %v14451_v40  ;;  %v14855_v40 = vpop.permute.xlu0 %7246 }
 0x90b   :  { %v14833_v57 = vmul.f32 %v14765_v62, %v14461_v19  ;;  %v14837_v24 = vmul.f32 %v14765_v62, %v14467_v48  ;;  %v14841_v26 = vmul.f32 %v14765_v62, %v14473_v63  ;;  %v14845_v53 = vmul.f32 %v14765_v62, %v14479_v9  ;;  %16819 = vst [vmem:[#allocation23_spill] sm:$0xff] %v14855_v40  ;;  %v14857_v19 = vpop.permute.xlu1 %7248  ;;  %v16830_v40 = vld [vmem:[#allocation161_spill] sm:$0xff] }
 0x90c   :  { %v14849_v49 = vmul.f32 %v14765_v62, %v14485_v8  ;;  %v14853_v32 = vmul.f32 %v14765_v62, %v14491_v56  ;;  %16820 = vst [vmem:[#allocation4_spill] sm:$0xff] %v14857_v19  ;;  %v14861_v48 = vmul.f32 %v14765_v62, %v14497_v21  ;;  %v14865_v63 = vmul.f32 %v14765_v62, %v14503_v59  ;;  %v16828_v19 = vld [vmem:[#allocation158_spill] sm:$0xff] }
 0x90d   :  { %v14869_v9 = vmul.f32 %v14765_v62, %v14509_v28  ;;  %v14873_v8 = vmul.f32 %v14765_v62, %v14515_v31  ;;  %v14877_v56 = vmul.f32 %v14765_v62, %v14521_v12  ;;  %v14881_v21 = vmul.f32 %v14765_v62, %v14527_v41 }
 0x90e   :  { %v14885_v59 = vmul.f32 %v14765_v62, %v14533_v37  ;;  %v14889_v28 = vmul.f32 %v14765_v62, %v14539_v52  ;;  %v14893_v31 = vmul.f32 %v14765_v62, %v14545_v6  ;;  %v14897_v12 = vmul.f32 %v14765_v62, %v14551_v39  ;;  %v14955_v27 = vpop.permute.xlu0 %7250 }
 0x90f   :  { %v14901_v41 = vmul.f32 %v14765_v62, %v14557_v20  ;;  %v14905_v37 = vmul.f32 %v14765_v62, %v14563_v45  ;;  %v14909_v52 = vmul.f32 %v14765_v62, %v14569_v2  ;;  %v14913_v6 = vmul.f32 %v14765_v62, %v14575_v55  ;;  %16821 = vst [vmem:[#allocation25_spill] sm:$0xff] %v14955_v27  ;;  %v16827_v27 = vld [vmem:[#allocation112_spill] sm:$0xff] }
 0x910   :  { %v14917_v39 = vmul.f32 %v14765_v62, %v14581_v15  ;;  %v14921_v20 = vmul.f32 %v14765_v62, %v14587_v50  ;;  %v14925_v45 = vmul.f32 %v14765_v62, %v14597_v51  ;;  %v14929_v2 = vmul.f32 %v14765_v62, %v14603_v17 }
 0x911   :  { %v14933_v55 = vmul.f32 %v14765_v62, %v14609_v13  ;;  %v14937_v15 = vmul.f32 %v14765_v62, %v14615_v46  ;;  %v14941_v50 = vmul.f32 %v14765_v62, %v14621_v54  ;;  %v14945_v51 = vmul.f32 %v14765_v62, %v14627_v60  ;;  %v14957_v46 = vpop.permute.xlu1 %7252 }
 0x912   :  { %v14949_v17 = vmul.f32 %v14765_v62, %v14633_v30  ;;  %v14953_v13 = vmul.f32 %v14765_v62, %v14639_v42  ;;  %16822 = vst [vmem:[#allocation7_spill] sm:$0xff] %v14957_v46  ;;  %v14961_v54 = vmul.f32 %v14765_v62, %v14645_v18  ;;  %v14965_v60 = vmul.f32 %v14765_v62, %v14651_v0  ;;  %v16825_v46 = vld [vmem:[#allocation109_spill] sm:$0xff] }
 0x913   :  { %v14969_v30 = vmul.f32 %v14765_v62, %v14657_v23  ;;  %v14973_v42 = vmul.f32 %v14765_v62, %v14663_v33  ;;  %v14977_v1 = vmul.f32 %v14765_v62, %v14669_v22  ;;  %v14981_v18 = vmul.f32 %v14765_v62, %v16825_v46 }
 0x914   :  { %v14985_v0 = vmul.f32 %v14765_v62, %v16827_v27  ;;  %v14989_v23 = vmul.f32 %v14765_v62, %v16828_v19  ;;  %v14993_v33 = vmul.f32 %v14765_v62, %v16830_v40  ;;  %v15010_v19 = vld [vmem:[%s15721_s9] ss:$0 sm:$0xff] }
 0x915   :  { %16823 = vst [vmem:[#allocation111_spill] sm:$0xff] %v14973_v42  ;;  %16824 = vst [vmem:[#allocation114_spill] sm:$0xff] %v14977_v1  ;;  %v16832_v42 = vld [vmem:[#allocation17_spill] sm:$0xff]  ;;  %v16833_v1 = vld [vmem:[#allocation8_spill] sm:$0xff] }
 0x916   :  { %16826 = vst [vmem:[#allocation160_spill] sm:$0xff] %v14981_v18  ;;  %16829 = vst [vmem:[#allocation163_spill] sm:$0xff] %v14989_v23  ;;  %v14997_v22 = vmul.f32 %v14765_v62, %v16832_v42  ;;  %v15001_v46 = vmul.f32 %v14765_v62, %v16833_v1  ;;  %v16835_v18 = vld [vmem:[#allocation24_spill] sm:$0xff]  ;;  %v15022_v1 = vmul.f32 %v14765_v62, %v14729_v16 }
 0x917   :  { %16831 = vst [vmem:[#allocation3_spill] sm:$0xff] %v14993_v33  ;;  %v15005_v27 = vmul.f32 %v14765_v62, %v16835_v18  ;;  %v16837_v23 = vld [vmem:[#allocation12_spill] sm:$0xff]  ;;  %v16838_v33 = vld [vmem:[#allocation9_spill] sm:$0xff]  ;;  %v15042_v16 = vmul.f32 %v14765_v62, %v14763_v14  ;;  %v15062_v14 = vpop.permute.xlu1 %7256 }
 0x918   :  { %16834 = vst [vmem:[#allocation32_spill] sm:$0xff] %v15001_v46  ;;  %v15014_v40 = vmul.f32 %v14765_v62, %v16837_v23  ;;  %v15018_v42 = vmul.f32 %v14765_v62, %v16838_v33  ;;  %v16839_v46 = vld [vmem:[#allocation16_spill] sm:$0xff]  ;;  %v15034_v23 = vmul.f32 %v14765_v62, %v14751_v10  ;;  %v15038_v33 = vmul.f32 %v14765_v62, %v14757_v34 }
 0x919   :  { %16836 = vst [vmem:[#allocation31_spill] sm:$0xff] %v15005_v27  ;;  %v15026_v18 = vmul.f32 %v14765_v62, %v16839_v46  ;;  %v15030_v27 = vmul.f32 %v14765_v62, %v14745_v58  ;;  %v15046_v46 = vmul.f32 %v14765_v62, %v14771_v3  ;;  %v15050_v58 = vmul.f32 %v14765_v62, %v14777_v5 }
 0x91a   :  { %16840 = vst [vmem:[#allocation34_spill] sm:$0xff] %v15038_v33  ;;  %v15054_v10 = vmul.f32 %v14765_v62, %v14783_v38  ;;  %v15058_v34 = vmul.f32 %v14765_v62, %v14789_v11  ;;  %v15060_v33 = vpop.permute.xlu0 %7254  ;;  %16842 = vst [vmem:[#allocation36_spill] sm:$0xff] %v15062_v14  ;;  %v15066_v3 = vadd.f32 %v15010_v19, %v14793_v29 }
 0x91b   :  { %16841 = vst [vmem:[#allocation33_spill] sm:$0xff] %v15060_v33  ;;  %v15070_v5 = vadd.f32 %v15010_v19, %v14797_v35  ;;  %v15074_v38 = vadd.f32 %v15010_v19, %v14801_v44  ;;  %v15078_v62 = vadd.f32 %v15010_v19, %v14805_v47  ;;  %v15082_v11 = vadd.f32 %v15010_v19, %v14809_v7 }
 0x91c   :  { %v15086_v29 = vadd.f32 %v15010_v19, %v14813_v43  ;;  %v15090_v35 = vadd.f32 %v15010_v19, %v14817_v36  ;;  %v15094_v44 = vadd.f32 %v15010_v19, %v14821_v4  ;;  %v15098_v47 = vadd.f32 %v15010_v19, %v14825_v25  ;;  %v16850_v33 = vld [vmem:[#allocation114_spill] sm:$0xff] }
 0x91d   :  { %v15102_v7 = vadd.f32 %v15010_v19, %v14829_v61  ;;  %v15106_v43 = vadd.f32 %v15010_v19, %v14833_v57  ;;  %v15110_v36 = vadd.f32 %v15010_v19, %v14837_v24  ;;  %v15114_v4 = vadd.f32 %v15010_v19, %v14841_v26 }
 0x91e   :  { %v15118_v25 = vadd.f32 %v15010_v19, %v14845_v53  ;;  %v15122_v61 = vadd.f32 %v15010_v19, %v14849_v49  ;;  %v15126_v57 = vadd.f32 %v15010_v19, %v14853_v32  ;;  %v15130_v24 = vadd.f32 %v15010_v19, %v14861_v48  ;;  %v15160_v14 = vpop.permute.xlu0 %7258 }
 0x91f   :  { %v15134_v26 = vadd.f32 %v15010_v19, %v14865_v63  ;;  %v15138_v53 = vadd.f32 %v15010_v19, %v14869_v9  ;;  %v15142_v49 = vadd.f32 %v15010_v19, %v14873_v8  ;;  %v15146_v32 = vadd.f32 %v15010_v19, %v14877_v56  ;;  %16843 = vst [vmem:[#allocation35_spill] sm:$0xff] %v15160_v14  ;;  %v15162_v8 = vpop.permute.xlu1 %7260 }
 0x920   :  { %v15150_v48 = vadd.f32 %v15010_v19, %v14881_v21  ;;  %v15154_v63 = vadd.f32 %v15010_v19, %v14885_v59  ;;  %v15158_v9 = vadd.f32 %v15010_v19, %v14889_v28  ;;  %16844 = vst [vmem:[#allocation38_spill] sm:$0xff] %v15162_v8  ;;  %v15166_v56 = vadd.f32 %v15010_v19, %v14893_v31  ;;  %v16848_v8 = vld [vmem:[#allocation111_spill] sm:$0xff] }
 0x921   :  { %v15170_v21 = vadd.f32 %v15010_v19, %v14897_v12  ;;  %v15174_v59 = vadd.f32 %v15010_v19, %v14901_v41  ;;  %v15178_v28 = vadd.f32 %v15010_v19, %v14905_v37  ;;  %v15182_v14 = vadd.f32 %v15010_v19, %v14909_v52 }
 0x922   :  { %v15186_v31 = vadd.f32 %v15010_v19, %v14913_v6  ;;  %v15190_v12 = vadd.f32 %v15010_v19, %v14917_v39  ;;  %v15194_v41 = vadd.f32 %v15010_v19, %v14921_v20  ;;  %v15198_v37 = vadd.f32 %v15010_v19, %v14925_v45 }
 0x923   :  { %v15202_v52 = vadd.f32 %v15010_v19, %v14929_v2  ;;  %v15206_v6 = vadd.f32 %v15010_v19, %v14933_v55  ;;  %v15210_v39 = vadd.f32 %v15010_v19, %v14937_v15  ;;  %v15214_v20 = vadd.f32 %v15010_v19, %v14941_v50 }
 0x924   :  { %v15218_v45 = vadd.f32 %v15010_v19, %v14945_v51  ;;  %v15222_v2 = vadd.f32 %v15010_v19, %v14949_v17  ;;  %v15226_v55 = vadd.f32 %v15010_v19, %v14953_v13  ;;  %v15230_v15 = vadd.f32 %v15010_v19, %v14961_v54 }
 0x925   :  { %v15234_v50 = vadd.f32 %v15010_v19, %v14965_v60  ;;  %v15238_v51 = vadd.f32 %v15010_v19, %v14969_v30  ;;  %v15242_v17 = vadd.f32 %v15010_v19, %v16848_v8  ;;  %v15246_v13 = vadd.f32 %v15010_v19, %v16850_v33  ;;  %v15262_v8 = vpop.permute.xlu1 %7264 }
 0x926   :  { %16845 = vst [vmem:[#allocation37_spill] sm:$0xff] %v15226_v55  ;;  %v16851_v55 = vld [vmem:[#allocation160_spill] sm:$0xff]  ;;  %v15254_v60 = vadd.f32 %v15010_v19, %v14985_v0  ;;  %16856 = vst [vmem:[#allocation165_spill] sm:$0xff] %v15262_v8  ;;  %v16863_v8 = vld [vmem:[#allocation34_spill] sm:$0xff] }
 0x927   :  { %16846 = vst [vmem:[#allocation40_spill] sm:$0xff] %v15234_v50  ;;  %16847 = vst [vmem:[#allocation39_spill] sm:$0xff] %v15238_v51  ;;  %v15250_v54 = vadd.f32 %v15010_v19, %v16851_v55  ;;  %v16854_v50 = vld [vmem:[#allocation163_spill] sm:$0xff]  ;;  %v15260_v51 = vpop.permute.xlu0 %7262  ;;  %v15270_v55 = vadd.f32 %v15010_v19, %v14997_v22  ;;  %v15290_v22 = vadd.f32 %v15010_v19, %v15022_v1 }
 0x928   :  { %16849 = vst [vmem:[#allocation42_spill] sm:$0xff] %v15242_v17  ;;  %16853 = vst [vmem:[#allocation116_spill] sm:$0xff] %v15254_v60  ;;  %v15258_v30 = vadd.f32 %v15010_v19, %v16854_v50  ;;  %v16857_v17 = vld [vmem:[#allocation3_spill] sm:$0xff]  ;;  %v15310_v1 = vadd.f32 %v15010_v19, %v15042_v16 }
 0x929   :  { %16852 = vst [vmem:[#allocation113_spill] sm:$0xff] %v15250_v54  ;;  %16855 = vst [vmem:[#allocation162_spill] sm:$0xff] %v15260_v51  ;;  %v15266_v33 = vadd.f32 %v15010_v19, %v16857_v17  ;;  %v16858_v54 = vld [vmem:[#allocation32_spill] sm:$0xff]  ;;  %v16859_v60 = vld [vmem:[#allocation31_spill] sm:$0xff]  ;;  %v15282_v51 = vadd.f32 %v15010_v19, %v15014_v40  ;;  %v15286_v17 = vadd.f32 %v15010_v19, %v15018_v42 }
 0x92a   :  { %v15274_v0 = vadd.f32 %v15010_v19, %v16858_v54  ;;  %v15278_v50 = vadd.f32 %v15010_v19, %v16859_v60  ;;  %v15294_v54 = vadd.f32 %v15010_v19, %v15026_v18  ;;  %v15298_v60 = vadd.f32 %v15010_v19, %v15030_v27  ;;  %16865 = vst [vmem:[#allocation45_spill] sm:$0xff] %v15310_v1  ;;  %v16871_v1 = vld [vmem:[#allocation85_spill] sm:$0xff] }
 0x92b   :  { %v15302_v40 = vadd.f32 %v15010_v19, %v15034_v23  ;;  %v15306_v42 = vadd.f32 %v15010_v19, %v16863_v8  ;;  %v15314_v18 = vadd.f32 %v15010_v19, %v15046_v46  ;;  %v15318_v27 = vadd.f32 %v15010_v19, %v15050_v58  ;;  %v16872_v46 = vld [vmem:[#allocation134_spill] sm:$0xff]  ;;  %v16873_v58 = vld [vmem:[#allocation183_spill] sm:$0xff] }
 0x92c   :  { %16860 = vst [vmem:[#allocation41_spill] sm:$0xff] %v15294_v54  ;;  %16861 = vst [vmem:[#allocation44_spill] sm:$0xff] %v15298_v60  ;;  %v15322_v23 = vadd.f32 %v15010_v19, %v15054_v10  ;;  %v15326_v8 = vadd.f32 %v15010_v19, %v15058_v34  ;;  %v16874_v60 = vld [vmem:[#allocation88_spill] sm:$0xff]  ;;  %v16876_v19 = vld [vmem:[#allocation186_spill] sm:$0xff] }
 0x92d   :  { %16862 = vst [vmem:[#allocation43_spill] sm:$0xff] %v15302_v40  ;;  %16864 = vst [vmem:[#allocation46_spill] sm:$0xff] %v15306_v42  ;;  %v16870_v42 = vld [vmem:[#allocation184_spill] sm:$0xff]  ;;  %v7343_v40 = vadd.f32 %v16871_v1, %v15070_v5  ;;  %v7346_v10 = vadd.f32 %v16874_v60, %v15082_v11  ;;  %v7348_v34 = vadd.f32 %v16876_v19, %v15090_v35  ;;  %v15346_v5 = vpop.permute.xlu1 %7268  ;;  %v16880_v11 = vld [vmem:[#allocation90_spill] sm:$0xff] }
 0x92e   :  { %16866 = vst [vmem:[#allocation48_spill] sm:$0xff] %v15314_v18  ;;  %16867 = vst [vmem:[#allocation47_spill] sm:$0xff] %v15318_v27  ;;  %v7342_v16 = vadd.f32 %v16870_v42, %v15066_v3  ;;  %v7344_v18 = vadd.f32 %v16872_v46, %v15074_v38  ;;  %v7345_v27 = vadd.f32 %v16873_v58, %v15078_v62  ;;  %v16877_v3 = vld [vmem:[#allocation87_spill] sm:$0xff]  ;;  %v16878_v38 = vld [vmem:[#allocation136_spill] sm:$0xff] }
 0x92f   :  { %16868 = vst [vmem:[#allocation50_spill] sm:$0xff] %v15322_v23  ;;  %16869 = vst [vmem:[#allocation49_spill] sm:$0xff] %v15326_v8  ;;  %v16875_v23 = vld [vmem:[#allocation137_spill] sm:$0xff]  ;;  %v7349_v42 = vadd.f32 %v16877_v3, %v15094_v44  ;;  %v15344_v8 = vpop.permute.xlu0 %7266  ;;  %v7350_v1 = vadd.f32 %v16878_v38, %v15098_v47  ;;  %v7352_v60 = vadd.f32 %v16880_v11, %v15106_v43  ;;  %v16882_v35 = vld [vmem:[#allocation68_spill] sm:$0xff] }
 0x930   :  { %v7347_v54 = vadd.f32 %v16875_v23, %v15086_v29  ;;  %v16879_v62 = vld [vmem:[#allocation185_spill] sm:$0xff]  ;;  %v16881_v29 = vld [vmem:[#allocation139_spill] sm:$0xff]  ;;  %7406 = vst.msk [vmem:[%s15722_s10] sm:$0xff] %vm4187_vm5, %v7342_v16  ;;  %7407 = vst.msk [vmem:[%s15722_s10 + $0x8] sm:$0xff] %vm4187_vm5, %v7343_v40  ;;  %v7354_v44 = vadd.f32 %v16882_v35, %v15114_v4 }
 0x931   :  { %v7351_v46 = vadd.f32 %v16879_v62, %v15102_v7  ;;  %v7353_v23 = vadd.f32 %v16881_v29, %v15110_v36  ;;  %7408 = vst.msk [vmem:[%s15722_s10 + $0x10] sm:$0xff] %vm4187_vm5, %v7344_v18  ;;  %7409 = vst.msk [vmem:[%s15722_s10 + $0x18] sm:$0xff] %vm4187_vm5, %v7345_v27  ;;  %v16883_v47 = vld [vmem:[#allocation70_spill] sm:$0xff]  ;;  %v16884_v43 = vld [vmem:[#allocation187_spill] sm:$0xff] }
 0x932   :  { %v7355_v7 = vadd.f32 %v16883_v47, %v15118_v25  ;;  %v7356_v36 = vadd.f32 %v16884_v43, %v15122_v61  ;;  %v16885_v40 = vld [vmem:[#allocation92_spill] sm:$0xff]  ;;  %7410 = vst.msk [vmem:[%s15722_s10 + $0x20] sm:$0xff] %vm4187_vm5, %v7346_v10  ;;  %7411 = vst.msk [vmem:[%s15722_s10 + $0x28] sm:$0xff] %vm4187_vm5, %v7347_v54  ;;  %v16886_v4 = vld [vmem:[#allocation91_spill] sm:$0xff] }
 0x933   :  { %v7357_v16 = vadd.f32 %v16885_v40, %v15126_v57  ;;  %7412 = vst.msk [vmem:[%s15722_s10 + $0x30] sm:$0xff] %vm4187_vm5, %v7348_v34  ;;  %7413 = vst.msk [vmem:[%s15722_s10 + $0x38] sm:$0xff] %vm4187_vm5, %v7349_v42  ;;  %v7358_v25 = vadd.f32 %v16886_v4, %v15130_v24  ;;  %v16887_v61 = vld [vmem:[#allocation94_spill] sm:$0xff]  ;;  %v16888_v18 = vld [vmem:[#allocation93_spill] sm:$0xff] }
 0x934   :  { %v7359_v57 = vadd.f32 %v16887_v61, %v15134_v26  ;;  %v7360_v27 = vadd.f32 %v16888_v18, %v15138_v53  ;;  %v16889_v54 = vld [vmem:[#allocation142_spill] sm:$0xff]  ;;  %7414 = vst.msk [vmem:[%s15722_s10 + $0x40] sm:$0xff] %vm4187_vm5, %v7350_v1  ;;  %7415 = vst.msk [vmem:[%s15722_s10 + $0x48] sm:$0xff] %vm4187_vm5, %v7351_v46  ;;  %v16890_v24 = vld [vmem:[#allocation144_spill] sm:$0xff] }
 0x935   :  { %v7361_v58 = vadd.f32 %v16889_v54, %v15142_v49  ;;  %7416 = vst.msk [vmem:[%s15722_s10 + $0x50] sm:$0xff] %vm4187_vm5, %v7352_v60  ;;  %7417 = vst.msk [vmem:[%s15722_s10 + $0x58] sm:$0xff] %vm4187_vm5, %v7353_v23  ;;  %v7362_v26 = vadd.f32 %v16890_v24, %v15146_v32  ;;  %v16891_v53 = vld [vmem:[#allocation147_spill] sm:$0xff]  ;;  %v16892_v10 = vld [vmem:[#allocation146_spill] sm:$0xff] }
 0x936   :  { %v7363_v49 = vadd.f32 %v16891_v53, %v15150_v48  ;;  %v7364_v19 = vadd.f32 %v16892_v10, %v15154_v63  ;;  %v16893_v34 = vld [vmem:[#allocation99_spill] sm:$0xff]  ;;  %7418 = vst.msk [vmem:[%s15722_s10 + $0x60] sm:$0xff] %vm4187_vm5, %v7354_v44  ;;  %7419 = vst.msk [vmem:[%s15722_s10 + $0x68] sm:$0xff] %vm4187_vm5, %v7355_v7  ;;  %v16894_v32 = vld [vmem:[#allocation101_spill] sm:$0xff] }
 0x937   :  { %v7365_v3 = vadd.f32 %v16893_v34, %v15158_v9  ;;  %7420 = vst.msk [vmem:[%s15722_s10 + $0x70] sm:$0xff] %vm4187_vm5, %v7356_v36  ;;  %7421 = vst.msk [vmem:[%s15722_s10 + $0x78] sm:$0xff] %vm4187_vm5, %v7357_v16  ;;  %v7366_v48 = vadd.f32 %v16894_v32, %v15166_v56  ;;  %v16895_v63 = vld [vmem:[#allocation104_spill] sm:$0xff]  ;;  %v16896_v42 = vld [vmem:[#allocation103_spill] sm:$0xff] }
 0x938   :  { %v7367_v9 = vadd.f32 %v16895_v63, %v15170_v21  ;;  %v7368_v38 = vadd.f32 %v16896_v42, %v15174_v59  ;;  %v16897_v1 = vld [vmem:[#allocation106_spill] sm:$0xff]  ;;  %7422 = vst.msk [vmem:[%s15722_s10 + $0x80] sm:$0xff] %vm4187_vm5, %v7358_v25  ;;  %7423 = vst.msk [vmem:[%s15722_s10 + $0x88] sm:$0xff] %vm4187_vm5, %v7359_v57  ;;  %v16898_v56 = vld [vmem:[#allocation152_spill] sm:$0xff] }
 0x939   :  { %v7369_v62 = vadd.f32 %v16897_v1, %v15178_v28  ;;  %7424 = vst.msk [vmem:[%s15722_s10 + $0x90] sm:$0xff] %vm4187_vm5, %v7360_v27  ;;  %7425 = vst.msk [vmem:[%s15722_s10 + $0x98] sm:$0xff] %vm4187_vm5, %v7361_v58  ;;  %v7370_v21 = vadd.f32 %v16898_v56, %v15182_v14  ;;  %v16899_v59 = vld [vmem:[#allocation155_spill] sm:$0xff]  ;;  %v16900_v46 = vld [vmem:[#allocation105_spill] sm:$0xff]  ;;  %v7271_v14 = vpop.permute.xlu0 %7270 }
 0x93a   :  { %v7371_v28 = vadd.f32 %v16899_v59, %v15186_v31  ;;  %v7372_v11 = vadd.f32 %v16900_v46, %v15190_v12  ;;  %v16901_v60 = vld [vmem:[#allocation108_spill] sm:$0xff]  ;;  %7426 = vst.msk [vmem:[%s15722_s10 + $0xa0] sm:$0xff] %vm4187_vm5, %v7362_v26  ;;  %7427 = vst.msk [vmem:[%s15722_s10 + $0xa8] sm:$0xff] %vm4187_vm5, %v7363_v49  ;;  %v7273_v31 = vpop.permute.xlu1 %7272  ;;  %v16902_v12 = vld [vmem:[#allocation154_spill] sm:$0xff] }
 0x93b   :  { %v7373_v29 = vadd.f32 %v16901_v60, %v15194_v41  ;;  %7428 = vst.msk [vmem:[%s15722_s10 + $0xb0] sm:$0xff] %vm4187_vm5, %v7364_v19  ;;  %7429 = vst.msk [vmem:[%s15722_s10 + $0xb8] sm:$0xff] %vm4187_vm5, %v7365_v3  ;;  %v7374_v41 = vadd.f32 %v16902_v12, %v15198_v37  ;;  %v16903_v23 = vld [vmem:[#allocation157_spill] sm:$0xff]  ;;  %v16904_v44 = vld [vmem:[#allocation107_spill] sm:$0xff] }
 0x93c   :  { %v7375_v35 = vadd.f32 %v16903_v23, %v15202_v52  ;;  %v7376_v47 = vadd.f32 %v16904_v44, %v15206_v6  ;;  %v16905_v7 = vld [vmem:[#allocation110_spill] sm:$0xff]  ;;  %7430 = vst.msk [vmem:[%s15722_s10 + $0xc0] sm:$0xff] %vm4187_vm5, %v7366_v48  ;;  %7431 = vst.msk [vmem:[%s15722_s10 + $0xc8] sm:$0xff] %vm4187_vm5, %v7367_v9  ;;  %v16906_v37 = vld [vmem:[#allocation156_spill] sm:$0xff] }
 0x93d   :  { %v7377_v43 = vadd.f32 %v16905_v7, %v15210_v39  ;;  %7432 = vst.msk [vmem:[%s15722_s10 + $0xd0] sm:$0xff] %vm4187_vm5, %v7368_v38  ;;  %7433 = vst.msk [vmem:[%s15722_s10 + $0xd8] sm:$0xff] %vm4187_vm5, %v7369_v62  ;;  %v7378_v52 = vadd.f32 %v16906_v37, %v15214_v20  ;;  %v16907_v6 = vld [vmem:[#allocation159_spill] sm:$0xff]  ;;  %v16909_v16 = vld [vmem:[#allocation37_spill] sm:$0xff] }
 0x93e   :  { %v7379_v39 = vadd.f32 %v16907_v6, %v15218_v45  ;;  %v16908_v36 = vld [vmem:[#allocation15_spill] sm:$0xff]  ;;  %7434 = vst.msk [vmem:[%s15722_s10 + $0xe0] sm:$0xff] %vm4187_vm5, %v7370_v21  ;;  %7435 = vst.msk [vmem:[%s15722_s10 + $0xe8] sm:$0xff] %vm4187_vm5, %v7371_v28  ;;  %v16911_v20 = vld [vmem:[#allocation20_spill] sm:$0xff] }
 0x93f   :  { %v7380_v40 = vadd.f32 %v16908_v36, %v15222_v2  ;;  %v16910_v4 = vld [vmem:[#allocation19_spill] sm:$0xff]  ;;  %7436 = vst.msk [vmem:[%s15722_s10 + $0xf0] sm:$0xff] %vm4187_vm5, %v7372_v11  ;;  %7437 = vst.msk [vmem:[%s15722_s10 + $0xf8] sm:$0xff] %vm4187_vm5, %v7373_v29  ;;  %v7382_v45 = vadd.f32 %v16911_v20, %v15230_v15  ;;  %v16912_v2 = vld [vmem:[#allocation40_spill] sm:$0xff] }
 0x940   :  { %v7381_v25 = vadd.f32 %v16910_v4, %v16909_v16  ;;  %v16913_v61 = vld [vmem:[#allocation14_spill] sm:$0xff]  ;;  %v16914_v18 = vld [vmem:[#allocation39_spill] sm:$0xff]  ;;  %7438 = vst.msk [vmem:[%s15722_s10 + $0x100] sm:$0xff] %vm4187_vm5, %v7374_v41  ;;  %7439 = vst.msk [vmem:[%s15722_s10 + $0x108] sm:$0xff] %vm4187_vm5, %v7375_v35 }
 0x941   :  { %v7383_v57 = vadd.f32 %v16913_v61, %v16912_v2  ;;  %v16915_v27 = vld [vmem:[#allocation22_spill] sm:$0xff]  ;;  %7440 = vst.msk [vmem:[%s15722_s10 + $0x110] sm:$0xff] %vm4187_vm5, %v7376_v47  ;;  %7441 = vst.msk [vmem:[%s15722_s10 + $0x118] sm:$0xff] %vm4187_vm5, %v7377_v43  ;;  %v16918_v15 = vld [vmem:[#allocation13_spill] sm:$0xff] }
 0x942   :  { %v7384_v54 = vadd.f32 %v16915_v27, %v16914_v18  ;;  %v16916_v58 = vld [vmem:[#allocation42_spill] sm:$0xff]  ;;  %v7386_v53 = vadd.f32 %v16918_v15, %v15246_v13  ;;  %v16919_v49 = vld [vmem:[#allocation113_spill] sm:$0xff]  ;;  %v16921_v34 = vld [vmem:[#allocation116_spill] sm:$0xff]  ;;  %7442 = vst.msk [vmem:[%s15722_s10 + $0x120] sm:$0xff] %vm4187_vm5, %v7378_v52 }
 0x943   :  { %v16917_v24 = vld [vmem:[#allocation18_spill] sm:$0xff]  ;;  %v16920_v10 = vld [vmem:[#allocation21_spill] sm:$0xff]  ;;  %v16922_v3 = vld [vmem:[#allocation11_spill] sm:$0xff]  ;;  %7443 = vst.msk [vmem:[%s15722_s10 + $0x128] sm:$0xff] %vm4187_vm5, %v7379_v39 }
 0x944   :  { %v7385_v26 = vadd.f32 %v16917_v24, %v16916_v58  ;;  %v7387_v19 = vadd.f32 %v16920_v10, %v16919_v49  ;;  %v7388_v32 = vadd.f32 %v16922_v3, %v16921_v34  ;;  %v16923_v48 = vld [vmem:[#allocation26_spill] sm:$0xff]  ;;  %7444 = vst.msk [vmem:[%s15722_s10 + $0x130] sm:$0xff] %vm4187_vm5, %v7380_v40  ;;  %7445 = vst.msk [vmem:[%s15722_s10 + $0x138] sm:$0xff] %vm4187_vm5, %v7381_v25  ;;  %v16924_v13 = vld [vmem:[#allocation23_spill] sm:$0xff] }
 0x945   :  { %v7389_v63 = vadd.f32 %v16923_v48, %v15258_v30  ;;  %v7390_v30 = vadd.f32 %v16924_v13, %v15266_v33  ;;  %v16925_v9 = vld [vmem:[#allocation4_spill] sm:$0xff]  ;;  %v16926_v38 = vld [vmem:[#allocation25_spill] sm:$0xff]  ;;  %v16927_v62 = vld [vmem:[#allocation7_spill] sm:$0xff]  ;;  %7446 = vst.msk [vmem:[%s15722_s10 + $0x140] sm:$0xff] %vm4187_vm5, %v7382_v45 }
 0x946   :  { %v7391_v42 = vadd.f32 %v16925_v9, %v15270_v55  ;;  %v7392_v1 = vadd.f32 %v16926_v38, %v15274_v0  ;;  %v7393_v56 = vadd.f32 %v16927_v62, %v15278_v50  ;;  %7447 = vst.msk [vmem:[%s15722_s10 + $0x148] sm:$0xff] %vm4187_vm5, %v7383_v57  ;;  %7448 = vst.msk [vmem:[%s15722_s10 + $0x150] sm:$0xff] %vm4187_vm5, %v7384_v54  ;;  %v16928_v33 = vld [vmem:[#allocation33_spill] sm:$0xff]  ;;  %v16929_v0 = vld [vmem:[#allocation36_spill] sm:$0xff] }
 0x947   :  { %7449 = vst.msk [vmem:[%s15722_s10 + $0x158] sm:$0xff] %vm4187_vm5, %v7385_v26  ;;  %v7394_v55 = vadd.f32 %v16928_v33, %v15282_v51  ;;  %v7395_v50 = vadd.f32 %v16929_v0, %v15286_v17  ;;  %v16930_v21 = vld [vmem:[#allocation35_spill] sm:$0xff]  ;;  %v16931_v28 = vld [vmem:[#allocation41_spill] sm:$0xff]  ;;  %v16932_v46 = vld [vmem:[#allocation38_spill] sm:$0xff]  ;;  %v7275_v51 = vpop.permute.xlu0 %7274  ;;  %v7277_v17 = vpop.permute.xlu1 %7276 }
 0x948   :  { %v7396_v59 = vadd.f32 %v16930_v21, %v15290_v22  ;;  %v7397_v11 = vadd.f32 %v16932_v46, %v16931_v28  ;;  %7450 = vst.msk [vmem:[%s15722_s10 + $0x160] sm:$0xff] %vm4187_vm5, %v7386_v53  ;;  %7451 = vst.msk [vmem:[%s15722_s10 + $0x168] sm:$0xff] %vm4187_vm5, %v7387_v19  ;;  %v16933_v22 = vld [vmem:[#allocation44_spill] sm:$0xff]  ;;  %v16934_v60 = vld [vmem:[#allocation162_spill] sm:$0xff] }
 0x949   :  { %7452 = vst.msk [vmem:[%s15722_s10 + $0x170] sm:$0xff] %vm4187_vm5, %v7388_v32  ;;  %7453 = vst.msk [vmem:[%s15722_s10 + $0x178] sm:$0xff] %vm4187_vm5, %v7389_v63  ;;  %v7398_v29 = vadd.f32 %v16934_v60, %v16933_v22  ;;  %v16935_v12 = vld [vmem:[#allocation43_spill] sm:$0xff]  ;;  %v16936_v41 = vld [vmem:[#allocation165_spill] sm:$0xff] }
 0x94a   :  { %v7399_v23 = vadd.f32 %v16936_v41, %v16935_v12  ;;  %v16937_v35 = vld [vmem:[#allocation46_spill] sm:$0xff]  ;;  %v16938_v47 = vld [vmem:[#allocation45_spill] sm:$0xff]  ;;  %7454 = vst.msk [vmem:[%s15722_s10 + $0x180] sm:$0xff] %vm4187_vm5, %v7390_v30  ;;  %7455 = vst.msk [vmem:[%s15722_s10 + $0x188] sm:$0xff] %vm4187_vm5, %v7391_v42 }
 0x94b   :  { %v7400_v44 = vadd.f32 %v15344_v8, %v16937_v35  ;;  %v7401_v7 = vadd.f32 %v15346_v5, %v16938_v47  ;;  %7456 = vst.msk [vmem:[%s15722_s10 + $0x190] sm:$0xff] %vm4187_vm5, %v7392_v1  ;;  %7457 = vst.msk [vmem:[%s15722_s10 + $0x198] sm:$0xff] %vm4187_vm5, %v7393_v56  ;;  %v16939_v8 = vld [vmem:[#allocation48_spill] sm:$0xff]  ;;  %v16940_v43 = vld [vmem:[#allocation47_spill] sm:$0xff] }
 0x94c   :  { %v7402_v5 = vadd.f32 %v7271_v14, %v16939_v8  ;;  %v7403_v37 = vadd.f32 %v7273_v31, %v16940_v43  ;;  %v16941_v52 = vld [vmem:[#allocation50_spill] sm:$0xff]  ;;  %v16942_v39 = vld [vmem:[#allocation49_spill] sm:$0xff]  ;;  %7458 = vst.msk [vmem:[%s15722_s10 + $0x1a0] sm:$0xff] %vm4187_vm5, %v7394_v55  ;;  %7459 = vst.msk [vmem:[%s15722_s10 + $0x1a8] sm:$0xff] %vm4187_vm5, %v7395_v50 }
 0x94d   :  { %v7404_v6 = vadd.f32 %v7275_v51, %v16941_v52  ;;  %v7405_v36 = vadd.f32 %v7277_v17, %v16942_v39  ;;  %7460 = vst.msk [vmem:[%s15722_s10 + $0x1b0] sm:$0xff] %vm4187_vm5, %v7396_v59  ;;  %7461 = vst.msk [vmem:[%s15722_s10 + $0x1b8] sm:$0xff] %vm4187_vm5, %v7397_v11 }
 0x94e   :  { %7462 = vst.msk [vmem:[%s15722_s10 + $0x1c0] sm:$0xff] %vm4187_vm5, %v7398_v29  ;;  %7463 = vst.msk [vmem:[%s15722_s10 + $0x1c8] sm:$0xff] %vm4187_vm5, %v7399_v23 }
 0x94f   :  { %7464 = vst.msk [vmem:[%s15722_s10 + $0x1d0] sm:$0xff] %vm4187_vm5, %v7400_v44  ;;  %7465 = vst.msk [vmem:[%s15722_s10 + $0x1d8] sm:$0xff] %vm4187_vm5, %v7401_v7 }
 0x950   :  { %7466 = vst.msk [vmem:[%s15722_s10 + $0x1e0] sm:$0xff] %vm4187_vm5, %v7402_v5  ;;  %7467 = vst.msk [vmem:[%s15722_s10 + $0x1e8] sm:$0xff] %vm4187_vm5, %v7403_v37 }
 0x951   :  { %7468 = vst.msk [vmem:[%s15722_s10 + $0x1f0] sm:$0xff] %vm4187_vm5, %v7404_v6  ;;  %7469 = vst.msk [vmem:[%s15722_s10 + $0x1f8] sm:$0xff] %vm4187_vm5, %v7405_v36 }

</bundles_post_ra>
